<compile_context>
chip_gen: v7x
topology: tpu7x:2x2x1
jax: 0.10.0
libtpu: 0.0.40
codegen_flags: <defaults>
</compile_context>

<pallas_src>
import functools
import struct

import jax
import jax.numpy as jnp
from jax import lax
from jax.experimental import pallas as pl
from jax.experimental.pallas import tpu as pltpu

# ---- attack config (matches typical CIFAR PGD config for this module) ----
EPSILON = 8.0 / 255.0
STEP_SIZE = 2.0 / 255.0
NUM_STEPS = 10
NUM_CLASSES = 10

# Classes padded to MXU-native lane width.  128 exactly fills a v5e MXU pass;
# the kernel is VALU/load bound (not MXU bound), so padding to 256 on v6e/v7x
# would only burn VMEM and bandwidth.
C_PAD = 128

# Bit pattern of +STEP_SIZE as float32 (for the copysign bit-trick) and the
# float32 sign-bit mask, both compile-time Python constants.
_STEP_BITS = struct.unpack("<i", struct.pack("<f", STEP_SIZE))[0]
_SIGN_MASK = -(2 ** 31)  # 0x8000_0000 as int32

# fori_loop unroll for the 10-step attack.  The body is loop-carried on the
# whole (TILE_B, D) tile so there is little cross-iteration ILP; sweep
# True / 2 / False per generation (partial unroll tends to help on v7x where
# VMEM spill headroom is tighter).
PGD_UNROLL = True


def _round_up(x, m):
    return ((x + m - 1) // m) * m


def _pgd_ce_kernel(org_ref, x0_ref, w_ref, b_ref, tgt_ref, o_ref, *,
                   epsilon, num_steps, step_bits, unroll):
    """Full num_steps PGD loop on one VMEM-resident (TILE_B, D) batch tile.

    org_ref : (TILE_B, D)   f32   clean images (projection center)
    x0_ref  : (TILE_B, D)   f32   org + uniform(-eps, eps) random init
    w_ref   : (D, C_PAD)    bf16  linear classifier weight (zero pad cols)
    b_ref   : (1, C_PAD)    f32   bias; pad lanes = -1e30 (kills pad softmax)
    tgt_ref : (TILE_B, 1)   i32   class labels (one-hot built in-kernel)
    o_ref   : (TILE_B, D)   f32   adversarial images out
    """
    org = org_ref[...]
    x0 = x0_ref[...]
    w = w_ref[...]
    tb, _ = org.shape
    cp = w.shape[1]

    # Hoisted out of the step loop (JAX does not CSE broadcast_in_dim).
    b_bcast = jnp.broadcast_to(b_ref[...], (tb, cp))
    # One-hot targets built from the tiny int32 column (no f32 onehot stream);
    # pad columns / pad rows stay exactly zero.
    cls = lax.broadcasted_iota(jnp.int32, (tb, cp), 1)
    y = (cls == tgt_ref[...]).astype(jnp.float32)

    sign_mask = jnp.int32(_SIGN_MASK)
    step_const = jnp.int32(step_bits)

    def body(_, x):
        # forward: logits = x @ W + b   (MXU, bf16 operands, f32 accumulation)
        x_bf = x.astype(jnp.bfloat16)
        logits = jnp.dot(x_bf, w, preferred_element_type=jnp.float32) + b_bcast
        # d(sum-CE)/d(logits) = softmax(logits) - onehot(target)
        m = jnp.max(logits, axis=-1, keepdims=True)
        e = jnp.exp(logits - m)
        # NOTE: plain divide (portable); on the Mosaic path this could be
        # pl.reciprocal(..., approx=True) to push the recip onto the EUP.
        p = e / jnp.sum(e, axis=-1, keepdims=True)
        g_logits = (p - y).astype(jnp.bfloat16)
        # backward to input: g_x = g_logits @ W^T, expressed as a contraction
        # over the class dim of W directly (no separately shipped transpose).
        g_x = lax.dot_general(g_logits, w,
                              dimension_numbers=(((1,), (1,)), ((), ())),
                              preferred_element_type=jnp.float32)
        # PGD step via copysign bit-trick: 2 bitwise ops + 1 add instead of
        # sign()'s compare/select/mul chain.  Semantic delta: g_x == 0 gives
        # +/-step instead of 0; bounded by the projection below.
        g_bits = lax.bitcast_convert_type(g_x, jnp.int32)
        signed_step = lax.bitcast_convert_type(
            lax.bitwise_or(lax.bitwise_and(g_bits, sign_mask), step_const),
            jnp.float32)
        x = x + signed_step
        # Projection onto the eps-ball around org intersected with [0, 1],
        # written as a delta clip so no resident lo/hi tensors are re-streamed
        # every step (only `org` stays live across the loop).
        delta = jnp.clip(x - org, -epsilon, epsilon)
        return jnp.clip(org + delta, 0.0, 1.0)

    o_ref[...] = lax.fori_loop(0, num_steps, body, x0, unroll=unroll)


def attack_pgd_ce(images_org, target, w, b, key):
    """JAX wrapper reproducing AttackPGD_ce.forward (linear head).

    images_org: (B, C, H, W) float32 in [0, 1]
    target    : (B,) int32 class labels
    w         : (D, NUM_CLASSES) float32
    b         : (NUM_CLASSES,) float32
    key       : jax PRNG key for the attack's uniform(-eps, eps) init
    """
    B, C, H, W_ = images_org.shape
    D = C * H * W_
    assert D % 128 == 0, "flattened image dim must be lane-aligned (mult of 128)"

    org_flat = images_org.reshape(B, D).astype(jnp.float32)

    # Random init generated with the portable JAX PRNG (the Mosaic-only
    # pltpu.prng_* path does not lower in interpret mode); read once per tile.
    noise = jax.random.uniform(key, (B, D), jnp.float32,
                               minval=-EPSILON, maxval=EPSILON)
    x0_flat = org_flat + noise

    # Batch tiling: multiples of 16 (bf16 packs two rows per sublane), capped
    # at 128 so the per-tile working set fits v7x's 64 MiB VMEM.  v5e/v6e have
    # 128 MiB and can afford TILE_B=256 -- worth sweeping there.
    b16 = _round_up(B, 16)
    TILE_B = min(128, b16)
    # v7x megacore: ensure the parallel batch grid has >= 2 steps when the
    # batch is big enough to split across the two TensorCores.
    if b16 // TILE_B < 2 and TILE_B >= 32:
        TILE_B = _round_up(TILE_B // 2, 16)
    B_pad = _round_up(B, TILE_B)

    if B_pad != B:
        org_flat = jnp.pad(org_flat, ((0, B_pad - B), (0, 0)))
        x0_flat = jnp.pad(x0_flat, ((0, B_pad - B), (0, 0)))

    # Class-dim padding to MXU-native width; weights shipped once as bf16.
    w_pad = jnp.zeros((D, C_PAD), jnp.float32).at[:, :NUM_CLASSES].set(
        w.astype(jnp.float32))
    w_bf = w_pad.astype(jnp.bfloat16)
    # Pad-lane bias = -1e30 so softmax mass on pad lanes is exactly ~0.
    b_pad = jnp.full((1, C_PAD), -1e30, jnp.float32).at[0, :NUM_CLASSES].set(
        b.astype(jnp.float32))
    # Targets shipped as a tiny (B_pad, 1) int32 column; one-hot built in-kernel.
    tgt = jnp.zeros((B_pad, 1), jnp.int32).at[:B, 0].set(
        target.astype(jnp.int32))

    kernel = functools.partial(_pgd_ce_kernel,
                               epsilon=EPSILON,
                               num_steps=NUM_STEPS,
                               step_bits=_STEP_BITS,
                               unroll=PGD_UNROLL)

    grid = (B_pad // TILE_B,)
    # Grid-invariant operands fetched once -> single-buffered to save VMEM.
    weight_spec = pl.BlockSpec((D, C_PAD), lambda i: (0, 0),
                               pipeline_mode=pl.Buffered(1))
    bias_spec = pl.BlockSpec((1, C_PAD), lambda i: (0, 0),
                             pipeline_mode=pl.Buffered(1))

    out_flat = pl.pallas_call(
        kernel,
        out_shape=jax.ShapeDtypeStruct((B_pad, D), jnp.float32),
        grid=grid,
        in_specs=[
            pl.BlockSpec((TILE_B, D), lambda i: (i, 0)),   # org
            pl.BlockSpec((TILE_B, D), lambda i: (i, 0)),   # x0 (random init)
            weight_spec,                                   # W (bf16, padded)
            bias_spec,                                     # bias (-1e30 pads)
            pl.BlockSpec((TILE_B, 1), lambda i: (i, 0)),   # int32 targets
        ],
        out_specs=pl.BlockSpec((TILE_B, D), lambda i: (i, 0)),
        compiler_params=pltpu.CompilerParams(
            dimension_semantics=("parallel",),
            vmem_limit_bytes=40 * 1024 * 1024,   # headroom on v7x's 64 MiB
        ),
    )(org_flat, x0_flat, w_bf, b_pad, tgt)

    return out_flat[:B].reshape(B, C, H, W_)


if __name__ == "__main__":
    key = jax.random.PRNGKey(0)
    k_img, k_w, k_b, k_tgt, k_noise = jax.random.split(key, 5)

    # small shapes consistent with the module: batch=2, channels=4, spatial=16
    B, C, H, W = 2, 4, 16, 16
    D = C * H * W

    images_org = jax.random.uniform(k_img, (B, C, H, W), jnp.float32)  # [0,1]
    target = jax.random.randint(k_tgt, (B,), 0, NUM_CLASSES, dtype=jnp.int32)

    # deterministic synthetic classifier parameters
    w = 0.02 * jax.random.normal(k_w, (D, NUM_CLASSES), jnp.float32)
    b = 0.01 * jax.random.normal(k_b, (NUM_CLASSES,), jnp.float32)

    x_adv = attack_pgd_ce(images_org, target, w, b, key=k_noise)
    x_adv = jax.block_until_ready(x_adv)

    # sanity: result stays in the eps-ball around the clean image and in [0,1]
    assert x_adv.shape == images_org.shape
    assert bool(jnp.all(jnp.isfinite(x_adv)))
    assert bool(jnp.all(x_adv >= 0.0)) and bool(jnp.all(x_adv <= 1.0))
    assert bool(jnp.all(jnp.abs(x_adv - images_org) <= EPSILON + 1e-6))

    print("KERNEL_OK")
</pallas_src>

<mosaic_0001>
module attributes {stable_mosaic.version = 11 : i64} {
  func.func @_pgd_ce_kernel(%arg0: i32, %arg1: memref<16x1024xf32, #tpu.memory_space<vmem>>, %arg2: memref<16x1024xf32, #tpu.memory_space<vmem>>, %arg3: memref<1024x128xbf16, #tpu.memory_space<vmem>>, %arg4: memref<1x128xf32, #tpu.memory_space<vmem>>, %arg5: memref<16x1xi32, #tpu.memory_space<vmem>>, %arg6: memref<16x1024xf32, #tpu.memory_space<vmem>>) attributes {dimension_semantics = [#tpu.dimension_semantics<parallel>], iteration_bounds = array<i64: 1>, scalar_prefetch = 0 : i64, scratch_operands = 0 : i64, tpu.core_type = #tpu.core_type<tc>, window_params = [{transform_indices = @transform_0, window_bounds = array<i64: 16, 1024>}, {transform_indices = @transform_1, window_bounds = array<i64: 16, 1024>}, {pipeline_mode = #tpu.pipeline_mode<synchronous>, transform_indices = @transform_2, window_bounds = array<i64: 1024, 128>}, {pipeline_mode = #tpu.pipeline_mode<synchronous>, transform_indices = @transform_3, window_bounds = array<i64: 1, 128>}, {transform_indices = @transform_4, window_bounds = array<i64: 16, 1>}, {transform_indices = @transform_5, window_bounds = array<i64: 16, 1024>}]} {
    %c0 = arith.constant 0 : index
    %c0_0 = arith.constant 0 : index
    %0 = vector.load %arg1[%c0, %c0_0] : memref<16x1024xf32, #tpu.memory_space<vmem>>, vector<16x1024xf32>
    %c0_1 = arith.constant 0 : index
    %c0_2 = arith.constant 0 : index
    %1 = vector.load %arg2[%c0_1, %c0_2] : memref<16x1024xf32, #tpu.memory_space<vmem>>, vector<16x1024xf32>
    %c0_3 = arith.constant 0 : index
    %c0_4 = arith.constant 0 : index
    %2 = vector.load %arg3[%c0_3, %c0_4] : memref<1024x128xbf16, #tpu.memory_space<vmem>>, vector<1024x128xbf16>
    %c0_5 = arith.constant 0 : index
    %c0_6 = arith.constant 0 : index
    %3 = vector.load %arg4[%c0_5, %c0_6] : memref<1x128xf32, #tpu.memory_space<vmem>>, vector<1x128xf32>
    %4 = vector.shape_cast %3 : vector<1x128xf32> to vector<1x128xf32>
    %5 = vector.broadcast %4 : vector<1x128xf32> to vector<16x128xf32>
    %6 = tpu.iota {dimensions = array<i32: 1>} : vector<16x128xi32>
    %c0_7 = arith.constant 0 : index
    %c0_8 = arith.constant 0 : index
    %7 = vector.load %arg5[%c0_7, %c0_8] : memref<16x1xi32, #tpu.memory_space<vmem>>, vector<16x1xi32>
    %8 = vector.broadcast %7 : vector<16x1xi32> to vector<16x128xi32>
    %9 = arith.cmpi eq, %6, %8 : vector<16x128xi32>
    %10 = arith.extui %9 : vector<16x128xi1> to vector<16x128xi32>
    %11 = arith.sitofp %10 : vector<16x128xi32> to vector<16x128xf32>
    %c-2147483648_i32 = arith.constant -2147483648 : i32
    %c1006665857_i32 = arith.constant 1006665857 : i32
    %c0_i32 = arith.constant 0 : i32
    %12 = arith.truncf %1 : vector<16x1024xf32> to vector<16x1024xbf16>
    %cst = arith.constant dense<0.000000e+00> : vector<16x128xf32>
    %13 = tpu.matmul %12, %2, %cst {dimension_numbers = #tpu.dot_dimension_numbers<[1], [0], [0], [1], [0, 0, 1, 1], [], []>} : vector<16x1024xbf16>, vector<1024x128xbf16>, vector<16x128xf32> -> vector<16x128xf32>
    %14 = arith.addf %13, %5 : vector<16x128xf32>
    %cst_9 = arith.constant dense<0xFF800000> : vector<16xf32>
    %15 = vector.multi_reduction <maximumf>, %14, %cst_9 [1] : vector<16x128xf32> to vector<16xf32>
    %16 = vector.shape_cast %15 : vector<16xf32> to vector<16x1xf32>
    %17 = vector.broadcast %16 : vector<16x1xf32> to vector<16x128xf32>
    %18 = arith.subf %14, %17 : vector<16x128xf32>
    %19 = math.exp %18 : vector<16x128xf32>
    %cst_10 = arith.constant dense<0.000000e+00> : vector<16xf32>
    %20 = vector.multi_reduction <add>, %19, %cst_10 [1] : vector<16x128xf32> to vector<16xf32>
    %21 = vector.shape_cast %20 : vector<16xf32> to vector<16x1xf32>
    %22 = vector.broadcast %21 : vector<16x1xf32> to vector<16x128xf32>
    %23 = arith.divf %19, %22 : vector<16x128xf32>
    %24 = arith.subf %23, %11 : vector<16x128xf32>
    %25 = arith.truncf %24 : vector<16x128xf32> to vector<16x128xbf16>
    %cst_11 = arith.constant dense<0.000000e+00> : vector<16x1024xf32>
    %26 = tpu.matmul %25, %2, %cst_11 {dimension_numbers = #tpu.dot_dimension_numbers<[1], [1], [0], [0], [0, 0, 1, 0], [], []>} : vector<16x128xbf16>, vector<1024x128xbf16>, vector<16x1024xf32> -> vector<16x1024xf32>
    %27 = tpu.bitcast %26 : vector<16x1024xf32> -> vector<16x1024xi32>
    %28 = vector.broadcast %c-2147483648_i32 : i32 to vector<16x1024xi32>
    %29 = arith.andi %27, %28 : vector<16x1024xi32>
    %30 = vector.broadcast %c1006665857_i32 : i32 to vector<16x1024xi32>
    %31 = arith.ori %29, %30 : vector<16x1024xi32>
    %32 = tpu.bitcast %31 : vector<16x1024xi32> -> vector<16x1024xf32>
    %33 = arith.addf %1, %32 : vector<16x1024xf32>
    %34 = arith.subf %33, %0 : vector<16x1024xf32>
    %cst_12 = arith.constant -0.0313725509 : f32
    %cst_13 = arith.constant 0.0313725509 : f32
    %35 = vector.broadcast %cst_12 : f32 to vector<16x1024xf32>
    %36 = arith.maximumf %35, %34 : vector<16x1024xf32>
    %37 = vector.broadcast %cst_13 : f32 to vector<16x1024xf32>
    %38 = arith.minimumf %37, %36 : vector<16x1024xf32>
    %39 = arith.addf %0, %38 : vector<16x1024xf32>
    %cst_14 = arith.constant 0.000000e+00 : f32
    %cst_15 = arith.constant 1.000000e+00 : f32
    %40 = vector.broadcast %cst_14 : f32 to vector<16x1024xf32>
    %41 = arith.maximumf %40, %39 : vector<16x1024xf32>
    %42 = vector.broadcast %cst_15 : f32 to vector<16x1024xf32>
    %43 = arith.minimumf %42, %41 : vector<16x1024xf32>
    %c1_i32 = arith.constant 1 : i32
    %44 = arith.truncf %43 : vector<16x1024xf32> to vector<16x1024xbf16>
    %cst_16 = arith.constant dense<0.000000e+00> : vector<16x128xf32>
    %45 = tpu.matmul %44, %2, %cst_16 {dimension_numbers = #tpu.dot_dimension_numbers<[1], [0], [0], [1], [0, 0, 1, 1], [], []>} : vector<16x1024xbf16>, vector<1024x128xbf16>, vector<16x128xf32> -> vector<16x128xf32>
    %46 = arith.addf %45, %5 : vector<16x128xf32>
    %cst_17 = arith.constant dense<0xFF800000> : vector<16xf32>
    %47 = vector.multi_reduction <maximumf>, %46, %cst_17 [1] : vector<16x128xf32> to vector<16xf32>
    %48 = vector.shape_cast %47 : vector<16xf32> to vector<16x1xf32>
    %49 = vector.broadcast %48 : vector<16x1xf32> to vector<16x128xf32>
    %50 = arith.subf %46, %49 : vector<16x128xf32>
    %51 = math.exp %50 : vector<16x128xf32>
    %cst_18 = arith.constant dense<0.000000e+00> : vector<16xf32>
    %52 = vector.multi_reduction <add>, %51, %cst_18 [1] : vector<16x128xf32> to vector<16xf32>
    %53 = vector.shape_cast %52 : vector<16xf32> to vector<16x1xf32>
    %54 = vector.broadcast %53 : vector<16x1xf32> to vector<16x128xf32>
    %55 = arith.divf %51, %54 : vector<16x128xf32>
    %56 = arith.subf %55, %11 : vector<16x128xf32>
    %57 = arith.truncf %56 : vector<16x128xf32> to vector<16x128xbf16>
    %cst_19 = arith.constant dense<0.000000e+00> : vector<16x1024xf32>
    %58 = tpu.matmul %57, %2, %cst_19 {dimension_numbers = #tpu.dot_dimension_numbers<[1], [1], [0], [0], [0, 0, 1, 0], [], []>} : vector<16x128xbf16>, vector<1024x128xbf16>, vector<16x1024xf32> -> vector<16x1024xf32>
    %59 = tpu.bitcast %58 : vector<16x1024xf32> -> vector<16x1024xi32>
    %60 = vector.broadcast %c-2147483648_i32 : i32 to vector<16x1024xi32>
    %61 = arith.andi %59, %60 : vector<16x1024xi32>
    %62 = vector.broadcast %c1006665857_i32 : i32 to vector<16x1024xi32>
    %63 = arith.ori %61, %62 : vector<16x1024xi32>
    %64 = tpu.bitcast %63 : vector<16x1024xi32> -> vector<16x1024xf32>
    %65 = arith.addf %43, %64 : vector<16x1024xf32>
    %66 = arith.subf %65, %0 : vector<16x1024xf32>
    %cst_20 = arith.constant -0.0313725509 : f32
    %cst_21 = arith.constant 0.0313725509 : f32
    %67 = vector.broadcast %cst_20 : f32 to vector<16x1024xf32>
    %68 = arith.maximumf %67, %66 : vector<16x1024xf32>
    %69 = vector.broadcast %cst_21 : f32 to vector<16x1024xf32>
    %70 = arith.minimumf %69, %68 : vector<16x1024xf32>
    %71 = arith.addf %0, %70 : vector<16x1024xf32>
    %cst_22 = arith.constant 0.000000e+00 : f32
    %cst_23 = arith.constant 1.000000e+00 : f32
    %72 = vector.broadcast %cst_22 : f32 to vector<16x1024xf32>
    %73 = arith.maximumf %72, %71 : vector<16x1024xf32>
    %74 = vector.broadcast %cst_23 : f32 to vector<16x1024xf32>
    %75 = arith.minimumf %74, %73 : vector<16x1024xf32>
    %c2_i32 = arith.constant 2 : i32
    %76 = arith.truncf %75 : vector<16x1024xf32> to vector<16x1024xbf16>
    %cst_24 = arith.constant dense<0.000000e+00> : vector<16x128xf32>
    %77 = tpu.matmul %76, %2, %cst_24 {dimension_numbers = #tpu.dot_dimension_numbers<[1], [0], [0], [1], [0, 0, 1, 1], [], []>} : vector<16x1024xbf16>, vector<1024x128xbf16>, vector<16x128xf32> -> vector<16x128xf32>
    %78 = arith.addf %77, %5 : vector<16x128xf32>
    %cst_25 = arith.constant dense<0xFF800000> : vector<16xf32>
    %79 = vector.multi_reduction <maximumf>, %78, %cst_25 [1] : vector<16x128xf32> to vector<16xf32>
    %80 = vector.shape_cast %79 : vector<16xf32> to vector<16x1xf32>
    %81 = vector.broadcast %80 : vector<16x1xf32> to vector<16x128xf32>
    %82 = arith.subf %78, %81 : vector<16x128xf32>
    %83 = math.exp %82 : vector<16x128xf32>
    %cst_26 = arith.constant dense<0.000000e+00> : vector<16xf32>
    %84 = vector.multi_reduction <add>, %83, %cst_26 [1] : vector<16x128xf32> to vector<16xf32>
    %85 = vector.shape_cast %84 : vector<16xf32> to vector<16x1xf32>
    %86 = vector.broadcast %85 : vector<16x1xf32> to vector<16x128xf32>
    %87 = arith.divf %83, %86 : vector<16x128xf32>
    %88 = arith.subf %87, %11 : vector<16x128xf32>
    %89 = arith.truncf %88 : vector<16x128xf32> to vector<16x128xbf16>
    %cst_27 = arith.constant dense<0.000000e+00> : vector<16x1024xf32>
    %90 = tpu.matmul %89, %2, %cst_27 {dimension_numbers = #tpu.dot_dimension_numbers<[1], [1], [0], [0], [0, 0, 1, 0], [], []>} : vector<16x128xbf16>, vector<1024x128xbf16>, vector<16x1024xf32> -> vector<16x1024xf32>
    %91 = tpu.bitcast %90 : vector<16x1024xf32> -> vector<16x1024xi32>
    %92 = vector.broadcast %c-2147483648_i32 : i32 to vector<16x1024xi32>
    %93 = arith.andi %91, %92 : vector<16x1024xi32>
    %94 = vector.broadcast %c1006665857_i32 : i32 to vector<16x1024xi32>
    %95 = arith.ori %93, %94 : vector<16x1024xi32>
    %96 = tpu.bitcast %95 : vector<16x1024xi32> -> vector<16x1024xf32>
    %97 = arith.addf %75, %96 : vector<16x1024xf32>
    %98 = arith.subf %97, %0 : vector<16x1024xf32>
    %cst_28 = arith.constant -0.0313725509 : f32
    %cst_29 = arith.constant 0.0313725509 : f32
    %99 = vector.broadcast %cst_28 : f32 to vector<16x1024xf32>
    %100 = arith.maximumf %99, %98 : vector<16x1024xf32>
    %101 = vector.broadcast %cst_29 : f32 to vector<16x1024xf32>
    %102 = arith.minimumf %101, %100 : vector<16x1024xf32>
    %103 = arith.addf %0, %102 : vector<16x1024xf32>
    %cst_30 = arith.constant 0.000000e+00 : f32
    %cst_31 = arith.constant 1.000000e+00 : f32
    %104 = vector.broadcast %cst_30 : f32 to vector<16x1024xf32>
    %105 = arith.maximumf %104, %103 : vector<16x1024xf32>
    %106 = vector.broadcast %cst_31 : f32 to vector<16x1024xf32>
    %107 = arith.minimumf %106, %105 : vector<16x1024xf32>
    %c3_i32 = arith.constant 3 : i32
    %108 = arith.truncf %107 : vector<16x1024xf32> to vector<16x1024xbf16>
    %cst_32 = arith.constant dense<0.000000e+00> : vector<16x128xf32>
    %109 = tpu.matmul %108, %2, %cst_32 {dimension_numbers = #tpu.dot_dimension_numbers<[1], [0], [0], [1], [0, 0, 1, 1], [], []>} : vector<16x1024xbf16>, vector<1024x128xbf16>, vector<16x128xf32> -> vector<16x128xf32>
    %110 = arith.addf %109, %5 : vector<16x128xf32>
    %cst_33 = arith.constant dense<0xFF800000> : vector<16xf32>
    %111 = vector.multi_reduction <maximumf>, %110, %cst_33 [1] : vector<16x128xf32> to vector<16xf32>
    %112 = vector.shape_cast %111 : vector<16xf32> to vector<16x1xf32>
    %113 = vector.broadcast %112 : vector<16x1xf32> to vector<16x128xf32>
    %114 = arith.subf %110, %113 : vector<16x128xf32>
    %115 = math.exp %114 : vector<16x128xf32>
    %cst_34 = arith.constant dense<0.000000e+00> : vector<16xf32>
    %116 = vector.multi_reduction <add>, %115, %cst_34 [1] : vector<16x128xf32> to vector<16xf32>
    %117 = vector.shape_cast %116 : vector<16xf32> to vector<16x1xf32>
    %118 = vector.broadcast %117 : vector<16x1xf32> to vector<16x128xf32>
    %119 = arith.divf %115, %118 : vector<16x128xf32>
    %120 = arith.subf %119, %11 : vector<16x128xf32>
    %121 = arith.truncf %120 : vector<16x128xf32> to vector<16x128xbf16>
    %cst_35 = arith.constant dense<0.000000e+00> : vector<16x1024xf32>
    %122 = tpu.matmul %121, %2, %cst_35 {dimension_numbers = #tpu.dot_dimension_numbers<[1], [1], [0], [0], [0, 0, 1, 0], [], []>} : vector<16x128xbf16>, vector<1024x128xbf16>, vector<16x1024xf32> -> vector<16x1024xf32>
    %123 = tpu.bitcast %122 : vector<16x1024xf32> -> vector<16x1024xi32>
    %124 = vector.broadcast %c-2147483648_i32 : i32 to vector<16x1024xi32>
    %125 = arith.andi %123, %124 : vector<16x1024xi32>
    %126 = vector.broadcast %c1006665857_i32 : i32 to vector<16x1024xi32>
    %127 = arith.ori %125, %126 : vector<16x1024xi32>
    %128 = tpu.bitcast %127 : vector<16x1024xi32> -> vector<16x1024xf32>
    %129 = arith.addf %107, %128 : vector<16x1024xf32>
    %130 = arith.subf %129, %0 : vector<16x1024xf32>
    %cst_36 = arith.constant -0.0313725509 : f32
    %cst_37 = arith.constant 0.0313725509 : f32
    %131 = vector.broadcast %cst_36 : f32 to vector<16x1024xf32>
    %132 = arith.maximumf %131, %130 : vector<16x1024xf32>
    %133 = vector.broadcast %cst_37 : f32 to vector<16x1024xf32>
    %134 = arith.minimumf %133, %132 : vector<16x1024xf32>
    %135 = arith.addf %0, %134 : vector<16x1024xf32>
    %cst_38 = arith.constant 0.000000e+00 : f32
    %cst_39 = arith.constant 1.000000e+00 : f32
    %136 = vector.broadcast %cst_38 : f32 to vector<16x1024xf32>
    %137 = arith.maximumf %136, %135 : vector<16x1024xf32>
    %138 = vector.broadcast %cst_39 : f32 to vector<16x1024xf32>
    %139 = arith.minimumf %138, %137 : vector<16x1024xf32>
    %c4_i32 = arith.constant 4 : i32
    %140 = arith.truncf %139 : vector<16x1024xf32> to vector<16x1024xbf16>
    %cst_40 = arith.constant dense<0.000000e+00> : vector<16x128xf32>
    %141 = tpu.matmul %140, %2, %cst_40 {dimension_numbers = #tpu.dot_dimension_numbers<[1], [0], [0], [1], [0, 0, 1, 1], [], []>} : vector<16x1024xbf16>, vector<1024x128xbf16>, vector<16x128xf32> -> vector<16x128xf32>
    %142 = arith.addf %141, %5 : vector<16x128xf32>
    %cst_41 = arith.constant dense<0xFF800000> : vector<16xf32>
    %143 = vector.multi_reduction <maximumf>, %142, %cst_41 [1] : vector<16x128xf32> to vector<16xf32>
    %144 = vector.shape_cast %143 : vector<16xf32> to vector<16x1xf32>
    %145 = vector.broadcast %144 : vector<16x1xf32> to vector<16x128xf32>
    %146 = arith.subf %142, %145 : vector<16x128xf32>
    %147 = math.exp %146 : vector<16x128xf32>
    %cst_42 = arith.constant dense<0.000000e+00> : vector<16xf32>
    %148 = vector.multi_reduction <add>, %147, %cst_42 [1] : vector<16x128xf32> to vector<16xf32>
    %149 = vector.shape_cast %148 : vector<16xf32> to vector<16x1xf32>
    %150 = vector.broadcast %149 : vector<16x1xf32> to vector<16x128xf32>
    %151 = arith.divf %147, %150 : vector<16x128xf32>
    %152 = arith.subf %151, %11 : vector<16x128xf32>
    %153 = arith.truncf %152 : vector<16x128xf32> to vector<16x128xbf16>
    %cst_43 = arith.constant dense<0.000000e+00> : vector<16x1024xf32>
    %154 = tpu.matmul %153, %2, %cst_43 {dimension_numbers = #tpu.dot_dimension_numbers<[1], [1], [0], [0], [0, 0, 1, 0], [], []>} : vector<16x128xbf16>, vector<1024x128xbf16>, vector<16x1024xf32> -> vector<16x1024xf32>
    %155 = tpu.bitcast %154 : vector<16x1024xf32> -> vector<16x1024xi32>
    %156 = vector.broadcast %c-2147483648_i32 : i32 to vector<16x1024xi32>
    %157 = arith.andi %155, %156 : vector<16x1024xi32>
    %158 = vector.broadcast %c1006665857_i32 : i32 to vector<16x1024xi32>
    %159 = arith.ori %157, %158 : vector<16x1024xi32>
    %160 = tpu.bitcast %159 : vector<16x1024xi32> -> vector<16x1024xf32>
    %161 = arith.addf %139, %160 : vector<16x1024xf32>
    %162 = arith.subf %161, %0 : vector<16x1024xf32>
    %cst_44 = arith.constant -0.0313725509 : f32
    %cst_45 = arith.constant 0.0313725509 : f32
    %163 = vector.broadcast %cst_44 : f32 to vector<16x1024xf32>
    %164 = arith.maximumf %163, %162 : vector<16x1024xf32>
    %165 = vector.broadcast %cst_45 : f32 to vector<16x1024xf32>
    %166 = arith.minimumf %165, %164 : vector<16x1024xf32>
    %167 = arith.addf %0, %166 : vector<16x1024xf32>
    %cst_46 = arith.constant 0.000000e+00 : f32
    %cst_47 = arith.constant 1.000000e+00 : f32
    %168 = vector.broadcast %cst_46 : f32 to vector<16x1024xf32>
    %169 = arith.maximumf %168, %167 : vector<16x1024xf32>
    %170 = vector.broadcast %cst_47 : f32 to vector<16x1024xf32>
    %171 = arith.minimumf %170, %169 : vector<16x1024xf32>
    %c5_i32 = arith.constant 5 : i32
    %172 = arith.truncf %171 : vector<16x1024xf32> to vector<16x1024xbf16>
    %cst_48 = arith.constant dense<0.000000e+00> : vector<16x128xf32>
    %173 = tpu.matmul %172, %2, %cst_48 {dimension_numbers = #tpu.dot_dimension_numbers<[1], [0], [0], [1], [0, 0, 1, 1], [], []>} : vector<16x1024xbf16>, vector<1024x128xbf16>, vector<16x128xf32> -> vector<16x128xf32>
    %174 = arith.addf %173, %5 : vector<16x128xf32>
    %cst_49 = arith.constant dense<0xFF800000> : vector<16xf32>
    %175 = vector.multi_reduction <maximumf>, %174, %cst_49 [1] : vector<16x128xf32> to vector<16xf32>
    %176 = vector.shape_cast %175 : vector<16xf32> to vector<16x1xf32>
    %177 = vector.broadcast %176 : vector<16x1xf32> to vector<16x128xf32>
    %178 = arith.subf %174, %177 : vector<16x128xf32>
    %179 = math.exp %178 : vector<16x128xf32>
    %cst_50 = arith.constant dense<0.000000e+00> : vector<16xf32>
    %180 = vector.multi_reduction <add>, %179, %cst_50 [1] : vector<16x128xf32> to vector<16xf32>
    %181 = vector.shape_cast %180 : vector<16xf32> to vector<16x1xf32>
    %182 = vector.broadcast %181 : vector<16x1xf32> to vector<16x128xf32>
    %183 = arith.divf %179, %182 : vector<16x128xf32>
    %184 = arith.subf %183, %11 : vector<16x128xf32>
    %185 = arith.truncf %184 : vector<16x128xf32> to vector<16x128xbf16>
    %cst_51 = arith.constant dense<0.000000e+00> : vector<16x1024xf32>
    %186 = tpu.matmul %185, %2, %cst_51 {dimension_numbers = #tpu.dot_dimension_numbers<[1], [1], [0], [0], [0, 0, 1, 0], [], []>} : vector<16x128xbf16>, vector<1024x128xbf16>, vector<16x1024xf32> -> vector<16x1024xf32>
    %187 = tpu.bitcast %186 : vector<16x1024xf32> -> vector<16x1024xi32>
    %188 = vector.broadcast %c-2147483648_i32 : i32 to vector<16x1024xi32>
    %189 = arith.andi %187, %188 : vector<16x1024xi32>
    %190 = vector.broadcast %c1006665857_i32 : i32 to vector<16x1024xi32>
    %191 = arith.ori %189, %190 : vector<16x1024xi32>
    %192 = tpu.bitcast %191 : vector<16x1024xi32> -> vector<16x1024xf32>
    %193 = arith.addf %171, %192 : vector<16x1024xf32>
    %194 = arith.subf %193, %0 : vector<16x1024xf32>
    %cst_52 = arith.constant -0.0313725509 : f32
    %cst_53 = arith.constant 0.0313725509 : f32
    %195 = vector.broadcast %cst_52 : f32 to vector<16x1024xf32>
    %196 = arith.maximumf %195, %194 : vector<16x1024xf32>
    %197 = vector.broadcast %cst_53 : f32 to vector<16x1024xf32>
    %198 = arith.minimumf %197, %196 : vector<16x1024xf32>
    %199 = arith.addf %0, %198 : vector<16x1024xf32>
    %cst_54 = arith.constant 0.000000e+00 : f32
    %cst_55 = arith.constant 1.000000e+00 : f32
    %200 = vector.broadcast %cst_54 : f32 to vector<16x1024xf32>
    %201 = arith.maximumf %200, %199 : vector<16x1024xf32>
    %202 = vector.broadcast %cst_55 : f32 to vector<16x1024xf32>
    %203 = arith.minimumf %202, %201 : vector<16x1024xf32>
    %c6_i32 = arith.constant 6 : i32
    %204 = arith.truncf %203 : vector<16x1024xf32> to vector<16x1024xbf16>
    %cst_56 = arith.constant dense<0.000000e+00> : vector<16x128xf32>
    %205 = tpu.matmul %204, %2, %cst_56 {dimension_numbers = #tpu.dot_dimension_numbers<[1], [0], [0], [1], [0, 0, 1, 1], [], []>} : vector<16x1024xbf16>, vector<1024x128xbf16>, vector<16x128xf32> -> vector<16x128xf32>
    %206 = arith.addf %205, %5 : vector<16x128xf32>
    %cst_57 = arith.constant dense<0xFF800000> : vector<16xf32>
    %207 = vector.multi_reduction <maximumf>, %206, %cst_57 [1] : vector<16x128xf32> to vector<16xf32>
    %208 = vector.shape_cast %207 : vector<16xf32> to vector<16x1xf32>
    %209 = vector.broadcast %208 : vector<16x1xf32> to vector<16x128xf32>
    %210 = arith.subf %206, %209 : vector<16x128xf32>
    %211 = math.exp %210 : vector<16x128xf32>
    %cst_58 = arith.constant dense<0.000000e+00> : vector<16xf32>
    %212 = vector.multi_reduction <add>, %211, %cst_58 [1] : vector<16x128xf32> to vector<16xf32>
    %213 = vector.shape_cast %212 : vector<16xf32> to vector<16x1xf32>
    %214 = vector.broadcast %213 : vector<16x1xf32> to vector<16x128xf32>
    %215 = arith.divf %211, %214 : vector<16x128xf32>
    %216 = arith.subf %215, %11 : vector<16x128xf32>
    %217 = arith.truncf %216 : vector<16x128xf32> to vector<16x128xbf16>
    %cst_59 = arith.constant dense<0.000000e+00> : vector<16x1024xf32>
    %218 = tpu.matmul %217, %2, %cst_59 {dimension_numbers = #tpu.dot_dimension_numbers<[1], [1], [0], [0], [0, 0, 1, 0], [], []>} : vector<16x128xbf16>, vector<1024x128xbf16>, vector<16x1024xf32> -> vector<16x1024xf32>
    %219 = tpu.bitcast %218 : vector<16x1024xf32> -> vector<16x1024xi32>
    %220 = vector.broadcast %c-2147483648_i32 : i32 to vector<16x1024xi32>
    %221 = arith.andi %219, %220 : vector<16x1024xi32>
    %222 = vector.broadcast %c1006665857_i32 : i32 to vector<16x1024xi32>
    %223 = arith.ori %221, %222 : vector<16x1024xi32>
    %224 = tpu.bitcast %223 : vector<16x1024xi32> -> vector<16x1024xf32>
    %225 = arith.addf %203, %224 : vector<16x1024xf32>
    %226 = arith.subf %225, %0 : vector<16x1024xf32>
    %cst_60 = arith.constant -0.0313725509 : f32
    %cst_61 = arith.constant 0.0313725509 : f32
    %227 = vector.broadcast %cst_60 : f32 to vector<16x1024xf32>
    %228 = arith.maximumf %227, %226 : vector<16x1024xf32>
    %229 = vector.broadcast %cst_61 : f32 to vector<16x1024xf32>
    %230 = arith.minimumf %229, %228 : vector<16x1024xf32>
    %231 = arith.addf %0, %230 : vector<16x1024xf32>
    %cst_62 = arith.constant 0.000000e+00 : f32
    %cst_63 = arith.constant 1.000000e+00 : f32
    %232 = vector.broadcast %cst_62 : f32 to vector<16x1024xf32>
    %233 = arith.maximumf %232, %231 : vector<16x1024xf32>
    %234 = vector.broadcast %cst_63 : f32 to vector<16x1024xf32>
    %235 = arith.minimumf %234, %233 : vector<16x1024xf32>
    %c7_i32 = arith.constant 7 : i32
    %236 = arith.truncf %235 : vector<16x1024xf32> to vector<16x1024xbf16>
    %cst_64 = arith.constant dense<0.000000e+00> : vector<16x128xf32>
    %237 = tpu.matmul %236, %2, %cst_64 {dimension_numbers = #tpu.dot_dimension_numbers<[1], [0], [0], [1], [0, 0, 1, 1], [], []>} : vector<16x1024xbf16>, vector<1024x128xbf16>, vector<16x128xf32> -> vector<16x128xf32>
    %238 = arith.addf %237, %5 : vector<16x128xf32>
    %cst_65 = arith.constant dense<0xFF800000> : vector<16xf32>
    %239 = vector.multi_reduction <maximumf>, %238, %cst_65 [1] : vector<16x128xf32> to vector<16xf32>
    %240 = vector.shape_cast %239 : vector<16xf32> to vector<16x1xf32>
    %241 = vector.broadcast %240 : vector<16x1xf32> to vector<16x128xf32>
    %242 = arith.subf %238, %241 : vector<16x128xf32>
    %243 = math.exp %242 : vector<16x128xf32>
    %cst_66 = arith.constant dense<0.000000e+00> : vector<16xf32>
    %244 = vector.multi_reduction <add>, %243, %cst_66 [1] : vector<16x128xf32> to vector<16xf32>
    %245 = vector.shape_cast %244 : vector<16xf32> to vector<16x1xf32>
    %246 = vector.broadcast %245 : vector<16x1xf32> to vector<16x128xf32>
    %247 = arith.divf %243, %246 : vector<16x128xf32>
    %248 = arith.subf %247, %11 : vector<16x128xf32>
    %249 = arith.truncf %248 : vector<16x128xf32> to vector<16x128xbf16>
    %cst_67 = arith.constant dense<0.000000e+00> : vector<16x1024xf32>
    %250 = tpu.matmul %249, %2, %cst_67 {dimension_numbers = #tpu.dot_dimension_numbers<[1], [1], [0], [0], [0, 0, 1, 0], [], []>} : vector<16x128xbf16>, vector<1024x128xbf16>, vector<16x1024xf32> -> vector<16x1024xf32>
    %251 = tpu.bitcast %250 : vector<16x1024xf32> -> vector<16x1024xi32>
    %252 = vector.broadcast %c-2147483648_i32 : i32 to vector<16x1024xi32>
    %253 = arith.andi %251, %252 : vector<16x1024xi32>
    %254 = vector.broadcast %c1006665857_i32 : i32 to vector<16x1024xi32>
    %255 = arith.ori %253, %254 : vector<16x1024xi32>
    %256 = tpu.bitcast %255 : vector<16x1024xi32> -> vector<16x1024xf32>
    %257 = arith.addf %235, %256 : vector<16x1024xf32>
    %258 = arith.subf %257, %0 : vector<16x1024xf32>
    %cst_68 = arith.constant -0.0313725509 : f32
    %cst_69 = arith.constant 0.0313725509 : f32
    %259 = vector.broadcast %cst_68 : f32 to vector<16x1024xf32>
    %260 = arith.maximumf %259, %258 : vector<16x1024xf32>
    %261 = vector.broadcast %cst_69 : f32 to vector<16x1024xf32>
    %262 = arith.minimumf %261, %260 : vector<16x1024xf32>
    %263 = arith.addf %0, %262 : vector<16x1024xf32>
    %cst_70 = arith.constant 0.000000e+00 : f32
    %cst_71 = arith.constant 1.000000e+00 : f32
    %264 = vector.broadcast %cst_70 : f32 to vector<16x1024xf32>
    %265 = arith.maximumf %264, %263 : vector<16x1024xf32>
    %266 = vector.broadcast %cst_71 : f32 to vector<16x1024xf32>
    %267 = arith.minimumf %266, %265 : vector<16x1024xf32>
    %c8_i32 = arith.constant 8 : i32
    %268 = arith.truncf %267 : vector<16x1024xf32> to vector<16x1024xbf16>
    %cst_72 = arith.constant dense<0.000000e+00> : vector<16x128xf32>
    %269 = tpu.matmul %268, %2, %cst_72 {dimension_numbers = #tpu.dot_dimension_numbers<[1], [0], [0], [1], [0, 0, 1, 1], [], []>} : vector<16x1024xbf16>, vector<1024x128xbf16>, vector<16x128xf32> -> vector<16x128xf32>
    %270 = arith.addf %269, %5 : vector<16x128xf32>
    %cst_73 = arith.constant dense<0xFF800000> : vector<16xf32>
    %271 = vector.multi_reduction <maximumf>, %270, %cst_73 [1] : vector<16x128xf32> to vector<16xf32>
    %272 = vector.shape_cast %271 : vector<16xf32> to vector<16x1xf32>
    %273 = vector.broadcast %272 : vector<16x1xf32> to vector<16x128xf32>
    %274 = arith.subf %270, %273 : vector<16x128xf32>
    %275 = math.exp %274 : vector<16x128xf32>
    %cst_74 = arith.constant dense<0.000000e+00> : vector<16xf32>
    %276 = vector.multi_reduction <add>, %275, %cst_74 [1] : vector<16x128xf32> to vector<16xf32>
    %277 = vector.shape_cast %276 : vector<16xf32> to vector<16x1xf32>
    %278 = vector.broadcast %277 : vector<16x1xf32> to vector<16x128xf32>
    %279 = arith.divf %275, %278 : vector<16x128xf32>
    %280 = arith.subf %279, %11 : vector<16x128xf32>
    %281 = arith.truncf %280 : vector<16x128xf32> to vector<16x128xbf16>
    %cst_75 = arith.constant dense<0.000000e+00> : vector<16x1024xf32>
    %282 = tpu.matmul %281, %2, %cst_75 {dimension_numbers = #tpu.dot_dimension_numbers<[1], [1], [0], [0], [0, 0, 1, 0], [], []>} : vector<16x128xbf16>, vector<1024x128xbf16>, vector<16x1024xf32> -> vector<16x1024xf32>
    %283 = tpu.bitcast %282 : vector<16x1024xf32> -> vector<16x1024xi32>
    %284 = vector.broadcast %c-2147483648_i32 : i32 to vector<16x1024xi32>
    %285 = arith.andi %283, %284 : vector<16x1024xi32>
    %286 = vector.broadcast %c1006665857_i32 : i32 to vector<16x1024xi32>
    %287 = arith.ori %285, %286 : vector<16x1024xi32>
    %288 = tpu.bitcast %287 : vector<16x1024xi32> -> vector<16x1024xf32>
    %289 = arith.addf %267, %288 : vector<16x1024xf32>
    %290 = arith.subf %289, %0 : vector<16x1024xf32>
    %cst_76 = arith.constant -0.0313725509 : f32
    %cst_77 = arith.constant 0.0313725509 : f32
    %291 = vector.broadcast %cst_76 : f32 to vector<16x1024xf32>
    %292 = arith.maximumf %291, %290 : vector<16x1024xf32>
    %293 = vector.broadcast %cst_77 : f32 to vector<16x1024xf32>
    %294 = arith.minimumf %293, %292 : vector<16x1024xf32>
    %295 = arith.addf %0, %294 : vector<16x1024xf32>
    %cst_78 = arith.constant 0.000000e+00 : f32
    %cst_79 = arith.constant 1.000000e+00 : f32
    %296 = vector.broadcast %cst_78 : f32 to vector<16x1024xf32>
    %297 = arith.maximumf %296, %295 : vector<16x1024xf32>
    %298 = vector.broadcast %cst_79 : f32 to vector<16x1024xf32>
    %299 = arith.minimumf %298, %297 : vector<16x1024xf32>
    %c9_i32 = arith.constant 9 : i32
    %300 = arith.truncf %299 : vector<16x1024xf32> to vector<16x1024xbf16>
    %cst_80 = arith.constant dense<0.000000e+00> : vector<16x128xf32>
    %301 = tpu.matmul %300, %2, %cst_80 {dimension_numbers = #tpu.dot_dimension_numbers<[1], [0], [0], [1], [0, 0, 1, 1], [], []>} : vector<16x1024xbf16>, vector<1024x128xbf16>, vector<16x128xf32> -> vector<16x128xf32>
    %302 = arith.addf %301, %5 : vector<16x128xf32>
    %cst_81 = arith.constant dense<0xFF800000> : vector<16xf32>
    %303 = vector.multi_reduction <maximumf>, %302, %cst_81 [1] : vector<16x128xf32> to vector<16xf32>
    %304 = vector.shape_cast %303 : vector<16xf32> to vector<16x1xf32>
    %305 = vector.broadcast %304 : vector<16x1xf32> to vector<16x128xf32>
    %306 = arith.subf %302, %305 : vector<16x128xf32>
    %307 = math.exp %306 : vector<16x128xf32>
    %cst_82 = arith.constant dense<0.000000e+00> : vector<16xf32>
    %308 = vector.multi_reduction <add>, %307, %cst_82 [1] : vector<16x128xf32> to vector<16xf32>
    %309 = vector.shape_cast %308 : vector<16xf32> to vector<16x1xf32>
    %310 = vector.broadcast %309 : vector<16x1xf32> to vector<16x128xf32>
    %311 = arith.divf %307, %310 : vector<16x128xf32>
    %312 = arith.subf %311, %11 : vector<16x128xf32>
    %313 = arith.truncf %312 : vector<16x128xf32> to vector<16x128xbf16>
    %cst_83 = arith.constant dense<0.000000e+00> : vector<16x1024xf32>
    %314 = tpu.matmul %313, %2, %cst_83 {dimension_numbers = #tpu.dot_dimension_numbers<[1], [1], [0], [0], [0, 0, 1, 0], [], []>} : vector<16x128xbf16>, vector<1024x128xbf16>, vector<16x1024xf32> -> vector<16x1024xf32>
    %315 = tpu.bitcast %314 : vector<16x1024xf32> -> vector<16x1024xi32>
    %316 = vector.broadcast %c-2147483648_i32 : i32 to vector<16x1024xi32>
    %317 = arith.andi %315, %316 : vector<16x1024xi32>
    %318 = vector.broadcast %c1006665857_i32 : i32 to vector<16x1024xi32>
    %319 = arith.ori %317, %318 : vector<16x1024xi32>
    %320 = tpu.bitcast %319 : vector<16x1024xi32> -> vector<16x1024xf32>
    %321 = arith.addf %299, %320 : vector<16x1024xf32>
    %322 = arith.subf %321, %0 : vector<16x1024xf32>
    %cst_84 = arith.constant -0.0313725509 : f32
    %cst_85 = arith.constant 0.0313725509 : f32
    %323 = vector.broadcast %cst_84 : f32 to vector<16x1024xf32>
    %324 = arith.maximumf %323, %322 : vector<16x1024xf32>
    %325 = vector.broadcast %cst_85 : f32 to vector<16x1024xf32>
    %326 = arith.minimumf %325, %324 : vector<16x1024xf32>
    %327 = arith.addf %0, %326 : vector<16x1024xf32>
    %cst_86 = arith.constant 0.000000e+00 : f32
    %cst_87 = arith.constant 1.000000e+00 : f32
    %328 = vector.broadcast %cst_86 : f32 to vector<16x1024xf32>
    %329 = arith.maximumf %328, %327 : vector<16x1024xf32>
    %330 = vector.broadcast %cst_87 : f32 to vector<16x1024xf32>
    %331 = arith.minimumf %330, %329 : vector<16x1024xf32>
    %c0_88 = arith.constant 0 : index
    %c0_89 = arith.constant 0 : index
    %332 = vector.load %arg6[%c0_88, %c0_89] : memref<16x1024xf32, #tpu.memory_space<vmem>>, vector<16x1024xf32>
    tpu.vector_store %arg6[%c0_88, %c0_89], %331 {strides = array<i32>} : memref<16x1024xf32, #tpu.memory_space<vmem>>, vector<16x1024xf32>,
    return
  }
  func.func @transform_0(%arg0: i32) -> (i32, i32) {
    %c0_i32 = arith.constant 0 : i32
    %c0_i32_0 = arith.constant 0 : i32
    return %arg0, %c0_i32 : i32, i32
  }
  func.func @transform_1(%arg0: i32) -> (i32, i32) {
    %c0_i32 = arith.constant 0 : i32
    %c0_i32_0 = arith.constant 0 : i32
    return %arg0, %c0_i32 : i32, i32
  }
  func.func @transform_2(%arg0: i32) -> (i32, i32) {
    %c0_i32 = arith.constant 0 : i32
    %c0_i32_0 = arith.constant 0 : i32
    %c0_i32_1 = arith.constant 0 : i32
    return %c0_i32, %c0_i32_0 : i32, i32
  }
  func.func @transform_3(%arg0: i32) -> (i32, i32) {
    %c0_i32 = arith.constant 0 : i32
    %c0_i32_0 = arith.constant 0 : i32
    %c0_i32_1 = arith.constant 0 : i32
    return %c0_i32, %c0_i32_0 : i32, i32
  }
  func.func @transform_4(%arg0: i32) -> (i32, i32) {
    %c0_i32 = arith.constant 0 : i32
    %c0_i32_0 = arith.constant 0 : i32
    return %arg0, %c0_i32 : i32, i32
  }
  func.func @transform_5(%arg0: i32) -> (i32, i32) {
    %c0_i32 = arith.constant 0 : i32
    %c0_i32_0 = arith.constant 0 : i32
    return %arg0, %c0_i32 : i32, i32
  }
}

</mosaic_0001>

<bundles_post_ra>
// kernel: tpu_custom_call.1
= control target key start
LH: loop header
LB: loop body
LE: loop exit
PB: predicated region body
PF: predicated region fallthrough
CT: control target
= control target key end

     0   :  { %10 = vsyncpa [#allocation3], 0  ;;  %s11750_s0 = inlined_call_operand.hbm [shape: f32[16,1024], index: 0, kind: input, shape index: {}]   ;;  %s11751_s1 = inlined_call_operand.hbm [shape: f32[16,1024], index: 1, kind: input, shape index: {}]   ;;  %s11752_s2 = inlined_call_operand.hbm [shape: bf16[1024,128], index: 2, kind: input, shape index: {}]   ;;  %s11753_s3 = inlined_call_operand.vmem [shape: f32[1,128], index: 3, kind: input, shape index: {}]   ;;  %s11754_s4 = inlined_call_operand.vmem [shape: s32[16,1], index: 4, kind: input, shape index: {}]   ;;  %s11755_s5 = inlined_call_operand.hbm [shape: f32[16,1024], index: 5, kind: output, shape index: {}]  }
   0x1   :  { %11 = vsyncpa [#allocation6], 0 }
   0x2   :  { %12 = vsyncpa [#allocation4], 0  ;;  %s8538_s18 = smov [#allocation5]   ;;  %s8539_s20 = smov [#allocation2]  }
   0x3   :  { %s30_s19 = sshll.u32 %s8538_s18, 4  ;;  %s18_s21 = sshll.u32 %s8539_s20, 4  ;;  %s31_s19 = int_to_ptr.vmem [resolvable:$true] %s30_s19  ;;  %s8577_s21 = int_to_ptr.vmem [resolvable:$true] %s18_s21 }
   0x4   :  { %s8444_s24 = scalar_lea.hbm %s11751_s1, 2048 }
   0x5   :  { %p8445_p0 = scmp.ne.s32.totalorder %s11751_s1, %s8444_s24  ;;  %p8448_p1 = scmp.lt.u32.totalorder %s8444_s24, %s11751_s1 }
   0x7   :  { %p8450_p2 = pnand %p8448_p1, %p8445_p0 }
   0x9   :  { %8453 = shalt.err (!%p8450_p2)
}
   0xa   :  { %s8454_s29 = scalar_lea.vmem %s31_s19, 2048  ;;  %p8459_p4 = scmp.lt.s32.totalorder %s31_s19, %s31_s19 }
   0xb   :  { %p8455_p3 = scmp.ne.s32.totalorder %s31_s19, %s8454_s29  ;;  %p8460_p5 = scmp.lt.s32.totalorder %s8454_s29, %s8454_s29 }
   0xd   :  { %p8461_p6 = por %p8460_p5, %p8459_p4 }
   0xf   :  { %p8462_p7 = pnand %p8461_p6, %p8455_p3 }
  0x11   :  { %8465 = shalt.err (!%p8462_p7)
}
  0x12   :  { %s8540_s30 = smov 1024   ;;  %s8541_s6 = smov 64  }
  0x13   :  { %36 = dma.hbm_to_vmem [thread:$0]  %s11751_s1, 2048, %s31_s19, [#allocation6], %s8540_s30, %s8540_s30, %s8541_s6  }
  0x14   :  { %s8466_s11 = scalar_lea.hbm %s11750_s0, 2048 }
  0x15   :  { %p8467_p8 = scmp.ne.s32.totalorder %s11750_s0, %s8466_s11  ;;  %p8470_p9 = scmp.lt.u32.totalorder %s8466_s11, %s11750_s0 }
  0x17   :  { %p8472_p10 = pnand %p8470_p9, %p8467_p8 }
  0x19   :  { %8475 = shalt.err (!%p8472_p10)
}
  0x1a   :  { %s8476_s16 = scalar_lea.vmem %s8577_s21, 2048  ;;  %p8481_p12 = scmp.lt.s32.totalorder %s8577_s21, %s8577_s21 }
  0x1b   :  { %p8477_p11 = scmp.ne.s32.totalorder %s8577_s21, %s8476_s16  ;;  %p8482_p13 = scmp.lt.s32.totalorder %s8476_s16, %s8476_s16 }
  0x1d   :  { %p8483_p0 = por %p8482_p13, %p8481_p12 }
  0x1f   :  { %p8484_p1 = pnand %p8483_p0, %p8477_p11 }
  0x21   :  { %8487 = shalt.err (!%p8484_p1)
}
  0x22   :  { %24 = dma.hbm_to_vmem [thread:$0]  %s11750_s0, 2048, %s8577_s21, [#allocation3], %s8540_s30, %s8540_s30, %s8541_s6  }
  0x23   :  { %s8542_s18 = smov [#allocation7]   ;;  %s8488_s23 = scalar_lea.hbm %s11752_s2, 8192 }
  0x24   :  { %s42_s19 = sshll.u32 %s8542_s18, 4  ;;  %p8489_p2 = scmp.ne.s32.totalorder %s11752_s2, %s8488_s23  ;;  %s43_s19 = int_to_ptr.vmem [resolvable:$true] %s42_s19 }
  0x25   :  { %p8492_p3 = scmp.lt.u32.totalorder %s8488_s23, %s11752_s2 }
  0x27   :  { %p8494_p4 = pnand %p8492_p3, %p8489_p2 }
  0x29   :  { %8497 = shalt.err (!%p8494_p4)
}
  0x2a   :  { %s8498_s28 = scalar_lea.vmem %s43_s19, 8192  ;;  %p8503_p6 = scmp.lt.s32.totalorder %s43_s19, %s43_s19 }
  0x2b   :  { %p8499_p5 = scmp.ne.s32.totalorder %s43_s19, %s8498_s28  ;;  %p8504_p7 = scmp.lt.s32.totalorder %s8498_s28, %s8498_s28 }
  0x2d   :  { %p8505_p8 = por %p8504_p7, %p8503_p6 }
  0x2f   :  { %p8506_p9 = pnand %p8505_p8, %p8499_p5 }
  0x31   :  { %8509 = shalt.err (!%p8506_p9)
}
  0x32   :  { %s8543_s0 = smov 4  }
  0x33   :  { %48 = dma.hbm_to_vmem [thread:$0]  %s11752_s2, 8192, %s43_s19, [#allocation6], %s8541_s6, %s8541_s6, %s8543_s0  }
  0x34   :  { %8532 = dma.done.wait [#allocation3], 2048  }
  0x35   :  { %8533 = vsyncadd [#allocation3], 4294965248 }
  0x36   :  { %8534 = dma.done.wait [#allocation6], 10240  }
  0x37   :  { %8535 = vsyncadd [#allocation6], 4294957056  ;;  %v8628_v0 = vld [vmem:[#allocation7 + $0x40] sm:$0xff]   ;;  %v8639_v4 = vld [vmem:[#allocation7 + $0x48] sm:$0xff]  }
  0x38   :  { %v8630_v1 = vld [vmem:[#allocation7 + $0xc0] sm:$0xff]   ;;  %6301 = vmatprep.subr.bf16.mxu0 %v8628_v0  ;;  %v8642_v5 = vld [vmem:[#allocation7 + $0xc8] sm:$0xff]   ;;  %v8651_v8 = vld [vmem:[#allocation7 + $0x50] sm:$0xff]  }
  0x39   :  { %v8633_v2 = vld [vmem:[#allocation7] sm:$0xff]   ;;  %6323 = vmatprep.subr.bf16.mxu1 %v8630_v1  ;;  %v8645_v6 = vld [vmem:[#allocation7 + $0x8] sm:$0xff]   ;;  %v8654_v9 = vld [vmem:[#allocation7 + $0xd0] sm:$0xff]  }
  0x3a   :  { %v8636_v3 = vld [vmem:[#allocation7 + $0x80] sm:$0xff]   ;;  %6302 = vmatpush3.bf16.msra.mxu0 %v8633_v2  ;;  %v8648_v7 = vld [vmem:[#allocation7 + $0x88] sm:$0xff]   ;;  %v8657_v10 = vld [vmem:[#allocation7 + $0x10] sm:$0xff]  }
  0x3b   :  { %6324 = vmatpush3.bf16.msra.mxu1 %v8636_v3  ;;  %6303 = vmatprep.subr.bf16.mxu0 %v8639_v4  ;;  %v8660_v11 = vld [vmem:[#allocation7 + $0x90] sm:$0xff]   ;;  %v8663_v12 = vld [vmem:[#allocation7 + $0x58] sm:$0xff]   ;;  %v8675_v16 = vld [vmem:[#allocation7 + $0x60] sm:$0xff]  }
  0x3c   :  { %6325 = vmatprep.subr.bf16.mxu1 %v8642_v5  ;;  %v8666_v13 = vld [vmem:[#allocation7 + $0xd8] sm:$0xff]   ;;  %v8678_v17 = vld [vmem:[#allocation7 + $0xe0] sm:$0xff]   ;;  %v8687_v20 = vld [vmem:[#allocation7 + $0x68] sm:$0xff]  }
  0x3d   :  { %v8669_v14 = vld [vmem:[#allocation7 + $0x18] sm:$0xff]   ;;  %v8681_v18 = vld [vmem:[#allocation7 + $0x20] sm:$0xff]   ;;  %12336 = vst [vmem:[#allocation12_spill] sm:$0xff] %v8687_v20  ;;  %v8690_v21 = vld [vmem:[#allocation7 + $0xe8] sm:$0xff]  }
  0x3e   :  { %6304 = vmatpush3.bf16.msra.mxu0 %v8645_v6  ;;  %v8672_v15 = vld [vmem:[#allocation7 + $0x98] sm:$0xff]   ;;  %v8684_v19 = vld [vmem:[#allocation7 + $0xa0] sm:$0xff]   ;;  %12337 = vst [vmem:[#allocation13_spill] sm:$0xff] %v8690_v21  ;;  %v8693_v22 = vld [vmem:[#allocation7 + $0x28] sm:$0xff]  }
  0x3f   :  { %6326 = vmatpush3.bf16.msra.mxu1 %v8648_v7  ;;  %6305 = vmatprep.subr.bf16.mxu0 %v8651_v8  ;;  %12338 = vst [vmem:[#allocation14_spill] sm:$0xff] %v8693_v22  ;;  %v8696_v23 = vld [vmem:[#allocation7 + $0xa8] sm:$0xff]   ;;  %v8699_v24 = vld [vmem:[#allocation7 + $0x70] sm:$0xff]   ;;  %v8711_v28 = vld [vmem:[#allocation7 + $0x78] sm:$0xff]  }
  0x40   :  { %6327 = vmatprep.subr.bf16.mxu1 %v8654_v9  ;;  %12339 = vst [vmem:[#allocation15_spill] sm:$0xff] %v8696_v23  ;;  %12340 = vst [vmem:[#allocation16_spill] sm:$0xff] %v8699_v24  ;;  %v8702_v25 = vld [vmem:[#allocation7 + $0xf0] sm:$0xff]   ;;  %v8714_v29 = vld [vmem:[#allocation7 + $0xf8] sm:$0xff]  }
  0x41   :  { %12341 = vst [vmem:[#allocation17_spill] sm:$0xff] %v8702_v25  ;;  %v8705_v26 = vld [vmem:[#allocation7 + $0x30] sm:$0xff]   ;;  %12344 = vst [vmem:[#allocation20_spill] sm:$0xff] %v8711_v28  ;;  %v8717_v30 = vld [vmem:[#allocation7 + $0x38] sm:$0xff]  }
  0x42   :  { %6306 = vmatpush3.bf16.msra.mxu0 %v8657_v10  ;;  %12342 = vst [vmem:[#allocation18_spill] sm:$0xff] %v8705_v26  ;;  %v8708_v27 = vld [vmem:[#allocation7 + $0xb0] sm:$0xff]   ;;  %12345 = vst [vmem:[#allocation21_spill] sm:$0xff] %v8714_v29  ;;  %v8720_v31 = vld [vmem:[#allocation7 + $0xb8] sm:$0xff]  }
  0x43   :  { %6328 = vmatpush3.bf16.msra.mxu1 %v8660_v11  ;;  %6307 = vmatprep.subr.bf16.mxu0 %v8663_v12  ;;  %12343 = vst [vmem:[#allocation19_spill] sm:$0xff] %v8708_v27  ;;  %12346 = vst [vmem:[#allocation22_spill] sm:$0xff] %v8717_v30  ;;  %v8723_v32 = vld [vmem:[#allocation5 + $0x8] sm:$0xff]  ;;  %v8727_v34 = vld [vmem:[#allocation5 + $0x18] sm:$0xff] }
  0x44   :  { %6329 = vmatprep.subr.bf16.mxu1 %v8666_v13  ;;  %12347 = vst [vmem:[#allocation23_spill] sm:$0xff] %v8720_v31  ;;  %12348 = vst [vmem:[#allocation24_spill] sm:$0xff] %v8723_v32  ;;  %v8725_v33 = vld [vmem:[#allocation5 + $0x48] sm:$0xff]  ;;  %v8732_v36 = vld [vmem:[#allocation5 + $0x58] sm:$0xff] }
  0x45   :  { %12349 = vst [vmem:[#allocation25_spill] sm:$0xff] %v8725_v33  ;;  %12350 = vst [vmem:[#allocation26_spill] sm:$0xff] %v8727_v34  ;;  %v247_v35 = vpack.c.bf16 %v8725_v33, %v8723_v32  ;;  %v8734_v37 = vld [vmem:[#allocation5] sm:$0xff]  ;;  %v249_v39 = vpack.c.bf16 %v8732_v36, %v8727_v34  ;;  %v8742_v41 = vld [vmem:[#allocation5 + $0x10] sm:$0xff] }
  0x46   :  { %6308 = vmatpush3.bf16.msra.mxu0 %v8669_v14  ;;  %12351 = vst [vmem:[#allocation27_spill] sm:$0xff] %v8732_v36  ;;  %12352 = vst [vmem:[#allocation28_spill] sm:$0xff] %v8734_v37  ;;  %v8736_v38 = vld [vmem:[#allocation5 + $0x40] sm:$0xff]  ;;  %v8744_v42 = vld [vmem:[#allocation5 + $0x50] sm:$0xff] }
  0x47   :  { %6330 = vmatpush3.bf16.msra.mxu1 %v8672_v15  ;;  %6309 = vmatprep.subr.bf16.mxu0 %v8675_v16  ;;  %12353 = vst [vmem:[#allocation29_spill] sm:$0xff] %v8736_v38  ;;  %v246_v40 = vpack.c.bf16 %v8736_v38, %v8734_v37  ;;  %12354 = vst [vmem:[#allocation30_spill] sm:$0xff] %v8742_v41  ;;  %v248_v43 = vpack.c.bf16 %v8744_v42, %v8742_v41  ;;  %v8748_v44 = vld [vmem:[#allocation7 + $0x140] sm:$0xff]   ;;  %v8759_v48 = vld [vmem:[#allocation7 + $0x148] sm:$0xff]  }
  0x48   :  { %6331 = vmatprep.subr.bf16.mxu1 %v8678_v17  ;;  %12355 = vst [vmem:[#allocation31_spill] sm:$0xff] %v8744_v42  ;;  %670 = vmatprep.mubr.bf16.mxu0 %v247_v35  ;;  %12356 = vst [vmem:[#allocation32_spill] sm:$0xff] %v8748_v44  ;;  %v8750_v45 = vld [vmem:[#allocation7 + $0x1c0] sm:$0xff]   ;;  %v8762_v49 = vld [vmem:[#allocation7 + $0x1c8] sm:$0xff]  }
  0x49   :  { %711 = vmatprep.mubr.bf16.mxu1 %v249_v39  ;;  %12357 = vst [vmem:[#allocation33_spill] sm:$0xff] %v8750_v45  ;;  %v8753_v46 = vld [vmem:[#allocation7 + $0x100] sm:$0xff]   ;;  %v8765_v50 = vld [vmem:[#allocation7 + $0x108] sm:$0xff]   ;;  %v8771_v52 = vld [vmem:[#allocation7 + $0x150] sm:$0xff]  }
  0x4a   :  { %6310 = vmatpush3.bf16.msra.mxu0 %v8681_v18  ;;  %v8756_v47 = vld [vmem:[#allocation7 + $0x180] sm:$0xff]   ;;  %v8768_v51 = vld [vmem:[#allocation7 + $0x188] sm:$0xff]   ;;  %v8774_v53 = vld [vmem:[#allocation7 + $0x1d0] sm:$0xff]  }
  0x4b   :  { %6332 = vmatpush3.bf16.msra.mxu1 %v8684_v19  ;;  %6311 = vmatprep.subr.bf16.mxu0 %v8687_v20  ;;  %v8777_v54 = vld [vmem:[#allocation7 + $0x110] sm:$0xff]   ;;  %v8783_v56 = vld [vmem:[#allocation7 + $0x158] sm:$0xff]   ;;  %v8795_v60 = vld [vmem:[#allocation7 + $0x160] sm:$0xff]  }
  0x4c   :  { %6333 = vmatprep.subr.bf16.mxu1 %v8690_v21  ;;  %v8780_v55 = vld [vmem:[#allocation7 + $0x190] sm:$0xff]   ;;  %v8786_v57 = vld [vmem:[#allocation7 + $0x1d8] sm:$0xff]   ;;  %v8798_v61 = vld [vmem:[#allocation7 + $0x1e0] sm:$0xff]  }
  0x4d   :  { %v8789_v58 = vld [vmem:[#allocation7 + $0x118] sm:$0xff]   ;;  %v8801_v62 = vld [vmem:[#allocation7 + $0x120] sm:$0xff]   ;;  %v8807_v35 = vld [vmem:[#allocation7 + $0x168] sm:$0xff]  }
  0x4e   :  { %6312 = vmatpush3.bf16.msra.mxu0 %v8693_v22  ;;  %v8792_v59 = vld [vmem:[#allocation7 + $0x198] sm:$0xff]   ;;  %v8804_v63 = vld [vmem:[#allocation7 + $0x1a0] sm:$0xff]   ;;  %12358 = vst [vmem:[#allocation34_spill] sm:$0xff] %v8807_v35  ;;  %v8810_v39 = vld [vmem:[#allocation7 + $0x1e8] sm:$0xff]  }
  0x4f   :  { %6334 = vmatpush3.bf16.msra.mxu1 %v8696_v23  ;;  %6313 = vmatprep.subr.bf16.mxu0 %v8699_v24  ;;  %12359 = vst [vmem:[#allocation35_spill] sm:$0xff] %v8810_v39  ;;  %v8819_v36 = vld [vmem:[#allocation7 + $0x170] sm:$0xff]   ;;  %v8831_v34 = vld [vmem:[#allocation7 + $0x178] sm:$0xff]  }
  0x50   :  { %6335 = vmatprep.subr.bf16.mxu1 %v8702_v25  ;;  %12362 = vst [vmem:[#allocation38_spill] sm:$0xff] %v8819_v36  ;;  %v8822_v33 = vld [vmem:[#allocation7 + $0x1f0] sm:$0xff]   ;;  %12366 = vst [vmem:[#allocation42_spill] sm:$0xff] %v8831_v34  ;;  %v8834_v32 = vld [vmem:[#allocation7 + $0x1f8] sm:$0xff]  }
  0x51   :  { %12363 = vst [vmem:[#allocation39_spill] sm:$0xff] %v8822_v33  ;;  %v8825_v42 = vld [vmem:[#allocation7 + $0x130] sm:$0xff]   ;;  %12367 = vst [vmem:[#allocation43_spill] sm:$0xff] %v8834_v32  ;;  %v8837_v41 = vld [vmem:[#allocation7 + $0x138] sm:$0xff]  }
  0x52   :  { %6314 = vmatpush3.bf16.msra.mxu0 %v8705_v26  ;;  %12364 = vst [vmem:[#allocation40_spill] sm:$0xff] %v8825_v42  ;;  %v8828_v38 = vld [vmem:[#allocation7 + $0x1b0] sm:$0xff]   ;;  %12368 = vst [vmem:[#allocation44_spill] sm:$0xff] %v8837_v41  ;;  %v8840_v37 = vld [vmem:[#allocation7 + $0x1b8] sm:$0xff]  }
  0x53   :  { %6336 = vmatpush3.bf16.msra.mxu1 %v8708_v27  ;;  %6315 = vmatprep.subr.bf16.mxu0 %v8711_v28  ;;  %12365 = vst [vmem:[#allocation41_spill] sm:$0xff] %v8828_v38 }
  0x54   :  { %6337 = vmatprep.subr.bf16.mxu1 %v8714_v29 }
  0x56   :  { %6316 = vmatpush3.bf16.msra.mxu0 %v8717_v30 }
  0x57   :  { %6338 = vmatpush3.bf16.msra.mxu1 %v8720_v31  ;;  %6345 = vmatprep.subr.bf16.mxu0 %v8748_v44 }
  0x58   :  { %6367 = vmatprep.subr.bf16.mxu1 %v8750_v45 }
  0x59   :  { %671 = vmatmul.mubr.bf16.vlgmr.msra.gmra.mrb[0].mxu0 %v246_v40  ;;  %v8813_v40 = vld [vmem:[#allocation7 + $0x128] sm:$0xff]  }
  0x5a   :  { %712 = vmatmul.mubr.bf16.vlgmr.msra.gmra.mrb[0].mxu1 %v248_v43  ;;  %6346 = vmatpush3.bf16.msra.mxu0 %v8753_v46  ;;  %12360 = vst [vmem:[#allocation36_spill] sm:$0xff] %v8813_v40  ;;  %v8816_v43 = vld [vmem:[#allocation7 + $0x1a8] sm:$0xff]  }
  0x5b   :  { %6368 = vmatpush3.bf16.msra.mxu1 %v8756_v47  ;;  %6347 = vmatprep.subr.bf16.mxu0 %v8759_v48  ;;  %12361 = vst [vmem:[#allocation37_spill] sm:$0xff] %v8816_v43 }
  0x5c   :  { %6369 = vmatprep.subr.bf16.mxu1 %v8762_v49 }
  0x5e   :  { %6348 = vmatpush3.bf16.msra.mxu0 %v8765_v50 }
  0x5f   :  { %6370 = vmatpush3.bf16.msra.mxu1 %v8768_v51  ;;  %6349 = vmatprep.subr.bf16.mxu0 %v8771_v52 }
  0x60   :  { %6371 = vmatprep.subr.bf16.mxu1 %v8774_v53 }
  0x62   :  { %6350 = vmatpush3.bf16.msra.mxu0 %v8777_v54 }
  0x63   :  { %6372 = vmatpush3.bf16.msra.mxu1 %v8780_v55  ;;  %6351 = vmatprep.subr.bf16.mxu0 %v8783_v56 }
  0x64   :  { %6373 = vmatprep.subr.bf16.mxu1 %v8786_v57 }
  0x66   :  { %6352 = vmatpush3.bf16.msra.mxu0 %v8789_v58 }
  0x67   :  { %6374 = vmatpush3.bf16.msra.mxu1 %v8792_v59  ;;  %6353 = vmatprep.subr.bf16.mxu0 %v8795_v60 }
  0x68   :  { %6375 = vmatprep.subr.bf16.mxu1 %v8798_v61 }
  0x6a   :  { %6354 = vmatpush3.bf16.msra.mxu0 %v8801_v62 }
  0x6b   :  { %6376 = vmatpush3.bf16.msra.mxu1 %v8804_v63  ;;  %6355 = vmatprep.subr.bf16.mxu0 %v8807_v35  ;;  %v8865_v35 = vld [vmem:[#allocation5 + $0x70] sm:$0xff] }
  0x6c   :  { %6377 = vmatprep.subr.bf16.mxu1 %v8810_v39  ;;  %v8860_v39 = vld [vmem:[#allocation5 + $0x30] sm:$0xff]  ;;  %12376 = vst [vmem:[#allocation52_spill] sm:$0xff] %v8865_v35 }
  0x6d   :  { %12375 = vst [vmem:[#allocation51_spill] sm:$0xff] %v8860_v39 }
  0x6e   :  { %6356 = vmatpush3.bf16.msra.mxu0 %v8813_v40  ;;  %v8858_v40 = vld [vmem:[#allocation5 + $0x60] sm:$0xff] }
  0x6f   :  { %6378 = vmatpush3.bf16.msra.mxu1 %v8816_v43  ;;  %6357 = vmatprep.subr.bf16.mxu0 %v8819_v36  ;;  %v8842_v36 = vld [vmem:[#allocation5 + $0x28] sm:$0xff]  ;;  %v8849_v43 = vld [vmem:[#allocation5 + $0x78] sm:$0xff]  ;;  %12374 = vst [vmem:[#allocation50_spill] sm:$0xff] %v8858_v40 }
  0x70   :  { %6379 = vmatprep.subr.bf16.mxu1 %v8822_v33  ;;  %12369 = vst [vmem:[#allocation45_spill] sm:$0xff] %v8842_v36  ;;  %v8845_v33 = vld [vmem:[#allocation5 + $0x68] sm:$0xff]  ;;  %12372 = vst [vmem:[#allocation48_spill] sm:$0xff] %v8849_v43 }
  0x71   :  { %12370 = vst [vmem:[#allocation46_spill] sm:$0xff] %v8845_v33 }
  0x72   :  { %6358 = vmatpush3.bf16.msra.mxu0 %v8825_v42  ;;  %v8847_v42 = vld [vmem:[#allocation5 + $0x38] sm:$0xff] }
  0x73   :  { %6380 = vmatpush3.bf16.msra.mxu1 %v8828_v38  ;;  %6359 = vmatprep.subr.bf16.mxu0 %v8831_v34  ;;  %12371 = vst [vmem:[#allocation47_spill] sm:$0xff] %v8847_v42  ;;  %v251_v34 = vpack.c.bf16 %v8845_v33, %v8842_v36  ;;  %v8856_v38 = vld [vmem:[#allocation5 + $0x20] sm:$0xff] }
  0x74   :  { %6381 = vmatprep.subr.bf16.mxu1 %v8834_v32  ;;  %v253_v32 = vpack.c.bf16 %v8849_v43, %v8847_v42  ;;  %12373 = vst [vmem:[#allocation49_spill] sm:$0xff] %v8856_v38  ;;  %v252_v43 = vpack.c.bf16 %v8865_v35, %v8860_v39 }
  0x75   :  { %752 = vmatprep.mubr.bf16.mxu0 %v251_v34 }
  0x76   :  { %6360 = vmatpush3.bf16.msra.mxu0 %v8837_v41  ;;  %v250_v41 = vpack.c.bf16 %v8858_v40, %v8856_v38  ;;  %793 = vmatprep.mubr.bf16.mxu1 %v253_v32 }
  0x77   :  { %6382 = vmatpush3.bf16.msra.mxu1 %v8840_v37  ;;  %6389 = vmatprep.subr.bf16.mxu0 %v8628_v0 }
  0x78   :  { %6407 = vmatprep.subr.bf16.mxu1 %v8630_v1 }
  0x79   :  { %753 = vmatmul.mubr.bf16.vlgmr.msra.gmra.mrb[4].mxu0 %v250_v41  ;;  %v8905_v41 = vld [vmem:[%s11753_s3] ss:$0 sm:$0xff] }
  0x7a   :  { %794 = vmatmul.mubr.bf16.vlgmr.msra.gmra.mrb[4].mxu1 %v252_v43 }
  0x7f   :  { %6390 = vmatpush3.bf16.xpose.msra.mxu0 %v8633_v2 }
  0x80   :  { %6408 = vmatpush3.bf16.xpose.msra.mxu1 %v8636_v3  ;;  %6391 = vmatprep.subr.bf16.mxu0 %v8639_v4 }
  0x81   :  { %6409 = vmatprep.subr.bf16.mxu1 %v8642_v5 }
  0x87   :  { %6392 = vmatpush3.bf16.xpose.msra.mxu0 %v8645_v6 }
  0x88   :  { %6410 = vmatpush3.bf16.xpose.msra.mxu1 %v8648_v7  ;;  %6393 = vmatprep.subr.bf16.mxu0 %v8651_v8 }
  0x89   :  { %6411 = vmatprep.subr.bf16.mxu1 %v8654_v9 }
  0x8f   :  { %6394 = vmatpush3.bf16.xpose.msra.mxu0 %v8657_v10 }
  0x90   :  { %6412 = vmatpush3.bf16.xpose.msra.mxu1 %v8660_v11  ;;  %6395 = vmatprep.subr.bf16.mxu0 %v8663_v12 }
  0x91   :  { %6413 = vmatprep.subr.bf16.mxu1 %v8666_v13 }
  0x97   :  { %6396 = vmatpush3.bf16.xpose.msra.mxu0 %v8669_v14 }
  0x98   :  { %6414 = vmatpush3.bf16.xpose.msra.mxu1 %v8672_v15  ;;  %6397 = vmatprep.subr.bf16.mxu0 %v8675_v16 }
  0x99   :  { %6415 = vmatprep.subr.bf16.mxu1 %v8678_v17 }
  0x9f   :  { %6398 = vmatpush3.bf16.xpose.msra.mxu0 %v8681_v18 }
  0xa0   :  { %6416 = vmatpush3.bf16.xpose.msra.mxu1 %v8684_v19  ;;  %6399 = vmatprep.subr.bf16.mxu0 %v8687_v20 }
  0xa1   :  { %6417 = vmatprep.subr.bf16.mxu1 %v8690_v21 }
  0xa7   :  { %6400 = vmatpush3.bf16.xpose.msra.mxu0 %v8693_v22 }
  0xa8   :  { %6418 = vmatpush3.bf16.xpose.msra.mxu1 %v8696_v23  ;;  %6401 = vmatprep.subr.bf16.mxu0 %v8699_v24 }
  0xa9   :  { %6419 = vmatprep.subr.bf16.mxu1 %v8702_v25 }
  0xaf   :  { %6402 = vmatpush3.bf16.xpose.msra.mxu0 %v8705_v26 }
  0xb0   :  { %6420 = vmatpush3.bf16.xpose.msra.mxu1 %v8708_v27  ;;  %6403 = vmatprep.subr.bf16.mxu0 %v8711_v28 }
  0xb1   :  { %6421 = vmatprep.subr.bf16.mxu1 %v8714_v29 }
  0xb7   :  { %6404 = vmatpush3.bf16.xpose.msra.mxu0 %v8717_v30 }
  0xb8   :  { %6422 = vmatpush3.bf16.xpose.msra.mxu1 %v8720_v31  ;;  %6425 = vmatprep.subr.bf16.mxu0 %v8748_v44 }
  0xb9   :  { %6443 = vmatprep.subr.bf16.mxu1 %v8750_v45 }
 0x12c   :  { %v6317_v32 = vpop.f32.mrb[0].mxu0 }
 0x12d   :  { %v6339_v34 = vpop.f32.mrb[0].mxu1  ;;  %v6318_v43 = vpop.f32.mrb[1].mxu0 }
 0x12e   :  { %v6319_v33 = vadd.f32 %v6318_v43, %v6317_v32  ;;  %v6340_v35 = vpop.f32.mrb[1].mxu1  ;;  %v6320_v40 = vpop.f32.mrb[2].mxu0 }
 0x12f   :  { %v6341_v42 = vadd.f32 %v6340_v35, %v6339_v34  ;;  %v6342_v36 = vpop.f32.mrb[2].mxu1  ;;  %v6321_v39 = vpop.f32.mrb[3].mxu0 }
 0x130   :  { %v673_v38 = vadd.f32 %v6319_v33, %v8905_v41  ;;  %v6322_v31 = vadd.f32 %v6321_v39, %v6320_v40  ;;  %v6343_v44 = vpop.f32.mrb[3].mxu1 }
 0x131   :  { %v6344_v30 = vadd.f32 %v6343_v44, %v6342_v36 }
 0x132   :  { %v714_v45 = vadd.f32 %v6341_v42, %v673_v38  ;;  %v676_v29 = vadd.f32 %v6322_v31, %v8905_v41  ;;  %v230_v42 = vlaneseq }
 0x134   :  { %v717_v28 = vadd.f32 %v6344_v30, %v676_v29  ;;  %v232_v29 = vld [vmem:[%s11754_s4] sm:$0xff]  ;;  %v8544_v30 = vmov 0   ;;  %v231_v44 = vand.u32 127, %v230_v42 }
 0x135   :  { %7910 = vset.pattern.permute.xlu0 %v8544_v30  ;;  %7911 = vset.pattern.permute.xlu1 %v8544_v30  ;;  %v12389_v42 = vld [vmem:[#allocation44_spill] sm:$0xff] }
 0x14c   :  { %v6361_v27 = vpop.f32.mrb[4].mxu0 }
 0x14d   :  { %v6383_v26 = vpop.f32.mrb[4].mxu1  ;;  %v6362_v25 = vpop.f32.mrb[5].mxu0 }
 0x14e   :  { %v6363_v24 = vadd.f32 %v6362_v25, %v6361_v27  ;;  %v6384_v23 = vpop.f32.mrb[5].mxu1  ;;  %v6364_v32 = vpop.f32.mrb[6].mxu0 }
 0x14f   :  { %v6385_v43 = vadd.f32 %v6384_v23, %v6383_v26  ;;  %v6386_v22 = vpop.f32.mrb[6].mxu1  ;;  %v6365_v35 = vpop.f32.mrb[7].mxu0 }
 0x150   :  { %v755_v34 = vadd.f32 %v6363_v24, %v714_v45  ;;  %v6366_v21 = vadd.f32 %v6365_v35, %v6364_v32  ;;  %v6387_v20 = vpop.f32.mrb[7].mxu1 }
 0x151   :  { %v6388_v33 = vadd.f32 %v6387_v20, %v6386_v22 }
 0x152   :  { %v758_v39 = vadd.f32 %v6366_v21, %v717_v28  ;;  %v796_v40 = vadd.f32 %v6385_v43, %v755_v34  ;;  %v233_v28 = vld [vmem:[%s11754_s4 + $0x8] sm:$0xff] }
 0x154   :  { %802 = vmax.xlane.f32.xlu0 %v796_v40  ;;  %v799_v36 = vadd.f32 %v6388_v33, %v758_v39  ;;  %v8545_v33 = vmov 0.0  }
 0x158   :  { %804 = vmax.xlane.f32.xlu0 %v799_v36 }
 0x16e   :  { %235 = vperm.xlu0 %7910, %v232_v29  }
 0x1e1   :  { %v803_v23 = vpop.xlane.xlu0 %802 }
 0x1e2   :  { %v806_v25 = vsub.f32 %v796_v40, %v803_v23 }
 0x1e4   :  { %v808_v26 = vmul.f32 1.442695, %v806_v25  ;;  %v12379_v25 = vld [vmem:[#allocation34_spill] sm:$0xff] }
 0x1e5   :  { %v805_v24 = vpop.xlane.xlu0 %804 }
 0x1e6   :  { %7976 = vpow2.f32 %v808_v26  ;;  %v807_v27 = vsub.f32 %v799_v36, %v805_v24  ;;  %v12380_v26 = vld [vmem:[#allocation35_spill] sm:$0xff]  ;;  %v12381_v24 = vld [vmem:[#allocation36_spill] sm:$0xff] }
 0x1e8   :  { %v810_v20 = vmul.f32 1.442695, %v807_v27  ;;  %v12382_v27 = vld [vmem:[#allocation37_spill] sm:$0xff] }
 0x1ea   :  { %7978 = vpow2.f32 %v810_v20  ;;  %v12383_v20 = vld [vmem:[#allocation38_spill] sm:$0xff] }
 0x1ed   :  { %v236_v45 = vpop.permute.xlu0 %235 }
 0x1ee   :  { %vm240_vm0 = vcmp.eq.s32.totalorder %v231_v44, %v236_v45  ;;  %v8987_v45 = vld [vmem:[#allocation2 + $0x10] sm:$0xff] }
 0x1ef   :  { %v8915_v39 = vsel %vm240_vm0, 1.0, %v8545_v33  ;;  %12405 = vst [vmem:[#allocation35_spill] sm:$0xff] %v8987_v45 }
 0x1f0   :  { %v7977_v21 = vpop.eup %7976  ;;  %12377 = vst [vmem:[#allocation53_spill] sm:$0xff] %v8915_v39 }
 0x1f1   :  { %812 = vadd.xlane.f32.xlu1 %v7977_v21 }
 0x1f4   :  { %v7979_v22 = vpop.eup %7978 }
 0x1f5   :  { %814 = vadd.xlane.f32.xlu1 %v7979_v22 }
 0x206   :  { %238 = vperm.xlu1 %7911, %v233_v28   ;;  %v12386_v28 = vld [vmem:[#allocation41_spill] sm:$0xff] }
 0x27e   :  { %v813_v31 = vpop.xlane.xlu1 %812 }
 0x27f   :  { %7980 = vrcp.f32 %v813_v31  ;;  %v12387_v31 = vld [vmem:[#allocation42_spill] sm:$0xff] }
 0x282   :  { %v815_v38 = vpop.xlane.xlu1 %814 }
 0x283   :  { %7982 = vrcp.f32 %v815_v38  ;;  %v12388_v38 = vld [vmem:[#allocation43_spill] sm:$0xff] }
 0x286   :  { %v239_v32 = vpop.permute.xlu1 %238 }
 0x287   :  { %vm241_vm1 = vcmp.eq.s32.totalorder %v231_v44, %v239_v32  ;;  %v8985_v44 = vld [vmem:[#allocation2] sm:$0xff] }
 0x288   :  { %v8917_v40 = vsel %vm241_vm1, 1.0, %v8545_v33  ;;  %12404 = vst [vmem:[#allocation34_spill] sm:$0xff] %v8985_v44 }
 0x289   :  { %v7981_v43 = vpop.eup %7980  ;;  %12378 = vst [vmem:[#allocation54_spill] sm:$0xff] %v8917_v40 }
 0x28a   :  { %v817_v35 = vmul.f32 %v7981_v43, %v7977_v21  ;;  %v12384_v21 = vld [vmem:[#allocation39_spill] sm:$0xff] }
 0x28c   :  { %v820_v29 = vsub.f32 %v817_v35, %v8915_v39 }
 0x28d   :  { %v7983_v34 = vpop.eup %7982 }
 0x28e   :  { %v819_v36 = vmul.f32 %v7983_v34, %v7979_v22  ;;  %v12385_v22 = vld [vmem:[#allocation40_spill] sm:$0xff] }
 0x290   :  { %v821_v30 = vsub.f32 %v819_v36, %v8917_v40 }
 0x292   :  { %v822_v23 = vpack.c.bf16 %v821_v30, %v820_v29 }
 0x294   :  { %6405 = vmatprep.mubr.bf16.mxu0 %v822_v23  ;;  %6423 = vmatprep.mubr.bf16.mxu1 %v822_v23 }
 0x295   :  { %6406 = vmatmul.mubr.bf16.vlgmr.msra.gmra.mrb[8].mxu0 %v822_v23  ;;  %6424 = vmatmul.mubr.bf16.vlgmr.msra.gmra.mrb[8].mxu1 %v822_v23 }
 0x296   :  { %6426 = vmatpush3.bf16.xpose.msra.mxu0 %v8753_v46  ;;  %6444 = vmatpush3.bf16.xpose.msra.mxu1 %v8756_v47 }
 0x297   :  { %6441 = vmatprep.mubr.bf16.mxu0 %v822_v23  ;;  %6459 = vmatprep.mubr.bf16.mxu1 %v822_v23 }
 0x298   :  { %6427 = vmatprep.subr.bf16.mxu0 %v8759_v48  ;;  %6445 = vmatprep.subr.bf16.mxu1 %v8762_v49 }
 0x29e   :  { %6428 = vmatpush3.bf16.xpose.msra.mxu0 %v8765_v50  ;;  %6446 = vmatpush3.bf16.xpose.msra.mxu1 %v8768_v51 }
 0x29f   :  { %6429 = vmatprep.subr.bf16.mxu0 %v8771_v52  ;;  %6447 = vmatprep.subr.bf16.mxu1 %v8774_v53 }
 0x2a6   :  { %6430 = vmatpush3.bf16.xpose.msra.mxu0 %v8777_v54  ;;  %6448 = vmatpush3.bf16.xpose.msra.mxu1 %v8780_v55 }
 0x2a7   :  { %6431 = vmatprep.subr.bf16.mxu0 %v8783_v56  ;;  %6449 = vmatprep.subr.bf16.mxu1 %v8786_v57 }
 0x2ae   :  { %6432 = vmatpush3.bf16.xpose.msra.mxu0 %v8789_v58  ;;  %6450 = vmatpush3.bf16.xpose.msra.mxu1 %v8792_v59 }
 0x2af   :  { %6433 = vmatprep.subr.bf16.mxu0 %v8795_v60  ;;  %6451 = vmatprep.subr.bf16.mxu1 %v8798_v61 }
 0x2b6   :  { %6434 = vmatpush3.bf16.xpose.msra.mxu0 %v8801_v62  ;;  %6452 = vmatpush3.bf16.xpose.msra.mxu1 %v8804_v63 }
 0x2b7   :  { %6435 = vmatprep.subr.bf16.mxu0 %v12379_v25  ;;  %6453 = vmatprep.subr.bf16.mxu1 %v12380_v26 }
 0x2be   :  { %6436 = vmatpush3.bf16.xpose.msra.mxu0 %v12381_v24  ;;  %6454 = vmatpush3.bf16.xpose.msra.mxu1 %v12382_v27 }
 0x2bf   :  { %6437 = vmatprep.subr.bf16.mxu0 %v12383_v20  ;;  %6455 = vmatprep.subr.bf16.mxu1 %v12384_v21 }
 0x2c6   :  { %6438 = vmatpush3.bf16.xpose.msra.mxu0 %v12385_v22  ;;  %6456 = vmatpush3.bf16.xpose.msra.mxu1 %v12386_v28 }
 0x2c7   :  { %6439 = vmatprep.subr.bf16.mxu0 %v12387_v31  ;;  %6457 = vmatprep.subr.bf16.mxu1 %v12388_v38 }
 0x2ce   :  { %6440 = vmatpush3.bf16.xpose.msra.mxu0 %v12389_v42  ;;  %6458 = vmatpush3.bf16.xpose.msra.mxu1 %v8840_v37 }
 0x2cf   :  { %6461 = vmatprep.subr.bf16.mxu0 %v8628_v0  ;;  %6483 = vmatprep.subr.bf16.mxu1 %v8630_v1  ;;  %v12390_v0 = vld [vmem:[#allocation12_spill] sm:$0xff]  ;;  %v12391_v1 = vld [vmem:[#allocation13_spill] sm:$0xff] }
 0x2d5   :  { %6442 = vmatmul.mubr.bf16.vlgmr.msra.gmra.mrb[12].mxu0 %v822_v23  ;;  %6460 = vmatmul.mubr.bf16.vlgmr.msra.gmra.mrb[12].mxu1 %v822_v23 }
 0x2d6   :  { %6462 = vmatpush3.bf16.msra.mxu0 %v8633_v2  ;;  %6484 = vmatpush3.bf16.msra.mxu1 %v8636_v3  ;;  %v12392_v2 = vld [vmem:[#allocation14_spill] sm:$0xff]  ;;  %v12393_v3 = vld [vmem:[#allocation15_spill] sm:$0xff] }
 0x2d7   :  { %6463 = vmatprep.subr.bf16.mxu0 %v8639_v4  ;;  %6485 = vmatprep.subr.bf16.mxu1 %v8642_v5  ;;  %v12394_v4 = vld [vmem:[#allocation16_spill] sm:$0xff]  ;;  %v12395_v5 = vld [vmem:[#allocation17_spill] sm:$0xff] }
 0x2da   :  { %6464 = vmatpush3.bf16.msra.mxu0 %v8645_v6  ;;  %6486 = vmatpush3.bf16.msra.mxu1 %v8648_v7  ;;  %v12396_v6 = vld [vmem:[#allocation18_spill] sm:$0xff]  ;;  %v12397_v7 = vld [vmem:[#allocation19_spill] sm:$0xff] }
 0x2db   :  { %6465 = vmatprep.subr.bf16.mxu0 %v8651_v8  ;;  %6487 = vmatprep.subr.bf16.mxu1 %v8654_v9  ;;  %v12398_v8 = vld [vmem:[#allocation20_spill] sm:$0xff]  ;;  %v12399_v9 = vld [vmem:[#allocation21_spill] sm:$0xff] }
 0x2de   :  { %6466 = vmatpush3.bf16.msra.mxu0 %v8657_v10  ;;  %6488 = vmatpush3.bf16.msra.mxu1 %v8660_v11  ;;  %v12400_v10 = vld [vmem:[#allocation22_spill] sm:$0xff]  ;;  %v12401_v11 = vld [vmem:[#allocation23_spill] sm:$0xff] }
 0x2df   :  { %6467 = vmatprep.subr.bf16.mxu0 %v8663_v12  ;;  %6489 = vmatprep.subr.bf16.mxu1 %v8666_v13  ;;  %v12402_v12 = vld [vmem:[#allocation32_spill] sm:$0xff]  ;;  %v12403_v13 = vld [vmem:[#allocation33_spill] sm:$0xff] }
 0x2e2   :  { %6468 = vmatpush3.bf16.msra.mxu0 %v8669_v14  ;;  %6490 = vmatpush3.bf16.msra.mxu1 %v8672_v15 }
 0x2e3   :  { %6469 = vmatprep.subr.bf16.mxu0 %v8675_v16  ;;  %6491 = vmatprep.subr.bf16.mxu1 %v8678_v17 }
 0x2e6   :  { %6470 = vmatpush3.bf16.msra.mxu0 %v8681_v18  ;;  %6492 = vmatpush3.bf16.msra.mxu1 %v8684_v19 }
 0x2e7   :  { %6471 = vmatprep.subr.bf16.mxu0 %v12390_v0  ;;  %6493 = vmatprep.subr.bf16.mxu1 %v12391_v1 }
 0x2ea   :  { %6472 = vmatpush3.bf16.msra.mxu0 %v12392_v2  ;;  %6494 = vmatpush3.bf16.msra.mxu1 %v12393_v3  ;;  %v12406_v3 = vld [vmem:[#allocation28_spill] sm:$0xff] }
 0x2eb   :  { %6473 = vmatprep.subr.bf16.mxu0 %v12394_v4  ;;  %6495 = vmatprep.subr.bf16.mxu1 %v12395_v5  ;;  %v12407_v5 = vld [vmem:[#allocation30_spill] sm:$0xff] }
 0x2ee   :  { %6474 = vmatpush3.bf16.msra.mxu0 %v12396_v6  ;;  %6496 = vmatpush3.bf16.msra.mxu1 %v12397_v7  ;;  %v8991_v7 = vld [vmem:[#allocation2 + $0x8] sm:$0xff] }
 0x2ef   :  { %6475 = vmatprep.subr.bf16.mxu0 %v12398_v8  ;;  %6497 = vmatprep.subr.bf16.mxu1 %v12399_v9  ;;  %12408 = vst [vmem:[#allocation36_spill] sm:$0xff] %v8991_v7  ;;  %v8993_v8 = vld [vmem:[#allocation2 + $0x18] sm:$0xff] }
 0x2f0   :  { %12409 = vst [vmem:[#allocation37_spill] sm:$0xff] %v8993_v8 }
 0x2f2   :  { %6476 = vmatpush3.bf16.msra.mxu0 %v12400_v10  ;;  %6498 = vmatpush3.bf16.msra.mxu1 %v12401_v11  ;;  %v12410_v11 = vld [vmem:[#allocation24_spill] sm:$0xff] }
 0x2f3   :  { %6505 = vmatprep.subr.bf16.mxu0 %v12402_v12  ;;  %6527 = vmatprep.subr.bf16.mxu1 %v12403_v13  ;;  %v12411_v13 = vld [vmem:[#allocation26_spill] sm:$0xff] }
 0x368   :  { %v857_v14 = vpop.f32.mrb[8].mxu0  ;;  %v900_v15 = vpop.f32.mrb[8].mxu1 }
 0x369   :  { %v1011_v16 = vand.u32 2147483648, %v857_v14  ;;  %v1013_v17 = vand.u32 2147483648, %v900_v15  ;;  %v859_v18 = vpop.f32.mrb[9].mxu0  ;;  %v902_v19 = vpop.f32.mrb[9].mxu1  ;;  %v8997_v15 = vld [vmem:[#allocation2 + $0x40] sm:$0xff] }
 0x36a   :  { %v1012_v32 = vand.u32 2147483648, %v859_v18  ;;  %v1014_v43 = vand.u32 2147483648, %v902_v19  ;;  %v861_v35 = vpop.f32.mrb[10].mxu0  ;;  %v904_v34 = vpop.f32.mrb[10].mxu1  ;;  %12412 = vst [vmem:[#allocation38_spill] sm:$0xff] %v8997_v15 }
 0x36b   :  { %v1027_v33 = vor.u32 1006665857, %v1011_v16  ;;  %v1029_v36 = vor.u32 1006665857, %v1013_v17  ;;  %v1019_v29 = vand.u32 2147483648, %v861_v35  ;;  %v1021_v30 = vand.u32 2147483648, %v904_v34 }
 0x36c   :  { %v1028_v23 = vor.u32 1006665857, %v1012_v32  ;;  %v1030_v0 = vor.u32 1006665857, %v1014_v43  ;;  %v863_v1 = vpop.f32.mrb[11].mxu0  ;;  %v906_v2 = vpop.f32.mrb[11].mxu1 }
 0x36d   :  { %v1059_v4 = vadd.f32 %v1027_v33, %v12406_v3  ;;  %v1061_v6 = vadd.f32 %v1029_v36, %v12407_v5  ;;  %v1035_v9 = vor.u32 1006665857, %v1019_v29  ;;  %v1037_v10 = vor.u32 1006665857, %v1021_v30  ;;  %v8999_v16 = vld [vmem:[#allocation2 + $0x50] sm:$0xff]  ;;  %v12414_v43 = vld [vmem:[#allocation29_spill] sm:$0xff] }
 0x36e   :  { %v1060_v12 = vadd.f32 %v1028_v23, %v12410_v11  ;;  %v1062_v14 = vadd.f32 %v1030_v0, %v12411_v13  ;;  %12413 = vst [vmem:[#allocation39_spill] sm:$0xff] %v8999_v16  ;;  %v1020_v17 = vand.u32 2147483648, %v863_v1  ;;  %v1022_v18 = vand.u32 2147483648, %v906_v2  ;;  %v12415_v34 = vld [vmem:[#allocation31_spill] sm:$0xff]  ;;  %v9009_v2 = vld [vmem:[#allocation2 + $0x48] sm:$0xff] }
 0x36f   :  { %v1075_v19 = vsub.f32 %v1059_v4, %v8985_v44  ;;  %v1077_v32 = vsub.f32 %v1061_v6, %v8987_v45  ;;  %v1067_v35 = vadd.f32 %v1035_v9, %v12414_v43  ;;  %v1069_v33 = vadd.f32 %v1037_v10, %v12415_v34  ;;  %12416 = vst [vmem:[#allocation40_spill] sm:$0xff] %v9009_v2  ;;  %v9011_v4 = vld [vmem:[#allocation2 + $0x58] sm:$0xff]  ;;  %v12418_v11 = vld [vmem:[#allocation25_spill] sm:$0xff] }
 0x370   :  { %v1076_v36 = vsub.f32 %v1060_v12, %v8991_v7  ;;  %v1078_v29 = vsub.f32 %v1062_v14, %v8993_v8  ;;  %v1036_v30 = vor.u32 1006665857, %v1020_v17  ;;  %v1038_v23 = vor.u32 1006665857, %v1022_v18  ;;  %12417 = vst [vmem:[#allocation41_spill] sm:$0xff] %v9011_v4  ;;  %v12419_v13 = vld [vmem:[#allocation27_spill] sm:$0xff] }
 0x371   :  { %v6141_v0 = vclamps-f32 %v1075_v19, 0.03137255  ;;  %v6143_v3 = vclamps-f32 %v1077_v32, 0.03137255  ;;  %v1083_v5 = vsub.f32 %v1067_v35, %v8997_v15  ;;  %v1085_v1 = vsub.f32 %v1069_v33, %v8999_v16 }
 0x372   :  { %v6142_v6 = vclamps-f32 %v1076_v36, 0.03137255  ;;  %v6144_v9 = vclamps-f32 %v1078_v29, 0.03137255  ;;  %v1068_v10 = vadd.f32 %v1036_v30, %v12418_v11  ;;  %v1070_v12 = vadd.f32 %v1038_v23, %v12419_v13 }
 0x373   :  { %v6149_v43 = vclamps-f32 %v1083_v5, 0.03137255  ;;  %v6151_v14 = vclamps-f32 %v1085_v1, 0.03137255  ;;  %v1123_v35 = vadd.f32 %v6141_v0, %v8985_v44  ;;  %v1125_v34 = vadd.f32 %v6143_v3, %v8987_v45 }
 0x374   :  { %v1084_v17 = vsub.f32 %v1068_v10, %v9009_v2  ;;  %v1086_v18 = vsub.f32 %v1070_v12, %v9011_v4  ;;  %v1124_v19 = vadd.f32 %v6142_v6, %v8991_v7  ;;  %v1126_v32 = vadd.f32 %v6144_v9, %v8993_v8 }
 0x375   :  { %v1131_v33 = vadd.f32 %v6149_v43, %v8997_v15  ;;  %v1133_v36 = vadd.f32 %v6151_v14, %v8999_v16  ;;  %v1139_v13 = vmax.f32 %v1123_v35, 0.0  ;;  %v1141_v9 = vmax.f32 %v1125_v34, 0.0 }
 0x376   :  { %v6150_v29 = vclamps-f32 %v1084_v17, 0.03137255  ;;  %v6152_v30 = vclamps-f32 %v1086_v18, 0.03137255  ;;  %v1140_v11 = vmax.f32 %v1124_v19, 0.0  ;;  %v1142_v6 = vmax.f32 %v1126_v32, 0.0 }
 0x377   :  { %v1147_v23 = vmax.f32 %v1131_v33, 0.0  ;;  %v1149_v5 = vmax.f32 %v1133_v36, 0.0  ;;  %v9037_v19 = vmin.f32 %v1139_v13, 1.0  ;;  %v9039_v33 = vmin.f32 %v1141_v9, 1.0 }
 0x378   :  { %v1132_v1 = vadd.f32 %v6150_v29, %v9009_v2  ;;  %v1134_v10 = vadd.f32 %v6152_v30, %v9011_v4  ;;  %v9029_v43 = vmin.f32 %v1140_v11, 1.0  ;;  %v9033_v17 = vmin.f32 %v1142_v6, 1.0  ;;  %v12432_v29 = vld [vmem:[#allocation45_spill] sm:$0xff]  ;;  %v9099_v11 = vld [vmem:[#allocation2 + $0x70] sm:$0xff] }
 0x379   :  { %v9025_v8 = vmin.f32 %v1147_v23, 1.0  ;;  %v9027_v3 = vmin.f32 %v1149_v5, 1.0  ;;  %v12433_v23 = vld [vmem:[#allocation47_spill] sm:$0xff]  ;;  %12435 = vst [vmem:[#allocation20_spill] sm:$0xff] %v9099_v11 }
 0x37a   :  { %v1148_v12 = vmax.f32 %v1132_v1, 0.0  ;;  %v1150_v0 = vmax.f32 %v1134_v10, 0.0  ;;  %12422 = vst [vmem:[#allocation44_spill] sm:$0xff] %v9029_v43  ;;  %12424 = vst [vmem:[#allocation13_spill] sm:$0xff] %v9033_v17  ;;  %v9097_v1 = vld [vmem:[#allocation2 + $0x60] sm:$0xff] }
 0x37b   :  { %12420 = vst [vmem:[#allocation42_spill] sm:$0xff] %v9025_v8  ;;  %12421 = vst [vmem:[#allocation43_spill] sm:$0xff] %v9027_v3  ;;  %v1171_v34 = vpack.c.bf16 %v9025_v8, %v9037_v19  ;;  %v1173_v36 = vpack.c.bf16 %v9027_v3, %v9039_v33 }
 0x37c   :  { %v9031_v14 = vmin.f32 %v1148_v12, 1.0  ;;  %v9035_v18 = vmin.f32 %v1150_v0, 1.0  ;;  %12434 = vst [vmem:[#allocation19_spill] sm:$0xff] %v9097_v1  ;;  %v12436_v12 = vld [vmem:[#allocation50_spill] sm:$0xff] }
 0x37e   :  { %12423 = vst [vmem:[#allocation12_spill] sm:$0xff] %v9031_v14  ;;  %12425 = vst [vmem:[#allocation14_spill] sm:$0xff] %v9035_v18  ;;  %v1172_v32 = vpack.c.bf16 %v9031_v14, %v9029_v43  ;;  %v1174_v35 = vpack.c.bf16 %v9035_v18, %v9033_v17 }
 0x380   :  { %1211 = vmatprep.mubr.bf16.mxu0 %v1172_v32  ;;  %1252 = vmatprep.mubr.bf16.mxu1 %v1174_v35  ;;  %v12437_v32 = vld [vmem:[#allocation52_spill] sm:$0xff] }
 0x381   :  { %1212 = vmatmul.mubr.bf16.vlgmr.msra.gmra.mrb[16].mxu0 %v1171_v34  ;;  %1253 = vmatmul.mubr.bf16.vlgmr.msra.gmra.mrb[16].mxu1 %v1173_v36 }
 0x382   :  { %6506 = vmatpush3.bf16.msra.mxu0 %v8753_v46  ;;  %6528 = vmatpush3.bf16.msra.mxu1 %v8756_v47  ;;  %v9079_v46 = vld [vmem:[#allocation7 + $0x40] sm:$0xff]  }
 0x383   :  { %6507 = vmatprep.subr.bf16.mxu0 %v8759_v48  ;;  %6529 = vmatprep.subr.bf16.mxu1 %v8762_v49  ;;  %v9082_v47 = vld [vmem:[#allocation7 + $0xc0] sm:$0xff]  }
 0x386   :  { %6508 = vmatpush3.bf16.msra.mxu0 %v8765_v50  ;;  %6530 = vmatpush3.bf16.msra.mxu1 %v8768_v51 }
 0x387   :  { %6509 = vmatprep.subr.bf16.mxu0 %v8771_v52  ;;  %6531 = vmatprep.subr.bf16.mxu1 %v8774_v53 }
 0x38a   :  { %6510 = vmatpush3.bf16.msra.mxu0 %v8777_v54  ;;  %6532 = vmatpush3.bf16.msra.mxu1 %v8780_v55  ;;  %v9085_v54 = vld [vmem:[#allocation2 + $0x20] sm:$0xff]  ;;  %v9087_v55 = vld [vmem:[#allocation2 + $0x30] sm:$0xff] }
 0x38b   :  { %6511 = vmatprep.subr.bf16.mxu0 %v8783_v56  ;;  %6533 = vmatprep.subr.bf16.mxu1 %v8786_v57  ;;  %12426 = vst [vmem:[#allocation15_spill] sm:$0xff] %v9085_v54  ;;  %12427 = vst [vmem:[#allocation16_spill] sm:$0xff] %v9087_v55 }
 0x38e   :  { %6512 = vmatpush3.bf16.msra.mxu0 %v8789_v58  ;;  %6534 = vmatpush3.bf16.msra.mxu1 %v8792_v59 }
 0x38f   :  { %6513 = vmatprep.subr.bf16.mxu0 %v8795_v60  ;;  %6535 = vmatprep.subr.bf16.mxu1 %v8798_v61 }
 0x392   :  { %6514 = vmatpush3.bf16.msra.mxu0 %v8801_v62  ;;  %6536 = vmatpush3.bf16.msra.mxu1 %v8804_v63 }
 0x393   :  { %6515 = vmatprep.subr.bf16.mxu0 %v12379_v25  ;;  %6537 = vmatprep.subr.bf16.mxu1 %v12380_v26 }
 0x396   :  { %6516 = vmatpush3.bf16.msra.mxu0 %v12381_v24  ;;  %6538 = vmatpush3.bf16.msra.mxu1 %v12382_v27  ;;  %v12428_v27 = vld [vmem:[#allocation49_spill] sm:$0xff] }
 0x397   :  { %6517 = vmatprep.subr.bf16.mxu0 %v12383_v20  ;;  %6539 = vmatprep.subr.bf16.mxu1 %v12384_v21  ;;  %v12429_v21 = vld [vmem:[#allocation51_spill] sm:$0xff] }
 0x39a   :  { %6518 = vmatpush3.bf16.msra.mxu0 %v12385_v22  ;;  %6540 = vmatpush3.bf16.msra.mxu1 %v12386_v28  ;;  %v9091_v28 = vld [vmem:[#allocation2 + $0x28] sm:$0xff] }
 0x39b   :  { %6519 = vmatprep.subr.bf16.mxu0 %v12387_v31  ;;  %6541 = vmatprep.subr.bf16.mxu1 %v12388_v38  ;;  %12430 = vst [vmem:[#allocation17_spill] sm:$0xff] %v9091_v28  ;;  %v9093_v31 = vld [vmem:[#allocation2 + $0x38] sm:$0xff] }
 0x39c   :  { %12431 = vst [vmem:[#allocation18_spill] sm:$0xff] %v9093_v31 }
 0x39e   :  { %6520 = vmatpush3.bf16.msra.mxu0 %v12389_v42  ;;  %6542 = vmatpush3.bf16.msra.mxu1 %v8840_v37 }
 0x39f   :  { %6549 = vmatprep.subr.bf16.mxu0 %v9079_v46  ;;  %6567 = vmatprep.subr.bf16.mxu1 %v9082_v47 }
 0x3a8   :  { %v943_v48 = vpop.f32.mrb[12].mxu0  ;;  %v986_v49 = vpop.f32.mrb[12].mxu1 }
 0x3a9   :  { %v1015_v50 = vand.u32 2147483648, %v943_v48  ;;  %v1017_v51 = vand.u32 2147483648, %v986_v49  ;;  %v945_v52 = vpop.f32.mrb[13].mxu0  ;;  %v988_v53 = vpop.f32.mrb[13].mxu1 }
 0x3aa   :  { %v1016_v56 = vand.u32 2147483648, %v945_v52  ;;  %v1018_v37 = vand.u32 2147483648, %v988_v53  ;;  %v947_v57 = vpop.f32.mrb[14].mxu0  ;;  %v990_v58 = vpop.f32.mrb[14].mxu1 }
 0x3ab   :  { %v1031_v59 = vor.u32 1006665857, %v1015_v50  ;;  %v1033_v60 = vor.u32 1006665857, %v1017_v51  ;;  %v1023_v61 = vand.u32 2147483648, %v947_v57  ;;  %v1025_v62 = vand.u32 2147483648, %v990_v58 }
 0x3ac   :  { %v1032_v63 = vor.u32 1006665857, %v1016_v56  ;;  %v1034_v25 = vor.u32 1006665857, %v1018_v37  ;;  %v949_v26 = vpop.f32.mrb[15].mxu0  ;;  %v992_v24 = vpop.f32.mrb[15].mxu1 }
 0x3ad   :  { %v1063_v20 = vadd.f32 %v1031_v59, %v12428_v27  ;;  %v1065_v22 = vadd.f32 %v1033_v60, %v12429_v21  ;;  %v1039_v38 = vor.u32 1006665857, %v1023_v61  ;;  %v1041_v42 = vor.u32 1006665857, %v1025_v62  ;;  %v9109_v56 = vld [vmem:[#allocation2 + $0x68] sm:$0xff]  ;;  %v9111_v37 = vld [vmem:[#allocation2 + $0x78] sm:$0xff] }
 0x3ae   :  { %v1064_v30 = vadd.f32 %v1032_v63, %v12432_v29  ;;  %v1066_v5 = vadd.f32 %v1034_v25, %v12433_v23  ;;  %v1024_v10 = vand.u32 2147483648, %v949_v26  ;;  %v1026_v6 = vand.u32 2147483648, %v992_v24  ;;  %12438 = vst [vmem:[#allocation21_spill] sm:$0xff] %v9109_v56  ;;  %12439 = vst [vmem:[#allocation22_spill] sm:$0xff] %v9111_v37  ;;  %v12440_v59 = vld [vmem:[#allocation46_spill] sm:$0xff]  ;;  %v12441_v61 = vld [vmem:[#allocation48_spill] sm:$0xff] }
 0x3af   :  { %v1079_v13 = vsub.f32 %v1063_v20, %v9085_v54  ;;  %v1081_v9 = vsub.f32 %v1065_v22, %v9087_v55  ;;  %v1071_v0 = vadd.f32 %v1039_v38, %v12436_v12  ;;  %v1073_v35 = vadd.f32 %v1041_v42, %v12437_v32 }
 0x3b0   :  { %v1080_v34 = vsub.f32 %v1064_v30, %v9091_v28  ;;  %v1082_v36 = vsub.f32 %v1066_v5, %v9093_v31  ;;  %v1040_v48 = vor.u32 1006665857, %v1024_v10  ;;  %v1042_v49 = vor.u32 1006665857, %v1026_v6 }
 0x3b1   :  { %v6145_v50 = vclamps-f32 %v1079_v13, 0.03137255  ;;  %v6147_v51 = vclamps-f32 %v1081_v9, 0.03137255  ;;  %v1087_v52 = vsub.f32 %v1071_v0, %v9097_v1  ;;  %v1089_v53 = vsub.f32 %v1073_v35, %v9099_v11 }
 0x3b2   :  { %v6146_v57 = vclamps-f32 %v1080_v34, 0.03137255  ;;  %v6148_v58 = vclamps-f32 %v1082_v36, 0.03137255  ;;  %v1072_v60 = vadd.f32 %v1040_v48, %v12440_v59  ;;  %v1074_v62 = vadd.f32 %v1042_v49, %v12441_v61  ;;  %v9149_v61 = vld [vmem:[#allocation7] sm:$0xff]  }
 0x3b3   :  { %v6153_v63 = vclamps-f32 %v1087_v52, 0.03137255  ;;  %v6155_v25 = vclamps-f32 %v1089_v53, 0.03137255  ;;  %v1127_v21 = vadd.f32 %v6145_v50, %v9085_v54  ;;  %v1129_v22 = vadd.f32 %v6147_v51, %v9087_v55 }
 0x3b4   :  { %v1088_v26 = vsub.f32 %v1072_v60, %v9109_v56  ;;  %v1090_v24 = vsub.f32 %v1074_v62, %v9111_v37  ;;  %v1128_v27 = vadd.f32 %v6146_v57, %v9091_v28  ;;  %v1130_v20 = vadd.f32 %v6148_v58, %v9093_v31  ;;  %v9152_v62 = vld [vmem:[#allocation7 + $0x80] sm:$0xff]  }
 0x3b5   :  { %v1135_v38 = vadd.f32 %v6153_v63, %v9097_v1  ;;  %v1137_v42 = vadd.f32 %v6155_v25, %v9099_v11  ;;  %v1143_v12 = vmax.f32 %v1127_v21, 0.0  ;;  %v1145_v0 = vmax.f32 %v1129_v22, 0.0  ;;  %v9155_v63 = vld [vmem:[#allocation7 + $0x48] sm:$0xff]   ;;  %v9173_v21 = vld [vmem:[#allocation7 + $0x10] sm:$0xff]  }
 0x3b6   :  { %v6154_v29 = vclamps-f32 %v1088_v26, 0.03137255  ;;  %v6156_v30 = vclamps-f32 %v1090_v24, 0.03137255  ;;  %v1144_v6 = vmax.f32 %v1128_v27, 0.0  ;;  %v1146_v9 = vmax.f32 %v1130_v20, 0.0 }
 0x3b7   :  { %v1151_v23 = vmax.f32 %v1135_v38, 0.0  ;;  %v1153_v5 = vmax.f32 %v1137_v42, 0.0  ;;  %v9137_v52 = vmin.f32 %v1143_v12, 1.0  ;;  %v9139_v53 = vmin.f32 %v1145_v0, 1.0  ;;  %v9158_v25 = vld [vmem:[#allocation7 + $0xc8] sm:$0xff]   ;;  %v9167_v27 = vld [vmem:[#allocation7 + $0x50] sm:$0xff]  }
 0x3b8   :  { %v1136_v10 = vadd.f32 %v6154_v29, %v9109_v56  ;;  %v1138_v13 = vadd.f32 %v6156_v30, %v9111_v37  ;;  %v9129_v48 = vmin.f32 %v1144_v6, 1.0  ;;  %v9133_v50 = vmin.f32 %v1146_v9, 1.0  ;;  %12450 = vst [vmem:[#allocation31_spill] sm:$0xff] %v9158_v25  ;;  %v9161_v26 = vld [vmem:[#allocation7 + $0x8] sm:$0xff]   ;;  %12453 = vst [vmem:[#allocation49_spill] sm:$0xff] %v9167_v27  ;;  %v9170_v20 = vld [vmem:[#allocation7 + $0xd0] sm:$0xff]  }
 0x3b9   :  { %v9125_v34 = vmin.f32 %v1151_v23, 1.0  ;;  %v9127_v36 = vmin.f32 %v1153_v5, 1.0  ;;  %12448 = vst [vmem:[#allocation26_spill] sm:$0xff] %v9137_v52  ;;  %12449 = vst [vmem:[#allocation29_spill] sm:$0xff] %v9139_v53  ;;  %v9164_v24 = vld [vmem:[#allocation7 + $0x88] sm:$0xff]   ;;  %v9176_v22 = vld [vmem:[#allocation7 + $0x90] sm:$0xff]  }
 0x3ba   :  { %v1152_v32 = vmax.f32 %v1136_v10, 0.0  ;;  %v1154_v35 = vmax.f32 %v1138_v13, 0.0  ;;  %12444 = vst [vmem:[#allocation33_spill] sm:$0xff] %v9129_v48  ;;  %12446 = vst [vmem:[#allocation30_spill] sm:$0xff] %v9133_v50  ;;  %v9179_v38 = vld [vmem:[#allocation7 + $0x58] sm:$0xff]   ;;  %v9191_v23 = vld [vmem:[#allocation7 + $0x60] sm:$0xff]  }
 0x3bb   :  { %12442 = vst [vmem:[#allocation23_spill] sm:$0xff] %v9125_v34  ;;  %12443 = vst [vmem:[#allocation32_spill] sm:$0xff] %v9127_v36  ;;  %v1175_v59 = vpack.c.bf16 %v9125_v34, %v9137_v52  ;;  %v1177_v60 = vpack.c.bf16 %v9127_v36, %v9139_v53  ;;  %v9182_v42 = vld [vmem:[#allocation7 + $0xd8] sm:$0xff]   ;;  %v9194_v5 = vld [vmem:[#allocation7 + $0xe0] sm:$0xff]  }
 0x3bc   :  { %v9131_v49 = vmin.f32 %v1152_v32, 1.0  ;;  %v9135_v51 = vmin.f32 %v1154_v35, 1.0  ;;  %12451 = vst [vmem:[#allocation25_spill] sm:$0xff] %v9161_v26  ;;  %12452 = vst [vmem:[#allocation27_spill] sm:$0xff] %v9164_v24  ;;  %v9185_v29 = vld [vmem:[#allocation7 + $0x18] sm:$0xff]   ;;  %v9197_v10 = vld [vmem:[#allocation7 + $0x20] sm:$0xff]  }
 0x3bd   :  { %12454 = vst [vmem:[#allocation51_spill] sm:$0xff] %v9170_v20  ;;  %12455 = vst [vmem:[#allocation45_spill] sm:$0xff] %v9173_v21  ;;  %v9188_v30 = vld [vmem:[#allocation7 + $0x98] sm:$0xff]   ;;  %v9200_v6 = vld [vmem:[#allocation7 + $0xa0] sm:$0xff]  }
 0x3be   :  { %12445 = vst [vmem:[#allocation28_spill] sm:$0xff] %v9131_v49  ;;  %12447 = vst [vmem:[#allocation24_spill] sm:$0xff] %v9135_v51  ;;  %v1176_v57 = vpack.c.bf16 %v9131_v49, %v9129_v48  ;;  %v1178_v58 = vpack.c.bf16 %v9135_v51, %v9133_v50  ;;  %v9203_v13 = vld [vmem:[#allocation7 + $0x68] sm:$0xff]   ;;  %v9215_v32 = vld [vmem:[#allocation7 + $0x70] sm:$0xff]  }
 0x3bf   :  { %12456 = vst [vmem:[#allocation47_spill] sm:$0xff] %v9176_v22  ;;  %12457 = vst [vmem:[#allocation50_spill] sm:$0xff] %v9179_v38  ;;  %v9206_v9 = vld [vmem:[#allocation7 + $0xe8] sm:$0xff]   ;;  %v9218_v35 = vld [vmem:[#allocation7 + $0xf0] sm:$0xff]  }
 0x3c0   :  { %1293 = vmatprep.mubr.bf16.mxu0 %v1176_v57  ;;  %1334 = vmatprep.mubr.bf16.mxu1 %v1178_v58  ;;  %12458 = vst [vmem:[#allocation52_spill] sm:$0xff] %v9182_v42  ;;  %12459 = vst [vmem:[#allocation46_spill] sm:$0xff] %v9185_v29  ;;  %v9209_v12 = vld [vmem:[#allocation7 + $0x28] sm:$0xff]   ;;  %v9221_v57 = vld [vmem:[#allocation7 + $0x30] sm:$0xff]  }
 0x3c1   :  { %1294 = vmatmul.mubr.bf16.vlgmr.msra.gmra.mrb[20].mxu0 %v1175_v59  ;;  %1335 = vmatmul.mubr.bf16.vlgmr.msra.gmra.mrb[20].mxu1 %v1177_v60  ;;  %12460 = vst [vmem:[#allocation48_spill] sm:$0xff] %v9188_v30  ;;  %12461 = vst [vmem:[#allocation55_spill] sm:$0xff] %v9191_v23  ;;  %v9212_v0 = vld [vmem:[#allocation7 + $0xa8] sm:$0xff]   ;;  %v9224_v58 = vld [vmem:[#allocation7 + $0xb0] sm:$0xff]  }
 0x3c2   :  { %6550 = vmatpush3.bf16.xpose.msra.mxu0 %v9149_v61  ;;  %6568 = vmatpush3.bf16.xpose.msra.mxu1 %v9152_v62  ;;  %12462 = vst [vmem:[#allocation56_spill] sm:$0xff] %v9194_v5  ;;  %12463 = vst [vmem:[#allocation57_spill] sm:$0xff] %v9197_v10  ;;  %v9227_v59 = vld [vmem:[#allocation7 + $0x78] sm:$0xff]   ;;  %v9239_v51 = vld [vmem:[#allocation7 + $0x140] sm:$0xff]  }
 0x3c3   :  { %6551 = vmatprep.subr.bf16.mxu0 %v9155_v63  ;;  %6569 = vmatprep.subr.bf16.mxu1 %v9158_v25  ;;  %12464 = vst [vmem:[#allocation58_spill] sm:$0xff] %v9200_v6  ;;  %12465 = vst [vmem:[#allocation59_spill] sm:$0xff] %v9203_v13  ;;  %v9230_v60 = vld [vmem:[#allocation7 + $0xf8] sm:$0xff]   ;;  %v9242_v49 = vld [vmem:[#allocation7 + $0x1c0] sm:$0xff]  }
 0x3c4   :  { %12466 = vst [vmem:[#allocation60_spill] sm:$0xff] %v9206_v9  ;;  %12467 = vst [vmem:[#allocation61_spill] sm:$0xff] %v9209_v12  ;;  %v9233_v37 = vld [vmem:[#allocation7 + $0x38] sm:$0xff]  }
 0x3c5   :  { %12468 = vst [vmem:[#allocation62_spill] sm:$0xff] %v9212_v0  ;;  %12469 = vst [vmem:[#allocation63_spill] sm:$0xff] %v9215_v32  ;;  %v9236_v56 = vld [vmem:[#allocation7 + $0xb8] sm:$0xff]  }
 0x3c6   :  { %12470 = vst [vmem:[#allocation64_spill] sm:$0xff] %v9218_v35  ;;  %12471 = vst [vmem:[#allocation65_spill] sm:$0xff] %v9221_v57 }
 0x3c7   :  { %12472 = vst [vmem:[#allocation66_spill] sm:$0xff] %v9224_v58  ;;  %12473 = vst [vmem:[#allocation67_spill] sm:$0xff] %v9227_v59 }
 0x3c8   :  { %12474 = vst [vmem:[#allocation68_spill] sm:$0xff] %v9230_v60  ;;  %12475 = vst [vmem:[#allocation69_spill] sm:$0xff] %v9233_v37 }
 0x3c9   :  { %12476 = vst [vmem:[#allocation70_spill] sm:$0xff] %v9236_v56  ;;  %12477 = vst [vmem:[#allocation71_spill] sm:$0xff] %v9239_v51 }
 0x3ca   :  { %6552 = vmatpush3.bf16.xpose.msra.mxu0 %v9161_v26  ;;  %6570 = vmatpush3.bf16.xpose.msra.mxu1 %v9164_v24  ;;  %12478 = vst [vmem:[#allocation72_spill] sm:$0xff] %v9242_v49 }
 0x3cb   :  { %6553 = vmatprep.subr.bf16.mxu0 %v9167_v27  ;;  %6571 = vmatprep.subr.bf16.mxu1 %v9170_v20 }
 0x3d2   :  { %6554 = vmatpush3.bf16.xpose.msra.mxu0 %v9173_v21  ;;  %6572 = vmatpush3.bf16.xpose.msra.mxu1 %v9176_v22 }
 0x3d3   :  { %6555 = vmatprep.subr.bf16.mxu0 %v9179_v38  ;;  %6573 = vmatprep.subr.bf16.mxu1 %v9182_v42 }
 0x3da   :  { %6556 = vmatpush3.bf16.xpose.msra.mxu0 %v9185_v29  ;;  %6574 = vmatpush3.bf16.xpose.msra.mxu1 %v9188_v30 }
 0x3db   :  { %6557 = vmatprep.subr.bf16.mxu0 %v9191_v23  ;;  %6575 = vmatprep.subr.bf16.mxu1 %v9194_v5 }
 0x3e2   :  { %6558 = vmatpush3.bf16.xpose.msra.mxu0 %v9197_v10  ;;  %6576 = vmatpush3.bf16.xpose.msra.mxu1 %v9200_v6 }
 0x3e3   :  { %6559 = vmatprep.subr.bf16.mxu0 %v9203_v13  ;;  %6577 = vmatprep.subr.bf16.mxu1 %v9206_v9 }
 0x3ea   :  { %6560 = vmatpush3.bf16.xpose.msra.mxu0 %v9209_v12  ;;  %6578 = vmatpush3.bf16.xpose.msra.mxu1 %v9212_v0 }
 0x3eb   :  { %6561 = vmatprep.subr.bf16.mxu0 %v9215_v32  ;;  %6579 = vmatprep.subr.bf16.mxu1 %v9218_v35 }
 0x3f2   :  { %6562 = vmatpush3.bf16.xpose.msra.mxu0 %v9221_v57  ;;  %6580 = vmatpush3.bf16.xpose.msra.mxu1 %v9224_v58 }
 0x3f3   :  { %6563 = vmatprep.subr.bf16.mxu0 %v9227_v59  ;;  %6581 = vmatprep.subr.bf16.mxu1 %v9230_v60 }
 0x3fa   :  { %6564 = vmatpush3.bf16.xpose.msra.mxu0 %v9233_v37  ;;  %6582 = vmatpush3.bf16.xpose.msra.mxu1 %v9236_v56 }
 0x3fb   :  { %6585 = vmatprep.subr.bf16.mxu0 %v9239_v51  ;;  %6603 = vmatprep.subr.bf16.mxu1 %v9242_v49 }
 0x454   :  { %v6477_v11 = vpop.f32.mrb[16].mxu0  ;;  %v6499_v1 = vpop.f32.mrb[16].mxu1 }
 0x455   :  { %v6478_v31 = vpop.f32.mrb[17].mxu0  ;;  %v6500_v28 = vpop.f32.mrb[17].mxu1 }
 0x456   :  { %v6479_v36 = vadd.f32 %v6478_v31, %v6477_v11  ;;  %v6501_v34 = vadd.f32 %v6500_v28, %v6499_v1  ;;  %v6480_v55 = vpop.f32.mrb[18].mxu0  ;;  %v6502_v54 = vpop.f32.mrb[18].mxu1 }
 0x457   :  { %v6481_v50 = vpop.f32.mrb[19].mxu0  ;;  %v6503_v48 = vpop.f32.mrb[19].mxu1 }
 0x458   :  { %v1214_v53 = vadd.f32 %v6479_v36, %v8905_v41  ;;  %v6482_v52 = vadd.f32 %v6481_v50, %v6480_v55  ;;  %v6504_v4 = vadd.f32 %v6503_v48, %v6502_v54 }
 0x45a   :  { %v1255_v2 = vadd.f32 %v6501_v34, %v1214_v53  ;;  %v1217_v18 = vadd.f32 %v6482_v52, %v8905_v41  ;;  %v9255_v52 = vld [vmem:[#allocation7 + $0x100] sm:$0xff]  }
 0x45b   :  { %v9258_v53 = vld [vmem:[#allocation7 + $0x180] sm:$0xff]  }
 0x45c   :  { %v1258_v14 = vadd.f32 %v6504_v4, %v1217_v18 }
 0x494   :  { %v6521_v16 = vpop.f32.mrb[20].mxu0  ;;  %v6543_v15 = vpop.f32.mrb[20].mxu1 }
 0x495   :  { %v6522_v7 = vpop.f32.mrb[21].mxu0  ;;  %v6544_v3 = vpop.f32.mrb[21].mxu1 }
 0x496   :  { %v6523_v8 = vadd.f32 %v6522_v7, %v6521_v16  ;;  %v6545_v45 = vadd.f32 %v6544_v3, %v6543_v15  ;;  %v6524_v31 = vpop.f32.mrb[22].mxu0  ;;  %v6546_v28 = vpop.f32.mrb[22].mxu1 }
 0x497   :  { %v6525_v1 = vpop.f32.mrb[23].mxu0  ;;  %v6547_v11 = vpop.f32.mrb[23].mxu1 }
 0x498   :  { %v1296_v44 = vadd.f32 %v6523_v8, %v1255_v2  ;;  %v6526_v17 = vadd.f32 %v6525_v1, %v6524_v31  ;;  %v6548_v43 = vadd.f32 %v6547_v11, %v6546_v28  ;;  %v9263_v31 = vld [vmem:[#allocation7 + $0x148] sm:$0xff]  }
 0x499   :  { %v9266_v28 = vld [vmem:[#allocation7 + $0x1c8] sm:$0xff]  }
 0x49a   :  { %v1299_v36 = vadd.f32 %v6526_v17, %v1258_v14  ;;  %v1337_v55 = vadd.f32 %v6545_v45, %v1296_v44  ;;  %v9269_v1 = vld [vmem:[#allocation7 + $0x108] sm:$0xff]  }
 0x49b   :  { %v9272_v11 = vld [vmem:[#allocation7 + $0x188] sm:$0xff]  }
 0x49c   :  { %1343 = vmax.xlane.f32.xlu1 %v1337_v55  ;;  %v1340_v54 = vadd.f32 %v6548_v43, %v1299_v36  ;;  %v9275_v36 = vld [vmem:[#allocation7 + $0x150] sm:$0xff]  }
 0x49e   :  { %1345 = vmax.xlane.f32.xlu0 %v1340_v54 }
 0x529   :  { %v1344_v41 = vpop.xlane.xlu1 %1343 }
 0x52a   :  { %v1347_v4 = vsub.f32 %v1337_v55, %v1344_v41  ;;  %v9278_v55 = vld [vmem:[#allocation7 + $0x1d0] sm:$0xff]  }
 0x52b   :  { %v1346_v18 = vpop.xlane.xlu0 %1345  ;;  %v9284_v41 = vld [vmem:[#allocation7 + $0x190] sm:$0xff]  }
 0x52c   :  { %v1349_v34 = vmul.f32 1.442695, %v1347_v4  ;;  %v1348_v48 = vsub.f32 %v1340_v54, %v1346_v18  ;;  %v9281_v54 = vld [vmem:[#allocation7 + $0x110] sm:$0xff]   ;;  %v9287_v4 = vld [vmem:[#allocation7 + $0x158] sm:$0xff]  }
 0x52d   :  { %v9290_v18 = vld [vmem:[#allocation7 + $0x1d8] sm:$0xff]  }
 0x52e   :  { %7984 = vpow2.f32 %v1349_v34  ;;  %v1351_v7 = vmul.f32 1.442695, %v1348_v48  ;;  %v9293_v34 = vld [vmem:[#allocation7 + $0x118] sm:$0xff]  }
 0x52f   :  { %v9296_v48 = vld [vmem:[#allocation7 + $0x198] sm:$0xff]  }
 0x530   :  { %7986 = vpow2.f32 %v1351_v7  ;;  %v9299_v7 = vld [vmem:[#allocation7 + $0x160] sm:$0xff]  }
 0x538   :  { %v7985_v15 = vpop.eup %7984 }
 0x539   :  { %1353 = vadd.xlane.f32.xlu1 %v7985_v15 }
 0x53a   :  { %v7987_v16 = vpop.eup %7986 }
 0x53d   :  { %1355 = vadd.xlane.f32.xlu1 %v7987_v16 }
 0x5c6   :  { %v1354_v8 = vpop.xlane.xlu1 %1353 }
 0x5c7   :  { %7988 = vrcp.f32 %v1354_v8  ;;  %v9308_v8 = vld [vmem:[#allocation7 + $0x1a0] sm:$0xff]  }
 0x5ca   :  { %v1356_v2 = vpop.xlane.xlu1 %1355 }
 0x5cb   :  { %7990 = vrcp.f32 %v1356_v2  ;;  %v9311_v2 = vld [vmem:[#allocation7 + $0x168] sm:$0xff]  }
 0x5d1   :  { %v7989_v44 = vpop.eup %7988 }
 0x5d2   :  { %v1358_v45 = vmul.f32 %v7989_v44, %v7985_v15  ;;  %v9302_v15 = vld [vmem:[#allocation7 + $0x1e0] sm:$0xff]   ;;  %v9314_v44 = vld [vmem:[#allocation7 + $0x1e8] sm:$0xff]  }
 0x5d4   :  { %v1361_v14 = vsub.f32 %v1358_v45, %v8915_v39  ;;  %v9317_v45 = vld [vmem:[#allocation7 + $0x128] sm:$0xff]   ;;  %v9335_v39 = vld [vmem:[#allocation7 + $0x178] sm:$0xff]  }
 0x5d5   :  { %v7991_v3 = vpop.eup %7990 }
 0x5d6   :  { %v1360_v43 = vmul.f32 %v7991_v3, %v7987_v16  ;;  %v9305_v16 = vld [vmem:[#allocation7 + $0x120] sm:$0xff]   ;;  %v9320_v3 = vld [vmem:[#allocation7 + $0x1a8] sm:$0xff]  }
 0x5d7   :  { %12479 = vst [vmem:[#allocation73_spill] sm:$0xff] %v9320_v3 }
 0x5d8   :  { %v1362_v17 = vsub.f32 %v1360_v43, %v8917_v40  ;;  %v9323_v43 = vld [vmem:[#allocation7 + $0x170] sm:$0xff]  }
 0x5d9   :  { %12480 = vst [vmem:[#allocation74_spill] sm:$0xff] %v9323_v43  ;;  %v9332_v40 = vld [vmem:[#allocation7 + $0x1b0] sm:$0xff]  }
 0x5da   :  { %v9249_v50 = vpack.c.bf16 %v1362_v17, %v1361_v14  ;;  %v9326_v14 = vld [vmem:[#allocation7 + $0x1f0] sm:$0xff]  }
 0x5db   :  { %12481 = vst [vmem:[#allocation75_spill] sm:$0xff] %v9326_v14  ;;  %v9329_v17 = vld [vmem:[#allocation7 + $0x130] sm:$0xff]  }
 0x5dc   :  { %6565 = vmatprep.mubr.bf16.mxu0 %v9249_v50  ;;  %6583 = vmatprep.mubr.bf16.mxu1 %v9249_v50 }
 0x5dd   :  { %6566 = vmatmul.mubr.bf16.vlgmr.msra.gmra.mrb[24].mxu0 %v9249_v50  ;;  %6584 = vmatmul.mubr.bf16.vlgmr.msra.gmra.mrb[24].mxu1 %v9249_v50 }
 0x5de   :  { %6586 = vmatpush3.bf16.xpose.msra.mxu0 %v9255_v52  ;;  %6604 = vmatpush3.bf16.xpose.msra.mxu1 %v9258_v53 }
 0x5df   :  { %6601 = vmatprep.mubr.bf16.mxu0 %v9249_v50  ;;  %6619 = vmatprep.mubr.bf16.mxu1 %v9249_v50 }
 0x5e0   :  { %6587 = vmatprep.subr.bf16.mxu0 %v9263_v31  ;;  %6605 = vmatprep.subr.bf16.mxu1 %v9266_v28 }
 0x5e6   :  { %6588 = vmatpush3.bf16.xpose.msra.mxu0 %v9269_v1  ;;  %6606 = vmatpush3.bf16.xpose.msra.mxu1 %v9272_v11 }
 0x5e7   :  { %6589 = vmatprep.subr.bf16.mxu0 %v9275_v36  ;;  %6607 = vmatprep.subr.bf16.mxu1 %v9278_v55 }
 0x5ee   :  { %6590 = vmatpush3.bf16.xpose.msra.mxu0 %v9281_v54  ;;  %6608 = vmatpush3.bf16.xpose.msra.mxu1 %v9284_v41 }
 0x5ef   :  { %6591 = vmatprep.subr.bf16.mxu0 %v9287_v4  ;;  %6609 = vmatprep.subr.bf16.mxu1 %v9290_v18 }
 0x5f6   :  { %6592 = vmatpush3.bf16.xpose.msra.mxu0 %v9293_v34  ;;  %6610 = vmatpush3.bf16.xpose.msra.mxu1 %v9296_v48 }
 0x5f7   :  { %6593 = vmatprep.subr.bf16.mxu0 %v9299_v7  ;;  %6611 = vmatprep.subr.bf16.mxu1 %v9302_v15 }
 0x5fe   :  { %6594 = vmatpush3.bf16.xpose.msra.mxu0 %v9305_v16  ;;  %6612 = vmatpush3.bf16.xpose.msra.mxu1 %v9308_v8 }
 0x5ff   :  { %6595 = vmatprep.subr.bf16.mxu0 %v9311_v2  ;;  %6613 = vmatprep.subr.bf16.mxu1 %v9314_v44 }
 0x606   :  { %6596 = vmatpush3.bf16.xpose.msra.mxu0 %v9317_v45  ;;  %6614 = vmatpush3.bf16.xpose.msra.mxu1 %v9320_v3  ;;  %v9338_v3 = vld [vmem:[#allocation7 + $0x1f8] sm:$0xff]  }
 0x607   :  { %6597 = vmatprep.subr.bf16.mxu0 %v9323_v43  ;;  %6615 = vmatprep.subr.bf16.mxu1 %v9326_v14  ;;  %v9341_v43 = vld [vmem:[#allocation7 + $0x138] sm:$0xff]  }
 0x608   :  { %v9344_v14 = vld [vmem:[#allocation7 + $0x1b8] sm:$0xff]  }
 0x609   :  { %12482 = vst [vmem:[#allocation76_spill] sm:$0xff] %v9344_v14 }
 0x60e   :  { %6598 = vmatpush3.bf16.xpose.msra.mxu0 %v9329_v17  ;;  %6616 = vmatpush3.bf16.xpose.msra.mxu1 %v9332_v40 }
 0x60f   :  { %6599 = vmatprep.subr.bf16.mxu0 %v9335_v39  ;;  %6617 = vmatprep.subr.bf16.mxu1 %v9338_v3 }
 0x616   :  { %6600 = vmatpush3.bf16.xpose.msra.mxu0 %v9341_v43  ;;  %6618 = vmatpush3.bf16.xpose.msra.mxu1 %v9344_v14 }
 0x617   :  { %6621 = vmatprep.subr.bf16.mxu0 %v9079_v46  ;;  %6643 = vmatprep.subr.bf16.mxu1 %v9082_v47 }
 0x61d   :  { %6602 = vmatmul.mubr.bf16.vlgmr.msra.gmra.mrb[28].mxu0 %v9249_v50  ;;  %6620 = vmatmul.mubr.bf16.vlgmr.msra.gmra.mrb[28].mxu1 %v9249_v50 }
 0x61e   :  { %6622 = vmatpush3.bf16.msra.mxu0 %v9149_v61  ;;  %6644 = vmatpush3.bf16.msra.mxu1 %v9152_v62 }
 0x61f   :  { %6623 = vmatprep.subr.bf16.mxu0 %v9155_v63  ;;  %6645 = vmatprep.subr.bf16.mxu1 %v9158_v25  ;;  %v12496_v25 = vld [vmem:[#allocation41_spill] sm:$0xff] }
 0x622   :  { %6624 = vmatpush3.bf16.msra.mxu0 %v9161_v26  ;;  %6646 = vmatpush3.bf16.msra.mxu1 %v9164_v24  ;;  %v12493_v24 = vld [vmem:[#allocation12_spill] sm:$0xff]  ;;  %v12494_v26 = vld [vmem:[#allocation14_spill] sm:$0xff] }
 0x623   :  { %6625 = vmatprep.subr.bf16.mxu0 %v9167_v27  ;;  %6647 = vmatprep.subr.bf16.mxu1 %v9170_v20  ;;  %v12489_v27 = vld [vmem:[#allocation36_spill] sm:$0xff] }
 0x626   :  { %6626 = vmatpush3.bf16.msra.mxu0 %v9173_v21  ;;  %6648 = vmatpush3.bf16.msra.mxu1 %v9176_v22  ;;  %v12488_v21 = vld [vmem:[#allocation43_spill] sm:$0xff] }
 0x627   :  { %6627 = vmatprep.subr.bf16.mxu0 %v9179_v38  ;;  %6649 = vmatprep.subr.bf16.mxu1 %v9182_v42 }
 0x62a   :  { %6628 = vmatpush3.bf16.msra.mxu0 %v9185_v29  ;;  %6650 = vmatpush3.bf16.msra.mxu1 %v9188_v30  ;;  %v12483_v29 = vld [vmem:[#allocation44_spill] sm:$0xff] }
 0x62b   :  { %6629 = vmatprep.subr.bf16.mxu0 %v9191_v23  ;;  %6651 = vmatprep.subr.bf16.mxu1 %v9194_v5 }
 0x62e   :  { %6630 = vmatpush3.bf16.msra.mxu0 %v9197_v10  ;;  %6652 = vmatpush3.bf16.msra.mxu1 %v9200_v6 }
 0x62f   :  { %6631 = vmatprep.subr.bf16.mxu0 %v9203_v13  ;;  %6653 = vmatprep.subr.bf16.mxu1 %v9206_v9 }
 0x632   :  { %6632 = vmatpush3.bf16.msra.mxu0 %v9209_v12  ;;  %6654 = vmatpush3.bf16.msra.mxu1 %v9212_v0 }
 0x633   :  { %6633 = vmatprep.subr.bf16.mxu0 %v9215_v32  ;;  %6655 = vmatprep.subr.bf16.mxu1 %v9218_v35 }
 0x636   :  { %6634 = vmatpush3.bf16.msra.mxu0 %v9221_v57  ;;  %6656 = vmatpush3.bf16.msra.mxu1 %v9224_v58 }
 0x637   :  { %6635 = vmatprep.subr.bf16.mxu0 %v9227_v59  ;;  %6657 = vmatprep.subr.bf16.mxu1 %v9230_v60 }
 0x63a   :  { %6636 = vmatpush3.bf16.msra.mxu0 %v9233_v37  ;;  %6658 = vmatpush3.bf16.msra.mxu1 %v9236_v56 }
 0x63b   :  { %6665 = vmatprep.subr.bf16.mxu0 %v9239_v51  ;;  %6687 = vmatprep.subr.bf16.mxu1 %v9242_v49 }
 0x6b0   :  { %v1398_v50 = vpop.f32.mrb[24].mxu0  ;;  %v1441_v32 = vpop.f32.mrb[24].mxu1 }
 0x6b1   :  { %v1552_v0 = vand.u32 2147483648, %v1398_v50  ;;  %v1554_v35 = vand.u32 2147483648, %v1441_v32  ;;  %v1400_v12 = vpop.f32.mrb[25].mxu0  ;;  %v1443_v57 = vpop.f32.mrb[25].mxu1 }
 0x6b2   :  { %v1553_v9 = vand.u32 2147483648, %v1400_v12  ;;  %v1555_v58 = vand.u32 2147483648, %v1443_v57  ;;  %v1402_v13 = vpop.f32.mrb[26].mxu0  ;;  %v1445_v59 = vpop.f32.mrb[26].mxu1  ;;  %v12484_v12 = vld [vmem:[#allocation13_spill] sm:$0xff] }
 0x6b3   :  { %v1568_v6 = vor.u32 1006665857, %v1552_v0  ;;  %v1570_v60 = vor.u32 1006665857, %v1554_v35  ;;  %v1560_v10 = vand.u32 2147483648, %v1402_v13  ;;  %v1562_v37 = vand.u32 2147483648, %v1445_v59 }
 0x6b4   :  { %v1569_v5 = vor.u32 1006665857, %v1553_v9  ;;  %v1571_v56 = vor.u32 1006665857, %v1555_v58  ;;  %v1404_v23 = vpop.f32.mrb[27].mxu0  ;;  %v1447_v51 = vpop.f32.mrb[27].mxu1 }
 0x6b5   :  { %v1600_v49 = vadd.f32 %v1568_v6, %v9037_v19  ;;  %v1602_v30 = vadd.f32 %v1570_v60, %v9039_v33  ;;  %v1576_v50 = vor.u32 1006665857, %v1560_v10  ;;  %v1578_v32 = vor.u32 1006665857, %v1562_v37  ;;  %v12485_v0 = vld [vmem:[#allocation34_spill] sm:$0xff]  ;;  %v12486_v13 = vld [vmem:[#allocation35_spill] sm:$0xff] }
 0x6b6   :  { %v1601_v42 = vadd.f32 %v1569_v5, %v12483_v29  ;;  %v1603_v57 = vadd.f32 %v1571_v56, %v12484_v12  ;;  %v1561_v38 = vand.u32 2147483648, %v1404_v23  ;;  %v1563_v22 = vand.u32 2147483648, %v1447_v51  ;;  %v12487_v9 = vld [vmem:[#allocation42_spill] sm:$0xff]  ;;  %v12490_v6 = vld [vmem:[#allocation37_spill] sm:$0xff]  ;;  %v12492_v23 = vld [vmem:[#allocation39_spill] sm:$0xff] }
 0x6b7   :  { %v1616_v35 = vsub.f32 %v1600_v49, %v12485_v0  ;;  %v1618_v59 = vsub.f32 %v1602_v30, %v12486_v13  ;;  %v1608_v58 = vadd.f32 %v1576_v50, %v12487_v9  ;;  %v1610_v20 = vadd.f32 %v1578_v32, %v12488_v21  ;;  %v12491_v5 = vld [vmem:[#allocation38_spill] sm:$0xff]  ;;  %v12495_v32 = vld [vmem:[#allocation40_spill] sm:$0xff] }
 0x6b8   :  { %v1617_v19 = vsub.f32 %v1601_v42, %v12489_v27  ;;  %v1619_v33 = vsub.f32 %v1603_v57, %v12490_v6  ;;  %v1577_v10 = vor.u32 1006665857, %v1561_v38  ;;  %v1579_v37 = vor.u32 1006665857, %v1563_v22 }
 0x6b9   :  { %v6157_v60 = vclamps-f32 %v1616_v35, 0.03137255  ;;  %v6159_v29 = vclamps-f32 %v1618_v59, 0.03137255  ;;  %v1624_v56 = vsub.f32 %v1608_v58, %v12491_v5  ;;  %v1626_v51 = vsub.f32 %v1610_v20, %v12492_v23 }
 0x6ba   :  { %v6158_v12 = vclamps-f32 %v1617_v19, 0.03137255  ;;  %v6160_v49 = vclamps-f32 %v1619_v33, 0.03137255  ;;  %v1609_v30 = vadd.f32 %v1577_v10, %v12493_v24  ;;  %v1611_v50 = vadd.f32 %v1579_v37, %v12494_v26 }
 0x6bb   :  { %v6165_v9 = vclamps-f32 %v1624_v56, 0.03137255  ;;  %v6167_v21 = vclamps-f32 %v1626_v51, 0.03137255  ;;  %v1664_v35 = vadd.f32 %v6157_v60, %v12485_v0  ;;  %v1666_v20 = vadd.f32 %v6159_v29, %v12486_v13 }
 0x6bc   :  { %v1625_v42 = vsub.f32 %v1609_v30, %v12495_v32  ;;  %v1627_v57 = vsub.f32 %v1611_v50, %v12496_v25  ;;  %v1665_v22 = vadd.f32 %v6158_v12, %v12489_v27  ;;  %v1667_v38 = vadd.f32 %v6160_v49, %v12490_v6 }
 0x6bd   :  { %v1672_v59 = vadd.f32 %v6165_v9, %v12491_v5  ;;  %v1674_v24 = vadd.f32 %v6167_v21, %v12492_v23  ;;  %v1680_v51 = vmax.f32 %v1664_v35, 0.0  ;;  %v1682_v6 = vmax.f32 %v1666_v20, 0.0 }
 0x6be   :  { %v6166_v58 = vclamps-f32 %v1625_v42, 0.03137255  ;;  %v6168_v26 = vclamps-f32 %v1627_v57, 0.03137255  ;;  %v1681_v37 = vmax.f32 %v1665_v22, 0.0  ;;  %v1683_v27 = vmax.f32 %v1667_v38, 0.0 }
 0x6bf   :  { %v1688_v19 = vmax.f32 %v1672_v59, 0.0  ;;  %v1690_v33 = vmax.f32 %v1674_v24, 0.0  ;;  %v9419_v30 = vmin.f32 %v1680_v51, 1.0  ;;  %v12505_v42 = vld [vmem:[#allocation73_spill] sm:$0xff]  ;;  %v12506_v57 = vld [vmem:[#allocation74_spill] sm:$0xff]  ;;  %v12507_v22 = vld [vmem:[#allocation75_spill] sm:$0xff] }
 0x6c0   :  { %v1673_v10 = vadd.f32 %v6166_v58, %v12495_v32  ;;  %v1675_v56 = vadd.f32 %v6168_v26, %v12496_v25  ;;  %v9411_v29 = vmin.f32 %v1681_v37, 1.0  ;;  %v9415_v23 = vmin.f32 %v1683_v27, 1.0 }
 0x6c1   :  { %v9407_v60 = vmin.f32 %v1688_v19, 1.0  ;;  %v9409_v13 = vmin.f32 %v1690_v33, 1.0  ;;  %12503 = vst [vmem:[#allocation36_spill] sm:$0xff] %v9419_v30  ;;  %v9421_v25 = vmin.f32 %v1682_v6, 1.0 }
 0x6c2   :  { %v1689_v12 = vmax.f32 %v1673_v10, 0.0  ;;  %v1691_v0 = vmax.f32 %v1675_v56, 0.0  ;;  %12499 = vst [vmem:[#allocation34_spill] sm:$0xff] %v9411_v29  ;;  %12501 = vst [vmem:[#allocation42_spill] sm:$0xff] %v9415_v23 }
 0x6c3   :  { %12497 = vst [vmem:[#allocation44_spill] sm:$0xff] %v9407_v60  ;;  %12498 = vst [vmem:[#allocation13_spill] sm:$0xff] %v9409_v13  ;;  %v1712_v21 = vpack.c.bf16 %v9407_v60, %v9419_v30  ;;  %v1714_v32 = vpack.c.bf16 %v9409_v13, %v9421_v25  ;;  %v12515_v60 = vld [vmem:[#allocation32_spill] sm:$0xff] }
 0x6c4   :  { %v9413_v5 = vmin.f32 %v1689_v12, 1.0  ;;  %v9417_v49 = vmin.f32 %v1691_v0, 1.0  ;;  %12504 = vst [vmem:[#allocation37_spill] sm:$0xff] %v9421_v25  ;;  %v12520_v25 = vld [vmem:[#allocation28_spill] sm:$0xff] }
 0x6c5   :  { %v12521_v30 = vld [vmem:[#allocation24_spill] sm:$0xff] }
 0x6c6   :  { %12500 = vst [vmem:[#allocation35_spill] sm:$0xff] %v9413_v5  ;;  %12502 = vst [vmem:[#allocation43_spill] sm:$0xff] %v9417_v49  ;;  %v1713_v50 = vpack.c.bf16 %v9413_v5, %v9411_v29  ;;  %v1715_v9 = vpack.c.bf16 %v9417_v49, %v9415_v23  ;;  %v12516_v29 = vld [vmem:[#allocation17_spill] sm:$0xff] }
 0x6c8   :  { %1752 = vmatprep.mubr.bf16.mxu0 %v1713_v50  ;;  %1793 = vmatprep.mubr.bf16.mxu1 %v1715_v9  ;;  %v12508_v50 = vld [vmem:[#allocation26_spill] sm:$0xff]  ;;  %v12509_v9 = vld [vmem:[#allocation29_spill] sm:$0xff] }
 0x6c9   :  { %1753 = vmatmul.mubr.bf16.vlgmr.msra.gmra.mrb[32].mxu0 %v1712_v21  ;;  %1794 = vmatmul.mubr.bf16.vlgmr.msra.gmra.mrb[32].mxu1 %v1714_v32 }
 0x6ca   :  { %6666 = vmatpush3.bf16.msra.mxu0 %v9255_v52  ;;  %6688 = vmatpush3.bf16.msra.mxu1 %v9258_v53 }
 0x6cb   :  { %6667 = vmatprep.subr.bf16.mxu0 %v9263_v31  ;;  %6689 = vmatprep.subr.bf16.mxu1 %v9266_v28 }
 0x6ce   :  { %6668 = vmatpush3.bf16.msra.mxu0 %v9269_v1  ;;  %6690 = vmatpush3.bf16.msra.mxu1 %v9272_v11 }
 0x6cf   :  { %6669 = vmatprep.subr.bf16.mxu0 %v9275_v36  ;;  %6691 = vmatprep.subr.bf16.mxu1 %v9278_v55 }
 0x6d2   :  { %6670 = vmatpush3.bf16.msra.mxu0 %v9281_v54  ;;  %6692 = vmatpush3.bf16.msra.mxu1 %v9284_v41 }
 0x6d3   :  { %6671 = vmatprep.subr.bf16.mxu0 %v9287_v4  ;;  %6693 = vmatprep.subr.bf16.mxu1 %v9290_v18 }
 0x6d6   :  { %6672 = vmatpush3.bf16.msra.mxu0 %v9293_v34  ;;  %6694 = vmatpush3.bf16.msra.mxu1 %v9296_v48 }
 0x6d7   :  { %6673 = vmatprep.subr.bf16.mxu0 %v9299_v7  ;;  %6695 = vmatprep.subr.bf16.mxu1 %v9302_v15 }
 0x6da   :  { %6674 = vmatpush3.bf16.msra.mxu0 %v9305_v16  ;;  %6696 = vmatpush3.bf16.msra.mxu1 %v9308_v8 }
 0x6db   :  { %6675 = vmatprep.subr.bf16.mxu0 %v9311_v2  ;;  %6697 = vmatprep.subr.bf16.mxu1 %v9314_v44 }
 0x6de   :  { %6676 = vmatpush3.bf16.msra.mxu0 %v9317_v45  ;;  %6698 = vmatpush3.bf16.msra.mxu1 %v12505_v42 }
 0x6df   :  { %6677 = vmatprep.subr.bf16.mxu0 %v12506_v57  ;;  %6699 = vmatprep.subr.bf16.mxu1 %v12507_v22 }
 0x6e2   :  { %6678 = vmatpush3.bf16.msra.mxu0 %v9329_v17  ;;  %6700 = vmatpush3.bf16.msra.mxu1 %v9332_v40 }
 0x6e3   :  { %6679 = vmatprep.subr.bf16.mxu0 %v9335_v39  ;;  %6701 = vmatprep.subr.bf16.mxu1 %v9338_v3 }
 0x6e6   :  { %6680 = vmatpush3.bf16.msra.mxu0 %v9341_v43  ;;  %6702 = vmatpush3.bf16.msra.mxu1 %v9344_v14  ;;  %v12523_v14 = vld [vmem:[#allocation22_spill] sm:$0xff] }
 0x6e7   :  { %6709 = vmatprep.subr.bf16.mxu0 %v9079_v46  ;;  %6727 = vmatprep.subr.bf16.mxu1 %v9082_v47 }
 0x6f0   :  { %v1484_v38 = vpop.f32.mrb[28].mxu0  ;;  %v1527_v35 = vpop.f32.mrb[28].mxu1 }
 0x6f1   :  { %v1556_v20 = vand.u32 2147483648, %v1484_v38  ;;  %v1558_v59 = vand.u32 2147483648, %v1527_v35  ;;  %v1486_v24 = vpop.f32.mrb[29].mxu0  ;;  %v1529_v58 = vpop.f32.mrb[29].mxu1  ;;  %v12510_v35 = vld [vmem:[#allocation33_spill] sm:$0xff] }
 0x6f2   :  { %v1557_v26 = vand.u32 2147483648, %v1486_v24  ;;  %v1559_v19 = vand.u32 2147483648, %v1529_v58  ;;  %v1488_v33 = vpop.f32.mrb[30].mxu0  ;;  %v1531_v10 = vpop.f32.mrb[30].mxu1  ;;  %v12511_v24 = vld [vmem:[#allocation30_spill] sm:$0xff] }
 0x6f3   :  { %v1572_v37 = vor.u32 1006665857, %v1556_v20  ;;  %v1574_v56 = vor.u32 1006665857, %v1558_v59  ;;  %v1564_v27 = vand.u32 2147483648, %v1488_v33  ;;  %v1566_v51 = vand.u32 2147483648, %v1531_v10 }
 0x6f4   :  { %v1573_v6 = vor.u32 1006665857, %v1557_v26  ;;  %v1575_v12 = vor.u32 1006665857, %v1559_v19  ;;  %v1490_v0 = vpop.f32.mrb[31].mxu0  ;;  %v1533_v46 = vpop.f32.mrb[31].mxu1 }
 0x6f5   :  { %v1604_v47 = vadd.f32 %v1572_v37, %v12508_v50  ;;  %v1606_v21 = vadd.f32 %v1574_v56, %v12509_v9  ;;  %v1580_v32 = vor.u32 1006665857, %v1564_v27  ;;  %v1582_v38 = vor.u32 1006665857, %v1566_v51  ;;  %v12512_v20 = vld [vmem:[#allocation15_spill] sm:$0xff]  ;;  %v12513_v33 = vld [vmem:[#allocation16_spill] sm:$0xff] }
 0x6f6   :  { %v1605_v49 = vadd.f32 %v1573_v6, %v12510_v35  ;;  %v1607_v58 = vadd.f32 %v1575_v12, %v12511_v24  ;;  %v1565_v5 = vand.u32 2147483648, %v1490_v0  ;;  %v1567_v13 = vand.u32 2147483648, %v1533_v46  ;;  %v12514_v26 = vld [vmem:[#allocation23_spill] sm:$0xff]  ;;  %v12517_v50 = vld [vmem:[#allocation18_spill] sm:$0xff]  ;;  %v12519_v0 = vld [vmem:[#allocation20_spill] sm:$0xff] }
 0x6f7   :  { %v1620_v59 = vsub.f32 %v1604_v47, %v12512_v20  ;;  %v1622_v10 = vsub.f32 %v1606_v21, %v12513_v33  ;;  %v1612_v19 = vadd.f32 %v1580_v32, %v12514_v26  ;;  %v1614_v23 = vadd.f32 %v1582_v38, %v12515_v60  ;;  %v12518_v35 = vld [vmem:[#allocation19_spill] sm:$0xff]  ;;  %v12522_v38 = vld [vmem:[#allocation21_spill] sm:$0xff] }
 0x6f8   :  { %v1621_v37 = vsub.f32 %v1605_v49, %v12516_v29  ;;  %v1623_v56 = vsub.f32 %v1607_v58, %v12517_v50  ;;  %v1581_v27 = vor.u32 1006665857, %v1565_v5  ;;  %v1583_v51 = vor.u32 1006665857, %v1567_v13 }
 0x6f9   :  { %v6161_v9 = vclamps-f32 %v1620_v59, 0.03137255  ;;  %v6163_v6 = vclamps-f32 %v1622_v10, 0.03137255  ;;  %v1628_v12 = vsub.f32 %v1612_v19, %v12518_v35  ;;  %v1630_v46 = vsub.f32 %v1614_v23, %v12519_v0 }
 0x6fa   :  { %v6162_v24 = vclamps-f32 %v1621_v37, 0.03137255  ;;  %v6164_v47 = vclamps-f32 %v1623_v56, 0.03137255  ;;  %v1613_v21 = vadd.f32 %v1581_v27, %v12520_v25  ;;  %v1615_v32 = vadd.f32 %v1583_v51, %v12521_v30 }
 0x6fb   :  { %v6169_v26 = vclamps-f32 %v1628_v12, 0.03137255  ;;  %v6171_v60 = vclamps-f32 %v1630_v46, 0.03137255  ;;  %v1668_v59 = vadd.f32 %v6161_v9, %v12512_v20  ;;  %v1670_v23 = vadd.f32 %v6163_v6, %v12513_v33 }
 0x6fc   :  { %v1629_v49 = vsub.f32 %v1613_v21, %v12522_v38  ;;  %v1631_v58 = vsub.f32 %v1615_v32, %v12523_v14  ;;  %v1669_v13 = vadd.f32 %v6162_v24, %v12516_v29  ;;  %v1671_v5 = vadd.f32 %v6164_v47, %v12517_v50 }
 0x6fd   :  { %v1676_v10 = vadd.f32 %v6169_v26, %v12518_v35  ;;  %v1678_v25 = vadd.f32 %v6171_v60, %v12519_v0  ;;  %v1684_v46 = vmax.f32 %v1668_v59, 0.0  ;;  %v1686_v50 = vmax.f32 %v1670_v23, 0.0  ;;  %v12536_v59 = vld [vmem:[#allocation51_spill] sm:$0xff]  ;;  %v12537_v23 = vld [vmem:[#allocation45_spill] sm:$0xff] }
 0x6fe   :  { %v6170_v19 = vclamps-f32 %v1629_v49, 0.03137255  ;;  %v6172_v30 = vclamps-f32 %v1631_v58, 0.03137255  ;;  %v1685_v51 = vmax.f32 %v1669_v13, 0.0  ;;  %v1687_v29 = vmax.f32 %v1671_v5, 0.0 }
 0x6ff   :  { %v1692_v37 = vmax.f32 %v1676_v10, 0.0  ;;  %v1694_v56 = vmax.f32 %v1678_v25, 0.0  ;;  %v9499_v21 = vmin.f32 %v1684_v46, 1.0  ;;  %v12532_v49 = vld [vmem:[#allocation31_spill] sm:$0xff]  ;;  %v12533_v58 = vld [vmem:[#allocation25_spill] sm:$0xff]  ;;  %v12539_v25 = vld [vmem:[#allocation50_spill] sm:$0xff] }
 0x700   :  { %v1677_v27 = vadd.f32 %v6170_v19, %v12522_v38  ;;  %v1679_v12 = vadd.f32 %v6172_v30, %v12523_v14  ;;  %v9491_v6 = vmin.f32 %v1685_v51, 1.0  ;;  %v9495_v0 = vmin.f32 %v1687_v29, 1.0  ;;  %v12534_v13 = vld [vmem:[#allocation27_spill] sm:$0xff]  ;;  %v12535_v5 = vld [vmem:[#allocation49_spill] sm:$0xff]  ;;  %v12540_v19 = vld [vmem:[#allocation52_spill] sm:$0xff] }
 0x701   :  { %v9487_v9 = vmin.f32 %v1692_v37, 1.0  ;;  %v9489_v33 = vmin.f32 %v1694_v56, 1.0  ;;  %12530 = vst [vmem:[#allocation73_spill] sm:$0xff] %v9499_v21  ;;  %v9501_v14 = vmin.f32 %v1686_v50, 1.0  ;;  %v12538_v10 = vld [vmem:[#allocation47_spill] sm:$0xff]  ;;  %v12541_v30 = vld [vmem:[#allocation46_spill] sm:$0xff] }
 0x702   :  { %v1693_v24 = vmax.f32 %v1677_v27, 0.0  ;;  %v1695_v20 = vmax.f32 %v1679_v12, 0.0  ;;  %12526 = vst [vmem:[#allocation12_spill] sm:$0xff] %v9491_v6  ;;  %12528 = vst [vmem:[#allocation40_spill] sm:$0xff] %v9495_v0  ;;  %v12542_v37 = vld [vmem:[#allocation48_spill] sm:$0xff]  ;;  %v12543_v56 = vld [vmem:[#allocation55_spill] sm:$0xff] }
 0x703   :  { %12524 = vst [vmem:[#allocation38_spill] sm:$0xff] %v9487_v9  ;;  %12525 = vst [vmem:[#allocation39_spill] sm:$0xff] %v9489_v33  ;;  %v1716_v60 = vpack.c.bf16 %v9487_v9, %v9499_v21  ;;  %v1718_v38 = vpack.c.bf16 %v9489_v33, %v9501_v14  ;;  %v12544_v27 = vld [vmem:[#allocation56_spill] sm:$0xff]  ;;  %v12545_v51 = vld [vmem:[#allocation57_spill] sm:$0xff] }
 0x704   :  { %v9493_v35 = vmin.f32 %v1693_v24, 1.0  ;;  %v9497_v47 = vmin.f32 %v1695_v20, 1.0  ;;  %12531 = vst [vmem:[#allocation74_spill] sm:$0xff] %v9501_v14  ;;  %v12546_v12 = vld [vmem:[#allocation58_spill] sm:$0xff]  ;;  %v12547_v29 = vld [vmem:[#allocation59_spill] sm:$0xff]  ;;  %v12548_v46 = vld [vmem:[#allocation60_spill] sm:$0xff] }
 0x705   :  { %v12549_v50 = vld [vmem:[#allocation61_spill] sm:$0xff]  ;;  %v12550_v24 = vld [vmem:[#allocation62_spill] sm:$0xff]  ;;  %v12551_v20 = vld [vmem:[#allocation63_spill] sm:$0xff] }
 0x706   :  { %12527 = vst [vmem:[#allocation14_spill] sm:$0xff] %v9493_v35  ;;  %12529 = vst [vmem:[#allocation41_spill] sm:$0xff] %v9497_v47  ;;  %v1717_v32 = vpack.c.bf16 %v9493_v35, %v9491_v6  ;;  %v1719_v26 = vpack.c.bf16 %v9497_v47, %v9495_v0  ;;  %v12556_v47 = vld [vmem:[#allocation68_spill] sm:$0xff]  ;;  %v12557_v35 = vld [vmem:[#allocation69_spill] sm:$0xff] }
 0x707   :  { %v12558_v33 = vld [vmem:[#allocation70_spill] sm:$0xff]  ;;  %v12559_v9 = vld [vmem:[#allocation71_spill] sm:$0xff]  ;;  %v12560_v0 = vld [vmem:[#allocation72_spill] sm:$0xff] }
 0x708   :  { %1834 = vmatprep.mubr.bf16.mxu0 %v1717_v32  ;;  %1875 = vmatprep.mubr.bf16.mxu1 %v1719_v26  ;;  %v12552_v32 = vld [vmem:[#allocation64_spill] sm:$0xff]  ;;  %v12553_v26 = vld [vmem:[#allocation65_spill] sm:$0xff] }
 0x709   :  { %1835 = vmatmul.mubr.bf16.vlgmr.msra.gmra.mrb[36].mxu0 %v1716_v60  ;;  %1876 = vmatmul.mubr.bf16.vlgmr.msra.gmra.mrb[36].mxu1 %v1718_v38  ;;  %v12554_v60 = vld [vmem:[#allocation66_spill] sm:$0xff]  ;;  %v12555_v38 = vld [vmem:[#allocation67_spill] sm:$0xff] }
 0x70a   :  { %6710 = vmatpush3.bf16.xpose.msra.mxu0 %v9149_v61  ;;  %6728 = vmatpush3.bf16.xpose.msra.mxu1 %v9152_v62 }
 0x70b   :  { %6711 = vmatprep.subr.bf16.mxu0 %v9155_v63  ;;  %6729 = vmatprep.subr.bf16.mxu1 %v12532_v49 }
 0x712   :  { %6712 = vmatpush3.bf16.xpose.msra.mxu0 %v12533_v58  ;;  %6730 = vmatpush3.bf16.xpose.msra.mxu1 %v12534_v13 }
 0x713   :  { %6713 = vmatprep.subr.bf16.mxu0 %v12535_v5  ;;  %6731 = vmatprep.subr.bf16.mxu1 %v12536_v59 }
 0x71a   :  { %6714 = vmatpush3.bf16.xpose.msra.mxu0 %v12537_v23  ;;  %6732 = vmatpush3.bf16.xpose.msra.mxu1 %v12538_v10 }
 0x71b   :  { %6715 = vmatprep.subr.bf16.mxu0 %v12539_v25  ;;  %6733 = vmatprep.subr.bf16.mxu1 %v12540_v19 }
 0x722   :  { %6716 = vmatpush3.bf16.xpose.msra.mxu0 %v12541_v30  ;;  %6734 = vmatpush3.bf16.xpose.msra.mxu1 %v12542_v37 }
 0x723   :  { %6717 = vmatprep.subr.bf16.mxu0 %v12543_v56  ;;  %6735 = vmatprep.subr.bf16.mxu1 %v12544_v27 }
 0x72a   :  { %6718 = vmatpush3.bf16.xpose.msra.mxu0 %v12545_v51  ;;  %6736 = vmatpush3.bf16.xpose.msra.mxu1 %v12546_v12 }
 0x72b   :  { %6719 = vmatprep.subr.bf16.mxu0 %v12547_v29  ;;  %6737 = vmatprep.subr.bf16.mxu1 %v12548_v46 }
 0x732   :  { %6720 = vmatpush3.bf16.xpose.msra.mxu0 %v12549_v50  ;;  %6738 = vmatpush3.bf16.xpose.msra.mxu1 %v12550_v24 }
 0x733   :  { %6721 = vmatprep.subr.bf16.mxu0 %v12551_v20  ;;  %6739 = vmatprep.subr.bf16.mxu1 %v12552_v32 }
 0x73a   :  { %6722 = vmatpush3.bf16.xpose.msra.mxu0 %v12553_v26  ;;  %6740 = vmatpush3.bf16.xpose.msra.mxu1 %v12554_v60 }
 0x73b   :  { %6723 = vmatprep.subr.bf16.mxu0 %v12555_v38  ;;  %6741 = vmatprep.subr.bf16.mxu1 %v12556_v47 }
 0x742   :  { %6724 = vmatpush3.bf16.xpose.msra.mxu0 %v12557_v35  ;;  %6742 = vmatpush3.bf16.xpose.msra.mxu1 %v12558_v33  ;;  %v9546_v35 = vld [vmem:[%s11753_s3] ss:$0 sm:$0xff] }
 0x743   :  { %6745 = vmatprep.subr.bf16.mxu0 %v12559_v9  ;;  %6763 = vmatprep.subr.bf16.mxu1 %v12560_v0 }
 0x79c   :  { %v6637_v6 = vpop.f32.mrb[32].mxu0  ;;  %v6659_v14 = vpop.f32.mrb[32].mxu1 }
 0x79d   :  { %v6638_v21 = vpop.f32.mrb[33].mxu0  ;;  %v6660_v32 = vpop.f32.mrb[33].mxu1 }
 0x79e   :  { %v6639_v20 = vadd.f32 %v6638_v21, %v6637_v6  ;;  %v6661_v26 = vadd.f32 %v6660_v32, %v6659_v14  ;;  %v6640_v24 = vpop.f32.mrb[34].mxu0  ;;  %v6662_v60 = vpop.f32.mrb[34].mxu1 }
 0x79f   :  { %v6641_v50 = vpop.f32.mrb[35].mxu0  ;;  %v6663_v38 = vpop.f32.mrb[35].mxu1 }
 0x7a0   :  { %v1755_v33 = vadd.f32 %v9546_v35, %v6639_v20  ;;  %v6642_v9 = vadd.f32 %v6641_v50, %v6640_v24  ;;  %v6664_v47 = vadd.f32 %v6663_v38, %v6662_v60 }
 0x7a2   :  { %v1796_v0 = vadd.f32 %v6661_v26, %v1755_v33  ;;  %v1758_v46 = vadd.f32 %v9546_v35, %v6642_v9 }
 0x7a4   :  { %v1799_v29 = vadd.f32 %v6664_v47, %v1758_v46 }
 0x7dc   :  { %v6681_v12 = vpop.f32.mrb[36].mxu0  ;;  %v6703_v6 = vpop.f32.mrb[36].mxu1 }
 0x7dd   :  { %v6682_v21 = vpop.f32.mrb[37].mxu0  ;;  %v6704_v14 = vpop.f32.mrb[37].mxu1 }
 0x7de   :  { %v6683_v32 = vadd.f32 %v6682_v21, %v6681_v12  ;;  %v6705_v51 = vadd.f32 %v6704_v14, %v6703_v6  ;;  %v6684_v27 = vpop.f32.mrb[38].mxu0  ;;  %v6706_v56 = vpop.f32.mrb[38].mxu1  ;;  %v12563_v21 = vld [vmem:[#allocation76_spill] sm:$0xff] }
 0x7df   :  { %v6685_v37 = vpop.f32.mrb[39].mxu0  ;;  %v6707_v30 = vpop.f32.mrb[39].mxu1  ;;  %v9582_v14 = vld [vmem:[#allocation7 + $0x40] sm:$0xff]  }
 0x7e0   :  { %v1837_v19 = vadd.f32 %v6683_v32, %v1796_v0  ;;  %v6686_v25 = vadd.f32 %v6685_v37, %v6684_v27  ;;  %v6708_v10 = vadd.f32 %v6707_v30, %v6706_v56  ;;  %v12561_v56 = vld [vmem:[#allocation53_spill] sm:$0xff]  ;;  %v9585_v32 = vld [vmem:[#allocation7 + $0xc0] sm:$0xff]  }
 0x7e2   :  { %v1840_v20 = vadd.f32 %v6686_v25, %v1799_v29  ;;  %v1878_v50 = vadd.f32 %v6705_v51, %v1837_v19  ;;  %v12562_v51 = vld [vmem:[#allocation54_spill] sm:$0xff] }
 0x7e4   :  { %1884 = vmax.xlane.f32.xlu1 %v1878_v50  ;;  %v1881_v33 = vadd.f32 %v6708_v10, %v1840_v20  ;;  %v12564_v20 = vld [vmem:[#allocation47_spill] sm:$0xff] }
 0x7e8   :  { %1886 = vmax.xlane.f32.xlu1 %v1881_v33 }
 0x871   :  { %v1885_v9 = vpop.xlane.xlu1 %1884 }
 0x872   :  { %v1888_v47 = vsub.f32 %v1878_v50, %v1885_v9  ;;  %v12565_v50 = vld [vmem:[#allocation50_spill] sm:$0xff] }
 0x873   :  { %v12576_v9 = vld [vmem:[#allocation62_spill] sm:$0xff] }
 0x874   :  { %v1890_v46 = vmul.f32 1.442695, %v1888_v47  ;;  %v12577_v47 = vld [vmem:[#allocation63_spill] sm:$0xff] }
 0x875   :  { %v1887_v24 = vpop.xlane.xlu1 %1886 }
 0x876   :  { %7992 = vpow2.f32 %v1890_v46  ;;  %v1889_v26 = vsub.f32 %v1881_v33, %v1887_v24  ;;  %v12575_v33 = vld [vmem:[#allocation61_spill] sm:$0xff]  ;;  %v12578_v46 = vld [vmem:[#allocation64_spill] sm:$0xff] }
 0x877   :  { %v12579_v24 = vld [vmem:[#allocation65_spill] sm:$0xff] }
 0x878   :  { %v1892_v12 = vmul.f32 1.442695, %v1889_v26  ;;  %v12580_v26 = vld [vmem:[#allocation66_spill] sm:$0xff] }
 0x87a   :  { %7994 = vpow2.f32 %v1892_v12  ;;  %v12581_v12 = vld [vmem:[#allocation67_spill] sm:$0xff] }
 0x880   :  { %v7993_v60 = vpop.eup %7992 }
 0x881   :  { %1894 = vadd.xlane.f32.xlu1 %v7993_v60 }
 0x884   :  { %v7995_v38 = vpop.eup %7994 }
 0x885   :  { %1896 = vadd.xlane.f32.xlu1 %v7995_v38 }
 0x90e   :  { %v1895_v0 = vpop.xlane.xlu1 %1894 }
 0x90f   :  { %7996 = vrcp.f32 %v1895_v0  ;;  %v12584_v0 = vld [vmem:[#allocation70_spill] sm:$0xff] }
 0x912   :  { %v1897_v30 = vpop.xlane.xlu1 %1896 }
 0x913   :  { %7998 = vrcp.f32 %v1897_v30  ;;  %v12585_v30 = vld [vmem:[#allocation71_spill] sm:$0xff] }
 0x919   :  { %v7997_v25 = vpop.eup %7996 }
 0x91a   :  { %v1899_v19 = vmul.f32 %v7997_v25, %v7993_v60  ;;  %v12582_v60 = vld [vmem:[#allocation68_spill] sm:$0xff] }
 0x91b   :  { %v12586_v25 = vld [vmem:[#allocation72_spill] sm:$0xff] }
 0x91c   :  { %v1902_v27 = vsub.f32 %v1899_v19, %v12561_v56 }
 0x91d   :  { %v7999_v10 = vpop.eup %7998 }
 0x91e   :  { %v1901_v37 = vmul.f32 %v7999_v10, %v7995_v38  ;;  %v12583_v38 = vld [vmem:[#allocation69_spill] sm:$0xff] }
 0x920   :  { %v1903_v29 = vsub.f32 %v1901_v37, %v12562_v51 }
 0x922   :  { %v1904_v6 = vpack.c.bf16 %v1903_v29, %v1902_v27 }
 0x924   :  { %6725 = vmatprep.mubr.bf16.mxu0 %v1904_v6  ;;  %6743 = vmatprep.mubr.bf16.mxu1 %v1904_v6 }
 0x925   :  { %6726 = vmatmul.mubr.bf16.vlgmr.msra.gmra.mrb[40].mxu0 %v1904_v6  ;;  %6744 = vmatmul.mubr.bf16.vlgmr.msra.gmra.mrb[40].mxu1 %v1904_v6 }
 0x926   :  { %6746 = vmatpush3.bf16.xpose.msra.mxu0 %v9255_v52  ;;  %6764 = vmatpush3.bf16.xpose.msra.mxu1 %v9258_v53 }
 0x927   :  { %6761 = vmatprep.mubr.bf16.mxu0 %v1904_v6  ;;  %6779 = vmatprep.mubr.bf16.mxu1 %v1904_v6 }
 0x928   :  { %6747 = vmatprep.subr.bf16.mxu0 %v9263_v31  ;;  %6765 = vmatprep.subr.bf16.mxu1 %v9266_v28 }
 0x92e   :  { %6748 = vmatpush3.bf16.xpose.msra.mxu0 %v9269_v1  ;;  %6766 = vmatpush3.bf16.xpose.msra.mxu1 %v9272_v11 }
 0x92f   :  { %6749 = vmatprep.subr.bf16.mxu0 %v9275_v36  ;;  %6767 = vmatprep.subr.bf16.mxu1 %v9278_v55 }
 0x936   :  { %6750 = vmatpush3.bf16.xpose.msra.mxu0 %v9281_v54  ;;  %6768 = vmatpush3.bf16.xpose.msra.mxu1 %v9284_v41 }
 0x937   :  { %6751 = vmatprep.subr.bf16.mxu0 %v9287_v4  ;;  %6769 = vmatprep.subr.bf16.mxu1 %v9290_v18 }
 0x93e   :  { %6752 = vmatpush3.bf16.xpose.msra.mxu0 %v9293_v34  ;;  %6770 = vmatpush3.bf16.xpose.msra.mxu1 %v9296_v48 }
 0x93f   :  { %6753 = vmatprep.subr.bf16.mxu0 %v9299_v7  ;;  %6771 = vmatprep.subr.bf16.mxu1 %v9302_v15 }
 0x946   :  { %6754 = vmatpush3.bf16.xpose.msra.mxu0 %v9305_v16  ;;  %6772 = vmatpush3.bf16.xpose.msra.mxu1 %v9308_v8 }
 0x947   :  { %6755 = vmatprep.subr.bf16.mxu0 %v9311_v2  ;;  %6773 = vmatprep.subr.bf16.mxu1 %v9314_v44 }
 0x94e   :  { %6756 = vmatpush3.bf16.xpose.msra.mxu0 %v9317_v45  ;;  %6774 = vmatpush3.bf16.xpose.msra.mxu1 %v12505_v42 }
 0x94f   :  { %6757 = vmatprep.subr.bf16.mxu0 %v12506_v57  ;;  %6775 = vmatprep.subr.bf16.mxu1 %v12507_v22 }
 0x956   :  { %6758 = vmatpush3.bf16.xpose.msra.mxu0 %v9329_v17  ;;  %6776 = vmatpush3.bf16.xpose.msra.mxu1 %v9332_v40 }
 0x957   :  { %6759 = vmatprep.subr.bf16.mxu0 %v9335_v39  ;;  %6777 = vmatprep.subr.bf16.mxu1 %v9338_v3 }
 0x95e   :  { %6760 = vmatpush3.bf16.xpose.msra.mxu0 %v9341_v43  ;;  %6778 = vmatpush3.bf16.xpose.msra.mxu1 %v12563_v21 }
 0x95f   :  { %6781 = vmatprep.subr.bf16.mxu0 %v9582_v14  ;;  %6803 = vmatprep.subr.bf16.mxu1 %v9585_v32 }
 0x965   :  { %6762 = vmatmul.mubr.bf16.vlgmr.msra.gmra.mrb[44].mxu0 %v1904_v6  ;;  %6780 = vmatmul.mubr.bf16.vlgmr.msra.gmra.mrb[44].mxu1 %v1904_v6 }
 0x966   :  { %6782 = vmatpush3.bf16.msra.mxu0 %v9149_v61  ;;  %6804 = vmatpush3.bf16.msra.mxu1 %v9152_v62  ;;  %v12566_v61 = vld [vmem:[#allocation52_spill] sm:$0xff]  ;;  %v12567_v62 = vld [vmem:[#allocation46_spill] sm:$0xff] }
 0x967   :  { %6783 = vmatprep.subr.bf16.mxu0 %v9155_v63  ;;  %6805 = vmatprep.subr.bf16.mxu1 %v12532_v49  ;;  %v12568_v63 = vld [vmem:[#allocation48_spill] sm:$0xff]  ;;  %v12569_v49 = vld [vmem:[#allocation55_spill] sm:$0xff] }
 0x96a   :  { %6784 = vmatpush3.bf16.msra.mxu0 %v12533_v58  ;;  %6806 = vmatpush3.bf16.msra.mxu1 %v12534_v13  ;;  %v12570_v58 = vld [vmem:[#allocation56_spill] sm:$0xff]  ;;  %v12571_v13 = vld [vmem:[#allocation57_spill] sm:$0xff] }
 0x96b   :  { %6785 = vmatprep.subr.bf16.mxu0 %v12535_v5  ;;  %6807 = vmatprep.subr.bf16.mxu1 %v12536_v59  ;;  %v12572_v5 = vld [vmem:[#allocation58_spill] sm:$0xff]  ;;  %v12573_v59 = vld [vmem:[#allocation59_spill] sm:$0xff] }
 0x96e   :  { %6786 = vmatpush3.bf16.msra.mxu0 %v12537_v23  ;;  %6808 = vmatpush3.bf16.msra.mxu1 %v12564_v20  ;;  %v12574_v23 = vld [vmem:[#allocation60_spill] sm:$0xff] }
 0x96f   :  { %6787 = vmatprep.subr.bf16.mxu0 %v12565_v50  ;;  %6809 = vmatprep.subr.bf16.mxu1 %v12566_v61 }
 0x972   :  { %6788 = vmatpush3.bf16.msra.mxu0 %v12567_v62  ;;  %6810 = vmatpush3.bf16.msra.mxu1 %v12568_v63 }
 0x973   :  { %6789 = vmatprep.subr.bf16.mxu0 %v12569_v49  ;;  %6811 = vmatprep.subr.bf16.mxu1 %v12570_v58 }
 0x976   :  { %6790 = vmatpush3.bf16.msra.mxu0 %v12571_v13  ;;  %6812 = vmatpush3.bf16.msra.mxu1 %v12572_v5 }
 0x977   :  { %6791 = vmatprep.subr.bf16.mxu0 %v12573_v59  ;;  %6813 = vmatprep.subr.bf16.mxu1 %v12574_v23 }
 0x97a   :  { %6792 = vmatpush3.bf16.msra.mxu0 %v12575_v33  ;;  %6814 = vmatpush3.bf16.msra.mxu1 %v12576_v9  ;;  %v12587_v9 = vld [vmem:[#allocation36_spill] sm:$0xff] }
 0x97b   :  { %6793 = vmatprep.subr.bf16.mxu0 %v12577_v47  ;;  %6815 = vmatprep.subr.bf16.mxu1 %v12578_v46  ;;  %v12588_v46 = vld [vmem:[#allocation37_spill] sm:$0xff] }
 0x97e   :  { %6794 = vmatpush3.bf16.msra.mxu0 %v12579_v24  ;;  %6816 = vmatpush3.bf16.msra.mxu1 %v12580_v26 }
 0x97f   :  { %6795 = vmatprep.subr.bf16.mxu0 %v12581_v12  ;;  %6817 = vmatprep.subr.bf16.mxu1 %v12582_v60  ;;  %v12589_v60 = vld [vmem:[#allocation34_spill] sm:$0xff] }
 0x982   :  { %6796 = vmatpush3.bf16.msra.mxu0 %v12583_v38  ;;  %6818 = vmatpush3.bf16.msra.mxu1 %v12584_v0  ;;  %v12590_v0 = vld [vmem:[#allocation42_spill] sm:$0xff] }
 0x983   :  { %6825 = vmatprep.subr.bf16.mxu0 %v12585_v30  ;;  %6847 = vmatprep.subr.bf16.mxu1 %v12586_v25 }
 0x9f8   :  { %v1939_v19 = vpop.f32.mrb[40].mxu0  ;;  %v1982_v10 = vpop.f32.mrb[40].mxu1 }
 0x9f9   :  { %v2093_v37 = vand.u32 2147483648, %v1939_v19  ;;  %v2095_v27 = vand.u32 2147483648, %v1982_v10  ;;  %v1941_v29 = vpop.f32.mrb[41].mxu0  ;;  %v1984_v6 = vpop.f32.mrb[41].mxu1  ;;  %v9624_v10 = vld [vmem:[#allocation2] sm:$0xff] }
 0x9fa   :  { %v2094_v20 = vand.u32 2147483648, %v1941_v29  ;;  %v2096_v50 = vand.u32 2147483648, %v1984_v6  ;;  %v1943_v61 = vpop.f32.mrb[42].mxu0  ;;  %v1986_v62 = vpop.f32.mrb[42].mxu1  ;;  %12591 = vst [vmem:[#allocation75_spill] sm:$0xff] %v9624_v10  ;;  %v12593_v6 = vld [vmem:[#allocation44_spill] sm:$0xff] }
 0x9fb   :  { %v2109_v63 = vor.u32 1006665857, %v2093_v37  ;;  %v2111_v49 = vor.u32 1006665857, %v2095_v27  ;;  %v2101_v58 = vand.u32 2147483648, %v1943_v61  ;;  %v2103_v13 = vand.u32 2147483648, %v1986_v62 }
 0x9fc   :  { %v2110_v5 = vor.u32 1006665857, %v2094_v20  ;;  %v2112_v59 = vor.u32 1006665857, %v2096_v50  ;;  %v1945_v23 = vpop.f32.mrb[43].mxu0  ;;  %v1988_v33 = vpop.f32.mrb[43].mxu1 }
 0x9fd   :  { %v2141_v47 = vadd.f32 %v2109_v63, %v12587_v9  ;;  %v2143_v24 = vadd.f32 %v2111_v49, %v12588_v46  ;;  %v2117_v26 = vor.u32 1006665857, %v2101_v58  ;;  %v2119_v12 = vor.u32 1006665857, %v2103_v13  ;;  %v9627_v27 = vld [vmem:[#allocation2 + $0x10] sm:$0xff]  ;;  %v12594_v50 = vld [vmem:[#allocation13_spill] sm:$0xff] }
 0x9fe   :  { %v2142_v38 = vadd.f32 %v2110_v5, %v12589_v60  ;;  %v2144_v30 = vadd.f32 %v2112_v59, %v12590_v0  ;;  %v2102_v25 = vand.u32 2147483648, %v1945_v23  ;;  %v2104_v19 = vand.u32 2147483648, %v1988_v33  ;;  %12592 = vst [vmem:[#allocation26_spill] sm:$0xff] %v9627_v27  ;;  %v9632_v62 = vld [vmem:[#allocation2 + $0x8] sm:$0xff]  ;;  %v9635_v49 = vld [vmem:[#allocation2 + $0x18] sm:$0xff]  ;;  %v9638_v33 = vld [vmem:[#allocation2 + $0x40] sm:$0xff] }
 0x9ff   :  { %v2157_v37 = vsub.f32 %v2141_v47, %v9624_v10  ;;  %v2159_v29 = vsub.f32 %v2143_v24, %v9627_v27  ;;  %v2149_v20 = vadd.f32 %v2117_v26, %v12593_v6  ;;  %v2151_v61 = vadd.f32 %v2119_v12, %v12594_v50  ;;  %12595 = vst [vmem:[#allocation29_spill] sm:$0xff] %v9632_v62  ;;  %v9641_v47 = vld [vmem:[#allocation2 + $0x50] sm:$0xff]  ;;  %v12599_v12 = vld [vmem:[#allocation35_spill] sm:$0xff] }
 0xa00   :  { %v2158_v63 = vsub.f32 %v2142_v38, %v9632_v62  ;;  %12596 = vst [vmem:[#allocation33_spill] sm:$0xff] %v9635_v49  ;;  %v2160_v58 = vsub.f32 %v2144_v30, %v9635_v49  ;;  %v2118_v13 = vor.u32 1006665857, %v2102_v25  ;;  %v2120_v5 = vor.u32 1006665857, %v2104_v19  ;;  %12597 = vst [vmem:[#allocation30_spill] sm:$0xff] %v9638_v33 }
 0xa01   :  { %v6173_v59 = vclamps-f32 %v2157_v37, 0.03137255  ;;  %v6175_v23 = vclamps-f32 %v2159_v29, 0.03137255  ;;  %v2165_v9 = vsub.f32 %v2149_v20, %v9638_v33  ;;  %12598 = vst [vmem:[#allocation15_spill] sm:$0xff] %v9641_v47  ;;  %v2167_v46 = vsub.f32 %v2151_v61, %v9641_v47  ;;  %v12600_v38 = vld [vmem:[#allocation43_spill] sm:$0xff] }
 0xa02   :  { %v6174_v24 = vclamps-f32 %v2158_v63, 0.03137255  ;;  %v6176_v26 = vclamps-f32 %v2160_v58, 0.03137255  ;;  %v2150_v60 = vadd.f32 %v2118_v13, %v12599_v12  ;;  %v2152_v0 = vadd.f32 %v2120_v5, %v12600_v38  ;;  %v9646_v25 = vld [vmem:[#allocation2 + $0x48] sm:$0xff]  ;;  %v9649_v37 = vld [vmem:[#allocation2 + $0x58] sm:$0xff] }
 0xa03   :  { %v6181_v6 = vclamps-f32 %v2165_v9, 0.03137255  ;;  %v6183_v30 = vclamps-f32 %v2167_v46, 0.03137255  ;;  %12601 = vst [vmem:[#allocation16_spill] sm:$0xff] %v9646_v25  ;;  %12602 = vst [vmem:[#allocation23_spill] sm:$0xff] %v9649_v37  ;;  %v2205_v61 = vadd.f32 %v9624_v10, %v6173_v59  ;;  %v2207_v63 = vadd.f32 %v9627_v27, %v6175_v23 }
 0xa04   :  { %v2166_v19 = vsub.f32 %v2150_v60, %v9646_v25  ;;  %v2168_v29 = vsub.f32 %v2152_v0, %v9649_v37  ;;  %v2206_v20 = vadd.f32 %v9632_v62, %v6174_v24  ;;  %v2208_v50 = vadd.f32 %v9635_v49, %v6176_v26 }
 0xa05   :  { %v2213_v58 = vadd.f32 %v9638_v33, %v6181_v6  ;;  %v2215_v13 = vadd.f32 %v9641_v47, %v6183_v30  ;;  %v2221_v62 = vmax.f32 %v2205_v61, 0.0  ;;  %v2223_v26 = vmax.f32 %v2207_v63, 0.0 }
 0xa06   :  { %v6182_v5 = vclamps-f32 %v2166_v19, 0.03137255  ;;  %v6184_v9 = vclamps-f32 %v2168_v29, 0.03137255  ;;  %v2222_v38 = vmax.f32 %v2206_v20, 0.0  ;;  %v2224_v24 = vmax.f32 %v2208_v50, 0.0 }
 0xa07   :  { %v2229_v46 = vmax.f32 %v2213_v58, 0.0  ;;  %v2231_v12 = vmax.f32 %v2215_v13, 0.0  ;;  %v9672_v20 = vmin.f32 %v2221_v62, 1.0  ;;  %v9674_v58 = vmin.f32 %v2223_v26, 1.0  ;;  %v9720_v62 = vld [vmem:[#allocation2 + $0x20] sm:$0xff]  ;;  %v9731_v26 = vld [vmem:[#allocation2 + $0x38] sm:$0xff] }
 0xa08   :  { %v2214_v60 = vadd.f32 %v9646_v25, %v6182_v5  ;;  %v2216_v0 = vadd.f32 %v9649_v37, %v6184_v9  ;;  %v9664_v6 = vmin.f32 %v2222_v38, 1.0  ;;  %v9668_v19 = vmin.f32 %v2224_v24, 1.0  ;;  %12613 = vst [vmem:[#allocation24_spill] sm:$0xff] %v9720_v62  ;;  %v9723_v5 = vld [vmem:[#allocation2 + $0x30] sm:$0xff]  ;;  %12618 = vst [vmem:[#allocation31_spill] sm:$0xff] %v9731_v26 }
 0xa09   :  { %v9660_v10 = vmin.f32 %v2229_v46, 1.0  ;;  %v9662_v23 = vmin.f32 %v2231_v12, 1.0  ;;  %12614 = vst [vmem:[#allocation21_spill] sm:$0xff] %v9723_v5  ;;  %v12615_v46 = vld [vmem:[#allocation38_spill] sm:$0xff] }
 0xa0a   :  { %v2230_v49 = vmax.f32 %v2214_v60, 0.0  ;;  %v2232_v59 = vmax.f32 %v2216_v0, 0.0  ;;  %12605 = vst [vmem:[#allocation18_spill] sm:$0xff] %v9664_v6  ;;  %12607 = vst [vmem:[#allocation20_spill] sm:$0xff] %v9668_v19  ;;  %v12616_v60 = vld [vmem:[#allocation39_spill] sm:$0xff]  ;;  %v9728_v0 = vld [vmem:[#allocation2 + $0x28] sm:$0xff] }
 0xa0b   :  { %12603 = vst [vmem:[#allocation32_spill] sm:$0xff] %v9660_v10  ;;  %12604 = vst [vmem:[#allocation17_spill] sm:$0xff] %v9662_v23  ;;  %v2253_v63 = vpack.c.bf16 %v9660_v10, %v9672_v20 }
 0xa0c   :  { %v9666_v30 = vmin.f32 %v2230_v49, 1.0  ;;  %v9670_v29 = vmin.f32 %v2232_v59, 1.0  ;;  %v2255_v49 = vpack.c.bf16 %v9662_v23, %v9674_v58  ;;  %12617 = vst [vmem:[#allocation22_spill] sm:$0xff] %v9728_v0 }
 0xa0e   :  { %12606 = vst [vmem:[#allocation19_spill] sm:$0xff] %v9666_v30  ;;  %12608 = vst [vmem:[#allocation28_spill] sm:$0xff] %v9670_v29  ;;  %v2254_v50 = vpack.c.bf16 %v9666_v30, %v9664_v6  ;;  %v2256_v61 = vpack.c.bf16 %v9670_v29, %v9668_v19 }
 0xa10   :  { %2293 = vmatprep.mubr.bf16.mxu0 %v2254_v50  ;;  %2334 = vmatprep.mubr.bf16.mxu1 %v2256_v61 }
 0xa11   :  { %2294 = vmatmul.mubr.bf16.vlgmr.msra.gmra.mrb[48].mxu0 %v2253_v63  ;;  %2335 = vmatmul.mubr.bf16.vlgmr.msra.gmra.mrb[48].mxu1 %v2255_v49 }
 0xa12   :  { %6826 = vmatpush3.bf16.msra.mxu0 %v9255_v52  ;;  %6848 = vmatpush3.bf16.msra.mxu1 %v9258_v53 }
 0xa13   :  { %6827 = vmatprep.subr.bf16.mxu0 %v9263_v31  ;;  %6849 = vmatprep.subr.bf16.mxu1 %v9266_v28 }
 0xa16   :  { %6828 = vmatpush3.bf16.msra.mxu0 %v9269_v1  ;;  %6850 = vmatpush3.bf16.msra.mxu1 %v9272_v11 }
 0xa17   :  { %6829 = vmatprep.subr.bf16.mxu0 %v9275_v36  ;;  %6851 = vmatprep.subr.bf16.mxu1 %v9278_v55 }
 0xa1a   :  { %6830 = vmatpush3.bf16.msra.mxu0 %v9281_v54  ;;  %6852 = vmatpush3.bf16.msra.mxu1 %v9284_v41 }
 0xa1b   :  { %6831 = vmatprep.subr.bf16.mxu0 %v9287_v4  ;;  %6853 = vmatprep.subr.bf16.mxu1 %v9290_v18 }
 0xa1e   :  { %6832 = vmatpush3.bf16.msra.mxu0 %v9293_v34  ;;  %6854 = vmatpush3.bf16.msra.mxu1 %v9296_v48 }
 0xa1f   :  { %6833 = vmatprep.subr.bf16.mxu0 %v9299_v7  ;;  %6855 = vmatprep.subr.bf16.mxu1 %v9302_v15 }
 0xa22   :  { %6834 = vmatpush3.bf16.msra.mxu0 %v9305_v16  ;;  %6856 = vmatpush3.bf16.msra.mxu1 %v9308_v8  ;;  %v12609_v16 = vld [vmem:[#allocation73_spill] sm:$0xff] }
 0xa23   :  { %6835 = vmatprep.subr.bf16.mxu0 %v9311_v2  ;;  %6857 = vmatprep.subr.bf16.mxu1 %v9314_v44  ;;  %v12610_v2 = vld [vmem:[#allocation74_spill] sm:$0xff] }
 0xa26   :  { %6836 = vmatpush3.bf16.msra.mxu0 %v9317_v45  ;;  %6858 = vmatpush3.bf16.msra.mxu1 %v12505_v42  ;;  %v12612_v42 = vld [vmem:[#allocation40_spill] sm:$0xff] }
 0xa27   :  { %6837 = vmatprep.subr.bf16.mxu0 %v12506_v57  ;;  %6859 = vmatprep.subr.bf16.mxu1 %v12507_v22 }
 0xa2a   :  { %6838 = vmatpush3.bf16.msra.mxu0 %v9329_v17  ;;  %6860 = vmatpush3.bf16.msra.mxu1 %v9332_v40 }
 0xa2b   :  { %6839 = vmatprep.subr.bf16.mxu0 %v9335_v39  ;;  %6861 = vmatprep.subr.bf16.mxu1 %v9338_v3 }
 0xa2e   :  { %6840 = vmatpush3.bf16.msra.mxu0 %v9341_v43  ;;  %6862 = vmatpush3.bf16.msra.mxu1 %v12563_v21  ;;  %v12611_v43 = vld [vmem:[#allocation12_spill] sm:$0xff] }
 0xa2f   :  { %6869 = vmatprep.subr.bf16.mxu0 %v9582_v14  ;;  %6887 = vmatprep.subr.bf16.mxu1 %v9585_v32 }
 0xa38   :  { %v2025_v52 = vpop.f32.mrb[44].mxu0  ;;  %v2068_v53 = vpop.f32.mrb[44].mxu1 }
 0xa39   :  { %v2097_v31 = vand.u32 2147483648, %v2025_v52  ;;  %v2099_v28 = vand.u32 2147483648, %v2068_v53  ;;  %v2027_v1 = vpop.f32.mrb[45].mxu0  ;;  %v2070_v11 = vpop.f32.mrb[45].mxu1  ;;  %v9734_v52 = vld [vmem:[#allocation2 + $0x60] sm:$0xff] }
 0xa3a   :  { %v2098_v36 = vand.u32 2147483648, %v2027_v1  ;;  %v2100_v40 = vand.u32 2147483648, %v2070_v11  ;;  %v2029_v55 = vpop.f32.mrb[46].mxu0  ;;  %v2072_v39 = vpop.f32.mrb[46].mxu1  ;;  %12619 = vst [vmem:[#allocation25_spill] sm:$0xff] %v9734_v52 }
 0xa3b   :  { %v2113_v54 = vor.u32 1006665857, %v2097_v31  ;;  %v2115_v41 = vor.u32 1006665857, %v2099_v28  ;;  %v2105_v4 = vand.u32 2147483648, %v2029_v55  ;;  %v2107_v18 = vand.u32 2147483648, %v2072_v39 }
 0xa3c   :  { %v2114_v34 = vor.u32 1006665857, %v2098_v36  ;;  %v2116_v48 = vor.u32 1006665857, %v2100_v40  ;;  %v2031_v7 = vpop.f32.mrb[47].mxu0  ;;  %v2074_v15 = vpop.f32.mrb[47].mxu1 }
 0xa3d   :  { %v2145_v8 = vadd.f32 %v2113_v54, %v12609_v16  ;;  %v2147_v44 = vadd.f32 %v2115_v41, %v12610_v2  ;;  %v2121_v45 = vor.u32 1006665857, %v2105_v4  ;;  %v2123_v3 = vor.u32 1006665857, %v2107_v18  ;;  %v9737_v31 = vld [vmem:[#allocation2 + $0x70] sm:$0xff]  ;;  %v12622_v55 = vld [vmem:[#allocation41_spill] sm:$0xff] }
 0xa3e   :  { %v2146_v17 = vadd.f32 %v2114_v34, %v12611_v43  ;;  %v2148_v57 = vadd.f32 %v2116_v48, %v12612_v42  ;;  %v2106_v22 = vand.u32 2147483648, %v2031_v7  ;;  %v2108_v21 = vand.u32 2147483648, %v2074_v15  ;;  %12620 = vst [vmem:[#allocation27_spill] sm:$0xff] %v9737_v31  ;;  %v12621_v36 = vld [vmem:[#allocation14_spill] sm:$0xff]  ;;  %v9742_v4 = vld [vmem:[#allocation2 + $0x68] sm:$0xff]  ;;  %v9745_v34 = vld [vmem:[#allocation2 + $0x78] sm:$0xff] }
 0xa3f   :  { %v2161_v13 = vsub.f32 %v2145_v8, %v9720_v62  ;;  %v2163_v9 = vsub.f32 %v2147_v44, %v9723_v5  ;;  %v2153_v12 = vadd.f32 %v2121_v45, %v12615_v46  ;;  %v2155_v38 = vadd.f32 %v2123_v3, %v12616_v60  ;;  %12623 = vst [vmem:[#allocation49_spill] sm:$0xff] %v9742_v4 }
 0xa40   :  { %v2162_v24 = vsub.f32 %v2146_v17, %v9728_v0  ;;  %v2164_v59 = vsub.f32 %v2148_v57, %v9731_v26  ;;  %v2122_v50 = vor.u32 1006665857, %v2106_v22  ;;  %v2124_v61 = vor.u32 1006665857, %v2108_v21  ;;  %12624 = vst [vmem:[#allocation51_spill] sm:$0xff] %v9745_v34 }
 0xa41   :  { %v6177_v63 = vclamps-f32 %v2161_v13, 0.03137255  ;;  %v6179_v49 = vclamps-f32 %v2163_v9, 0.03137255  ;;  %v2169_v53 = vsub.f32 %v2153_v12, %v9734_v52  ;;  %v2171_v28 = vsub.f32 %v2155_v38, %v9737_v31 }
 0xa42   :  { %v6178_v1 = vclamps-f32 %v2162_v24, 0.03137255  ;;  %v6180_v11 = vclamps-f32 %v2164_v59, 0.03137255  ;;  %v2154_v40 = vadd.f32 %v2122_v50, %v12621_v36  ;;  %v2156_v39 = vadd.f32 %v2124_v61, %v12622_v55  ;;  %v9780_v36 = vld [vmem:[#allocation7] sm:$0xff]   ;;  %v9786_v55 = vld [vmem:[#allocation7 + $0x48] sm:$0xff]  }
 0xa43   :  { %v6185_v54 = vclamps-f32 %v2169_v53, 0.03137255  ;;  %v6187_v41 = vclamps-f32 %v2171_v28, 0.03137255  ;;  %v2209_v16 = vadd.f32 %v9720_v62, %v6177_v63  ;;  %v2211_v8 = vadd.f32 %v9723_v5, %v6179_v49 }
 0xa44   :  { %v2170_v18 = vsub.f32 %v2154_v40, %v9742_v4  ;;  %v2172_v48 = vsub.f32 %v2156_v39, %v9745_v34  ;;  %v2210_v7 = vadd.f32 %v9728_v0, %v6178_v1  ;;  %v2212_v15 = vadd.f32 %v9731_v26, %v6180_v11  ;;  %v9783_v40 = vld [vmem:[#allocation7 + $0x80] sm:$0xff]   ;;  %v9789_v39 = vld [vmem:[#allocation7 + $0xc8] sm:$0xff]  }
 0xa45   :  { %v2217_v2 = vadd.f32 %v9734_v52, %v6185_v54  ;;  %v2219_v44 = vadd.f32 %v9737_v31, %v6187_v41  ;;  %v2225_v13 = vmax.f32 %v2209_v16, 0.0  ;;  %v2227_v9 = vmax.f32 %v2211_v8, 0.0  ;;  %12633 = vst [vmem:[#allocation56_spill] sm:$0xff] %v9789_v39  ;;  %v9792_v54 = vld [vmem:[#allocation7 + $0x8] sm:$0xff]   ;;  %v9810_v16 = vld [vmem:[#allocation7 + $0x58] sm:$0xff]  }
 0xa46   :  { %v6186_v45 = vclamps-f32 %v2170_v18, 0.03137255  ;;  %v6188_v3 = vclamps-f32 %v2172_v48, 0.03137255  ;;  %v2226_v57 = vmax.f32 %v2210_v7, 0.0  ;;  %v2228_v21 = vmax.f32 %v2212_v15, 0.0 }
 0xa47   :  { %v2233_v43 = vmax.f32 %v2217_v2, 0.0  ;;  %v2235_v17 = vmax.f32 %v2219_v44, 0.0  ;;  %v9768_v63 = vmin.f32 %v2225_v13, 1.0  ;;  %v9770_v49 = vmin.f32 %v2227_v9, 1.0  ;;  %12634 = vst [vmem:[#allocation57_spill] sm:$0xff] %v9792_v54  ;;  %v9795_v41 = vld [vmem:[#allocation7 + $0x88] sm:$0xff]  }
 0xa48   :  { %v2218_v42 = vadd.f32 %v9742_v4, %v6186_v45  ;;  %v2220_v22 = vadd.f32 %v9745_v34, %v6188_v3  ;;  %v9760_v24 = vmin.f32 %v2226_v57, 1.0  ;;  %v9764_v50 = vmin.f32 %v2228_v21, 1.0  ;;  %12635 = vst [vmem:[#allocation58_spill] sm:$0xff] %v9795_v41  ;;  %v9798_v18 = vld [vmem:[#allocation7 + $0x50] sm:$0xff]   ;;  %12640 = vst [vmem:[#allocation63_spill] sm:$0xff] %v9810_v16  ;;  %v9813_v8 = vld [vmem:[#allocation7 + $0xd8] sm:$0xff]  }
 0xa49   :  { %v9756_v60 = vmin.f32 %v2233_v43, 1.0  ;;  %v9758_v38 = vmin.f32 %v2235_v17, 1.0  ;;  %12631 = vst [vmem:[#allocation48_spill] sm:$0xff] %v9768_v63  ;;  %12632 = vst [vmem:[#allocation55_spill] sm:$0xff] %v9770_v49  ;;  %v9801_v48 = vld [vmem:[#allocation7 + $0xd0] sm:$0xff]   ;;  %v9816_v2 = vld [vmem:[#allocation7 + $0x18] sm:$0xff]  }
 0xa4a   :  { %v2234_v46 = vmax.f32 %v2218_v42, 0.0  ;;  %v2236_v12 = vmax.f32 %v2220_v22, 0.0  ;;  %12627 = vst [vmem:[#allocation47_spill] sm:$0xff] %v9760_v24  ;;  %12629 = vst [vmem:[#allocation52_spill] sm:$0xff] %v9764_v50  ;;  %v9804_v7 = vld [vmem:[#allocation7 + $0x10] sm:$0xff]   ;;  %v9819_v44 = vld [vmem:[#allocation7 + $0x98] sm:$0xff]  }
 0xa4b   :  { %12625 = vst [vmem:[#allocation45_spill] sm:$0xff] %v9756_v60  ;;  %12626 = vst [vmem:[#allocation76_spill] sm:$0xff] %v9758_v38  ;;  %v2257_v1 = vpack.c.bf16 %v9756_v60, %v9768_v63  ;;  %v2259_v11 = vpack.c.bf16 %v9758_v38, %v9770_v49  ;;  %v9807_v15 = vld [vmem:[#allocation7 + $0x90] sm:$0xff]   ;;  %v9822_v45 = vld [vmem:[#allocation7 + $0x60] sm:$0xff]  }
 0xa4c   :  { %v9762_v59 = vmin.f32 %v2234_v46, 1.0  ;;  %v9766_v61 = vmin.f32 %v2236_v12, 1.0  ;;  %12636 = vst [vmem:[#allocation59_spill] sm:$0xff] %v9798_v18  ;;  %12637 = vst [vmem:[#allocation60_spill] sm:$0xff] %v9801_v48  ;;  %v9825_v3 = vld [vmem:[#allocation7 + $0xe0] sm:$0xff]   ;;  %v9834_v42 = vld [vmem:[#allocation7 + $0x68] sm:$0xff]  }
 0xa4d   :  { %12638 = vst [vmem:[#allocation61_spill] sm:$0xff] %v9804_v7  ;;  %12639 = vst [vmem:[#allocation62_spill] sm:$0xff] %v9807_v15  ;;  %v9828_v43 = vld [vmem:[#allocation7 + $0x20] sm:$0xff]   ;;  %v9837_v57 = vld [vmem:[#allocation7 + $0xe8] sm:$0xff]  }
 0xa4e   :  { %12628 = vst [vmem:[#allocation50_spill] sm:$0xff] %v9762_v59  ;;  %12630 = vst [vmem:[#allocation46_spill] sm:$0xff] %v9766_v61  ;;  %v2258_v53 = vpack.c.bf16 %v9762_v59, %v9760_v24  ;;  %v2260_v28 = vpack.c.bf16 %v9766_v61, %v9764_v50  ;;  %v9831_v17 = vld [vmem:[#allocation7 + $0xa0] sm:$0xff]   ;;  %v9840_v22 = vld [vmem:[#allocation7 + $0x28] sm:$0xff]  }
 0xa4f   :  { %12641 = vst [vmem:[#allocation64_spill] sm:$0xff] %v9813_v8  ;;  %12642 = vst [vmem:[#allocation65_spill] sm:$0xff] %v9816_v2  ;;  %v9843_v21 = vld [vmem:[#allocation7 + $0xa8] sm:$0xff]   ;;  %v9846_v13 = vld [vmem:[#allocation7 + $0x70] sm:$0xff]  }
 0xa50   :  { %2375 = vmatprep.mubr.bf16.mxu0 %v2258_v53  ;;  %2416 = vmatprep.mubr.bf16.mxu1 %v2260_v28  ;;  %12643 = vst [vmem:[#allocation66_spill] sm:$0xff] %v9819_v44  ;;  %12644 = vst [vmem:[#allocation67_spill] sm:$0xff] %v9822_v45  ;;  %v9849_v9 = vld [vmem:[#allocation7 + $0xf0] sm:$0xff]   ;;  %v9858_v53 = vld [vmem:[#allocation7 + $0x78] sm:$0xff]  }
 0xa51   :  { %2376 = vmatmul.mubr.bf16.vlgmr.msra.gmra.mrb[52].mxu0 %v2257_v1  ;;  %2417 = vmatmul.mubr.bf16.vlgmr.msra.gmra.mrb[52].mxu1 %v2259_v11  ;;  %12645 = vst [vmem:[#allocation68_spill] sm:$0xff] %v9825_v3  ;;  %12646 = vst [vmem:[#allocation69_spill] sm:$0xff] %v9828_v43  ;;  %v9852_v46 = vld [vmem:[#allocation7 + $0x30] sm:$0xff]   ;;  %v9861_v28 = vld [vmem:[#allocation7 + $0xf8] sm:$0xff]  }
 0xa52   :  { %6870 = vmatpush3.bf16.xpose.msra.mxu0 %v9780_v36  ;;  %6888 = vmatpush3.bf16.xpose.msra.mxu1 %v9783_v40  ;;  %12647 = vst [vmem:[#allocation70_spill] sm:$0xff] %v9831_v17  ;;  %12648 = vst [vmem:[#allocation71_spill] sm:$0xff] %v9834_v42  ;;  %v9855_v12 = vld [vmem:[#allocation7 + $0xb0] sm:$0xff]   ;;  %v9864_v1 = vld [vmem:[#allocation7 + $0x38] sm:$0xff]  }
 0xa53   :  { %6871 = vmatprep.subr.bf16.mxu0 %v9786_v55  ;;  %6889 = vmatprep.subr.bf16.mxu1 %v9789_v39  ;;  %12649 = vst [vmem:[#allocation72_spill] sm:$0xff] %v9837_v57  ;;  %12650 = vst [vmem:[#allocation36_spill] sm:$0xff] %v9840_v22  ;;  %v9867_v11 = vld [vmem:[#allocation7 + $0xb8] sm:$0xff]   ;;  %v9870_v34 = vld [vmem:[#allocation7 + $0x140] sm:$0xff]  }
 0xa54   :  { %12651 = vst [vmem:[#allocation37_spill] sm:$0xff] %v9843_v21  ;;  %12652 = vst [vmem:[#allocation34_spill] sm:$0xff] %v9846_v13  ;;  %v9873_v4 = vld [vmem:[#allocation7 + $0x1c0] sm:$0xff]  }
 0xa55   :  { %12653 = vst [vmem:[#allocation42_spill] sm:$0xff] %v9849_v9  ;;  %12654 = vst [vmem:[#allocation44_spill] sm:$0xff] %v9852_v46 }
 0xa56   :  { %12655 = vst [vmem:[#allocation13_spill] sm:$0xff] %v9855_v12  ;;  %12656 = vst [vmem:[#allocation35_spill] sm:$0xff] %v9858_v53 }
 0xa57   :  { %12657 = vst [vmem:[#allocation43_spill] sm:$0xff] %v9861_v28  ;;  %12658 = vst [vmem:[#allocation73_spill] sm:$0xff] %v9864_v1 }
 0xa58   :  { %12659 = vst [vmem:[#allocation74_spill] sm:$0xff] %v9867_v11  ;;  %12660 = vst [vmem:[#allocation12_spill] sm:$0xff] %v9870_v34 }
 0xa59   :  { %12661 = vst [vmem:[#allocation40_spill] sm:$0xff] %v9873_v4 }
 0xa5a   :  { %6872 = vmatpush3.bf16.xpose.msra.mxu0 %v9792_v54  ;;  %6890 = vmatpush3.bf16.xpose.msra.mxu1 %v9795_v41 }
 0xa5b   :  { %6873 = vmatprep.subr.bf16.mxu0 %v9798_v18  ;;  %6891 = vmatprep.subr.bf16.mxu1 %v9801_v48 }
 0xa62   :  { %6874 = vmatpush3.bf16.xpose.msra.mxu0 %v9804_v7  ;;  %6892 = vmatpush3.bf16.xpose.msra.mxu1 %v9807_v15 }
 0xa63   :  { %6875 = vmatprep.subr.bf16.mxu0 %v9810_v16  ;;  %6893 = vmatprep.subr.bf16.mxu1 %v9813_v8 }
 0xa6a   :  { %6876 = vmatpush3.bf16.xpose.msra.mxu0 %v9816_v2  ;;  %6894 = vmatpush3.bf16.xpose.msra.mxu1 %v9819_v44 }
 0xa6b   :  { %6877 = vmatprep.subr.bf16.mxu0 %v9822_v45  ;;  %6895 = vmatprep.subr.bf16.mxu1 %v9825_v3 }
 0xa72   :  { %6878 = vmatpush3.bf16.xpose.msra.mxu0 %v9828_v43  ;;  %6896 = vmatpush3.bf16.xpose.msra.mxu1 %v9831_v17 }
 0xa73   :  { %6879 = vmatprep.subr.bf16.mxu0 %v9834_v42  ;;  %6897 = vmatprep.subr.bf16.mxu1 %v9837_v57 }
 0xa7a   :  { %6880 = vmatpush3.bf16.xpose.msra.mxu0 %v9840_v22  ;;  %6898 = vmatpush3.bf16.xpose.msra.mxu1 %v9843_v21 }
 0xa7b   :  { %6881 = vmatprep.subr.bf16.mxu0 %v9846_v13  ;;  %6899 = vmatprep.subr.bf16.mxu1 %v9849_v9 }
 0xa82   :  { %6882 = vmatpush3.bf16.xpose.msra.mxu0 %v9852_v46  ;;  %6900 = vmatpush3.bf16.xpose.msra.mxu1 %v9855_v12 }
 0xa83   :  { %6883 = vmatprep.subr.bf16.mxu0 %v9858_v53  ;;  %6901 = vmatprep.subr.bf16.mxu1 %v9861_v28 }
 0xa8a   :  { %6884 = vmatpush3.bf16.xpose.msra.mxu0 %v9864_v1  ;;  %6902 = vmatpush3.bf16.xpose.msra.mxu1 %v9867_v11 }
 0xa8b   :  { %6905 = vmatprep.subr.bf16.mxu0 %v9870_v34  ;;  %6923 = vmatprep.subr.bf16.mxu1 %v9873_v4 }
 0xae4   :  { %v6797_v61 = vpop.f32.mrb[48].mxu0  ;;  %v6819_v59 = vpop.f32.mrb[48].mxu1 }
 0xae5   :  { %v6798_v31 = vpop.f32.mrb[49].mxu0  ;;  %v6820_v52 = vpop.f32.mrb[49].mxu1 }
 0xae6   :  { %v6799_v26 = vadd.f32 %v6798_v31, %v6797_v61  ;;  %v6821_v0 = vadd.f32 %v6820_v52, %v6819_v59  ;;  %v6800_v38 = vpop.f32.mrb[50].mxu0  ;;  %v6822_v60 = vpop.f32.mrb[50].mxu1 }
 0xae7   :  { %v6801_v5 = vpop.f32.mrb[51].mxu0  ;;  %v6823_v62 = vpop.f32.mrb[51].mxu1 }
 0xae8   :  { %v2296_v50 = vadd.f32 %v9546_v35, %v6799_v26  ;;  %v6802_v24 = vadd.f32 %v6801_v5, %v6800_v38  ;;  %v6824_v49 = vadd.f32 %v6823_v62, %v6822_v60 }
 0xaea   :  { %v2337_v63 = vadd.f32 %v6821_v0, %v2296_v50  ;;  %v2299_v37 = vadd.f32 %v9546_v35, %v6802_v24 }
 0xaec   :  { %v2340_v25 = vadd.f32 %v6824_v49, %v2299_v37  ;;  %v9889_v49 = vld [vmem:[#allocation7 + $0x180] sm:$0xff]  }
 0xb24   :  { %v6841_v29 = vpop.f32.mrb[52].mxu0  ;;  %v6863_v30 = vpop.f32.mrb[52].mxu1 }
 0xb25   :  { %v6842_v47 = vpop.f32.mrb[53].mxu0  ;;  %v6864_v33 = vpop.f32.mrb[53].mxu1 }
 0xb26   :  { %v6843_v23 = vadd.f32 %v6842_v47, %v6841_v29  ;;  %v6865_v10 = vadd.f32 %v6864_v33, %v6863_v30  ;;  %v6844_v31 = vpop.f32.mrb[54].mxu0  ;;  %v6866_v52 = vpop.f32.mrb[54].mxu1 }
 0xb27   :  { %v6845_v59 = vpop.f32.mrb[55].mxu0  ;;  %v6867_v61 = vpop.f32.mrb[55].mxu1 }
 0xb28   :  { %v2378_v27 = vadd.f32 %v6843_v23, %v2337_v63  ;;  %v6846_v19 = vadd.f32 %v6845_v59, %v6844_v31  ;;  %v6868_v6 = vadd.f32 %v6867_v61, %v6866_v52  ;;  %v9886_v63 = vld [vmem:[#allocation7 + $0x100] sm:$0xff]   ;;  %v9894_v31 = vld [vmem:[#allocation7 + $0x148] sm:$0xff]  }
 0xb29   :  { %v9897_v52 = vld [vmem:[#allocation7 + $0x1c8] sm:$0xff]  }
 0xb2a   :  { %v2381_v26 = vadd.f32 %v6846_v19, %v2340_v25  ;;  %v2419_v5 = vadd.f32 %v6865_v10, %v2378_v27  ;;  %v9900_v59 = vld [vmem:[#allocation7 + $0x108] sm:$0xff]  }
 0xb2b   :  { %v9903_v61 = vld [vmem:[#allocation7 + $0x188] sm:$0xff]  }
 0xb2c   :  { %2425 = vmax.xlane.f32.xlu0 %v2419_v5  ;;  %v2422_v62 = vadd.f32 %v6868_v6, %v2381_v26  ;;  %v9906_v26 = vld [vmem:[#allocation7 + $0x150] sm:$0xff]  }
 0xb2e   :  { %2427 = vmax.xlane.f32.xlu1 %v2422_v62 }
 0xbb9   :  { %v2426_v35 = vpop.xlane.xlu0 %2425 }
 0xbba   :  { %v2429_v37 = vsub.f32 %v2419_v5, %v2426_v35  ;;  %v9909_v5 = vld [vmem:[#allocation7 + $0x1d0] sm:$0xff]  }
 0xbbb   :  { %v2428_v0 = vpop.xlane.xlu1 %2427  ;;  %v9915_v35 = vld [vmem:[#allocation7 + $0x190] sm:$0xff]  }
 0xbbc   :  { %v2431_v60 = vmul.f32 1.442695, %v2429_v37  ;;  %v2430_v38 = vsub.f32 %v2422_v62, %v2428_v0  ;;  %v9912_v62 = vld [vmem:[#allocation7 + $0x110] sm:$0xff]   ;;  %v9918_v37 = vld [vmem:[#allocation7 + $0x158] sm:$0xff]  }
 0xbbd   :  { %v9921_v0 = vld [vmem:[#allocation7 + $0x1d8] sm:$0xff]  }
 0xbbe   :  { %8000 = vpow2.f32 %v2431_v60  ;;  %v2433_v47 = vmul.f32 1.442695, %v2430_v38  ;;  %v9924_v60 = vld [vmem:[#allocation7 + $0x118] sm:$0xff]  }
 0xbbf   :  { %v9927_v38 = vld [vmem:[#allocation7 + $0x198] sm:$0xff]  }
 0xbc0   :  { %8002 = vpow2.f32 %v2433_v47  ;;  %v9930_v47 = vld [vmem:[#allocation7 + $0x160] sm:$0xff]  }
 0xbc8   :  { %v8001_v33 = vpop.eup %8000 }
 0xbc9   :  { %2435 = vadd.xlane.f32.xlu0 %v8001_v33 }
 0xbca   :  { %v8003_v30 = vpop.eup %8002 }
 0xbcb   :  { %2437 = vadd.xlane.f32.xlu1 %v8003_v30 }
 0xc56   :  { %v2436_v23 = vpop.xlane.xlu0 %2435 }
 0xc57   :  { %8004 = vrcp.f32 %v2436_v23  ;;  %v9939_v23 = vld [vmem:[#allocation7 + $0x1a0] sm:$0xff]  }
 0xc58   :  { %v2438_v29 = vpop.xlane.xlu1 %2437 }
 0xc59   :  { %8006 = vrcp.f32 %v2438_v29  ;;  %v9942_v29 = vld [vmem:[#allocation7 + $0x168] sm:$0xff]  }
 0xc61   :  { %v8005_v10 = vpop.eup %8004 }
 0xc62   :  { %v2440_v27 = vmul.f32 %v8005_v10, %v8001_v33  ;;  %v9933_v33 = vld [vmem:[#allocation7 + $0x1e0] sm:$0xff]   ;;  %v9945_v10 = vld [vmem:[#allocation7 + $0x1e8] sm:$0xff]  }
 0xc63   :  { %v8007_v25 = vpop.eup %8006 }
 0xc64   :  { %v2442_v6 = vmul.f32 %v8007_v25, %v8003_v30  ;;  %v2443_v19 = vsub.f32 %v2440_v27, %v12561_v56  ;;  %v9936_v30 = vld [vmem:[#allocation7 + $0x120] sm:$0xff]   ;;  %v9948_v27 = vld [vmem:[#allocation7 + $0x128] sm:$0xff]   ;;  %v9966_v56 = vld [vmem:[#allocation7 + $0x178] sm:$0xff]  }
 0xc65   :  { %v9951_v25 = vld [vmem:[#allocation7 + $0x1a8] sm:$0xff]  }
 0xc66   :  { %v2444_v24 = vsub.f32 %v2442_v6, %v12562_v51  ;;  %12662 = vst [vmem:[#allocation38_spill] sm:$0xff] %v9951_v25  ;;  %v9954_v6 = vld [vmem:[#allocation7 + $0x170] sm:$0xff]  }
 0xc67   :  { %12663 = vst [vmem:[#allocation39_spill] sm:$0xff] %v9954_v6  ;;  %v9963_v51 = vld [vmem:[#allocation7 + $0x1b0] sm:$0xff]  }
 0xc68   :  { %v9880_v50 = vpack.c.bf16 %v2444_v24, %v2443_v19  ;;  %v9957_v19 = vld [vmem:[#allocation7 + $0x1f0] sm:$0xff]  }
 0xc69   :  { %12664 = vst [vmem:[#allocation14_spill] sm:$0xff] %v9957_v19  ;;  %v9960_v24 = vld [vmem:[#allocation7 + $0x130] sm:$0xff]  }
 0xc6a   :  { %6885 = vmatprep.mubr.bf16.mxu0 %v9880_v50  ;;  %6903 = vmatprep.mubr.bf16.mxu1 %v9880_v50 }
 0xc6b   :  { %6886 = vmatmul.mubr.bf16.vlgmr.msra.gmra.mrb[56].mxu0 %v9880_v50  ;;  %6904 = vmatmul.mubr.bf16.vlgmr.msra.gmra.mrb[56].mxu1 %v9880_v50 }
 0xc6c   :  { %6906 = vmatpush3.bf16.xpose.msra.mxu0 %v9886_v63  ;;  %6924 = vmatpush3.bf16.xpose.msra.mxu1 %v9889_v49 }
 0xc6d   :  { %6921 = vmatprep.mubr.bf16.mxu0 %v9880_v50  ;;  %6939 = vmatprep.mubr.bf16.mxu1 %v9880_v50 }
 0xc6e   :  { %6907 = vmatprep.subr.bf16.mxu0 %v9894_v31  ;;  %6925 = vmatprep.subr.bf16.mxu1 %v9897_v52 }
 0xc74   :  { %6908 = vmatpush3.bf16.xpose.msra.mxu0 %v9900_v59  ;;  %6926 = vmatpush3.bf16.xpose.msra.mxu1 %v9903_v61 }
 0xc75   :  { %6909 = vmatprep.subr.bf16.mxu0 %v9906_v26  ;;  %6927 = vmatprep.subr.bf16.mxu1 %v9909_v5 }
 0xc7c   :  { %6910 = vmatpush3.bf16.xpose.msra.mxu0 %v9912_v62  ;;  %6928 = vmatpush3.bf16.xpose.msra.mxu1 %v9915_v35 }
 0xc7d   :  { %6911 = vmatprep.subr.bf16.mxu0 %v9918_v37  ;;  %6929 = vmatprep.subr.bf16.mxu1 %v9921_v0 }
 0xc84   :  { %6912 = vmatpush3.bf16.xpose.msra.mxu0 %v9924_v60  ;;  %6930 = vmatpush3.bf16.xpose.msra.mxu1 %v9927_v38 }
 0xc85   :  { %6913 = vmatprep.subr.bf16.mxu0 %v9930_v47  ;;  %6931 = vmatprep.subr.bf16.mxu1 %v9933_v33 }
 0xc8c   :  { %6914 = vmatpush3.bf16.xpose.msra.mxu0 %v9936_v30  ;;  %6932 = vmatpush3.bf16.xpose.msra.mxu1 %v9939_v23 }
 0xc8d   :  { %6915 = vmatprep.subr.bf16.mxu0 %v9942_v29  ;;  %6933 = vmatprep.subr.bf16.mxu1 %v9945_v10 }
 0xc94   :  { %6916 = vmatpush3.bf16.xpose.msra.mxu0 %v9948_v27  ;;  %6934 = vmatpush3.bf16.xpose.msra.mxu1 %v9951_v25  ;;  %v9969_v25 = vld [vmem:[#allocation7 + $0x1f8] sm:$0xff]  }
 0xc95   :  { %6917 = vmatprep.subr.bf16.mxu0 %v9954_v6  ;;  %6935 = vmatprep.subr.bf16.mxu1 %v9957_v19  ;;  %v9972_v6 = vld [vmem:[#allocation7 + $0x138] sm:$0xff]  }
 0xc96   :  { %v9975_v19 = vld [vmem:[#allocation7 + $0x1b8] sm:$0xff]  }
 0xc97   :  { %12665 = vst [vmem:[#allocation41_spill] sm:$0xff] %v9975_v19 }
 0xc9c   :  { %6918 = vmatpush3.bf16.xpose.msra.mxu0 %v9960_v24  ;;  %6936 = vmatpush3.bf16.xpose.msra.mxu1 %v9963_v51 }
 0xc9d   :  { %6919 = vmatprep.subr.bf16.mxu0 %v9966_v56  ;;  %6937 = vmatprep.subr.bf16.mxu1 %v9969_v25 }
 0xca4   :  { %6920 = vmatpush3.bf16.xpose.msra.mxu0 %v9972_v6  ;;  %6938 = vmatpush3.bf16.xpose.msra.mxu1 %v9975_v19 }
 0xca5   :  { %6941 = vmatprep.subr.bf16.mxu0 %v9582_v14  ;;  %6963 = vmatprep.subr.bf16.mxu1 %v9585_v32 }
 0xcab   :  { %6922 = vmatmul.mubr.bf16.vlgmr.msra.gmra.mrb[60].mxu0 %v9880_v50  ;;  %6940 = vmatmul.mubr.bf16.vlgmr.msra.gmra.mrb[60].mxu1 %v9880_v50 }
 0xcac   :  { %6942 = vmatpush3.bf16.msra.mxu0 %v9780_v36  ;;  %6964 = vmatpush3.bf16.msra.mxu1 %v9783_v40 }
 0xcad   :  { %6943 = vmatprep.subr.bf16.mxu0 %v9786_v55  ;;  %6965 = vmatprep.subr.bf16.mxu1 %v9789_v39  ;;  %v12679_v39 = vld [vmem:[#allocation23_spill] sm:$0xff] }
 0xcb0   :  { %6944 = vmatpush3.bf16.msra.mxu0 %v9792_v54  ;;  %6966 = vmatpush3.bf16.msra.mxu1 %v9795_v41  ;;  %v12676_v41 = vld [vmem:[#allocation19_spill] sm:$0xff]  ;;  %v12677_v54 = vld [vmem:[#allocation28_spill] sm:$0xff] }
 0xcb1   :  { %6945 = vmatprep.subr.bf16.mxu0 %v9798_v18  ;;  %6967 = vmatprep.subr.bf16.mxu1 %v9801_v48  ;;  %v12672_v18 = vld [vmem:[#allocation29_spill] sm:$0xff] }
 0xcb4   :  { %6946 = vmatpush3.bf16.msra.mxu0 %v9804_v7  ;;  %6968 = vmatpush3.bf16.msra.mxu1 %v9807_v15  ;;  %v12671_v7 = vld [vmem:[#allocation17_spill] sm:$0xff] }
 0xcb5   :  { %6947 = vmatprep.subr.bf16.mxu0 %v9810_v16  ;;  %6969 = vmatprep.subr.bf16.mxu1 %v9813_v8 }
 0xcb8   :  { %6948 = vmatpush3.bf16.msra.mxu0 %v9816_v2  ;;  %6970 = vmatpush3.bf16.msra.mxu1 %v9819_v44  ;;  %v12666_v2 = vld [vmem:[#allocation18_spill] sm:$0xff] }
 0xcb9   :  { %6949 = vmatprep.subr.bf16.mxu0 %v9822_v45  ;;  %6971 = vmatprep.subr.bf16.mxu1 %v9825_v3 }
 0xcbc   :  { %6950 = vmatpush3.bf16.msra.mxu0 %v9828_v43  ;;  %6972 = vmatpush3.bf16.msra.mxu1 %v9831_v17 }
 0xcbd   :  { %6951 = vmatprep.subr.bf16.mxu0 %v9834_v42  ;;  %6973 = vmatprep.subr.bf16.mxu1 %v9837_v57 }
 0xcc0   :  { %6952 = vmatpush3.bf16.msra.mxu0 %v9840_v22  ;;  %6974 = vmatpush3.bf16.msra.mxu1 %v9843_v21 }
 0xcc1   :  { %6953 = vmatprep.subr.bf16.mxu0 %v9846_v13  ;;  %6975 = vmatprep.subr.bf16.mxu1 %v9849_v9 }
 0xcc4   :  { %6954 = vmatpush3.bf16.msra.mxu0 %v9852_v46  ;;  %6976 = vmatpush3.bf16.msra.mxu1 %v9855_v12 }
 0xcc5   :  { %6955 = vmatprep.subr.bf16.mxu0 %v9858_v53  ;;  %6977 = vmatprep.subr.bf16.mxu1 %v9861_v28 }
 0xcc8   :  { %6956 = vmatpush3.bf16.msra.mxu0 %v9864_v1  ;;  %6978 = vmatpush3.bf16.msra.mxu1 %v9867_v11 }
 0xcc9   :  { %6985 = vmatprep.subr.bf16.mxu0 %v9870_v34  ;;  %7007 = vmatprep.subr.bf16.mxu1 %v9873_v4 }
 0xd3e   :  { %v2480_v50 = vpop.f32.mrb[56].mxu0  ;;  %v2523_v13 = vpop.f32.mrb[56].mxu1 }
 0xd3f   :  { %v2634_v21 = vand.u32 2147483648, %v2480_v50  ;;  %v2636_v9 = vand.u32 2147483648, %v2523_v13  ;;  %v2482_v22 = vpop.f32.mrb[57].mxu0  ;;  %v2525_v46 = vpop.f32.mrb[57].mxu1 }
 0xd40   :  { %v2635_v57 = vand.u32 2147483648, %v2482_v22  ;;  %v2637_v12 = vand.u32 2147483648, %v2525_v46  ;;  %v2484_v42 = vpop.f32.mrb[58].mxu0  ;;  %v2527_v53 = vpop.f32.mrb[58].mxu1  ;;  %v12667_v22 = vld [vmem:[#allocation20_spill] sm:$0xff] }
 0xd41   :  { %v2650_v17 = vor.u32 1006665857, %v2634_v21  ;;  %v2652_v28 = vor.u32 1006665857, %v2636_v9  ;;  %v2642_v43 = vand.u32 2147483648, %v2484_v42  ;;  %v2644_v1 = vand.u32 2147483648, %v2527_v53 }
 0xd42   :  { %v2651_v3 = vor.u32 1006665857, %v2635_v57  ;;  %v2653_v11 = vor.u32 1006665857, %v2637_v12  ;;  %v2486_v45 = vpop.f32.mrb[59].mxu0  ;;  %v2529_v34 = vpop.f32.mrb[59].mxu1 }
 0xd43   :  { %v2682_v4 = vadd.f32 %v2650_v17, %v9672_v20  ;;  %v2684_v44 = vadd.f32 %v2652_v28, %v9674_v58  ;;  %v2658_v50 = vor.u32 1006665857, %v2642_v43  ;;  %v2660_v13 = vor.u32 1006665857, %v2644_v1  ;;  %v12668_v21 = vld [vmem:[#allocation75_spill] sm:$0xff]  ;;  %v12669_v42 = vld [vmem:[#allocation26_spill] sm:$0xff] }
 0xd44   :  { %v2683_v8 = vadd.f32 %v2651_v3, %v12666_v2  ;;  %v2685_v46 = vadd.f32 %v2653_v11, %v12667_v22  ;;  %v2643_v16 = vand.u32 2147483648, %v2486_v45  ;;  %v2645_v15 = vand.u32 2147483648, %v2529_v34  ;;  %v12670_v57 = vld [vmem:[#allocation32_spill] sm:$0xff]  ;;  %v12673_v17 = vld [vmem:[#allocation33_spill] sm:$0xff]  ;;  %v12674_v3 = vld [vmem:[#allocation30_spill] sm:$0xff] }
 0xd45   :  { %v2698_v9 = vsub.f32 %v2682_v4, %v12668_v21  ;;  %v2700_v53 = vsub.f32 %v2684_v44, %v12669_v42  ;;  %v2690_v12 = vadd.f32 %v2658_v50, %v12670_v57  ;;  %v2692_v48 = vadd.f32 %v2660_v13, %v12671_v7  ;;  %v12675_v45 = vld [vmem:[#allocation15_spill] sm:$0xff]  ;;  %v12678_v13 = vld [vmem:[#allocation16_spill] sm:$0xff] }
 0xd46   :  { %v2699_v20 = vsub.f32 %v2683_v8, %v12672_v18  ;;  %v2701_v58 = vsub.f32 %v2685_v46, %v12673_v17  ;;  %v2659_v43 = vor.u32 1006665857, %v2643_v16  ;;  %v2661_v28 = vor.u32 1006665857, %v2645_v15 }
 0xd47   :  { %v6189_v1 = vclamps-f32 %v2698_v9, 0.03137255  ;;  %v6191_v2 = vclamps-f32 %v2700_v53, 0.03137255  ;;  %v2706_v11 = vsub.f32 %v2690_v12, %v12674_v3  ;;  %v2708_v34 = vsub.f32 %v2692_v48, %v12675_v45 }
 0xd48   :  { %v6190_v22 = vclamps-f32 %v2699_v20, 0.03137255  ;;  %v6192_v4 = vclamps-f32 %v2701_v58, 0.03137255  ;;  %v2691_v44 = vadd.f32 %v2659_v43, %v12676_v41  ;;  %v2693_v50 = vadd.f32 %v2661_v28, %v12677_v54 }
 0xd49   :  { %v6197_v57 = vclamps-f32 %v2706_v11, 0.03137255  ;;  %v6199_v7 = vclamps-f32 %v2708_v34, 0.03137255  ;;  %v2746_v9 = vadd.f32 %v12668_v21, %v6189_v1  ;;  %v2748_v48 = vadd.f32 %v12669_v42, %v6191_v2 }
 0xd4a   :  { %v2707_v8 = vsub.f32 %v2691_v44, %v12678_v13  ;;  %v2709_v46 = vsub.f32 %v2693_v50, %v12679_v39  ;;  %v2747_v15 = vadd.f32 %v12672_v18, %v6190_v22  ;;  %v2749_v16 = vadd.f32 %v12673_v17, %v6192_v4 }
 0xd4b   :  { %v2754_v53 = vadd.f32 %v12674_v3, %v6197_v57  ;;  %v2756_v41 = vadd.f32 %v12675_v45, %v6199_v7  ;;  %v2762_v34 = vmax.f32 %v2746_v9, 0.0  ;;  %v2764_v17 = vmax.f32 %v2748_v48, 0.0 }
 0xd4c   :  { %v6198_v12 = vclamps-f32 %v2707_v8, 0.03137255  ;;  %v6200_v54 = vclamps-f32 %v2709_v46, 0.03137255  ;;  %v2763_v28 = vmax.f32 %v2747_v15, 0.0  ;;  %v2765_v18 = vmax.f32 %v2749_v16, 0.0 }
 0xd4d   :  { %v2770_v20 = vmax.f32 %v2754_v53, 0.0  ;;  %v2772_v58 = vmax.f32 %v2756_v41, 0.0  ;;  %v10050_v44 = vmin.f32 %v2762_v34, 1.0  ;;  %v12688_v8 = vld [vmem:[#allocation38_spill] sm:$0xff]  ;;  %v12689_v46 = vld [vmem:[#allocation39_spill] sm:$0xff] }
 0xd4e   :  { %v2755_v43 = vadd.f32 %v12678_v13, %v6198_v12  ;;  %v2757_v11 = vadd.f32 %v12679_v39, %v6200_v54  ;;  %v10042_v2 = vmin.f32 %v2763_v28, 1.0  ;;  %v10046_v45 = vmin.f32 %v2765_v18, 1.0  ;;  %v12690_v15 = vld [vmem:[#allocation14_spill] sm:$0xff] }
 0xd4f   :  { %v10038_v1 = vmin.f32 %v2770_v20, 1.0  ;;  %v10040_v42 = vmin.f32 %v2772_v58, 1.0  ;;  %12686 = vst [vmem:[#allocation29_spill] sm:$0xff] %v10050_v44  ;;  %v10052_v39 = vmin.f32 %v2764_v17, 1.0 }
 0xd50   :  { %v2771_v22 = vmax.f32 %v2755_v43, 0.0  ;;  %v2773_v21 = vmax.f32 %v2757_v11, 0.0  ;;  %12682 = vst [vmem:[#allocation75_spill] sm:$0xff] %v10042_v2  ;;  %12684 = vst [vmem:[#allocation32_spill] sm:$0xff] %v10046_v45 }
 0xd51   :  { %12680 = vst [vmem:[#allocation18_spill] sm:$0xff] %v10038_v1  ;;  %12681 = vst [vmem:[#allocation20_spill] sm:$0xff] %v10040_v42  ;;  %v2794_v7 = vpack.c.bf16 %v10038_v1, %v10050_v44  ;;  %v2796_v13 = vpack.c.bf16 %v10040_v42, %v10052_v39  ;;  %v12698_v1 = vld [vmem:[#allocation76_spill] sm:$0xff]  ;;  %v12704_v44 = vld [vmem:[#allocation46_spill] sm:$0xff] }
 0xd52   :  { %v10044_v3 = vmin.f32 %v2771_v22, 1.0  ;;  %v10048_v4 = vmin.f32 %v2773_v21, 1.0  ;;  %12687 = vst [vmem:[#allocation33_spill] sm:$0xff] %v10052_v39  ;;  %v12703_v39 = vld [vmem:[#allocation50_spill] sm:$0xff] }
 0xd54   :  { %12683 = vst [vmem:[#allocation26_spill] sm:$0xff] %v10044_v3  ;;  %12685 = vst [vmem:[#allocation17_spill] sm:$0xff] %v10048_v4  ;;  %v2795_v50 = vpack.c.bf16 %v10044_v3, %v10042_v2  ;;  %v2797_v57 = vpack.c.bf16 %v10048_v4, %v10046_v45  ;;  %v12699_v2 = vld [vmem:[#allocation22_spill] sm:$0xff] }
 0xd56   :  { %2834 = vmatprep.mubr.bf16.mxu0 %v2795_v50  ;;  %2875 = vmatprep.mubr.bf16.mxu1 %v2797_v57  ;;  %v12691_v50 = vld [vmem:[#allocation48_spill] sm:$0xff]  ;;  %v12692_v57 = vld [vmem:[#allocation55_spill] sm:$0xff] }
 0xd57   :  { %2835 = vmatmul.mubr.bf16.vlgmr.msra.gmra.mrb[64].mxu0 %v2794_v7  ;;  %2876 = vmatmul.mubr.bf16.vlgmr.msra.gmra.mrb[64].mxu1 %v2796_v13 }
 0xd58   :  { %6986 = vmatpush3.bf16.msra.mxu0 %v9886_v63  ;;  %7008 = vmatpush3.bf16.msra.mxu1 %v9889_v49 }
 0xd59   :  { %6987 = vmatprep.subr.bf16.mxu0 %v9894_v31  ;;  %7009 = vmatprep.subr.bf16.mxu1 %v9897_v52 }
 0xd5c   :  { %6988 = vmatpush3.bf16.msra.mxu0 %v9900_v59  ;;  %7010 = vmatpush3.bf16.msra.mxu1 %v9903_v61 }
 0xd5d   :  { %6989 = vmatprep.subr.bf16.mxu0 %v9906_v26  ;;  %7011 = vmatprep.subr.bf16.mxu1 %v9909_v5 }
 0xd60   :  { %6990 = vmatpush3.bf16.msra.mxu0 %v9912_v62  ;;  %7012 = vmatpush3.bf16.msra.mxu1 %v9915_v35 }
 0xd61   :  { %6991 = vmatprep.subr.bf16.mxu0 %v9918_v37  ;;  %7013 = vmatprep.subr.bf16.mxu1 %v9921_v0 }
 0xd64   :  { %6992 = vmatpush3.bf16.msra.mxu0 %v9924_v60  ;;  %7014 = vmatpush3.bf16.msra.mxu1 %v9927_v38 }
 0xd65   :  { %6993 = vmatprep.subr.bf16.mxu0 %v9930_v47  ;;  %7015 = vmatprep.subr.bf16.mxu1 %v9933_v33 }
 0xd68   :  { %6994 = vmatpush3.bf16.msra.mxu0 %v9936_v30  ;;  %7016 = vmatpush3.bf16.msra.mxu1 %v9939_v23 }
 0xd69   :  { %6995 = vmatprep.subr.bf16.mxu0 %v9942_v29  ;;  %7017 = vmatprep.subr.bf16.mxu1 %v9945_v10 }
 0xd6c   :  { %6996 = vmatpush3.bf16.msra.mxu0 %v9948_v27  ;;  %7018 = vmatpush3.bf16.msra.mxu1 %v12688_v8 }
 0xd6d   :  { %6997 = vmatprep.subr.bf16.mxu0 %v12689_v46  ;;  %7019 = vmatprep.subr.bf16.mxu1 %v12690_v15 }
 0xd70   :  { %6998 = vmatpush3.bf16.msra.mxu0 %v9960_v24  ;;  %7020 = vmatpush3.bf16.msra.mxu1 %v9963_v51 }
 0xd71   :  { %6999 = vmatprep.subr.bf16.mxu0 %v9966_v56  ;;  %7021 = vmatprep.subr.bf16.mxu1 %v9969_v25 }
 0xd74   :  { %7000 = vmatpush3.bf16.msra.mxu0 %v9972_v6  ;;  %7022 = vmatpush3.bf16.msra.mxu1 %v9975_v19  ;;  %v12706_v19 = vld [vmem:[#allocation51_spill] sm:$0xff] }
 0xd75   :  { %7029 = vmatprep.subr.bf16.mxu0 %v9582_v14  ;;  %7047 = vmatprep.subr.bf16.mxu1 %v9585_v32 }
 0xd7e   :  { %v2566_v16 = vpop.f32.mrb[60].mxu0  ;;  %v2609_v9 = vpop.f32.mrb[60].mxu1 }
 0xd7f   :  { %v2638_v48 = vand.u32 2147483648, %v2566_v16  ;;  %v2640_v53 = vand.u32 2147483648, %v2609_v9  ;;  %v2568_v41 = vpop.f32.mrb[61].mxu0  ;;  %v2611_v12 = vpop.f32.mrb[61].mxu1  ;;  %v12693_v9 = vld [vmem:[#allocation47_spill] sm:$0xff] }
 0xd80   :  { %v2639_v54 = vand.u32 2147483648, %v2568_v41  ;;  %v2641_v20 = vand.u32 2147483648, %v2611_v12  ;;  %v2570_v58 = vpop.f32.mrb[62].mxu0  ;;  %v2613_v43 = vpop.f32.mrb[62].mxu1  ;;  %v12694_v41 = vld [vmem:[#allocation52_spill] sm:$0xff] }
 0xd81   :  { %v2654_v28 = vor.u32 1006665857, %v2638_v48  ;;  %v2656_v11 = vor.u32 1006665857, %v2640_v53  ;;  %v2646_v18 = vand.u32 2147483648, %v2570_v58  ;;  %v2648_v34 = vand.u32 2147483648, %v2613_v43 }
 0xd82   :  { %v2655_v17 = vor.u32 1006665857, %v2639_v54  ;;  %v2657_v22 = vor.u32 1006665857, %v2641_v20  ;;  %v2572_v21 = vpop.f32.mrb[63].mxu0  ;;  %v2615_v14 = vpop.f32.mrb[63].mxu1 }
 0xd83   :  { %v2686_v32 = vadd.f32 %v2654_v28, %v12691_v50  ;;  %v2688_v7 = vadd.f32 %v2656_v11, %v12692_v57  ;;  %v2662_v13 = vor.u32 1006665857, %v2646_v18  ;;  %v2664_v16 = vor.u32 1006665857, %v2648_v34  ;;  %v12695_v48 = vld [vmem:[#allocation24_spill] sm:$0xff]  ;;  %v12696_v58 = vld [vmem:[#allocation21_spill] sm:$0xff] }
 0xd84   :  { %v2687_v4 = vadd.f32 %v2655_v17, %v12693_v9  ;;  %v2689_v12 = vadd.f32 %v2657_v22, %v12694_v41  ;;  %v2647_v3 = vand.u32 2147483648, %v2572_v21  ;;  %v2649_v42 = vand.u32 2147483648, %v2615_v14  ;;  %v12697_v54 = vld [vmem:[#allocation45_spill] sm:$0xff]  ;;  %v12700_v50 = vld [vmem:[#allocation31_spill] sm:$0xff] }
 0xd85   :  { %v2702_v53 = vsub.f32 %v2686_v32, %v12695_v48  ;;  %v2704_v43 = vsub.f32 %v2688_v7, %v12696_v58  ;;  %v2694_v20 = vadd.f32 %v2662_v13, %v12697_v54  ;;  %v2696_v45 = vadd.f32 %v2664_v16, %v12698_v1  ;;  %v12701_v9 = vld [vmem:[#allocation25_spill] sm:$0xff]  ;;  %v12702_v21 = vld [vmem:[#allocation27_spill] sm:$0xff] }
 0xd86   :  { %v2703_v28 = vsub.f32 %v2687_v4, %v12699_v2  ;;  %v2705_v11 = vsub.f32 %v2689_v12, %v12700_v50  ;;  %v2663_v18 = vor.u32 1006665857, %v2647_v3  ;;  %v2665_v34 = vor.u32 1006665857, %v2649_v42  ;;  %v12705_v16 = vld [vmem:[#allocation49_spill] sm:$0xff] }
 0xd87   :  { %v6193_v57 = vclamps-f32 %v2702_v53, 0.03137255  ;;  %v6195_v17 = vclamps-f32 %v2704_v43, 0.03137255  ;;  %v2710_v22 = vsub.f32 %v2694_v20, %v12701_v9  ;;  %v2712_v14 = vsub.f32 %v2696_v45, %v12702_v21 }
 0xd88   :  { %v6194_v41 = vclamps-f32 %v2703_v28, 0.03137255  ;;  %v6196_v32 = vclamps-f32 %v2705_v11, 0.03137255  ;;  %v2695_v7 = vadd.f32 %v2663_v18, %v12703_v39  ;;  %v2697_v13 = vadd.f32 %v2665_v34, %v12704_v44 }
 0xd89   :  { %v6201_v54 = vclamps-f32 %v2710_v22, 0.03137255  ;;  %v6203_v1 = vclamps-f32 %v2712_v14, 0.03137255  ;;  %v2750_v53 = vadd.f32 %v12695_v48, %v6193_v57  ;;  %v2752_v45 = vadd.f32 %v12696_v58, %v6195_v17 }
 0xd8a   :  { %v2711_v4 = vsub.f32 %v2695_v7, %v12705_v16  ;;  %v2713_v12 = vsub.f32 %v2697_v13, %v12706_v19  ;;  %v2751_v42 = vadd.f32 %v12699_v2, %v6194_v41  ;;  %v2753_v3 = vadd.f32 %v12700_v50, %v6196_v32 }
 0xd8b   :  { %v2758_v43 = vadd.f32 %v12701_v9, %v6201_v54  ;;  %v2760_v39 = vadd.f32 %v12702_v21, %v6203_v1  ;;  %v2766_v14 = vmax.f32 %v2750_v53, 0.0  ;;  %v2768_v50 = vmax.f32 %v2752_v45, 0.0  ;;  %v12719_v53 = vld [vmem:[#allocation60_spill] sm:$0xff]  ;;  %v12720_v45 = vld [vmem:[#allocation61_spill] sm:$0xff] }
 0xd8c   :  { %v6202_v20 = vclamps-f32 %v2711_v4, 0.03137255  ;;  %v6204_v44 = vclamps-f32 %v2713_v12, 0.03137255  ;;  %v2767_v34 = vmax.f32 %v2751_v42, 0.0  ;;  %v2769_v2 = vmax.f32 %v2753_v3, 0.0 }
 0xd8d   :  { %v2774_v28 = vmax.f32 %v2758_v43, 0.0  ;;  %v2776_v11 = vmax.f32 %v2760_v39, 0.0  ;;  %v10130_v7 = vmin.f32 %v2766_v14, 1.0  ;;  %v12715_v4 = vld [vmem:[#allocation56_spill] sm:$0xff]  ;;  %v12716_v12 = vld [vmem:[#allocation57_spill] sm:$0xff]  ;;  %v12717_v42 = vld [vmem:[#allocation58_spill] sm:$0xff] }
 0xd8e   :  { %v2759_v18 = vadd.f32 %v12705_v16, %v6202_v20  ;;  %v2761_v22 = vadd.f32 %v12706_v19, %v6204_v44  ;;  %v10122_v17 = vmin.f32 %v2767_v34, 1.0  ;;  %v10126_v21 = vmin.f32 %v2769_v2, 1.0  ;;  %v12718_v3 = vld [vmem:[#allocation59_spill] sm:$0xff]  ;;  %v12721_v43 = vld [vmem:[#allocation62_spill] sm:$0xff]  ;;  %v12723_v20 = vld [vmem:[#allocation64_spill] sm:$0xff] }
 0xd8f   :  { %v10118_v57 = vmin.f32 %v2774_v28, 1.0  ;;  %v10120_v58 = vmin.f32 %v2776_v11, 1.0  ;;  %12713 = vst [vmem:[#allocation38_spill] sm:$0xff] %v10130_v7  ;;  %v10132_v19 = vmin.f32 %v2768_v50, 1.0  ;;  %v12722_v39 = vld [vmem:[#allocation63_spill] sm:$0xff]  ;;  %v12724_v44 = vld [vmem:[#allocation65_spill] sm:$0xff] }
 0xd90   :  { %v2775_v41 = vmax.f32 %v2759_v18, 0.0  ;;  %v2777_v48 = vmax.f32 %v2761_v22, 0.0  ;;  %12709 = vst [vmem:[#allocation19_spill] sm:$0xff] %v10122_v17  ;;  %12711 = vst [vmem:[#allocation16_spill] sm:$0xff] %v10126_v21  ;;  %v12725_v28 = vld [vmem:[#allocation66_spill] sm:$0xff]  ;;  %v12726_v11 = vld [vmem:[#allocation67_spill] sm:$0xff] }
 0xd91   :  { %12707 = vst [vmem:[#allocation30_spill] sm:$0xff] %v10118_v57  ;;  %12708 = vst [vmem:[#allocation15_spill] sm:$0xff] %v10120_v58  ;;  %v2798_v1 = vpack.c.bf16 %v10118_v57, %v10130_v7  ;;  %v2800_v16 = vpack.c.bf16 %v10120_v58, %v10132_v19  ;;  %v12727_v18 = vld [vmem:[#allocation68_spill] sm:$0xff]  ;;  %v12728_v34 = vld [vmem:[#allocation69_spill] sm:$0xff] }
 0xd92   :  { %v10124_v9 = vmin.f32 %v2775_v41, 1.0  ;;  %v10128_v32 = vmin.f32 %v2777_v48, 1.0  ;;  %12714 = vst [vmem:[#allocation39_spill] sm:$0xff] %v10132_v19  ;;  %v12729_v22 = vld [vmem:[#allocation70_spill] sm:$0xff]  ;;  %v12730_v2 = vld [vmem:[#allocation71_spill] sm:$0xff]  ;;  %v12731_v14 = vld [vmem:[#allocation72_spill] sm:$0xff] }
 0xd93   :  { %v12732_v50 = vld [vmem:[#allocation36_spill] sm:$0xff]  ;;  %v12733_v41 = vld [vmem:[#allocation37_spill] sm:$0xff]  ;;  %v12734_v48 = vld [vmem:[#allocation34_spill] sm:$0xff] }
 0xd94   :  { %12710 = vst [vmem:[#allocation28_spill] sm:$0xff] %v10124_v9  ;;  %12712 = vst [vmem:[#allocation23_spill] sm:$0xff] %v10128_v32  ;;  %v2799_v13 = vpack.c.bf16 %v10124_v9, %v10122_v17  ;;  %v2801_v54 = vpack.c.bf16 %v10128_v32, %v10126_v21  ;;  %v12739_v32 = vld [vmem:[#allocation43_spill] sm:$0xff]  ;;  %v12740_v9 = vld [vmem:[#allocation73_spill] sm:$0xff] }
 0xd95   :  { %v12741_v58 = vld [vmem:[#allocation74_spill] sm:$0xff]  ;;  %v12742_v57 = vld [vmem:[#allocation12_spill] sm:$0xff] }
 0xd96   :  { %2916 = vmatprep.mubr.bf16.mxu0 %v2799_v13  ;;  %2957 = vmatprep.mubr.bf16.mxu1 %v2801_v54  ;;  %v12735_v13 = vld [vmem:[#allocation42_spill] sm:$0xff]  ;;  %v12736_v54 = vld [vmem:[#allocation44_spill] sm:$0xff] }
 0xd97   :  { %2917 = vmatmul.mubr.bf16.vlgmr.msra.gmra.mrb[68].mxu0 %v2798_v1  ;;  %2958 = vmatmul.mubr.bf16.vlgmr.msra.gmra.mrb[68].mxu1 %v2800_v16  ;;  %v12737_v1 = vld [vmem:[#allocation13_spill] sm:$0xff]  ;;  %v12738_v16 = vld [vmem:[#allocation35_spill] sm:$0xff]  ;;  %v12743_v21 = vld [vmem:[#allocation40_spill] sm:$0xff] }
 0xd98   :  { %7030 = vmatpush3.bf16.xpose.msra.mxu0 %v9780_v36  ;;  %7048 = vmatpush3.bf16.xpose.msra.mxu1 %v9783_v40 }
 0xd99   :  { %7031 = vmatprep.subr.bf16.mxu0 %v9786_v55  ;;  %7049 = vmatprep.subr.bf16.mxu1 %v12715_v4 }
 0xda0   :  { %7032 = vmatpush3.bf16.xpose.msra.mxu0 %v12716_v12  ;;  %7050 = vmatpush3.bf16.xpose.msra.mxu1 %v12717_v42 }
 0xda1   :  { %7033 = vmatprep.subr.bf16.mxu0 %v12718_v3  ;;  %7051 = vmatprep.subr.bf16.mxu1 %v12719_v53 }
 0xda8   :  { %7034 = vmatpush3.bf16.xpose.msra.mxu0 %v12720_v45  ;;  %7052 = vmatpush3.bf16.xpose.msra.mxu1 %v12721_v43 }
 0xda9   :  { %7035 = vmatprep.subr.bf16.mxu0 %v12722_v39  ;;  %7053 = vmatprep.subr.bf16.mxu1 %v12723_v20 }
 0xdb0   :  { %7036 = vmatpush3.bf16.xpose.msra.mxu0 %v12724_v44  ;;  %7054 = vmatpush3.bf16.xpose.msra.mxu1 %v12725_v28 }
 0xdb1   :  { %7037 = vmatprep.subr.bf16.mxu0 %v12726_v11  ;;  %7055 = vmatprep.subr.bf16.mxu1 %v12727_v18 }
 0xdb8   :  { %7038 = vmatpush3.bf16.xpose.msra.mxu0 %v12728_v34  ;;  %7056 = vmatpush3.bf16.xpose.msra.mxu1 %v12729_v22 }
 0xdb9   :  { %7039 = vmatprep.subr.bf16.mxu0 %v12730_v2  ;;  %7057 = vmatprep.subr.bf16.mxu1 %v12731_v14 }
 0xdc0   :  { %7040 = vmatpush3.bf16.xpose.msra.mxu0 %v12732_v50  ;;  %7058 = vmatpush3.bf16.xpose.msra.mxu1 %v12733_v41 }
 0xdc1   :  { %7041 = vmatprep.subr.bf16.mxu0 %v12734_v48  ;;  %7059 = vmatprep.subr.bf16.mxu1 %v12735_v13 }
 0xdc8   :  { %7042 = vmatpush3.bf16.xpose.msra.mxu0 %v12736_v54  ;;  %7060 = vmatpush3.bf16.xpose.msra.mxu1 %v12737_v1 }
 0xdc9   :  { %7043 = vmatprep.subr.bf16.mxu0 %v12738_v16  ;;  %7061 = vmatprep.subr.bf16.mxu1 %v12739_v32 }
 0xdd0   :  { %7044 = vmatpush3.bf16.xpose.msra.mxu0 %v12740_v9  ;;  %7062 = vmatpush3.bf16.xpose.msra.mxu1 %v12741_v58  ;;  %v10177_v9 = vld [vmem:[%s11753_s3] ss:$0 sm:$0xff] }
 0xdd1   :  { %7065 = vmatprep.subr.bf16.mxu0 %v12742_v57  ;;  %7083 = vmatprep.subr.bf16.mxu1 %v12743_v21 }
 0xe2a   :  { %v6957_v17 = vpop.f32.mrb[64].mxu0  ;;  %v6979_v19 = vpop.f32.mrb[64].mxu1 }
 0xe2b   :  { %v6958_v7 = vpop.f32.mrb[65].mxu0  ;;  %v6980_v13 = vpop.f32.mrb[65].mxu1 }
 0xe2c   :  { %v6959_v48 = vadd.f32 %v6958_v7, %v6957_v17  ;;  %v6981_v54 = vadd.f32 %v6980_v13, %v6979_v19  ;;  %v6960_v41 = vpop.f32.mrb[66].mxu0  ;;  %v6982_v1 = vpop.f32.mrb[66].mxu1 }
 0xe2d   :  { %v6961_v50 = vpop.f32.mrb[67].mxu0  ;;  %v6983_v16 = vpop.f32.mrb[67].mxu1 }
 0xe2e   :  { %v2837_v58 = vadd.f32 %v10177_v9, %v6959_v48  ;;  %v6962_v57 = vadd.f32 %v6961_v50, %v6960_v41  ;;  %v6984_v32 = vadd.f32 %v6983_v16, %v6982_v1 }
 0xe30   :  { %v2878_v21 = vadd.f32 %v6981_v54, %v2837_v58  ;;  %v2840_v14 = vadd.f32 %v10177_v9, %v6962_v57 }
 0xe32   :  { %v2881_v2 = vadd.f32 %v6984_v32, %v2840_v14 }
 0xe6a   :  { %v7001_v22 = vpop.f32.mrb[68].mxu0  ;;  %v7023_v17 = vpop.f32.mrb[68].mxu1 }
 0xe6b   :  { %v7002_v7 = vpop.f32.mrb[69].mxu0  ;;  %v7024_v19 = vpop.f32.mrb[69].mxu1 }
 0xe6c   :  { %v7003_v13 = vadd.f32 %v7002_v7, %v7001_v22  ;;  %v7025_v34 = vadd.f32 %v7024_v19, %v7023_v17  ;;  %v7004_v18 = vpop.f32.mrb[70].mxu0  ;;  %v7026_v11 = vpop.f32.mrb[70].mxu1  ;;  %v12746_v7 = vld [vmem:[#allocation41_spill] sm:$0xff]  ;;  %v10213_v19 = vld [vmem:[#allocation7 + $0x40] sm:$0xff]  }
 0xe6d   :  { %v7005_v28 = vpop.f32.mrb[71].mxu0  ;;  %v7027_v44 = vpop.f32.mrb[71].mxu1 }
 0xe6e   :  { %v2919_v20 = vadd.f32 %v7003_v13, %v2878_v21  ;;  %v7006_v39 = vadd.f32 %v7005_v28, %v7004_v18  ;;  %v7028_v43 = vadd.f32 %v7027_v44, %v7026_v11  ;;  %v12744_v11 = vld [vmem:[#allocation53_spill] sm:$0xff]  ;;  %v10216_v13 = vld [vmem:[#allocation7 + $0xc0] sm:$0xff]  }
 0xe70   :  { %v2922_v48 = vadd.f32 %v7006_v39, %v2881_v2  ;;  %v2960_v50 = vadd.f32 %v7025_v34, %v2919_v20  ;;  %v12745_v34 = vld [vmem:[#allocation54_spill] sm:$0xff] }
 0xe72   :  { %2966 = vmax.xlane.f32.xlu0 %v2960_v50  ;;  %v2963_v58 = vadd.f32 %v7028_v43, %v2922_v48  ;;  %v12747_v48 = vld [vmem:[#allocation62_spill] sm:$0xff] }
 0xe74   :  { %2968 = vmax.xlane.f32.xlu1 %v2963_v58 }
 0xeff   :  { %v2967_v57 = vpop.xlane.xlu0 %2966 }
 0xf00   :  { %v2970_v32 = vsub.f32 %v2960_v50, %v2967_v57  ;;  %v12748_v50 = vld [vmem:[#allocation63_spill] sm:$0xff]  ;;  %v12759_v57 = vld [vmem:[#allocation37_spill] sm:$0xff] }
 0xf01   :  { %v2969_v14 = vpop.xlane.xlu1 %2968 }
 0xf02   :  { %v2972_v41 = vmul.f32 1.442695, %v2970_v32  ;;  %v2971_v54 = vsub.f32 %v2963_v58, %v2969_v14  ;;  %v12758_v58 = vld [vmem:[#allocation36_spill] sm:$0xff]  ;;  %v12760_v32 = vld [vmem:[#allocation34_spill] sm:$0xff] }
 0xf03   :  { %v12761_v14 = vld [vmem:[#allocation42_spill] sm:$0xff] }
 0xf04   :  { %8008 = vpow2.f32 %v2972_v41  ;;  %v2974_v22 = vmul.f32 1.442695, %v2971_v54  ;;  %v12762_v41 = vld [vmem:[#allocation44_spill] sm:$0xff]  ;;  %v12763_v54 = vld [vmem:[#allocation13_spill] sm:$0xff] }
 0xf06   :  { %8010 = vpow2.f32 %v2974_v22  ;;  %v12764_v22 = vld [vmem:[#allocation35_spill] sm:$0xff] }
 0xf0e   :  { %v8009_v1 = vpop.eup %8008 }
 0xf0f   :  { %2976 = vadd.xlane.f32.xlu0 %v8009_v1 }
 0xf10   :  { %v8011_v16 = vpop.eup %8010 }
 0xf11   :  { %2978 = vadd.xlane.f32.xlu1 %v8011_v16 }
 0xf9c   :  { %v2977_v21 = vpop.xlane.xlu0 %2976 }
 0xf9d   :  { %8012 = vrcp.f32 %v2977_v21  ;;  %v12767_v21 = vld [vmem:[#allocation74_spill] sm:$0xff] }
 0xf9e   :  { %v2979_v44 = vpop.xlane.xlu1 %2978 }
 0xf9f   :  { %8014 = vrcp.f32 %v2979_v44  ;;  %v12768_v44 = vld [vmem:[#allocation12_spill] sm:$0xff] }
 0xfa7   :  { %v8013_v39 = vpop.eup %8012 }
 0xfa8   :  { %v2981_v20 = vmul.f32 %v8013_v39, %v8009_v1  ;;  %v12765_v1 = vld [vmem:[#allocation43_spill] sm:$0xff]  ;;  %v12769_v39 = vld [vmem:[#allocation40_spill] sm:$0xff] }
 0xfa9   :  { %v8015_v43 = vpop.eup %8014 }
 0xfaa   :  { %v2983_v28 = vmul.f32 %v8015_v43, %v8011_v16  ;;  %v2984_v18 = vsub.f32 %v2981_v20, %v12744_v11  ;;  %v12766_v16 = vld [vmem:[#allocation73_spill] sm:$0xff] }
 0xfac   :  { %v2985_v2 = vsub.f32 %v2983_v28, %v12745_v34 }
 0xfae   :  { %v2986_v17 = vpack.c.bf16 %v2985_v2, %v2984_v18 }
 0xfb0   :  { %7045 = vmatprep.mubr.bf16.mxu0 %v2986_v17  ;;  %7063 = vmatprep.mubr.bf16.mxu1 %v2986_v17 }
 0xfb1   :  { %7046 = vmatmul.mubr.bf16.vlgmr.msra.gmra.mrb[72].mxu0 %v2986_v17  ;;  %7064 = vmatmul.mubr.bf16.vlgmr.msra.gmra.mrb[72].mxu1 %v2986_v17 }
 0xfb2   :  { %7066 = vmatpush3.bf16.xpose.msra.mxu0 %v9886_v63  ;;  %7084 = vmatpush3.bf16.xpose.msra.mxu1 %v9889_v49 }
 0xfb3   :  { %7081 = vmatprep.mubr.bf16.mxu0 %v2986_v17  ;;  %7099 = vmatprep.mubr.bf16.mxu1 %v2986_v17 }
 0xfb4   :  { %7067 = vmatprep.subr.bf16.mxu0 %v9894_v31  ;;  %7085 = vmatprep.subr.bf16.mxu1 %v9897_v52 }
 0xfba   :  { %7068 = vmatpush3.bf16.xpose.msra.mxu0 %v9900_v59  ;;  %7086 = vmatpush3.bf16.xpose.msra.mxu1 %v9903_v61 }
 0xfbb   :  { %7069 = vmatprep.subr.bf16.mxu0 %v9906_v26  ;;  %7087 = vmatprep.subr.bf16.mxu1 %v9909_v5 }
 0xfc2   :  { %7070 = vmatpush3.bf16.xpose.msra.mxu0 %v9912_v62  ;;  %7088 = vmatpush3.bf16.xpose.msra.mxu1 %v9915_v35 }
 0xfc3   :  { %7071 = vmatprep.subr.bf16.mxu0 %v9918_v37  ;;  %7089 = vmatprep.subr.bf16.mxu1 %v9921_v0 }
 0xfca   :  { %7072 = vmatpush3.bf16.xpose.msra.mxu0 %v9924_v60  ;;  %7090 = vmatpush3.bf16.xpose.msra.mxu1 %v9927_v38 }
 0xfcb   :  { %7073 = vmatprep.subr.bf16.mxu0 %v9930_v47  ;;  %7091 = vmatprep.subr.bf16.mxu1 %v9933_v33 }
 0xfd2   :  { %7074 = vmatpush3.bf16.xpose.msra.mxu0 %v9936_v30  ;;  %7092 = vmatpush3.bf16.xpose.msra.mxu1 %v9939_v23 }
 0xfd3   :  { %7075 = vmatprep.subr.bf16.mxu0 %v9942_v29  ;;  %7093 = vmatprep.subr.bf16.mxu1 %v9945_v10 }
 0xfda   :  { %7076 = vmatpush3.bf16.xpose.msra.mxu0 %v9948_v27  ;;  %7094 = vmatpush3.bf16.xpose.msra.mxu1 %v12688_v8 }
 0xfdb   :  { %7077 = vmatprep.subr.bf16.mxu0 %v12689_v46  ;;  %7095 = vmatprep.subr.bf16.mxu1 %v12690_v15 }
 0xfe2   :  { %7078 = vmatpush3.bf16.xpose.msra.mxu0 %v9960_v24  ;;  %7096 = vmatpush3.bf16.xpose.msra.mxu1 %v9963_v51 }
 0xfe3   :  { %7079 = vmatprep.subr.bf16.mxu0 %v9966_v56  ;;  %7097 = vmatprep.subr.bf16.mxu1 %v9969_v25 }
 0xfea   :  { %7080 = vmatpush3.bf16.xpose.msra.mxu0 %v9972_v6  ;;  %7098 = vmatpush3.bf16.xpose.msra.mxu1 %v12746_v7 }
 0xfeb   :  { %7101 = vmatprep.subr.bf16.mxu0 %v10213_v19  ;;  %7123 = vmatprep.subr.bf16.mxu1 %v10216_v13 }
 0xff1   :  { %7082 = vmatmul.mubr.bf16.vlgmr.msra.gmra.mrb[76].mxu0 %v2986_v17  ;;  %7100 = vmatmul.mubr.bf16.vlgmr.msra.gmra.mrb[76].mxu1 %v2986_v17 }
 0xff2   :  { %7102 = vmatpush3.bf16.msra.mxu0 %v9780_v36  ;;  %7124 = vmatpush3.bf16.msra.mxu1 %v9783_v40  ;;  %v12749_v36 = vld [vmem:[#allocation64_spill] sm:$0xff]  ;;  %v12750_v40 = vld [vmem:[#allocation65_spill] sm:$0xff] }
 0xff3   :  { %7103 = vmatprep.subr.bf16.mxu0 %v9786_v55  ;;  %7125 = vmatprep.subr.bf16.mxu1 %v12715_v4  ;;  %v12751_v55 = vld [vmem:[#allocation66_spill] sm:$0xff]  ;;  %v12752_v4 = vld [vmem:[#allocation67_spill] sm:$0xff] }
 0xff6   :  { %7104 = vmatpush3.bf16.msra.mxu0 %v12716_v12  ;;  %7126 = vmatpush3.bf16.msra.mxu1 %v12717_v42  ;;  %v12753_v12 = vld [vmem:[#allocation68_spill] sm:$0xff]  ;;  %v12754_v42 = vld [vmem:[#allocation69_spill] sm:$0xff] }
 0xff7   :  { %7105 = vmatprep.subr.bf16.mxu0 %v12718_v3  ;;  %7127 = vmatprep.subr.bf16.mxu1 %v12719_v53  ;;  %v12755_v3 = vld [vmem:[#allocation70_spill] sm:$0xff]  ;;  %v12756_v53 = vld [vmem:[#allocation71_spill] sm:$0xff] }
 0xffa   :  { %7106 = vmatpush3.bf16.msra.mxu0 %v12720_v45  ;;  %7128 = vmatpush3.bf16.msra.mxu1 %v12747_v48  ;;  %v12757_v45 = vld [vmem:[#allocation72_spill] sm:$0xff] }
 0xffb   :  { %7107 = vmatprep.subr.bf16.mxu0 %v12748_v50  ;;  %7129 = vmatprep.subr.bf16.mxu1 %v12749_v36 }
 0xffe   :  { %7108 = vmatpush3.bf16.msra.mxu0 %v12750_v40  ;;  %7130 = vmatpush3.bf16.msra.mxu1 %v12751_v55 }
 0xfff   :  { %7109 = vmatprep.subr.bf16.mxu0 %v12752_v4  ;;  %7131 = vmatprep.subr.bf16.mxu1 %v12753_v12 }
0x1002   :  { %7110 = vmatpush3.bf16.msra.mxu0 %v12754_v42  ;;  %7132 = vmatpush3.bf16.msra.mxu1 %v12755_v3 }
0x1003   :  { %7111 = vmatprep.subr.bf16.mxu0 %v12756_v53  ;;  %7133 = vmatprep.subr.bf16.mxu1 %v12757_v45 }
0x1006   :  { %7112 = vmatpush3.bf16.msra.mxu0 %v12758_v58  ;;  %7134 = vmatpush3.bf16.msra.mxu1 %v12759_v57  ;;  %v12770_v57 = vld [vmem:[#allocation29_spill] sm:$0xff] }
0x1007   :  { %7113 = vmatprep.subr.bf16.mxu0 %v12760_v32  ;;  %7135 = vmatprep.subr.bf16.mxu1 %v12761_v14  ;;  %v12771_v14 = vld [vmem:[#allocation33_spill] sm:$0xff] }
0x100a   :  { %7114 = vmatpush3.bf16.msra.mxu0 %v12762_v41  ;;  %7136 = vmatpush3.bf16.msra.mxu1 %v12763_v54 }
0x100b   :  { %7115 = vmatprep.subr.bf16.mxu0 %v12764_v22  ;;  %7137 = vmatprep.subr.bf16.mxu1 %v12765_v1  ;;  %v12772_v1 = vld [vmem:[#allocation75_spill] sm:$0xff] }
0x100e   :  { %7116 = vmatpush3.bf16.msra.mxu0 %v12766_v16  ;;  %7138 = vmatpush3.bf16.msra.mxu1 %v12767_v21  ;;  %v12773_v21 = vld [vmem:[#allocation32_spill] sm:$0xff] }
0x100f   :  { %7145 = vmatprep.subr.bf16.mxu0 %v12768_v44  ;;  %7167 = vmatprep.subr.bf16.mxu1 %v12769_v39 }
0x1084   :  { %v3021_v20 = vpop.f32.mrb[72].mxu0  ;;  %v3064_v43 = vpop.f32.mrb[72].mxu1 }
0x1085   :  { %v3175_v28 = vand.u32 2147483648, %v3021_v20  ;;  %v3177_v18 = vand.u32 2147483648, %v3064_v43  ;;  %v3023_v2 = vpop.f32.mrb[73].mxu0  ;;  %v3066_v17 = vpop.f32.mrb[73].mxu1  ;;  %v10255_v43 = vld [vmem:[#allocation2] sm:$0xff] }
0x1086   :  { %v3176_v48 = vand.u32 2147483648, %v3023_v2  ;;  %v3178_v50 = vand.u32 2147483648, %v3066_v17  ;;  %v3025_v36 = vpop.f32.mrb[74].mxu0  ;;  %v3068_v40 = vpop.f32.mrb[74].mxu1  ;;  %12774 = vst [vmem:[#allocation14_spill] sm:$0xff] %v10255_v43  ;;  %v12776_v17 = vld [vmem:[#allocation18_spill] sm:$0xff] }
0x1087   :  { %v3191_v55 = vor.u32 1006665857, %v3175_v28  ;;  %v3193_v4 = vor.u32 1006665857, %v3177_v18  ;;  %v3183_v12 = vand.u32 2147483648, %v3025_v36  ;;  %v3185_v42 = vand.u32 2147483648, %v3068_v40 }
0x1088   :  { %v3192_v3 = vor.u32 1006665857, %v3176_v48  ;;  %v3194_v53 = vor.u32 1006665857, %v3178_v50  ;;  %v3027_v45 = vpop.f32.mrb[75].mxu0  ;;  %v3070_v58 = vpop.f32.mrb[75].mxu1 }
0x1089   :  { %v3223_v32 = vadd.f32 %v3191_v55, %v12770_v57  ;;  %v3225_v41 = vadd.f32 %v3193_v4, %v12771_v14  ;;  %v3199_v54 = vor.u32 1006665857, %v3183_v12  ;;  %v3201_v22 = vor.u32 1006665857, %v3185_v42  ;;  %v10258_v18 = vld [vmem:[#allocation2 + $0x10] sm:$0xff]  ;;  %v12777_v50 = vld [vmem:[#allocation20_spill] sm:$0xff] }
0x108a   :  { %v3224_v16 = vadd.f32 %v3192_v3, %v12772_v1  ;;  %v3226_v44 = vadd.f32 %v3194_v53, %v12773_v21  ;;  %v3184_v39 = vand.u32 2147483648, %v3027_v45  ;;  %v3186_v20 = vand.u32 2147483648, %v3070_v58  ;;  %12775 = vst [vmem:[#allocation48_spill] sm:$0xff] %v10258_v18  ;;  %v10263_v40 = vld [vmem:[#allocation2 + $0x8] sm:$0xff]  ;;  %v10266_v4 = vld [vmem:[#allocation2 + $0x18] sm:$0xff]  ;;  %v10269_v58 = vld [vmem:[#allocation2 + $0x40] sm:$0xff] }
0x108b   :  { %v3239_v28 = vsub.f32 %v3223_v32, %v10255_v43  ;;  %v3241_v2 = vsub.f32 %v3225_v41, %v10258_v18  ;;  %v3231_v48 = vadd.f32 %v3199_v54, %v12776_v17  ;;  %v3233_v36 = vadd.f32 %v3201_v22, %v12777_v50  ;;  %12778 = vst [vmem:[#allocation55_spill] sm:$0xff] %v10263_v40  ;;  %v10272_v32 = vld [vmem:[#allocation2 + $0x50] sm:$0xff] }
0x108c   :  { %v3240_v55 = vsub.f32 %v3224_v16, %v10263_v40  ;;  %12779 = vst [vmem:[#allocation47_spill] sm:$0xff] %v10266_v4  ;;  %v3242_v12 = vsub.f32 %v3226_v44, %v10266_v4  ;;  %v3200_v42 = vor.u32 1006665857, %v3184_v39  ;;  %v3202_v3 = vor.u32 1006665857, %v3186_v20  ;;  %12780 = vst [vmem:[#allocation52_spill] sm:$0xff] %v10269_v58 }
0x108d   :  { %v6205_v53 = vclamps-f32 %v3239_v28, 0.03137255  ;;  %v6207_v45 = vclamps-f32 %v3241_v2, 0.03137255  ;;  %v3247_v57 = vsub.f32 %v3231_v48, %v10269_v58  ;;  %12781 = vst [vmem:[#allocation24_spill] sm:$0xff] %v10272_v32  ;;  %v3249_v14 = vsub.f32 %v3233_v36, %v10272_v32  ;;  %v12782_v22 = vld [vmem:[#allocation26_spill] sm:$0xff] }
0x108e   :  { %v6206_v41 = vclamps-f32 %v3240_v55, 0.03137255  ;;  %v6208_v54 = vclamps-f32 %v3242_v12, 0.03137255  ;;  %v3232_v1 = vadd.f32 %v3200_v42, %v12782_v22  ;;  %v12783_v16 = vld [vmem:[#allocation17_spill] sm:$0xff]  ;;  %v10280_v28 = vld [vmem:[#allocation2 + $0x58] sm:$0xff] }
0x108f   :  { %v3234_v21 = vadd.f32 %v3202_v3, %v12783_v16  ;;  %v6213_v17 = vclamps-f32 %v3247_v57, 0.03137255  ;;  %v6215_v44 = vclamps-f32 %v3249_v14, 0.03137255  ;;  %v10277_v39 = vld [vmem:[#allocation2 + $0x48] sm:$0xff]  ;;  %12785 = vst [vmem:[#allocation45_spill] sm:$0xff] %v10280_v28  ;;  %v3287_v36 = vadd.f32 %v10255_v43, %v6205_v53 }
0x1090   :  { %12784 = vst [vmem:[#allocation21_spill] sm:$0xff] %v10277_v39  ;;  %v3248_v20 = vsub.f32 %v3232_v1, %v10277_v39  ;;  %v3288_v48 = vadd.f32 %v10263_v40, %v6206_v41  ;;  %v3290_v50 = vadd.f32 %v10266_v4, %v6208_v54  ;;  %v3289_v55 = vadd.f32 %v10258_v18, %v6207_v45 }
0x1091   :  { %v3250_v2 = vsub.f32 %v3234_v21, %v10280_v28  ;;  %v3295_v12 = vadd.f32 %v10269_v58, %v6213_v17  ;;  %v3297_v42 = vadd.f32 %v10272_v32, %v6215_v44  ;;  %v3303_v40 = vmax.f32 %v3287_v36, 0.0 }
0x1092   :  { %v6214_v3 = vclamps-f32 %v3248_v20, 0.03137255  ;;  %v3304_v16 = vmax.f32 %v3288_v48, 0.0  ;;  %v3306_v41 = vmax.f32 %v3290_v50, 0.0  ;;  %v3305_v54 = vmax.f32 %v3289_v55, 0.0 }
0x1093   :  { %v6216_v57 = vclamps-f32 %v3250_v2, 0.03137255  ;;  %v3311_v14 = vmax.f32 %v3295_v12, 0.0  ;;  %v3313_v22 = vmax.f32 %v3297_v42, 0.0  ;;  %v10303_v48 = vmin.f32 %v3303_v40, 1.0  ;;  %v10351_v40 = vld [vmem:[#allocation2 + $0x20] sm:$0xff] }
0x1094   :  { %v3296_v1 = vadd.f32 %v10277_v39, %v6214_v3  ;;  %v10295_v17 = vmin.f32 %v3304_v16, 1.0  ;;  %v10299_v20 = vmin.f32 %v3306_v41, 1.0  ;;  %v10305_v12 = vmin.f32 %v3305_v54, 1.0  ;;  %12796 = vst [vmem:[#allocation46_spill] sm:$0xff] %v10351_v40  ;;  %v10354_v3 = vld [vmem:[#allocation2 + $0x30] sm:$0xff]  ;;  %v10362_v54 = vld [vmem:[#allocation2 + $0x38] sm:$0xff] }
0x1095   :  { %v3298_v21 = vadd.f32 %v10280_v28, %v6216_v57  ;;  %v10291_v43 = vmin.f32 %v3311_v14, 1.0  ;;  %v10293_v45 = vmin.f32 %v3313_v22, 1.0  ;;  %12797 = vst [vmem:[#allocation49_spill] sm:$0xff] %v10354_v3  ;;  %v12798_v14 = vld [vmem:[#allocation30_spill] sm:$0xff]  ;;  %12801 = vst [vmem:[#allocation56_spill] sm:$0xff] %v10362_v54 }
0x1096   :  { %v3312_v4 = vmax.f32 %v3296_v1, 0.0  ;;  %12788 = vst [vmem:[#allocation31_spill] sm:$0xff] %v10295_v17  ;;  %12790 = vst [vmem:[#allocation27_spill] sm:$0xff] %v10299_v20  ;;  %v12799_v1 = vld [vmem:[#allocation15_spill] sm:$0xff] }
0x1097   :  { %v3314_v53 = vmax.f32 %v3298_v21, 0.0  ;;  %12786 = vst [vmem:[#allocation76_spill] sm:$0xff] %v10291_v43  ;;  %12787 = vst [vmem:[#allocation22_spill] sm:$0xff] %v10293_v45  ;;  %v3335_v55 = vpack.c.bf16 %v10291_v43, %v10303_v48  ;;  %v10359_v21 = vld [vmem:[#allocation2 + $0x28] sm:$0xff] }
0x1098   :  { %v10297_v44 = vmin.f32 %v3312_v4, 1.0  ;;  %v3337_v4 = vpack.c.bf16 %v10293_v45, %v10305_v12  ;;  %12800 = vst [vmem:[#allocation51_spill] sm:$0xff] %v10359_v21 }
0x1099   :  { %v10301_v2 = vmin.f32 %v3314_v53, 1.0 }
0x109a   :  { %12789 = vst [vmem:[#allocation25_spill] sm:$0xff] %v10297_v44  ;;  %v3336_v50 = vpack.c.bf16 %v10297_v44, %v10295_v17 }
0x109b   :  { %12791 = vst [vmem:[#allocation50_spill] sm:$0xff] %v10301_v2  ;;  %v3338_v36 = vpack.c.bf16 %v10301_v2, %v10299_v20 }
0x109c   :  { %3375 = vmatprep.mubr.bf16.mxu0 %v3336_v50 }
0x109d   :  { %3416 = vmatprep.mubr.bf16.mxu1 %v3338_v36  ;;  %3376 = vmatmul.mubr.bf16.vlgmr.msra.gmra.mrb[80].mxu0 %v3335_v55 }
0x109e   :  { %3417 = vmatmul.mubr.bf16.vlgmr.msra.gmra.mrb[80].mxu1 %v3337_v4  ;;  %7146 = vmatpush3.bf16.msra.mxu0 %v9886_v63 }
0x109f   :  { %7168 = vmatpush3.bf16.msra.mxu1 %v9889_v49  ;;  %7147 = vmatprep.subr.bf16.mxu0 %v9894_v31 }
0x10a0   :  { %7169 = vmatprep.subr.bf16.mxu1 %v9897_v52 }
0x10a2   :  { %7148 = vmatpush3.bf16.msra.mxu0 %v9900_v59 }
0x10a3   :  { %7170 = vmatpush3.bf16.msra.mxu1 %v9903_v61  ;;  %7149 = vmatprep.subr.bf16.mxu0 %v9906_v26 }
0x10a4   :  { %7171 = vmatprep.subr.bf16.mxu1 %v9909_v5 }
0x10a6   :  { %7150 = vmatpush3.bf16.msra.mxu0 %v9912_v62 }
0x10a7   :  { %7172 = vmatpush3.bf16.msra.mxu1 %v9915_v35  ;;  %7151 = vmatprep.subr.bf16.mxu0 %v9918_v37 }
0x10a8   :  { %7173 = vmatprep.subr.bf16.mxu1 %v9921_v0 }
0x10aa   :  { %7152 = vmatpush3.bf16.msra.mxu0 %v9924_v60 }
0x10ab   :  { %7174 = vmatpush3.bf16.msra.mxu1 %v9927_v38  ;;  %7153 = vmatprep.subr.bf16.mxu0 %v9930_v47 }
0x10ac   :  { %7175 = vmatprep.subr.bf16.mxu1 %v9933_v33 }
0x10ae   :  { %7154 = vmatpush3.bf16.msra.mxu0 %v9936_v30  ;;  %v12792_v30 = vld [vmem:[#allocation38_spill] sm:$0xff] }
0x10af   :  { %7176 = vmatpush3.bf16.msra.mxu1 %v9939_v23  ;;  %7155 = vmatprep.subr.bf16.mxu0 %v9942_v29  ;;  %v12793_v29 = vld [vmem:[#allocation39_spill] sm:$0xff] }
0x10b0   :  { %7177 = vmatprep.subr.bf16.mxu1 %v9945_v10 }
0x10b2   :  { %7156 = vmatpush3.bf16.msra.mxu0 %v9948_v27 }
0x10b3   :  { %7178 = vmatpush3.bf16.msra.mxu1 %v12688_v8  ;;  %7157 = vmatprep.subr.bf16.mxu0 %v12689_v46  ;;  %v12795_v8 = vld [vmem:[#allocation16_spill] sm:$0xff] }
0x10b4   :  { %7179 = vmatprep.subr.bf16.mxu1 %v12690_v15 }
0x10b6   :  { %7158 = vmatpush3.bf16.msra.mxu0 %v9960_v24 }
0x10b7   :  { %7180 = vmatpush3.bf16.msra.mxu1 %v9963_v51  ;;  %7159 = vmatprep.subr.bf16.mxu0 %v9966_v56 }
0x10b8   :  { %7181 = vmatprep.subr.bf16.mxu1 %v9969_v25 }
0x10ba   :  { %7160 = vmatpush3.bf16.msra.mxu0 %v9972_v6  ;;  %v12794_v6 = vld [vmem:[#allocation19_spill] sm:$0xff] }
0x10bb   :  { %7182 = vmatpush3.bf16.msra.mxu1 %v12746_v7  ;;  %7189 = vmatprep.subr.bf16.mxu0 %v10213_v19 }
0x10bc   :  { %7207 = vmatprep.subr.bf16.mxu1 %v10216_v13 }
0x10c4   :  { %v3107_v63 = vpop.f32.mrb[76].mxu0  ;;  %v3150_v49 = vpop.f32.mrb[76].mxu1 }
0x10c5   :  { %v3179_v31 = vand.u32 2147483648, %v3107_v63  ;;  %v3181_v52 = vand.u32 2147483648, %v3150_v49  ;;  %v3109_v59 = vpop.f32.mrb[77].mxu0  ;;  %v3152_v61 = vpop.f32.mrb[77].mxu1  ;;  %v10365_v63 = vld [vmem:[#allocation2 + $0x60] sm:$0xff] }
0x10c6   :  { %v3180_v26 = vand.u32 2147483648, %v3109_v59  ;;  %v3182_v51 = vand.u32 2147483648, %v3152_v61  ;;  %v3111_v5 = vpop.f32.mrb[78].mxu0  ;;  %v3154_v56 = vpop.f32.mrb[78].mxu1  ;;  %12802 = vst [vmem:[#allocation57_spill] sm:$0xff] %v10365_v63 }
0x10c7   :  { %v3195_v62 = vor.u32 1006665857, %v3179_v31  ;;  %v3197_v35 = vor.u32 1006665857, %v3181_v52  ;;  %v3187_v37 = vand.u32 2147483648, %v3111_v5  ;;  %v3189_v0 = vand.u32 2147483648, %v3154_v56 }
0x10c8   :  { %v3196_v60 = vor.u32 1006665857, %v3180_v26  ;;  %v3198_v38 = vor.u32 1006665857, %v3182_v51  ;;  %v3113_v47 = vpop.f32.mrb[79].mxu0  ;;  %v3156_v33 = vpop.f32.mrb[79].mxu1 }
0x10c9   :  { %v3227_v23 = vadd.f32 %v3195_v62, %v12792_v30  ;;  %v3229_v10 = vadd.f32 %v3197_v35, %v12793_v29  ;;  %v3203_v27 = vor.u32 1006665857, %v3187_v37  ;;  %v3205_v25 = vor.u32 1006665857, %v3189_v0  ;;  %v10368_v31 = vld [vmem:[#allocation2 + $0x70] sm:$0xff]  ;;  %v12804_v26 = vld [vmem:[#allocation28_spill] sm:$0xff] }
0x10ca   :  { %v3228_v24 = vadd.f32 %v3196_v60, %v12794_v6  ;;  %v3230_v46 = vadd.f32 %v3198_v38, %v12795_v8  ;;  %v3188_v15 = vand.u32 2147483648, %v3113_v47  ;;  %v3190_v7 = vand.u32 2147483648, %v3156_v33  ;;  %12803 = vst [vmem:[#allocation58_spill] sm:$0xff] %v10368_v31  ;;  %v12805_v5 = vld [vmem:[#allocation23_spill] sm:$0xff]  ;;  %v10373_v37 = vld [vmem:[#allocation2 + $0x68] sm:$0xff] }
0x10cb   :  { %v3243_v42 = vsub.f32 %v3227_v23, %v10351_v40  ;;  %v3245_v57 = vsub.f32 %v3229_v10, %v10354_v3  ;;  %v3235_v22 = vadd.f32 %v3203_v27, %v12798_v14  ;;  %v3237_v16 = vadd.f32 %v3205_v25, %v12799_v1  ;;  %12806 = vst [vmem:[#allocation59_spill] sm:$0xff] %v10373_v37  ;;  %v10376_v60 = vld [vmem:[#allocation2 + $0x78] sm:$0xff] }
0x10cc   :  { %v3244_v41 = vsub.f32 %v3228_v24, %v10359_v21  ;;  %v3246_v53 = vsub.f32 %v3230_v46, %v10362_v54  ;;  %v3204_v50 = vor.u32 1006665857, %v3188_v15  ;;  %v3206_v36 = vor.u32 1006665857, %v3190_v7  ;;  %12807 = vst [vmem:[#allocation60_spill] sm:$0xff] %v10376_v60 }
0x10cd   :  { %v6209_v55 = vclamps-f32 %v3243_v42, 0.03137255  ;;  %v6211_v4 = vclamps-f32 %v3245_v57, 0.03137255  ;;  %v3251_v49 = vsub.f32 %v3235_v22, %v10365_v63  ;;  %v3253_v52 = vsub.f32 %v3237_v16, %v10368_v31 }
0x10ce   :  { %v6210_v59 = vclamps-f32 %v3244_v41, 0.03137255  ;;  %v6212_v61 = vclamps-f32 %v3246_v53, 0.03137255  ;;  %v3236_v51 = vadd.f32 %v3204_v50, %v12804_v26  ;;  %v3238_v56 = vadd.f32 %v3206_v36, %v12805_v5  ;;  %v10411_v26 = vld [vmem:[#allocation7] sm:$0xff]   ;;  %v10417_v5 = vld [vmem:[#allocation7 + $0x48] sm:$0xff]  }
0x10cf   :  { %v6217_v62 = vclamps-f32 %v3251_v49, 0.03137255  ;;  %v6219_v35 = vclamps-f32 %v3253_v52, 0.03137255  ;;  %v3291_v30 = vadd.f32 %v10351_v40, %v6209_v55  ;;  %v3293_v23 = vadd.f32 %v10354_v3, %v6211_v4 }
0x10d0   :  { %v3252_v0 = vsub.f32 %v3236_v51, %v10373_v37  ;;  %v3254_v38 = vsub.f32 %v3238_v56, %v10376_v60  ;;  %v3292_v47 = vadd.f32 %v10359_v21, %v6210_v59  ;;  %v3294_v33 = vadd.f32 %v10362_v54, %v6212_v61  ;;  %v10414_v51 = vld [vmem:[#allocation7 + $0x80] sm:$0xff]   ;;  %v10420_v56 = vld [vmem:[#allocation7 + $0xc8] sm:$0xff]  }
0x10d1   :  { %v3299_v29 = vadd.f32 %v10365_v63, %v6217_v62  ;;  %v3301_v10 = vadd.f32 %v10368_v31, %v6219_v35  ;;  %v3307_v42 = vmax.f32 %v3291_v30, 0.0  ;;  %v3309_v57 = vmax.f32 %v3293_v23, 0.0  ;;  %12816 = vst [vmem:[#allocation68_spill] sm:$0xff] %v10420_v56  ;;  %v10423_v62 = vld [vmem:[#allocation7 + $0x8] sm:$0xff]   ;;  %v10441_v30 = vld [vmem:[#allocation7 + $0x58] sm:$0xff]  }
0x10d2   :  { %v6218_v27 = vclamps-f32 %v3252_v0, 0.03137255  ;;  %v6220_v25 = vclamps-f32 %v3254_v38, 0.03137255  ;;  %v3308_v46 = vmax.f32 %v3292_v47, 0.0  ;;  %v3310_v7 = vmax.f32 %v3294_v33, 0.0 }
0x10d3   :  { %v3315_v6 = vmax.f32 %v3299_v29, 0.0  ;;  %v3317_v24 = vmax.f32 %v3301_v10, 0.0  ;;  %v10399_v55 = vmin.f32 %v3307_v42, 1.0  ;;  %v10401_v4 = vmin.f32 %v3309_v57, 1.0  ;;  %12817 = vst [vmem:[#allocation69_spill] sm:$0xff] %v10423_v62  ;;  %v10426_v35 = vld [vmem:[#allocation7 + $0x88] sm:$0xff]  }
0x10d4   :  { %v3300_v8 = vadd.f32 %v10373_v37, %v6218_v27  ;;  %v3302_v15 = vadd.f32 %v10376_v60, %v6220_v25  ;;  %v10391_v41 = vmin.f32 %v3308_v46, 1.0  ;;  %v10395_v50 = vmin.f32 %v3310_v7, 1.0  ;;  %12818 = vst [vmem:[#allocation70_spill] sm:$0xff] %v10426_v35  ;;  %v10429_v0 = vld [vmem:[#allocation7 + $0x50] sm:$0xff]   ;;  %12823 = vst [vmem:[#allocation34_spill] sm:$0xff] %v10441_v30  ;;  %v10444_v23 = vld [vmem:[#allocation7 + $0xd8] sm:$0xff]  }
0x10d5   :  { %v10387_v1 = vmin.f32 %v3315_v6, 1.0  ;;  %v10389_v16 = vmin.f32 %v3317_v24, 1.0  ;;  %12814 = vst [vmem:[#allocation66_spill] sm:$0xff] %v10399_v55  ;;  %12815 = vst [vmem:[#allocation67_spill] sm:$0xff] %v10401_v4  ;;  %v10432_v38 = vld [vmem:[#allocation7 + $0xd0] sm:$0xff]   ;;  %v10447_v29 = vld [vmem:[#allocation7 + $0x18] sm:$0xff]  }
0x10d6   :  { %v3316_v14 = vmax.f32 %v3300_v8, 0.0  ;;  %v3318_v22 = vmax.f32 %v3302_v15, 0.0  ;;  %12810 = vst [vmem:[#allocation62_spill] sm:$0xff] %v10391_v41  ;;  %12812 = vst [vmem:[#allocation64_spill] sm:$0xff] %v10395_v50  ;;  %v10435_v47 = vld [vmem:[#allocation7 + $0x10] sm:$0xff]   ;;  %v10450_v10 = vld [vmem:[#allocation7 + $0x98] sm:$0xff]  }
0x10d7   :  { %12808 = vst [vmem:[#allocation61_spill] sm:$0xff] %v10387_v1  ;;  %12809 = vst [vmem:[#allocation41_spill] sm:$0xff] %v10389_v16  ;;  %v3339_v59 = vpack.c.bf16 %v10387_v1, %v10399_v55  ;;  %v3341_v61 = vpack.c.bf16 %v10389_v16, %v10401_v4  ;;  %v10438_v33 = vld [vmem:[#allocation7 + $0x90] sm:$0xff]   ;;  %v10453_v27 = vld [vmem:[#allocation7 + $0x60] sm:$0xff]  }
0x10d8   :  { %v10393_v53 = vmin.f32 %v3316_v14, 1.0  ;;  %v10397_v36 = vmin.f32 %v3318_v22, 1.0  ;;  %12819 = vst [vmem:[#allocation71_spill] sm:$0xff] %v10429_v0  ;;  %12820 = vst [vmem:[#allocation72_spill] sm:$0xff] %v10432_v38  ;;  %v10456_v25 = vld [vmem:[#allocation7 + $0xe0] sm:$0xff]   ;;  %v10465_v8 = vld [vmem:[#allocation7 + $0x68] sm:$0xff]  }
0x10d9   :  { %12821 = vst [vmem:[#allocation36_spill] sm:$0xff] %v10435_v47  ;;  %12822 = vst [vmem:[#allocation37_spill] sm:$0xff] %v10438_v33  ;;  %v10459_v6 = vld [vmem:[#allocation7 + $0x20] sm:$0xff]   ;;  %v10468_v46 = vld [vmem:[#allocation7 + $0xe8] sm:$0xff]  }
0x10da   :  { %12811 = vst [vmem:[#allocation63_spill] sm:$0xff] %v10393_v53  ;;  %12813 = vst [vmem:[#allocation65_spill] sm:$0xff] %v10397_v36  ;;  %v3340_v49 = vpack.c.bf16 %v10393_v53, %v10391_v41  ;;  %v3342_v52 = vpack.c.bf16 %v10397_v36, %v10395_v50  ;;  %v10462_v24 = vld [vmem:[#allocation7 + $0xa0] sm:$0xff]   ;;  %v10471_v15 = vld [vmem:[#allocation7 + $0x28] sm:$0xff]  }
0x10db   :  { %12824 = vst [vmem:[#allocation42_spill] sm:$0xff] %v10444_v23  ;;  %12825 = vst [vmem:[#allocation44_spill] sm:$0xff] %v10447_v29  ;;  %v10474_v7 = vld [vmem:[#allocation7 + $0xa8] sm:$0xff]   ;;  %v10477_v42 = vld [vmem:[#allocation7 + $0x70] sm:$0xff]  }
0x10dc   :  { %3457 = vmatprep.mubr.bf16.mxu0 %v3340_v49  ;;  %3498 = vmatprep.mubr.bf16.mxu1 %v3342_v52  ;;  %12826 = vst [vmem:[#allocation13_spill] sm:$0xff] %v10450_v10  ;;  %12827 = vst [vmem:[#allocation35_spill] sm:$0xff] %v10453_v27  ;;  %v10480_v57 = vld [vmem:[#allocation7 + $0xf0] sm:$0xff]   ;;  %v10489_v49 = vld [vmem:[#allocation7 + $0x78] sm:$0xff]  }
0x10dd   :  { %3458 = vmatmul.mubr.bf16.vlgmr.msra.gmra.mrb[84].mxu0 %v3339_v59  ;;  %3499 = vmatmul.mubr.bf16.vlgmr.msra.gmra.mrb[84].mxu1 %v3341_v61  ;;  %12828 = vst [vmem:[#allocation43_spill] sm:$0xff] %v10456_v25  ;;  %12829 = vst [vmem:[#allocation73_spill] sm:$0xff] %v10459_v6  ;;  %v10483_v14 = vld [vmem:[#allocation7 + $0x30] sm:$0xff]   ;;  %v10492_v52 = vld [vmem:[#allocation7 + $0xf8] sm:$0xff]  }
0x10de   :  { %7190 = vmatpush3.bf16.xpose.msra.mxu0 %v10411_v26  ;;  %7208 = vmatpush3.bf16.xpose.msra.mxu1 %v10414_v51  ;;  %12830 = vst [vmem:[#allocation74_spill] sm:$0xff] %v10462_v24  ;;  %12831 = vst [vmem:[#allocation12_spill] sm:$0xff] %v10465_v8  ;;  %v10486_v22 = vld [vmem:[#allocation7 + $0xb0] sm:$0xff]   ;;  %v10495_v59 = vld [vmem:[#allocation7 + $0x38] sm:$0xff]  }
0x10df   :  { %7191 = vmatprep.subr.bf16.mxu0 %v10417_v5  ;;  %7209 = vmatprep.subr.bf16.mxu1 %v10420_v56  ;;  %12832 = vst [vmem:[#allocation40_spill] sm:$0xff] %v10468_v46  ;;  %12833 = vst [vmem:[#allocation29_spill] sm:$0xff] %v10471_v15  ;;  %v10498_v61 = vld [vmem:[#allocation7 + $0xb8] sm:$0xff]   ;;  %v10501_v60 = vld [vmem:[#allocation7 + $0x140] sm:$0xff]  }
0x10e0   :  { %12834 = vst [vmem:[#allocation33_spill] sm:$0xff] %v10474_v7  ;;  %12835 = vst [vmem:[#allocation75_spill] sm:$0xff] %v10477_v42  ;;  %v10504_v37 = vld [vmem:[#allocation7 + $0x1c0] sm:$0xff]  }
0x10e1   :  { %12836 = vst [vmem:[#allocation32_spill] sm:$0xff] %v10480_v57  ;;  %12837 = vst [vmem:[#allocation18_spill] sm:$0xff] %v10483_v14 }
0x10e2   :  { %12838 = vst [vmem:[#allocation20_spill] sm:$0xff] %v10486_v22  ;;  %12839 = vst [vmem:[#allocation26_spill] sm:$0xff] %v10489_v49 }
0x10e3   :  { %12840 = vst [vmem:[#allocation17_spill] sm:$0xff] %v10492_v52  ;;  %12841 = vst [vmem:[#allocation38_spill] sm:$0xff] %v10495_v59 }
0x10e4   :  { %12842 = vst [vmem:[#allocation39_spill] sm:$0xff] %v10498_v61  ;;  %12843 = vst [vmem:[#allocation19_spill] sm:$0xff] %v10501_v60 }
0x10e5   :  { %12844 = vst [vmem:[#allocation16_spill] sm:$0xff] %v10504_v37 }
0x10e6   :  { %7192 = vmatpush3.bf16.xpose.msra.mxu0 %v10423_v62  ;;  %7210 = vmatpush3.bf16.xpose.msra.mxu1 %v10426_v35 }
0x10e7   :  { %7193 = vmatprep.subr.bf16.mxu0 %v10429_v0  ;;  %7211 = vmatprep.subr.bf16.mxu1 %v10432_v38 }
0x10ee   :  { %7194 = vmatpush3.bf16.xpose.msra.mxu0 %v10435_v47  ;;  %7212 = vmatpush3.bf16.xpose.msra.mxu1 %v10438_v33 }
0x10ef   :  { %7195 = vmatprep.subr.bf16.mxu0 %v10441_v30  ;;  %7213 = vmatprep.subr.bf16.mxu1 %v10444_v23 }
0x10f6   :  { %7196 = vmatpush3.bf16.xpose.msra.mxu0 %v10447_v29  ;;  %7214 = vmatpush3.bf16.xpose.msra.mxu1 %v10450_v10 }
0x10f7   :  { %7197 = vmatprep.subr.bf16.mxu0 %v10453_v27  ;;  %7215 = vmatprep.subr.bf16.mxu1 %v10456_v25 }
0x10fe   :  { %7198 = vmatpush3.bf16.xpose.msra.mxu0 %v10459_v6  ;;  %7216 = vmatpush3.bf16.xpose.msra.mxu1 %v10462_v24 }
0x10ff   :  { %7199 = vmatprep.subr.bf16.mxu0 %v10465_v8  ;;  %7217 = vmatprep.subr.bf16.mxu1 %v10468_v46 }
0x1106   :  { %7200 = vmatpush3.bf16.xpose.msra.mxu0 %v10471_v15  ;;  %7218 = vmatpush3.bf16.xpose.msra.mxu1 %v10474_v7 }
0x1107   :  { %7201 = vmatprep.subr.bf16.mxu0 %v10477_v42  ;;  %7219 = vmatprep.subr.bf16.mxu1 %v10480_v57 }
0x110e   :  { %7202 = vmatpush3.bf16.xpose.msra.mxu0 %v10483_v14  ;;  %7220 = vmatpush3.bf16.xpose.msra.mxu1 %v10486_v22 }
0x110f   :  { %7203 = vmatprep.subr.bf16.mxu0 %v10489_v49  ;;  %7221 = vmatprep.subr.bf16.mxu1 %v10492_v52 }
0x1116   :  { %7204 = vmatpush3.bf16.xpose.msra.mxu0 %v10495_v59  ;;  %7222 = vmatpush3.bf16.xpose.msra.mxu1 %v10498_v61 }
0x1117   :  { %7225 = vmatprep.subr.bf16.mxu0 %v10501_v60  ;;  %7243 = vmatprep.subr.bf16.mxu1 %v10504_v37 }
0x1170   :  { %v7117_v36 = vpop.f32.mrb[80].mxu0 }
0x1171   :  { %v7139_v53 = vpop.f32.mrb[80].mxu1  ;;  %v7118_v31 = vpop.f32.mrb[81].mxu0 }
0x1172   :  { %v7140_v63 = vpop.f32.mrb[81].mxu1  ;;  %v7119_v54 = vadd.f32 %v7118_v31, %v7117_v36  ;;  %v7120_v16 = vpop.f32.mrb[82].mxu0 }
0x1173   :  { %v7141_v21 = vadd.f32 %v7140_v63, %v7139_v53  ;;  %v7142_v1 = vpop.f32.mrb[82].mxu1  ;;  %v7121_v3 = vpop.f32.mrb[83].mxu0 }
0x1174   :  { %v7143_v40 = vpop.f32.mrb[83].mxu1  ;;  %v3378_v50 = vadd.f32 %v10177_v9, %v7119_v54  ;;  %v7122_v41 = vadd.f32 %v7121_v3, %v7120_v16 }
0x1175   :  { %v7144_v4 = vadd.f32 %v7143_v40, %v7142_v1 }
0x1176   :  { %v3419_v55 = vadd.f32 %v7141_v21, %v3378_v50  ;;  %v3381_v28 = vadd.f32 %v10177_v9, %v7122_v41 }
0x1178   :  { %v3422_v39 = vadd.f32 %v7144_v4, %v3381_v28  ;;  %v10520_v4 = vld [vmem:[#allocation7 + $0x180] sm:$0xff]  }
0x11b0   :  { %v7161_v2 = vpop.f32.mrb[84].mxu0  ;;  %v7183_v44 = vpop.f32.mrb[84].mxu1 }
0x11b1   :  { %v7162_v32 = vpop.f32.mrb[85].mxu0  ;;  %v7184_v58 = vpop.f32.mrb[85].mxu1 }
0x11b2   :  { %v7163_v45 = vadd.f32 %v7162_v32, %v7161_v2  ;;  %v7185_v43 = vadd.f32 %v7184_v58, %v7183_v44  ;;  %v7164_v31 = vpop.f32.mrb[86].mxu0  ;;  %v7186_v63 = vpop.f32.mrb[86].mxu1 }
0x11b3   :  { %v7165_v53 = vpop.f32.mrb[87].mxu0  ;;  %v7187_v36 = vpop.f32.mrb[87].mxu1 }
0x11b4   :  { %v3460_v18 = vadd.f32 %v7163_v45, %v3419_v55  ;;  %v7166_v20 = vadd.f32 %v7165_v53, %v7164_v31  ;;  %v7188_v17 = vadd.f32 %v7187_v36, %v7186_v63  ;;  %v10517_v55 = vld [vmem:[#allocation7 + $0x100] sm:$0xff]   ;;  %v10525_v31 = vld [vmem:[#allocation7 + $0x148] sm:$0xff]  }
0x11b5   :  { %v10528_v63 = vld [vmem:[#allocation7 + $0x1c8] sm:$0xff]  }
0x11b6   :  { %v3463_v54 = vadd.f32 %v7166_v20, %v3422_v39  ;;  %v3501_v3 = vadd.f32 %v7185_v43, %v3460_v18  ;;  %v10531_v53 = vld [vmem:[#allocation7 + $0x108] sm:$0xff]  }
0x11b7   :  { %v10534_v36 = vld [vmem:[#allocation7 + $0x188] sm:$0xff]  }
0x11b8   :  { %3507 = vmax.xlane.f32.xlu0 %v3501_v3  ;;  %v3504_v40 = vadd.f32 %v7188_v17, %v3463_v54  ;;  %v10537_v54 = vld [vmem:[#allocation7 + $0x150] sm:$0xff]  }
0x11ba   :  { %3509 = vmax.xlane.f32.xlu1 %v3504_v40 }
0x1245   :  { %v3508_v9 = vpop.xlane.xlu0 %3507 }
0x1246   :  { %v3511_v28 = vsub.f32 %v3501_v3, %v3508_v9  ;;  %v10540_v3 = vld [vmem:[#allocation7 + $0x1d0] sm:$0xff]  }
0x1247   :  { %v3510_v21 = vpop.xlane.xlu1 %3509  ;;  %v10546_v9 = vld [vmem:[#allocation7 + $0x190] sm:$0xff]  }
0x1248   :  { %v3513_v1 = vmul.f32 1.442695, %v3511_v28  ;;  %v3512_v16 = vsub.f32 %v3504_v40, %v3510_v21  ;;  %v10543_v40 = vld [vmem:[#allocation7 + $0x110] sm:$0xff]   ;;  %v10549_v28 = vld [vmem:[#allocation7 + $0x158] sm:$0xff]  }
0x1249   :  { %v10552_v21 = vld [vmem:[#allocation7 + $0x1d8] sm:$0xff]  }
0x124a   :  { %8016 = vpow2.f32 %v3513_v1  ;;  %v3515_v32 = vmul.f32 1.442695, %v3512_v16  ;;  %v10555_v1 = vld [vmem:[#allocation7 + $0x118] sm:$0xff]  }
0x124b   :  { %v10558_v16 = vld [vmem:[#allocation7 + $0x198] sm:$0xff]  }
0x124c   :  { %8018 = vpow2.f32 %v3515_v32  ;;  %v10561_v32 = vld [vmem:[#allocation7 + $0x160] sm:$0xff]  }
0x1254   :  { %v8017_v58 = vpop.eup %8016 }
0x1255   :  { %3517 = vadd.xlane.f32.xlu0 %v8017_v58 }
0x1256   :  { %v8019_v44 = vpop.eup %8018 }
0x1257   :  { %3519 = vadd.xlane.f32.xlu1 %v8019_v44 }
0x12e2   :  { %v3518_v45 = vpop.xlane.xlu0 %3517 }
0x12e3   :  { %8020 = vrcp.f32 %v3518_v45  ;;  %v10570_v45 = vld [vmem:[#allocation7 + $0x1a0] sm:$0xff]  }
0x12e4   :  { %v3520_v2 = vpop.xlane.xlu1 %3519 }
0x12e5   :  { %8022 = vrcp.f32 %v3520_v2  ;;  %v10573_v2 = vld [vmem:[#allocation7 + $0x168] sm:$0xff]  }
0x12ed   :  { %v8021_v43 = vpop.eup %8020 }
0x12ee   :  { %v3522_v18 = vmul.f32 %v8021_v43, %v8017_v58  ;;  %v10564_v58 = vld [vmem:[#allocation7 + $0x1e0] sm:$0xff]   ;;  %v10576_v43 = vld [vmem:[#allocation7 + $0x1e8] sm:$0xff]  }
0x12ef   :  { %v8023_v39 = vpop.eup %8022 }
0x12f0   :  { %v3524_v17 = vmul.f32 %v8023_v39, %v8019_v44  ;;  %v3525_v20 = vsub.f32 %v3522_v18, %v12744_v11  ;;  %v10567_v44 = vld [vmem:[#allocation7 + $0x120] sm:$0xff]   ;;  %v10579_v18 = vld [vmem:[#allocation7 + $0x128] sm:$0xff]   ;;  %v10597_v11 = vld [vmem:[#allocation7 + $0x178] sm:$0xff]  }
0x12f1   :  { %v10582_v39 = vld [vmem:[#allocation7 + $0x1a8] sm:$0xff]  }
0x12f2   :  { %v3526_v41 = vsub.f32 %v3524_v17, %v12745_v34  ;;  %12845 = vst [vmem:[#allocation30_spill] sm:$0xff] %v10582_v39  ;;  %v10585_v17 = vld [vmem:[#allocation7 + $0x170] sm:$0xff]  }
0x12f3   :  { %12846 = vst [vmem:[#allocation15_spill] sm:$0xff] %v10585_v17  ;;  %v10594_v34 = vld [vmem:[#allocation7 + $0x1b0] sm:$0xff]  }
0x12f4   :  { %v10511_v50 = vpack.c.bf16 %v3526_v41, %v3525_v20  ;;  %v10588_v20 = vld [vmem:[#allocation7 + $0x1f0] sm:$0xff]  }
0x12f5   :  { %12847 = vst [vmem:[#allocation28_spill] sm:$0xff] %v10588_v20  ;;  %v10591_v41 = vld [vmem:[#allocation7 + $0x130] sm:$0xff]  }
0x12f6   :  { %7205 = vmatprep.mubr.bf16.mxu0 %v10511_v50  ;;  %7223 = vmatprep.mubr.bf16.mxu1 %v10511_v50 }
0x12f7   :  { %7206 = vmatmul.mubr.bf16.vlgmr.msra.gmra.mrb[88].mxu0 %v10511_v50  ;;  %7224 = vmatmul.mubr.bf16.vlgmr.msra.gmra.mrb[88].mxu1 %v10511_v50 }
0x12f8   :  { %7226 = vmatpush3.bf16.xpose.msra.mxu0 %v10517_v55  ;;  %7244 = vmatpush3.bf16.xpose.msra.mxu1 %v10520_v4 }
0x12f9   :  { %7241 = vmatprep.mubr.bf16.mxu0 %v10511_v50  ;;  %7259 = vmatprep.mubr.bf16.mxu1 %v10511_v50 }
0x12fa   :  { %7227 = vmatprep.subr.bf16.mxu0 %v10525_v31  ;;  %7245 = vmatprep.subr.bf16.mxu1 %v10528_v63 }
0x1300   :  { %7228 = vmatpush3.bf16.xpose.msra.mxu0 %v10531_v53  ;;  %7246 = vmatpush3.bf16.xpose.msra.mxu1 %v10534_v36 }
0x1301   :  { %7229 = vmatprep.subr.bf16.mxu0 %v10537_v54  ;;  %7247 = vmatprep.subr.bf16.mxu1 %v10540_v3 }
0x1308   :  { %7230 = vmatpush3.bf16.xpose.msra.mxu0 %v10543_v40  ;;  %7248 = vmatpush3.bf16.xpose.msra.mxu1 %v10546_v9 }
0x1309   :  { %7231 = vmatprep.subr.bf16.mxu0 %v10549_v28  ;;  %7249 = vmatprep.subr.bf16.mxu1 %v10552_v21 }
0x1310   :  { %7232 = vmatpush3.bf16.xpose.msra.mxu0 %v10555_v1  ;;  %7250 = vmatpush3.bf16.xpose.msra.mxu1 %v10558_v16 }
0x1311   :  { %7233 = vmatprep.subr.bf16.mxu0 %v10561_v32  ;;  %7251 = vmatprep.subr.bf16.mxu1 %v10564_v58 }
0x1318   :  { %7234 = vmatpush3.bf16.xpose.msra.mxu0 %v10567_v44  ;;  %7252 = vmatpush3.bf16.xpose.msra.mxu1 %v10570_v45 }
0x1319   :  { %7235 = vmatprep.subr.bf16.mxu0 %v10573_v2  ;;  %7253 = vmatprep.subr.bf16.mxu1 %v10576_v43 }
0x1320   :  { %7236 = vmatpush3.bf16.xpose.msra.mxu0 %v10579_v18  ;;  %7254 = vmatpush3.bf16.xpose.msra.mxu1 %v10582_v39  ;;  %v10600_v39 = vld [vmem:[#allocation7 + $0x1f8] sm:$0xff]  }
0x1321   :  { %7237 = vmatprep.subr.bf16.mxu0 %v10585_v17  ;;  %7255 = vmatprep.subr.bf16.mxu1 %v10588_v20  ;;  %v10603_v17 = vld [vmem:[#allocation7 + $0x138] sm:$0xff]  }
0x1322   :  { %v10606_v20 = vld [vmem:[#allocation7 + $0x1b8] sm:$0xff]  }
0x1323   :  { %12848 = vst [vmem:[#allocation23_spill] sm:$0xff] %v10606_v20 }
0x1328   :  { %7238 = vmatpush3.bf16.xpose.msra.mxu0 %v10591_v41  ;;  %7256 = vmatpush3.bf16.xpose.msra.mxu1 %v10594_v34 }
0x1329   :  { %7239 = vmatprep.subr.bf16.mxu0 %v10597_v11  ;;  %7257 = vmatprep.subr.bf16.mxu1 %v10600_v39 }
0x1330   :  { %7240 = vmatpush3.bf16.xpose.msra.mxu0 %v10603_v17  ;;  %7258 = vmatpush3.bf16.xpose.msra.mxu1 %v10606_v20 }
0x1331   :  { %7261 = vmatprep.subr.bf16.mxu0 %v10213_v19  ;;  %7283 = vmatprep.subr.bf16.mxu1 %v10216_v13 }
0x1337   :  { %7242 = vmatmul.mubr.bf16.vlgmr.msra.gmra.mrb[92].mxu0 %v10511_v50  ;;  %7260 = vmatmul.mubr.bf16.vlgmr.msra.gmra.mrb[92].mxu1 %v10511_v50 }
0x1338   :  { %7262 = vmatpush3.bf16.msra.mxu0 %v10411_v26  ;;  %7284 = vmatpush3.bf16.msra.mxu1 %v10414_v51 }
0x1339   :  { %7263 = vmatprep.subr.bf16.mxu0 %v10417_v5  ;;  %7285 = vmatprep.subr.bf16.mxu1 %v10420_v56  ;;  %v12862_v56 = vld [vmem:[#allocation45_spill] sm:$0xff] }
0x133c   :  { %7264 = vmatpush3.bf16.msra.mxu0 %v10423_v62  ;;  %7286 = vmatpush3.bf16.msra.mxu1 %v10426_v35  ;;  %v12859_v35 = vld [vmem:[#allocation25_spill] sm:$0xff]  ;;  %v12860_v62 = vld [vmem:[#allocation50_spill] sm:$0xff] }
0x133d   :  { %7265 = vmatprep.subr.bf16.mxu0 %v10429_v0  ;;  %7287 = vmatprep.subr.bf16.mxu1 %v10432_v38  ;;  %v12855_v0 = vld [vmem:[#allocation55_spill] sm:$0xff] }
0x1340   :  { %7266 = vmatpush3.bf16.msra.mxu0 %v10435_v47  ;;  %7288 = vmatpush3.bf16.msra.mxu1 %v10438_v33  ;;  %v12854_v47 = vld [vmem:[#allocation22_spill] sm:$0xff] }
0x1341   :  { %7267 = vmatprep.subr.bf16.mxu0 %v10441_v30  ;;  %7289 = vmatprep.subr.bf16.mxu1 %v10444_v23 }
0x1344   :  { %7268 = vmatpush3.bf16.msra.mxu0 %v10447_v29  ;;  %7290 = vmatpush3.bf16.msra.mxu1 %v10450_v10  ;;  %v12849_v29 = vld [vmem:[#allocation31_spill] sm:$0xff] }
0x1345   :  { %7269 = vmatprep.subr.bf16.mxu0 %v10453_v27  ;;  %7291 = vmatprep.subr.bf16.mxu1 %v10456_v25 }
0x1348   :  { %7270 = vmatpush3.bf16.msra.mxu0 %v10459_v6  ;;  %7292 = vmatpush3.bf16.msra.mxu1 %v10462_v24 }
0x1349   :  { %7271 = vmatprep.subr.bf16.mxu0 %v10465_v8  ;;  %7293 = vmatprep.subr.bf16.mxu1 %v10468_v46 }
0x134c   :  { %7272 = vmatpush3.bf16.msra.mxu0 %v10471_v15  ;;  %7294 = vmatpush3.bf16.msra.mxu1 %v10474_v7 }
0x134d   :  { %7273 = vmatprep.subr.bf16.mxu0 %v10477_v42  ;;  %7295 = vmatprep.subr.bf16.mxu1 %v10480_v57 }
0x1350   :  { %7274 = vmatpush3.bf16.msra.mxu0 %v10483_v14  ;;  %7296 = vmatpush3.bf16.msra.mxu1 %v10486_v22 }
0x1351   :  { %7275 = vmatprep.subr.bf16.mxu0 %v10489_v49  ;;  %7297 = vmatprep.subr.bf16.mxu1 %v10492_v52 }
0x1354   :  { %7276 = vmatpush3.bf16.msra.mxu0 %v10495_v59  ;;  %7298 = vmatpush3.bf16.msra.mxu1 %v10498_v61 }
0x1355   :  { %7305 = vmatprep.subr.bf16.mxu0 %v10501_v60  ;;  %7327 = vmatprep.subr.bf16.mxu1 %v10504_v37 }
0x13ca   :  { %v3562_v50 = vpop.f32.mrb[88].mxu0  ;;  %v3605_v42 = vpop.f32.mrb[88].mxu1 }
0x13cb   :  { %v3716_v7 = vand.u32 2147483648, %v3562_v50  ;;  %v3718_v57 = vand.u32 2147483648, %v3605_v42  ;;  %v3564_v15 = vpop.f32.mrb[89].mxu0  ;;  %v3607_v14 = vpop.f32.mrb[89].mxu1 }
0x13cc   :  { %v3717_v46 = vand.u32 2147483648, %v3564_v15  ;;  %v3719_v22 = vand.u32 2147483648, %v3607_v14  ;;  %v3566_v8 = vpop.f32.mrb[90].mxu0  ;;  %v3609_v49 = vpop.f32.mrb[90].mxu1  ;;  %v12850_v15 = vld [vmem:[#allocation27_spill] sm:$0xff] }
0x13cd   :  { %v3732_v24 = vor.u32 1006665857, %v3716_v7  ;;  %v3734_v52 = vor.u32 1006665857, %v3718_v57  ;;  %v3724_v6 = vand.u32 2147483648, %v3566_v8  ;;  %v3726_v59 = vand.u32 2147483648, %v3609_v49 }
0x13ce   :  { %v3733_v25 = vor.u32 1006665857, %v3717_v46  ;;  %v3735_v61 = vor.u32 1006665857, %v3719_v22  ;;  %v3568_v27 = vpop.f32.mrb[91].mxu0  ;;  %v3611_v60 = vpop.f32.mrb[91].mxu1 }
0x13cf   :  { %v3764_v37 = vadd.f32 %v3732_v24, %v10303_v48  ;;  %v3766_v10 = vadd.f32 %v3734_v52, %v10305_v12  ;;  %v3740_v50 = vor.u32 1006665857, %v3724_v6  ;;  %v3742_v42 = vor.u32 1006665857, %v3726_v59  ;;  %v12851_v7 = vld [vmem:[#allocation14_spill] sm:$0xff]  ;;  %v12852_v8 = vld [vmem:[#allocation48_spill] sm:$0xff] }
0x13d0   :  { %v3765_v23 = vadd.f32 %v3733_v25, %v12849_v29  ;;  %v3767_v14 = vadd.f32 %v3735_v61, %v12850_v15  ;;  %v3725_v30 = vand.u32 2147483648, %v3568_v27  ;;  %v3727_v33 = vand.u32 2147483648, %v3611_v60  ;;  %v12853_v46 = vld [vmem:[#allocation76_spill] sm:$0xff]  ;;  %v12856_v24 = vld [vmem:[#allocation47_spill] sm:$0xff] }
0x13d1   :  { %v3780_v57 = vsub.f32 %v3764_v37, %v12851_v7  ;;  %v3782_v49 = vsub.f32 %v3766_v10, %v12852_v8  ;;  %v3772_v22 = vadd.f32 %v3740_v50, %v12853_v46  ;;  %v3774_v38 = vadd.f32 %v3742_v42, %v12854_v47  ;;  %v12857_v25 = vld [vmem:[#allocation52_spill] sm:$0xff]  ;;  %v12861_v42 = vld [vmem:[#allocation21_spill] sm:$0xff] }
0x13d2   :  { %v3781_v48 = vsub.f32 %v3765_v23, %v12855_v0  ;;  %v3783_v12 = vsub.f32 %v3767_v14, %v12856_v24  ;;  %v3741_v6 = vor.u32 1006665857, %v3725_v30  ;;  %v3743_v52 = vor.u32 1006665857, %v3727_v33  ;;  %v12858_v27 = vld [vmem:[#allocation24_spill] sm:$0xff] }
0x13d3   :  { %v6221_v59 = vclamps-f32 %v3780_v57, 0.03137255  ;;  %v6223_v29 = vclamps-f32 %v3782_v49, 0.03137255  ;;  %v3788_v61 = vsub.f32 %v3772_v22, %v12857_v25  ;;  %v3790_v60 = vsub.f32 %v3774_v38, %v12858_v27 }
0x13d4   :  { %v6222_v15 = vclamps-f32 %v3781_v48, 0.03137255  ;;  %v6224_v37 = vclamps-f32 %v3783_v12, 0.03137255  ;;  %v3773_v10 = vadd.f32 %v3741_v6, %v12859_v35  ;;  %v3775_v50 = vadd.f32 %v3743_v52, %v12860_v62 }
0x13d5   :  { %v6229_v46 = vclamps-f32 %v3788_v61, 0.03137255  ;;  %v6231_v47 = vclamps-f32 %v3790_v60, 0.03137255  ;;  %v3828_v57 = vadd.f32 %v12851_v7, %v6221_v59  ;;  %v3830_v38 = vadd.f32 %v12852_v8, %v6223_v29 }
0x13d6   :  { %v3789_v23 = vsub.f32 %v3773_v10, %v12861_v42  ;;  %v3791_v14 = vsub.f32 %v3775_v50, %v12862_v56  ;;  %v3829_v33 = vadd.f32 %v12855_v0, %v6222_v15  ;;  %v3831_v30 = vadd.f32 %v12856_v24, %v6224_v37 }
0x13d7   :  { %v3836_v49 = vadd.f32 %v12857_v25, %v6229_v46  ;;  %v3838_v35 = vadd.f32 %v12858_v27, %v6231_v47  ;;  %v3844_v60 = vmax.f32 %v3828_v57, 0.0  ;;  %v3846_v24 = vmax.f32 %v3830_v38, 0.0 }
0x13d8   :  { %v6230_v22 = vclamps-f32 %v3789_v23, 0.03137255  ;;  %v6232_v62 = vclamps-f32 %v3791_v14, 0.03137255  ;;  %v3845_v52 = vmax.f32 %v3829_v33, 0.0  ;;  %v3847_v0 = vmax.f32 %v3831_v30, 0.0 }
0x13d9   :  { %v3852_v48 = vmax.f32 %v3836_v49, 0.0  ;;  %v3854_v12 = vmax.f32 %v3838_v35, 0.0  ;;  %v10681_v10 = vmin.f32 %v3844_v60, 1.0  ;;  %v12871_v23 = vld [vmem:[#allocation30_spill] sm:$0xff]  ;;  %v12872_v14 = vld [vmem:[#allocation15_spill] sm:$0xff]  ;;  %v12873_v33 = vld [vmem:[#allocation28_spill] sm:$0xff] }
0x13da   :  { %v3837_v6 = vadd.f32 %v12861_v42, %v6230_v22  ;;  %v3839_v61 = vadd.f32 %v12862_v56, %v6232_v62  ;;  %v10673_v29 = vmin.f32 %v3845_v52, 1.0  ;;  %v10677_v27 = vmin.f32 %v3847_v0, 1.0 }
0x13db   :  { %v10669_v59 = vmin.f32 %v3852_v48, 1.0  ;;  %v10671_v8 = vmin.f32 %v3854_v12, 1.0  ;;  %12869 = vst [vmem:[#allocation55_spill] sm:$0xff] %v10681_v10  ;;  %v10683_v56 = vmin.f32 %v3846_v24, 1.0 }
0x13dc   :  { %v3853_v15 = vmax.f32 %v3837_v6, 0.0  ;;  %v3855_v7 = vmax.f32 %v3839_v61, 0.0  ;;  %12865 = vst [vmem:[#allocation14_spill] sm:$0xff] %v10673_v29  ;;  %12867 = vst [vmem:[#allocation76_spill] sm:$0xff] %v10677_v27 }
0x13dd   :  { %12863 = vst [vmem:[#allocation31_spill] sm:$0xff] %v10669_v59  ;;  %12864 = vst [vmem:[#allocation27_spill] sm:$0xff] %v10671_v8  ;;  %v3876_v47 = vpack.c.bf16 %v10669_v59, %v10681_v10  ;;  %v3878_v42 = vpack.c.bf16 %v10671_v8, %v10683_v56  ;;  %v12881_v59 = vld [vmem:[#allocation41_spill] sm:$0xff] }
0x13de   :  { %v10675_v25 = vmin.f32 %v3853_v15, 1.0  ;;  %v10679_v37 = vmin.f32 %v3855_v7, 1.0  ;;  %12870 = vst [vmem:[#allocation47_spill] sm:$0xff] %v10683_v56  ;;  %v12886_v56 = vld [vmem:[#allocation63_spill] sm:$0xff]  ;;  %v12887_v10 = vld [vmem:[#allocation65_spill] sm:$0xff] }
0x13e0   :  { %12866 = vst [vmem:[#allocation48_spill] sm:$0xff] %v10675_v25  ;;  %12868 = vst [vmem:[#allocation22_spill] sm:$0xff] %v10679_v37  ;;  %v3877_v50 = vpack.c.bf16 %v10675_v25, %v10673_v29  ;;  %v3879_v46 = vpack.c.bf16 %v10679_v37, %v10677_v27  ;;  %v12882_v29 = vld [vmem:[#allocation51_spill] sm:$0xff] }
0x13e2   :  { %3916 = vmatprep.mubr.bf16.mxu0 %v3877_v50  ;;  %3957 = vmatprep.mubr.bf16.mxu1 %v3879_v46  ;;  %v12874_v50 = vld [vmem:[#allocation66_spill] sm:$0xff]  ;;  %v12875_v46 = vld [vmem:[#allocation67_spill] sm:$0xff] }
0x13e3   :  { %3917 = vmatmul.mubr.bf16.vlgmr.msra.gmra.mrb[96].mxu0 %v3876_v47  ;;  %3958 = vmatmul.mubr.bf16.vlgmr.msra.gmra.mrb[96].mxu1 %v3878_v42 }
0x13e4   :  { %7306 = vmatpush3.bf16.msra.mxu0 %v10517_v55  ;;  %7328 = vmatpush3.bf16.msra.mxu1 %v10520_v4 }
0x13e5   :  { %7307 = vmatprep.subr.bf16.mxu0 %v10525_v31  ;;  %7329 = vmatprep.subr.bf16.mxu1 %v10528_v63 }
0x13e8   :  { %7308 = vmatpush3.bf16.msra.mxu0 %v10531_v53  ;;  %7330 = vmatpush3.bf16.msra.mxu1 %v10534_v36 }
0x13e9   :  { %7309 = vmatprep.subr.bf16.mxu0 %v10537_v54  ;;  %7331 = vmatprep.subr.bf16.mxu1 %v10540_v3 }
0x13ec   :  { %7310 = vmatpush3.bf16.msra.mxu0 %v10543_v40  ;;  %7332 = vmatpush3.bf16.msra.mxu1 %v10546_v9 }
0x13ed   :  { %7311 = vmatprep.subr.bf16.mxu0 %v10549_v28  ;;  %7333 = vmatprep.subr.bf16.mxu1 %v10552_v21 }
0x13f0   :  { %7312 = vmatpush3.bf16.msra.mxu0 %v10555_v1  ;;  %7334 = vmatpush3.bf16.msra.mxu1 %v10558_v16 }
0x13f1   :  { %7313 = vmatprep.subr.bf16.mxu0 %v10561_v32  ;;  %7335 = vmatprep.subr.bf16.mxu1 %v10564_v58 }
0x13f4   :  { %7314 = vmatpush3.bf16.msra.mxu0 %v10567_v44  ;;  %7336 = vmatpush3.bf16.msra.mxu1 %v10570_v45 }
0x13f5   :  { %7315 = vmatprep.subr.bf16.mxu0 %v10573_v2  ;;  %7337 = vmatprep.subr.bf16.mxu1 %v10576_v43 }
0x13f8   :  { %7316 = vmatpush3.bf16.msra.mxu0 %v10579_v18  ;;  %7338 = vmatpush3.bf16.msra.mxu1 %v12871_v23 }
0x13f9   :  { %7317 = vmatprep.subr.bf16.mxu0 %v12872_v14  ;;  %7339 = vmatprep.subr.bf16.mxu1 %v12873_v33 }
0x13fc   :  { %7318 = vmatpush3.bf16.msra.mxu0 %v10591_v41  ;;  %7340 = vmatpush3.bf16.msra.mxu1 %v10594_v34 }
0x13fd   :  { %7319 = vmatprep.subr.bf16.mxu0 %v10597_v11  ;;  %7341 = vmatprep.subr.bf16.mxu1 %v10600_v39 }
0x1400   :  { %7320 = vmatpush3.bf16.msra.mxu0 %v10603_v17  ;;  %7342 = vmatpush3.bf16.msra.mxu1 %v10606_v20  ;;  %v12889_v20 = vld [vmem:[#allocation60_spill] sm:$0xff] }
0x1401   :  { %7349 = vmatprep.subr.bf16.mxu0 %v10213_v19  ;;  %7367 = vmatprep.subr.bf16.mxu1 %v10216_v13 }
0x140a   :  { %v3648_v30 = vpop.f32.mrb[92].mxu0  ;;  %v3691_v57 = vpop.f32.mrb[92].mxu1 }
0x140b   :  { %v3720_v38 = vand.u32 2147483648, %v3648_v30  ;;  %v3722_v49 = vand.u32 2147483648, %v3691_v57  ;;  %v3650_v35 = vpop.f32.mrb[93].mxu0  ;;  %v3693_v22 = vpop.f32.mrb[93].mxu1  ;;  %v12876_v57 = vld [vmem:[#allocation62_spill] sm:$0xff] }
0x140c   :  { %v3721_v62 = vand.u32 2147483648, %v3650_v35  ;;  %v3723_v48 = vand.u32 2147483648, %v3693_v22  ;;  %v3652_v12 = vpop.f32.mrb[94].mxu0  ;;  %v3695_v6 = vpop.f32.mrb[94].mxu1  ;;  %v12877_v35 = vld [vmem:[#allocation64_spill] sm:$0xff] }
0x140d   :  { %v3736_v52 = vor.u32 1006665857, %v3720_v38  ;;  %v3738_v61 = vor.u32 1006665857, %v3722_v49  ;;  %v3728_v0 = vand.u32 2147483648, %v3652_v12  ;;  %v3730_v60 = vand.u32 2147483648, %v3695_v6 }
0x140e   :  { %v3737_v24 = vor.u32 1006665857, %v3721_v62  ;;  %v3739_v15 = vor.u32 1006665857, %v3723_v48  ;;  %v3654_v7 = vpop.f32.mrb[95].mxu0  ;;  %v3697_v19 = vpop.f32.mrb[95].mxu1 }
0x140f   :  { %v3768_v13 = vadd.f32 %v3736_v52, %v12874_v50  ;;  %v3770_v47 = vadd.f32 %v3738_v61, %v12875_v46  ;;  %v3744_v42 = vor.u32 1006665857, %v3728_v0  ;;  %v3746_v30 = vor.u32 1006665857, %v3730_v60  ;;  %v12878_v38 = vld [vmem:[#allocation46_spill] sm:$0xff]  ;;  %v12879_v12 = vld [vmem:[#allocation49_spill] sm:$0xff] }
0x1410   :  { %v3769_v37 = vadd.f32 %v3737_v24, %v12876_v57  ;;  %v3771_v22 = vadd.f32 %v3739_v15, %v12877_v35  ;;  %v3729_v25 = vand.u32 2147483648, %v3654_v7  ;;  %v3731_v8 = vand.u32 2147483648, %v3697_v19  ;;  %v12880_v62 = vld [vmem:[#allocation61_spill] sm:$0xff]  ;;  %v12883_v50 = vld [vmem:[#allocation56_spill] sm:$0xff]  ;;  %v12885_v7 = vld [vmem:[#allocation58_spill] sm:$0xff] }
0x1411   :  { %v3784_v49 = vsub.f32 %v3768_v13, %v12878_v38  ;;  %v3786_v6 = vsub.f32 %v3770_v47, %v12879_v12  ;;  %v3776_v48 = vadd.f32 %v3744_v42, %v12880_v62  ;;  %v3778_v27 = vadd.f32 %v3746_v30, %v12881_v59  ;;  %v12884_v57 = vld [vmem:[#allocation57_spill] sm:$0xff]  ;;  %v12888_v30 = vld [vmem:[#allocation59_spill] sm:$0xff] }
0x1412   :  { %v3785_v52 = vsub.f32 %v3769_v37, %v12882_v29  ;;  %v3787_v61 = vsub.f32 %v3771_v22, %v12883_v50  ;;  %v3745_v0 = vor.u32 1006665857, %v3729_v25  ;;  %v3747_v60 = vor.u32 1006665857, %v3731_v8 }
0x1413   :  { %v6225_v46 = vclamps-f32 %v3784_v49, 0.03137255  ;;  %v6227_v24 = vclamps-f32 %v3786_v6, 0.03137255  ;;  %v3792_v15 = vsub.f32 %v3776_v48, %v12884_v57  ;;  %v3794_v19 = vsub.f32 %v3778_v27, %v12885_v7 }
0x1414   :  { %v6226_v35 = vclamps-f32 %v3785_v52, 0.03137255  ;;  %v6228_v13 = vclamps-f32 %v3787_v61, 0.03137255  ;;  %v3777_v47 = vadd.f32 %v3745_v0, %v12886_v56  ;;  %v3779_v42 = vadd.f32 %v3747_v60, %v12887_v10 }
0x1415   :  { %v6233_v62 = vclamps-f32 %v3792_v15, 0.03137255  ;;  %v6235_v59 = vclamps-f32 %v3794_v19, 0.03137255  ;;  %v3832_v49 = vadd.f32 %v12878_v38, %v6225_v46  ;;  %v3834_v27 = vadd.f32 %v12879_v12, %v6227_v24 }
0x1416   :  { %v3793_v37 = vsub.f32 %v3777_v47, %v12888_v30  ;;  %v3795_v22 = vsub.f32 %v3779_v42, %v12889_v20  ;;  %v3833_v8 = vadd.f32 %v12882_v29, %v6226_v35  ;;  %v3835_v25 = vadd.f32 %v12883_v50, %v6228_v13 }
0x1417   :  { %v3840_v6 = vadd.f32 %v12884_v57, %v6233_v62  ;;  %v3842_v56 = vadd.f32 %v12885_v7, %v6235_v59  ;;  %v3848_v19 = vmax.f32 %v3832_v49, 0.0  ;;  %v3850_v50 = vmax.f32 %v3834_v27, 0.0  ;;  %v12902_v49 = vld [vmem:[#allocation72_spill] sm:$0xff] }
0x1418   :  { %v6234_v48 = vclamps-f32 %v3793_v37, 0.03137255  ;;  %v6236_v10 = vclamps-f32 %v3795_v22, 0.03137255  ;;  %v3849_v60 = vmax.f32 %v3833_v8, 0.0  ;;  %v3851_v29 = vmax.f32 %v3835_v25, 0.0 }
0x1419   :  { %v3856_v52 = vmax.f32 %v3840_v6, 0.0  ;;  %v3858_v61 = vmax.f32 %v3842_v56, 0.0  ;;  %v10761_v47 = vmin.f32 %v3848_v19, 1.0  ;;  %v12898_v37 = vld [vmem:[#allocation68_spill] sm:$0xff]  ;;  %v12899_v22 = vld [vmem:[#allocation69_spill] sm:$0xff]  ;;  %v12900_v8 = vld [vmem:[#allocation70_spill] sm:$0xff] }
0x141a   :  { %v3841_v0 = vadd.f32 %v12888_v30, %v6234_v48  ;;  %v3843_v15 = vadd.f32 %v12889_v20, %v6236_v10  ;;  %v10753_v24 = vmin.f32 %v3849_v60, 1.0  ;;  %v10757_v7 = vmin.f32 %v3851_v29, 1.0  ;;  %v12901_v25 = vld [vmem:[#allocation71_spill] sm:$0xff]  ;;  %v12903_v27 = vld [vmem:[#allocation36_spill] sm:$0xff]  ;;  %v12904_v6 = vld [vmem:[#allocation37_spill] sm:$0xff] }
0x141b   :  { %v10749_v46 = vmin.f32 %v3856_v52, 1.0  ;;  %v10751_v12 = vmin.f32 %v3858_v61, 1.0  ;;  %12896 = vst [vmem:[#allocation30_spill] sm:$0xff] %v10761_v47  ;;  %v10763_v20 = vmin.f32 %v3850_v50, 1.0  ;;  %v12905_v56 = vld [vmem:[#allocation34_spill] sm:$0xff]  ;;  %v12907_v10 = vld [vmem:[#allocation44_spill] sm:$0xff] }
0x141c   :  { %v3857_v35 = vmax.f32 %v3841_v0, 0.0  ;;  %v3859_v38 = vmax.f32 %v3843_v15, 0.0  ;;  %12892 = vst [vmem:[#allocation25_spill] sm:$0xff] %v10753_v24  ;;  %12894 = vst [vmem:[#allocation21_spill] sm:$0xff] %v10757_v7  ;;  %v12906_v48 = vld [vmem:[#allocation42_spill] sm:$0xff]  ;;  %v12908_v52 = vld [vmem:[#allocation13_spill] sm:$0xff] }
0x141d   :  { %12890 = vst [vmem:[#allocation52_spill] sm:$0xff] %v10749_v46  ;;  %12891 = vst [vmem:[#allocation24_spill] sm:$0xff] %v10751_v12  ;;  %v3880_v59 = vpack.c.bf16 %v10749_v46, %v10761_v47  ;;  %v3882_v30 = vpack.c.bf16 %v10751_v12, %v10763_v20  ;;  %v12909_v61 = vld [vmem:[#allocation35_spill] sm:$0xff]  ;;  %v12911_v60 = vld [vmem:[#allocation73_spill] sm:$0xff] }
0x141e   :  { %v10755_v57 = vmin.f32 %v3857_v35, 1.0  ;;  %v10759_v13 = vmin.f32 %v3859_v38, 1.0  ;;  %12897 = vst [vmem:[#allocation15_spill] sm:$0xff] %v10763_v20  ;;  %v12910_v0 = vld [vmem:[#allocation43_spill] sm:$0xff]  ;;  %v12912_v15 = vld [vmem:[#allocation74_spill] sm:$0xff]  ;;  %v12913_v29 = vld [vmem:[#allocation12_spill] sm:$0xff] }
0x141f   :  { %v12914_v19 = vld [vmem:[#allocation40_spill] sm:$0xff]  ;;  %v12915_v50 = vld [vmem:[#allocation29_spill] sm:$0xff]  ;;  %v12917_v38 = vld [vmem:[#allocation75_spill] sm:$0xff] }
0x1420   :  { %12893 = vst [vmem:[#allocation50_spill] sm:$0xff] %v10755_v57  ;;  %12895 = vst [vmem:[#allocation45_spill] sm:$0xff] %v10759_v13  ;;  %v3881_v42 = vpack.c.bf16 %v10755_v57, %v10753_v24  ;;  %v3883_v62 = vpack.c.bf16 %v10759_v13, %v10757_v7  ;;  %v12916_v35 = vld [vmem:[#allocation33_spill] sm:$0xff]  ;;  %v12923_v57 = vld [vmem:[#allocation38_spill] sm:$0xff] }
0x1421   :  { %v12922_v13 = vld [vmem:[#allocation17_spill] sm:$0xff]  ;;  %v12924_v12 = vld [vmem:[#allocation39_spill] sm:$0xff]  ;;  %v12926_v7 = vld [vmem:[#allocation16_spill] sm:$0xff] }
0x1422   :  { %3998 = vmatprep.mubr.bf16.mxu0 %v3881_v42  ;;  %4039 = vmatprep.mubr.bf16.mxu1 %v3883_v62  ;;  %v12918_v42 = vld [vmem:[#allocation32_spill] sm:$0xff]  ;;  %v12919_v62 = vld [vmem:[#allocation18_spill] sm:$0xff]  ;;  %v12925_v46 = vld [vmem:[#allocation19_spill] sm:$0xff] }
0x1423   :  { %3999 = vmatmul.mubr.bf16.vlgmr.msra.gmra.mrb[100].mxu0 %v3880_v59  ;;  %4040 = vmatmul.mubr.bf16.vlgmr.msra.gmra.mrb[100].mxu1 %v3882_v30  ;;  %v12920_v59 = vld [vmem:[#allocation20_spill] sm:$0xff]  ;;  %v12921_v30 = vld [vmem:[#allocation26_spill] sm:$0xff] }
0x1424   :  { %7350 = vmatpush3.bf16.xpose.msra.mxu0 %v10411_v26  ;;  %7368 = vmatpush3.bf16.xpose.msra.mxu1 %v10414_v51 }
0x1425   :  { %7351 = vmatprep.subr.bf16.mxu0 %v10417_v5  ;;  %7369 = vmatprep.subr.bf16.mxu1 %v12898_v37 }
0x142c   :  { %7352 = vmatpush3.bf16.xpose.msra.mxu0 %v12899_v22  ;;  %7370 = vmatpush3.bf16.xpose.msra.mxu1 %v12900_v8 }
0x142d   :  { %7353 = vmatprep.subr.bf16.mxu0 %v12901_v25  ;;  %7371 = vmatprep.subr.bf16.mxu1 %v12902_v49 }
0x1434   :  { %7354 = vmatpush3.bf16.xpose.msra.mxu0 %v12903_v27  ;;  %7372 = vmatpush3.bf16.xpose.msra.mxu1 %v12904_v6 }
0x1435   :  { %7355 = vmatprep.subr.bf16.mxu0 %v12905_v56  ;;  %7373 = vmatprep.subr.bf16.mxu1 %v12906_v48 }
0x143c   :  { %7356 = vmatpush3.bf16.xpose.msra.mxu0 %v12907_v10  ;;  %7374 = vmatpush3.bf16.xpose.msra.mxu1 %v12908_v52 }
0x143d   :  { %7357 = vmatprep.subr.bf16.mxu0 %v12909_v61  ;;  %7375 = vmatprep.subr.bf16.mxu1 %v12910_v0 }
0x1444   :  { %7358 = vmatpush3.bf16.xpose.msra.mxu0 %v12911_v60  ;;  %7376 = vmatpush3.bf16.xpose.msra.mxu1 %v12912_v15 }
0x1445   :  { %7359 = vmatprep.subr.bf16.mxu0 %v12913_v29  ;;  %7377 = vmatprep.subr.bf16.mxu1 %v12914_v19 }
0x144c   :  { %7360 = vmatpush3.bf16.xpose.msra.mxu0 %v12915_v50  ;;  %7378 = vmatpush3.bf16.xpose.msra.mxu1 %v12916_v35 }
0x144d   :  { %7361 = vmatprep.subr.bf16.mxu0 %v12917_v38  ;;  %7379 = vmatprep.subr.bf16.mxu1 %v12918_v42 }
0x1454   :  { %7362 = vmatpush3.bf16.xpose.msra.mxu0 %v12919_v62  ;;  %7380 = vmatpush3.bf16.xpose.msra.mxu1 %v12920_v59 }
0x1455   :  { %7363 = vmatprep.subr.bf16.mxu0 %v12921_v30  ;;  %7381 = vmatprep.subr.bf16.mxu1 %v12922_v13 }
0x145c   :  { %7364 = vmatpush3.bf16.xpose.msra.mxu0 %v12923_v57  ;;  %7382 = vmatpush3.bf16.xpose.msra.mxu1 %v12924_v12  ;;  %v10808_v57 = vld [vmem:[%s11753_s3] ss:$0 sm:$0xff] }
0x145d   :  { %7385 = vmatprep.subr.bf16.mxu0 %v12925_v46  ;;  %7403 = vmatprep.subr.bf16.mxu1 %v12926_v7 }
0x14b6   :  { %v7277_v24 = vpop.f32.mrb[96].mxu0  ;;  %v7299_v20 = vpop.f32.mrb[96].mxu1 }
0x14b7   :  { %v7278_v47 = vpop.f32.mrb[97].mxu0  ;;  %v7300_v42 = vpop.f32.mrb[97].mxu1 }
0x14b8   :  { %v7279_v38 = vadd.f32 %v7278_v47, %v7277_v24  ;;  %v7301_v62 = vadd.f32 %v7300_v42, %v7299_v20  ;;  %v7280_v35 = vpop.f32.mrb[98].mxu0  ;;  %v7302_v59 = vpop.f32.mrb[98].mxu1 }
0x14b9   :  { %v7281_v50 = vpop.f32.mrb[99].mxu0  ;;  %v7303_v30 = vpop.f32.mrb[99].mxu1 }
0x14ba   :  { %v3919_v12 = vadd.f32 %v10808_v57, %v7279_v38  ;;  %v7282_v46 = vadd.f32 %v7281_v50, %v7280_v35  ;;  %v7304_v13 = vadd.f32 %v7303_v30, %v7302_v59 }
0x14bc   :  { %v3960_v7 = vadd.f32 %v7301_v62, %v3919_v12  ;;  %v3922_v19 = vadd.f32 %v10808_v57, %v7282_v46 }
0x14be   :  { %v3963_v29 = vadd.f32 %v7304_v13, %v3922_v19 }
0x14f6   :  { %v7321_v15 = vpop.f32.mrb[100].mxu0  ;;  %v7343_v24 = vpop.f32.mrb[100].mxu1 }
0x14f7   :  { %v7322_v47 = vpop.f32.mrb[101].mxu0  ;;  %v7344_v20 = vpop.f32.mrb[101].mxu1 }
0x14f8   :  { %v7323_v42 = vadd.f32 %v7322_v47, %v7321_v15  ;;  %v7345_v60 = vadd.f32 %v7344_v20, %v7343_v24  ;;  %v7324_v0 = vpop.f32.mrb[102].mxu0  ;;  %v7346_v61 = vpop.f32.mrb[102].mxu1  ;;  %v12929_v47 = vld [vmem:[#allocation23_spill] sm:$0xff]  ;;  %v10844_v20 = vld [vmem:[#allocation7 + $0x40] sm:$0xff]  }
0x14f9   :  { %v7325_v52 = vpop.f32.mrb[103].mxu0  ;;  %v7347_v10 = vpop.f32.mrb[103].mxu1 }
0x14fa   :  { %v4001_v48 = vadd.f32 %v7323_v42, %v3960_v7  ;;  %v7326_v56 = vadd.f32 %v7325_v52, %v7324_v0  ;;  %v7348_v6 = vadd.f32 %v7347_v10, %v7346_v61  ;;  %v12927_v61 = vld [vmem:[#allocation53_spill] sm:$0xff]  ;;  %v10847_v42 = vld [vmem:[#allocation7 + $0xc0] sm:$0xff]  }
0x14fc   :  { %v4004_v38 = vadd.f32 %v7326_v56, %v3963_v29  ;;  %v4042_v50 = vadd.f32 %v7345_v60, %v4001_v48  ;;  %v12928_v60 = vld [vmem:[#allocation54_spill] sm:$0xff] }
0x14fe   :  { %4048 = vmax.xlane.f32.xlu0 %v4042_v50  ;;  %v4045_v12 = vadd.f32 %v7348_v6, %v4004_v38  ;;  %v12930_v38 = vld [vmem:[#allocation37_spill] sm:$0xff] }
0x1500   :  { %4050 = vmax.xlane.f32.xlu1 %v4045_v12 }
0x158b   :  { %v4049_v46 = vpop.xlane.xlu0 %4048 }
0x158c   :  { %v4052_v13 = vsub.f32 %v4042_v50, %v4049_v46  ;;  %v12931_v50 = vld [vmem:[#allocation34_spill] sm:$0xff]  ;;  %v12942_v46 = vld [vmem:[#allocation33_spill] sm:$0xff] }
0x158d   :  { %v4051_v19 = vpop.xlane.xlu1 %4050 }
0x158e   :  { %v4054_v35 = vmul.f32 1.442695, %v4052_v13  ;;  %v4053_v62 = vsub.f32 %v4045_v12, %v4051_v19  ;;  %v12941_v12 = vld [vmem:[#allocation29_spill] sm:$0xff]  ;;  %v12943_v13 = vld [vmem:[#allocation75_spill] sm:$0xff]  ;;  %v12944_v19 = vld [vmem:[#allocation32_spill] sm:$0xff] }
0x1590   :  { %8024 = vpow2.f32 %v4054_v35  ;;  %v4056_v15 = vmul.f32 1.442695, %v4053_v62  ;;  %v12945_v35 = vld [vmem:[#allocation18_spill] sm:$0xff]  ;;  %v12946_v62 = vld [vmem:[#allocation20_spill] sm:$0xff] }
0x1592   :  { %8026 = vpow2.f32 %v4056_v15  ;;  %v12947_v15 = vld [vmem:[#allocation26_spill] sm:$0xff] }
0x159a   :  { %v8025_v59 = vpop.eup %8024 }
0x159b   :  { %4058 = vadd.xlane.f32.xlu0 %v8025_v59 }
0x159c   :  { %v8027_v30 = vpop.eup %8026 }
0x159d   :  { %4060 = vadd.xlane.f32.xlu1 %v8027_v30 }
0x1628   :  { %v4059_v7 = vpop.xlane.xlu0 %4058 }
0x1629   :  { %8028 = vrcp.f32 %v4059_v7  ;;  %v12950_v7 = vld [vmem:[#allocation39_spill] sm:$0xff] }
0x162a   :  { %v4061_v10 = vpop.xlane.xlu1 %4060 }
0x162b   :  { %8030 = vrcp.f32 %v4061_v10  ;;  %v12951_v10 = vld [vmem:[#allocation19_spill] sm:$0xff] }
0x1633   :  { %v8029_v56 = vpop.eup %8028 }
0x1634   :  { %v4063_v48 = vmul.f32 %v8029_v56, %v8025_v59  ;;  %v12948_v59 = vld [vmem:[#allocation17_spill] sm:$0xff]  ;;  %v12952_v56 = vld [vmem:[#allocation16_spill] sm:$0xff] }
0x1635   :  { %v8031_v6 = vpop.eup %8030 }
0x1636   :  { %v4065_v52 = vmul.f32 %v8031_v6, %v8027_v30  ;;  %v4066_v0 = vsub.f32 %v4063_v48, %v12927_v61  ;;  %v12949_v30 = vld [vmem:[#allocation38_spill] sm:$0xff] }
0x1638   :  { %v4067_v29 = vsub.f32 %v4065_v52, %v12928_v60 }
0x163a   :  { %v4068_v24 = vpack.c.bf16 %v4067_v29, %v4066_v0 }
0x163c   :  { %7365 = vmatprep.mubr.bf16.mxu0 %v4068_v24  ;;  %7383 = vmatprep.mubr.bf16.mxu1 %v4068_v24 }
0x163d   :  { %7366 = vmatmul.mubr.bf16.vlgmr.msra.gmra.mrb[104].mxu0 %v4068_v24  ;;  %7384 = vmatmul.mubr.bf16.vlgmr.msra.gmra.mrb[104].mxu1 %v4068_v24 }
0x163e   :  { %7386 = vmatpush3.bf16.xpose.msra.mxu0 %v10517_v55  ;;  %7404 = vmatpush3.bf16.xpose.msra.mxu1 %v10520_v4 }
0x163f   :  { %7401 = vmatprep.mubr.bf16.mxu0 %v4068_v24  ;;  %7419 = vmatprep.mubr.bf16.mxu1 %v4068_v24 }
0x1640   :  { %7387 = vmatprep.subr.bf16.mxu0 %v10525_v31  ;;  %7405 = vmatprep.subr.bf16.mxu1 %v10528_v63 }
0x1646   :  { %7388 = vmatpush3.bf16.xpose.msra.mxu0 %v10531_v53  ;;  %7406 = vmatpush3.bf16.xpose.msra.mxu1 %v10534_v36 }
0x1647   :  { %7389 = vmatprep.subr.bf16.mxu0 %v10537_v54  ;;  %7407 = vmatprep.subr.bf16.mxu1 %v10540_v3 }
0x164e   :  { %7390 = vmatpush3.bf16.xpose.msra.mxu0 %v10543_v40  ;;  %7408 = vmatpush3.bf16.xpose.msra.mxu1 %v10546_v9 }
0x164f   :  { %7391 = vmatprep.subr.bf16.mxu0 %v10549_v28  ;;  %7409 = vmatprep.subr.bf16.mxu1 %v10552_v21 }
0x1656   :  { %7392 = vmatpush3.bf16.xpose.msra.mxu0 %v10555_v1  ;;  %7410 = vmatpush3.bf16.xpose.msra.mxu1 %v10558_v16 }
0x1657   :  { %7393 = vmatprep.subr.bf16.mxu0 %v10561_v32  ;;  %7411 = vmatprep.subr.bf16.mxu1 %v10564_v58 }
0x165e   :  { %7394 = vmatpush3.bf16.xpose.msra.mxu0 %v10567_v44  ;;  %7412 = vmatpush3.bf16.xpose.msra.mxu1 %v10570_v45 }
0x165f   :  { %7395 = vmatprep.subr.bf16.mxu0 %v10573_v2  ;;  %7413 = vmatprep.subr.bf16.mxu1 %v10576_v43 }
0x1666   :  { %7396 = vmatpush3.bf16.xpose.msra.mxu0 %v10579_v18  ;;  %7414 = vmatpush3.bf16.xpose.msra.mxu1 %v12871_v23 }
0x1667   :  { %7397 = vmatprep.subr.bf16.mxu0 %v12872_v14  ;;  %7415 = vmatprep.subr.bf16.mxu1 %v12873_v33 }
0x166e   :  { %7398 = vmatpush3.bf16.xpose.msra.mxu0 %v10591_v41  ;;  %7416 = vmatpush3.bf16.xpose.msra.mxu1 %v10594_v34 }
0x166f   :  { %7399 = vmatprep.subr.bf16.mxu0 %v10597_v11  ;;  %7417 = vmatprep.subr.bf16.mxu1 %v10600_v39 }
0x1676   :  { %7400 = vmatpush3.bf16.xpose.msra.mxu0 %v10603_v17  ;;  %7418 = vmatpush3.bf16.xpose.msra.mxu1 %v12929_v47 }
0x1677   :  { %7421 = vmatprep.subr.bf16.mxu0 %v10844_v20  ;;  %7443 = vmatprep.subr.bf16.mxu1 %v10847_v42 }
0x167d   :  { %7402 = vmatmul.mubr.bf16.vlgmr.msra.gmra.mrb[108].mxu0 %v4068_v24  ;;  %7420 = vmatmul.mubr.bf16.vlgmr.msra.gmra.mrb[108].mxu1 %v4068_v24 }
0x167e   :  { %7422 = vmatpush3.bf16.msra.mxu0 %v10411_v26  ;;  %7444 = vmatpush3.bf16.msra.mxu1 %v10414_v51  ;;  %v12932_v26 = vld [vmem:[#allocation42_spill] sm:$0xff]  ;;  %v12933_v51 = vld [vmem:[#allocation44_spill] sm:$0xff] }
0x167f   :  { %7423 = vmatprep.subr.bf16.mxu0 %v10417_v5  ;;  %7445 = vmatprep.subr.bf16.mxu1 %v12898_v37  ;;  %v12934_v5 = vld [vmem:[#allocation13_spill] sm:$0xff]  ;;  %v12935_v37 = vld [vmem:[#allocation35_spill] sm:$0xff] }
0x1682   :  { %7424 = vmatpush3.bf16.msra.mxu0 %v12899_v22  ;;  %7446 = vmatpush3.bf16.msra.mxu1 %v12900_v8  ;;  %v12936_v22 = vld [vmem:[#allocation43_spill] sm:$0xff]  ;;  %v12937_v8 = vld [vmem:[#allocation73_spill] sm:$0xff] }
0x1683   :  { %7425 = vmatprep.subr.bf16.mxu0 %v12901_v25  ;;  %7447 = vmatprep.subr.bf16.mxu1 %v12902_v49  ;;  %v12938_v25 = vld [vmem:[#allocation74_spill] sm:$0xff]  ;;  %v12939_v49 = vld [vmem:[#allocation12_spill] sm:$0xff] }
0x1686   :  { %7426 = vmatpush3.bf16.msra.mxu0 %v12903_v27  ;;  %7448 = vmatpush3.bf16.msra.mxu1 %v12930_v38  ;;  %v12940_v27 = vld [vmem:[#allocation40_spill] sm:$0xff] }
0x1687   :  { %7427 = vmatprep.subr.bf16.mxu0 %v12931_v50  ;;  %7449 = vmatprep.subr.bf16.mxu1 %v12932_v26 }
0x168a   :  { %7428 = vmatpush3.bf16.msra.mxu0 %v12933_v51  ;;  %7450 = vmatpush3.bf16.msra.mxu1 %v12934_v5 }
0x168b   :  { %7429 = vmatprep.subr.bf16.mxu0 %v12935_v37  ;;  %7451 = vmatprep.subr.bf16.mxu1 %v12936_v22 }
0x168e   :  { %7430 = vmatpush3.bf16.msra.mxu0 %v12937_v8  ;;  %7452 = vmatpush3.bf16.msra.mxu1 %v12938_v25 }
0x168f   :  { %7431 = vmatprep.subr.bf16.mxu0 %v12939_v49  ;;  %7453 = vmatprep.subr.bf16.mxu1 %v12940_v27 }
0x1692   :  { %7432 = vmatpush3.bf16.msra.mxu0 %v12941_v12  ;;  %7454 = vmatpush3.bf16.msra.mxu1 %v12942_v46  ;;  %v12953_v46 = vld [vmem:[#allocation55_spill] sm:$0xff] }
0x1693   :  { %7433 = vmatprep.subr.bf16.mxu0 %v12943_v13  ;;  %7455 = vmatprep.subr.bf16.mxu1 %v12944_v19  ;;  %v12954_v19 = vld [vmem:[#allocation47_spill] sm:$0xff] }
0x1696   :  { %7434 = vmatpush3.bf16.msra.mxu0 %v12945_v35  ;;  %7456 = vmatpush3.bf16.msra.mxu1 %v12946_v62 }
0x1697   :  { %7435 = vmatprep.subr.bf16.mxu0 %v12947_v15  ;;  %7457 = vmatprep.subr.bf16.mxu1 %v12948_v59  ;;  %v12955_v59 = vld [vmem:[#allocation14_spill] sm:$0xff] }
0x169a   :  { %7436 = vmatpush3.bf16.msra.mxu0 %v12949_v30  ;;  %7458 = vmatpush3.bf16.msra.mxu1 %v12950_v7  ;;  %v12956_v7 = vld [vmem:[#allocation76_spill] sm:$0xff] }
0x169b   :  { %7465 = vmatprep.subr.bf16.mxu0 %v12951_v10  ;;  %7487 = vmatprep.subr.bf16.mxu1 %v12952_v56 }
0x1710   :  { %v4103_v48 = vpop.f32.mrb[104].mxu0  ;;  %v4146_v6 = vpop.f32.mrb[104].mxu1 }
0x1711   :  { %v4257_v52 = vand.u32 2147483648, %v4103_v48  ;;  %v4259_v0 = vand.u32 2147483648, %v4146_v6  ;;  %v4105_v29 = vpop.f32.mrb[105].mxu0  ;;  %v4148_v24 = vpop.f32.mrb[105].mxu1  ;;  %v10886_v6 = vld [vmem:[#allocation2] sm:$0xff] }
0x1712   :  { %v4258_v38 = vand.u32 2147483648, %v4105_v29  ;;  %v4260_v50 = vand.u32 2147483648, %v4148_v24  ;;  %v4107_v26 = vpop.f32.mrb[106].mxu0  ;;  %v4150_v51 = vpop.f32.mrb[106].mxu1  ;;  %12957 = vst [vmem:[#allocation28_spill] sm:$0xff] %v10886_v6  ;;  %v12959_v24 = vld [vmem:[#allocation31_spill] sm:$0xff] }
0x1713   :  { %v4273_v5 = vor.u32 1006665857, %v4257_v52  ;;  %v4275_v37 = vor.u32 1006665857, %v4259_v0  ;;  %v4265_v22 = vand.u32 2147483648, %v4107_v26  ;;  %v4267_v8 = vand.u32 2147483648, %v4150_v51 }
0x1714   :  { %v4274_v25 = vor.u32 1006665857, %v4258_v38  ;;  %v4276_v49 = vor.u32 1006665857, %v4260_v50  ;;  %v4109_v27 = vpop.f32.mrb[107].mxu0  ;;  %v4152_v12 = vpop.f32.mrb[107].mxu1 }
0x1715   :  { %v4305_v13 = vadd.f32 %v4273_v5, %v12953_v46  ;;  %v4307_v35 = vadd.f32 %v4275_v37, %v12954_v19  ;;  %v4281_v62 = vor.u32 1006665857, %v4265_v22  ;;  %v4283_v15 = vor.u32 1006665857, %v4267_v8  ;;  %v10889_v0 = vld [vmem:[#allocation2 + $0x10] sm:$0xff]  ;;  %v12960_v50 = vld [vmem:[#allocation27_spill] sm:$0xff] }
0x1716   :  { %v4306_v30 = vadd.f32 %v4274_v25, %v12955_v59  ;;  %v4308_v10 = vadd.f32 %v4276_v49, %v12956_v7  ;;  %v4266_v56 = vand.u32 2147483648, %v4109_v27  ;;  %v4268_v48 = vand.u32 2147483648, %v4152_v12  ;;  %12958 = vst [vmem:[#allocation66_spill] sm:$0xff] %v10889_v0  ;;  %v10894_v51 = vld [vmem:[#allocation2 + $0x8] sm:$0xff]  ;;  %v10897_v37 = vld [vmem:[#allocation2 + $0x18] sm:$0xff]  ;;  %v10900_v12 = vld [vmem:[#allocation2 + $0x40] sm:$0xff] }
0x1717   :  { %v4321_v52 = vsub.f32 %v4305_v13, %v10886_v6  ;;  %v4323_v29 = vsub.f32 %v4307_v35, %v10889_v0  ;;  %v4313_v38 = vadd.f32 %v4281_v62, %v12959_v24  ;;  %v4315_v26 = vadd.f32 %v4283_v15, %v12960_v50  ;;  %12961 = vst [vmem:[#allocation67_spill] sm:$0xff] %v10894_v51  ;;  %v10903_v13 = vld [vmem:[#allocation2 + $0x50] sm:$0xff]  ;;  %v12965_v15 = vld [vmem:[#allocation48_spill] sm:$0xff] }
0x1718   :  { %v4322_v5 = vsub.f32 %v4306_v30, %v10894_v51  ;;  %12962 = vst [vmem:[#allocation62_spill] sm:$0xff] %v10897_v37  ;;  %v4324_v22 = vsub.f32 %v4308_v10, %v10897_v37  ;;  %v4282_v8 = vor.u32 1006665857, %v4266_v56  ;;  %v4284_v25 = vor.u32 1006665857, %v4268_v48  ;;  %12963 = vst [vmem:[#allocation64_spill] sm:$0xff] %v10900_v12 }
0x1719   :  { %v6237_v49 = vclamps-f32 %v4321_v52, 0.03137255  ;;  %v6239_v27 = vclamps-f32 %v4323_v29, 0.03137255  ;;  %v4329_v46 = vsub.f32 %v4313_v38, %v10900_v12  ;;  %12964 = vst [vmem:[#allocation46_spill] sm:$0xff] %v10903_v13  ;;  %v4331_v19 = vsub.f32 %v4315_v26, %v10903_v13  ;;  %v12966_v30 = vld [vmem:[#allocation22_spill] sm:$0xff] }
0x171a   :  { %v6238_v35 = vclamps-f32 %v4322_v5, 0.03137255  ;;  %v6240_v62 = vclamps-f32 %v4324_v22, 0.03137255  ;;  %v4314_v59 = vadd.f32 %v4282_v8, %v12965_v15  ;;  %v4316_v7 = vadd.f32 %v4284_v25, %v12966_v30  ;;  %v10908_v56 = vld [vmem:[#allocation2 + $0x48] sm:$0xff]  ;;  %v10911_v52 = vld [vmem:[#allocation2 + $0x58] sm:$0xff] }
0x171b   :  { %v6245_v24 = vclamps-f32 %v4329_v46, 0.03137255  ;;  %v6247_v10 = vclamps-f32 %v4331_v19, 0.03137255  ;;  %12967 = vst [vmem:[#allocation49_spill] sm:$0xff] %v10908_v56  ;;  %12968 = vst [vmem:[#allocation61_spill] sm:$0xff] %v10911_v52  ;;  %v4369_v26 = vadd.f32 %v10886_v6, %v6237_v49  ;;  %v4371_v5 = vadd.f32 %v10889_v0, %v6239_v27 }
0x171c   :  { %v4330_v48 = vsub.f32 %v4314_v59, %v10908_v56  ;;  %v4332_v29 = vsub.f32 %v4316_v7, %v10911_v52  ;;  %v4370_v38 = vadd.f32 %v10894_v51, %v6238_v35  ;;  %v4372_v50 = vadd.f32 %v10897_v37, %v6240_v62 }
0x171d   :  { %v4377_v22 = vadd.f32 %v10900_v12, %v6245_v24  ;;  %v4379_v8 = vadd.f32 %v10903_v13, %v6247_v10  ;;  %v4385_v51 = vmax.f32 %v4369_v26, 0.0  ;;  %v4387_v62 = vmax.f32 %v4371_v5, 0.0 }
0x171e   :  { %v6246_v25 = vclamps-f32 %v4330_v48, 0.03137255  ;;  %v6248_v46 = vclamps-f32 %v4332_v29, 0.03137255  ;;  %v4386_v30 = vmax.f32 %v4370_v38, 0.0  ;;  %v4388_v35 = vmax.f32 %v4372_v50, 0.0 }
0x171f   :  { %v4393_v19 = vmax.f32 %v4377_v22, 0.0  ;;  %v4395_v15 = vmax.f32 %v4379_v8, 0.0  ;;  %v10934_v38 = vmin.f32 %v4385_v51, 1.0  ;;  %v10936_v22 = vmin.f32 %v4387_v62, 1.0  ;;  %v10982_v51 = vld [vmem:[#allocation2 + $0x20] sm:$0xff]  ;;  %v10993_v62 = vld [vmem:[#allocation2 + $0x38] sm:$0xff] }
0x1720   :  { %v4378_v59 = vadd.f32 %v10908_v56, %v6246_v25  ;;  %v4380_v7 = vadd.f32 %v10911_v52, %v6248_v46  ;;  %v10926_v24 = vmin.f32 %v4386_v30, 1.0  ;;  %v10930_v48 = vmin.f32 %v4388_v35, 1.0  ;;  %12979 = vst [vmem:[#allocation65_spill] sm:$0xff] %v10982_v51  ;;  %v10985_v25 = vld [vmem:[#allocation2 + $0x30] sm:$0xff]  ;;  %12984 = vst [vmem:[#allocation68_spill] sm:$0xff] %v10993_v62 }
0x1721   :  { %v10922_v6 = vmin.f32 %v4393_v19, 1.0  ;;  %v10924_v27 = vmin.f32 %v4395_v15, 1.0  ;;  %12980 = vst [vmem:[#allocation59_spill] sm:$0xff] %v10985_v25  ;;  %v12981_v19 = vld [vmem:[#allocation52_spill] sm:$0xff] }
0x1722   :  { %v4394_v37 = vmax.f32 %v4378_v59, 0.0  ;;  %v4396_v49 = vmax.f32 %v4380_v7, 0.0  ;;  %12971 = vst [vmem:[#allocation56_spill] sm:$0xff] %v10926_v24  ;;  %12973 = vst [vmem:[#allocation58_spill] sm:$0xff] %v10930_v48  ;;  %v12982_v59 = vld [vmem:[#allocation24_spill] sm:$0xff]  ;;  %v10990_v7 = vld [vmem:[#allocation2 + $0x28] sm:$0xff] }
0x1723   :  { %12969 = vst [vmem:[#allocation41_spill] sm:$0xff] %v10922_v6  ;;  %12970 = vst [vmem:[#allocation51_spill] sm:$0xff] %v10924_v27  ;;  %v4417_v5 = vpack.c.bf16 %v10922_v6, %v10934_v38 }
0x1724   :  { %v10928_v10 = vmin.f32 %v4394_v37, 1.0  ;;  %v10932_v29 = vmin.f32 %v4396_v49, 1.0  ;;  %v4419_v37 = vpack.c.bf16 %v10924_v27, %v10936_v22  ;;  %12983 = vst [vmem:[#allocation60_spill] sm:$0xff] %v10990_v7 }
0x1726   :  { %12972 = vst [vmem:[#allocation57_spill] sm:$0xff] %v10928_v10  ;;  %12974 = vst [vmem:[#allocation63_spill] sm:$0xff] %v10932_v29  ;;  %v4418_v50 = vpack.c.bf16 %v10928_v10, %v10926_v24  ;;  %v4420_v26 = vpack.c.bf16 %v10932_v29, %v10930_v48 }
0x1728   :  { %4457 = vmatprep.mubr.bf16.mxu0 %v4418_v50  ;;  %4498 = vmatprep.mubr.bf16.mxu1 %v4420_v26 }
0x1729   :  { %4458 = vmatmul.mubr.bf16.vlgmr.msra.gmra.mrb[112].mxu0 %v4417_v5  ;;  %4499 = vmatmul.mubr.bf16.vlgmr.msra.gmra.mrb[112].mxu1 %v4419_v37 }
0x172a   :  { %7466 = vmatpush3.bf16.msra.mxu0 %v10517_v55  ;;  %7488 = vmatpush3.bf16.msra.mxu1 %v10520_v4 }
0x172b   :  { %7467 = vmatprep.subr.bf16.mxu0 %v10525_v31  ;;  %7489 = vmatprep.subr.bf16.mxu1 %v10528_v63 }
0x172e   :  { %7468 = vmatpush3.bf16.msra.mxu0 %v10531_v53  ;;  %7490 = vmatpush3.bf16.msra.mxu1 %v10534_v36 }
0x172f   :  { %7469 = vmatprep.subr.bf16.mxu0 %v10537_v54  ;;  %7491 = vmatprep.subr.bf16.mxu1 %v10540_v3 }
0x1732   :  { %7470 = vmatpush3.bf16.msra.mxu0 %v10543_v40  ;;  %7492 = vmatpush3.bf16.msra.mxu1 %v10546_v9 }
0x1733   :  { %7471 = vmatprep.subr.bf16.mxu0 %v10549_v28  ;;  %7493 = vmatprep.subr.bf16.mxu1 %v10552_v21 }
0x1736   :  { %7472 = vmatpush3.bf16.msra.mxu0 %v10555_v1  ;;  %7494 = vmatpush3.bf16.msra.mxu1 %v10558_v16 }
0x1737   :  { %7473 = vmatprep.subr.bf16.mxu0 %v10561_v32  ;;  %7495 = vmatprep.subr.bf16.mxu1 %v10564_v58 }
0x173a   :  { %7474 = vmatpush3.bf16.msra.mxu0 %v10567_v44  ;;  %7496 = vmatpush3.bf16.msra.mxu1 %v10570_v45  ;;  %v12975_v44 = vld [vmem:[#allocation30_spill] sm:$0xff] }
0x173b   :  { %7475 = vmatprep.subr.bf16.mxu0 %v10573_v2  ;;  %7497 = vmatprep.subr.bf16.mxu1 %v10576_v43  ;;  %v12976_v2 = vld [vmem:[#allocation15_spill] sm:$0xff] }
0x173e   :  { %7476 = vmatpush3.bf16.msra.mxu0 %v10579_v18  ;;  %7498 = vmatpush3.bf16.msra.mxu1 %v12871_v23  ;;  %v12978_v23 = vld [vmem:[#allocation21_spill] sm:$0xff] }
0x173f   :  { %7477 = vmatprep.subr.bf16.mxu0 %v12872_v14  ;;  %7499 = vmatprep.subr.bf16.mxu1 %v12873_v33 }
0x1742   :  { %7478 = vmatpush3.bf16.msra.mxu0 %v10591_v41  ;;  %7500 = vmatpush3.bf16.msra.mxu1 %v10594_v34 }
0x1743   :  { %7479 = vmatprep.subr.bf16.mxu0 %v10597_v11  ;;  %7501 = vmatprep.subr.bf16.mxu1 %v10600_v39 }
0x1746   :  { %7480 = vmatpush3.bf16.msra.mxu0 %v10603_v17  ;;  %7502 = vmatpush3.bf16.msra.mxu1 %v12929_v47  ;;  %v12977_v17 = vld [vmem:[#allocation25_spill] sm:$0xff] }
0x1747   :  { %7509 = vmatprep.subr.bf16.mxu0 %v10844_v20  ;;  %7527 = vmatprep.subr.bf16.mxu1 %v10847_v42 }
0x1750   :  { %v4189_v55 = vpop.f32.mrb[108].mxu0  ;;  %v4232_v4 = vpop.f32.mrb[108].mxu1 }
0x1751   :  { %v4261_v31 = vand.u32 2147483648, %v4189_v55  ;;  %v4263_v63 = vand.u32 2147483648, %v4232_v4  ;;  %v4191_v53 = vpop.f32.mrb[109].mxu0  ;;  %v4234_v36 = vpop.f32.mrb[109].mxu1  ;;  %v10996_v55 = vld [vmem:[#allocation2 + $0x60] sm:$0xff] }
0x1752   :  { %v4262_v54 = vand.u32 2147483648, %v4191_v53  ;;  %v4264_v34 = vand.u32 2147483648, %v4234_v36  ;;  %v4193_v3 = vpop.f32.mrb[110].mxu0  ;;  %v4236_v11 = vpop.f32.mrb[110].mxu1  ;;  %12985 = vst [vmem:[#allocation69_spill] sm:$0xff] %v10996_v55 }
0x1753   :  { %v4277_v40 = vor.u32 1006665857, %v4261_v31  ;;  %v4279_v9 = vor.u32 1006665857, %v4263_v63  ;;  %v4269_v28 = vand.u32 2147483648, %v4193_v3  ;;  %v4271_v21 = vand.u32 2147483648, %v4236_v11 }
0x1754   :  { %v4278_v1 = vor.u32 1006665857, %v4262_v54  ;;  %v4280_v16 = vor.u32 1006665857, %v4264_v34  ;;  %v4195_v32 = vpop.f32.mrb[111].mxu0  ;;  %v4238_v58 = vpop.f32.mrb[111].mxu1 }
0x1755   :  { %v4309_v45 = vadd.f32 %v4277_v40, %v12975_v44  ;;  %v4311_v43 = vadd.f32 %v4279_v9, %v12976_v2  ;;  %v4285_v18 = vor.u32 1006665857, %v4269_v28  ;;  %v4287_v39 = vor.u32 1006665857, %v4271_v21  ;;  %v10999_v31 = vld [vmem:[#allocation2 + $0x70] sm:$0xff]  ;;  %v12988_v3 = vld [vmem:[#allocation45_spill] sm:$0xff] }
0x1756   :  { %v4310_v41 = vadd.f32 %v4278_v1, %v12977_v17  ;;  %v4312_v14 = vadd.f32 %v4280_v16, %v12978_v23  ;;  %v4270_v33 = vand.u32 2147483648, %v4195_v32  ;;  %v4272_v47 = vand.u32 2147483648, %v4238_v58  ;;  %12986 = vst [vmem:[#allocation70_spill] sm:$0xff] %v10999_v31  ;;  %v12987_v54 = vld [vmem:[#allocation50_spill] sm:$0xff]  ;;  %v11004_v28 = vld [vmem:[#allocation2 + $0x68] sm:$0xff]  ;;  %v11007_v1 = vld [vmem:[#allocation2 + $0x78] sm:$0xff] }
0x1757   :  { %v4325_v8 = vsub.f32 %v4309_v45, %v10982_v51  ;;  %v4327_v46 = vsub.f32 %v4311_v43, %v10985_v25  ;;  %v4317_v15 = vadd.f32 %v4285_v18, %v12981_v19  ;;  %v4319_v30 = vadd.f32 %v4287_v39, %v12982_v59  ;;  %12989 = vst [vmem:[#allocation71_spill] sm:$0xff] %v11004_v28 }
0x1758   :  { %v4326_v35 = vsub.f32 %v4310_v41, %v10990_v7  ;;  %v4328_v49 = vsub.f32 %v4312_v14, %v10993_v62  ;;  %v4286_v50 = vor.u32 1006665857, %v4270_v33  ;;  %v4288_v26 = vor.u32 1006665857, %v4272_v47  ;;  %12990 = vst [vmem:[#allocation72_spill] sm:$0xff] %v11007_v1 }
0x1759   :  { %v6241_v5 = vclamps-f32 %v4325_v8, 0.03137255  ;;  %v6243_v37 = vclamps-f32 %v4327_v46, 0.03137255  ;;  %v4333_v4 = vsub.f32 %v4317_v15, %v10996_v55  ;;  %v4335_v63 = vsub.f32 %v4319_v30, %v10999_v31 }
0x175a   :  { %v6242_v53 = vclamps-f32 %v4326_v35, 0.03137255  ;;  %v6244_v36 = vclamps-f32 %v4328_v49, 0.03137255  ;;  %v4318_v34 = vadd.f32 %v4286_v50, %v12987_v54  ;;  %v4320_v11 = vadd.f32 %v4288_v26, %v12988_v3  ;;  %v11042_v54 = vld [vmem:[#allocation7] sm:$0xff]   ;;  %v11048_v3 = vld [vmem:[#allocation7 + $0x48] sm:$0xff]  }
0x175b   :  { %v6249_v40 = vclamps-f32 %v4333_v4, 0.03137255  ;;  %v6251_v9 = vclamps-f32 %v4335_v63, 0.03137255  ;;  %v4373_v44 = vadd.f32 %v10982_v51, %v6241_v5  ;;  %v4375_v45 = vadd.f32 %v10985_v25, %v6243_v37 }
0x175c   :  { %v4334_v21 = vsub.f32 %v4318_v34, %v11004_v28  ;;  %v4336_v16 = vsub.f32 %v4320_v11, %v11007_v1  ;;  %v4374_v32 = vadd.f32 %v10990_v7, %v6242_v53  ;;  %v4376_v58 = vadd.f32 %v10993_v62, %v6244_v36  ;;  %v11045_v34 = vld [vmem:[#allocation7 + $0x80] sm:$0xff]   ;;  %v11051_v11 = vld [vmem:[#allocation7 + $0xc8] sm:$0xff]  }
0x175d   :  { %v4381_v2 = vadd.f32 %v10996_v55, %v6249_v40  ;;  %v4383_v43 = vadd.f32 %v10999_v31, %v6251_v9  ;;  %v4389_v8 = vmax.f32 %v4373_v44, 0.0  ;;  %v4391_v46 = vmax.f32 %v4375_v45, 0.0  ;;  %12999 = vst [vmem:[#allocation43_spill] sm:$0xff] %v11051_v11  ;;  %v11054_v40 = vld [vmem:[#allocation7 + $0x8] sm:$0xff]   ;;  %v11072_v44 = vld [vmem:[#allocation7 + $0x58] sm:$0xff]  }
0x175e   :  { %v6250_v18 = vclamps-f32 %v4334_v21, 0.03137255  ;;  %v6252_v39 = vclamps-f32 %v4336_v16, 0.03137255  ;;  %v4390_v14 = vmax.f32 %v4374_v32, 0.0  ;;  %v4392_v47 = vmax.f32 %v4376_v58, 0.0 }
0x175f   :  { %v4397_v17 = vmax.f32 %v4381_v2, 0.0  ;;  %v4399_v41 = vmax.f32 %v4383_v43, 0.0  ;;  %v11030_v5 = vmin.f32 %v4389_v8, 1.0  ;;  %v11032_v37 = vmin.f32 %v4391_v46, 1.0  ;;  %13000 = vst [vmem:[#allocation73_spill] sm:$0xff] %v11054_v40  ;;  %v11057_v9 = vld [vmem:[#allocation7 + $0x88] sm:$0xff]  }
0x1760   :  { %v4382_v23 = vadd.f32 %v11004_v28, %v6250_v18  ;;  %v4384_v33 = vadd.f32 %v11007_v1, %v6252_v39  ;;  %v11022_v35 = vmin.f32 %v4390_v14, 1.0  ;;  %v11026_v50 = vmin.f32 %v4392_v47, 1.0  ;;  %13001 = vst [vmem:[#allocation74_spill] sm:$0xff] %v11057_v9  ;;  %v11060_v21 = vld [vmem:[#allocation7 + $0x50] sm:$0xff]   ;;  %13006 = vst [vmem:[#allocation75_spill] sm:$0xff] %v11072_v44  ;;  %v11075_v45 = vld [vmem:[#allocation7 + $0xd8] sm:$0xff]  }
0x1761   :  { %v11018_v59 = vmin.f32 %v4397_v17, 1.0  ;;  %v11020_v30 = vmin.f32 %v4399_v41, 1.0  ;;  %12997 = vst [vmem:[#allocation13_spill] sm:$0xff] %v11030_v5  ;;  %12998 = vst [vmem:[#allocation35_spill] sm:$0xff] %v11032_v37  ;;  %v11063_v16 = vld [vmem:[#allocation7 + $0xd0] sm:$0xff]   ;;  %v11078_v2 = vld [vmem:[#allocation7 + $0x18] sm:$0xff]  }
0x1762   :  { %v4398_v19 = vmax.f32 %v4382_v23, 0.0  ;;  %v4400_v15 = vmax.f32 %v4384_v33, 0.0  ;;  %12993 = vst [vmem:[#allocation37_spill] sm:$0xff] %v11022_v35  ;;  %12995 = vst [vmem:[#allocation42_spill] sm:$0xff] %v11026_v50  ;;  %v11066_v32 = vld [vmem:[#allocation7 + $0x10] sm:$0xff]   ;;  %v11081_v43 = vld [vmem:[#allocation7 + $0x98] sm:$0xff]  }
0x1763   :  { %12991 = vst [vmem:[#allocation36_spill] sm:$0xff] %v11018_v59  ;;  %12992 = vst [vmem:[#allocation23_spill] sm:$0xff] %v11020_v30  ;;  %v4421_v53 = vpack.c.bf16 %v11018_v59, %v11030_v5  ;;  %v4423_v36 = vpack.c.bf16 %v11020_v30, %v11032_v37  ;;  %v11069_v58 = vld [vmem:[#allocation7 + $0x90] sm:$0xff]   ;;  %v11084_v18 = vld [vmem:[#allocation7 + $0x60] sm:$0xff]  }
0x1764   :  { %v11024_v49 = vmin.f32 %v4398_v19, 1.0  ;;  %v11028_v26 = vmin.f32 %v4400_v15, 1.0  ;;  %13002 = vst [vmem:[#allocation12_spill] sm:$0xff] %v11060_v21  ;;  %13003 = vst [vmem:[#allocation40_spill] sm:$0xff] %v11063_v16  ;;  %v11087_v39 = vld [vmem:[#allocation7 + $0xe0] sm:$0xff]   ;;  %v11096_v23 = vld [vmem:[#allocation7 + $0x68] sm:$0xff]  }
0x1765   :  { %13004 = vst [vmem:[#allocation29_spill] sm:$0xff] %v11066_v32  ;;  %13005 = vst [vmem:[#allocation33_spill] sm:$0xff] %v11069_v58  ;;  %v11090_v17 = vld [vmem:[#allocation7 + $0x20] sm:$0xff]   ;;  %v11099_v14 = vld [vmem:[#allocation7 + $0xe8] sm:$0xff]  }
0x1766   :  { %12994 = vst [vmem:[#allocation34_spill] sm:$0xff] %v11024_v49  ;;  %12996 = vst [vmem:[#allocation44_spill] sm:$0xff] %v11028_v26  ;;  %v4422_v4 = vpack.c.bf16 %v11024_v49, %v11022_v35  ;;  %v4424_v63 = vpack.c.bf16 %v11028_v26, %v11026_v50  ;;  %v11093_v41 = vld [vmem:[#allocation7 + $0xa0] sm:$0xff]   ;;  %v11102_v33 = vld [vmem:[#allocation7 + $0x28] sm:$0xff]  }
0x1767   :  { %13007 = vst [vmem:[#allocation32_spill] sm:$0xff] %v11075_v45  ;;  %13008 = vst [vmem:[#allocation18_spill] sm:$0xff] %v11078_v2  ;;  %v11105_v47 = vld [vmem:[#allocation7 + $0xa8] sm:$0xff]   ;;  %v11108_v8 = vld [vmem:[#allocation7 + $0x70] sm:$0xff]  }
0x1768   :  { %4539 = vmatprep.mubr.bf16.mxu0 %v4422_v4  ;;  %4580 = vmatprep.mubr.bf16.mxu1 %v4424_v63  ;;  %13009 = vst [vmem:[#allocation20_spill] sm:$0xff] %v11081_v43  ;;  %13010 = vst [vmem:[#allocation26_spill] sm:$0xff] %v11084_v18  ;;  %v11111_v46 = vld [vmem:[#allocation7 + $0xf0] sm:$0xff]   ;;  %v11120_v4 = vld [vmem:[#allocation7 + $0x78] sm:$0xff]  }
0x1769   :  { %4540 = vmatmul.mubr.bf16.vlgmr.msra.gmra.mrb[116].mxu0 %v4421_v53  ;;  %4581 = vmatmul.mubr.bf16.vlgmr.msra.gmra.mrb[116].mxu1 %v4423_v36  ;;  %13011 = vst [vmem:[#allocation17_spill] sm:$0xff] %v11087_v39  ;;  %13012 = vst [vmem:[#allocation38_spill] sm:$0xff] %v11090_v17  ;;  %v11114_v19 = vld [vmem:[#allocation7 + $0x30] sm:$0xff]   ;;  %v11123_v63 = vld [vmem:[#allocation7 + $0xf8] sm:$0xff]  }
0x176a   :  { %7510 = vmatpush3.bf16.xpose.msra.mxu0 %v11042_v54  ;;  %7528 = vmatpush3.bf16.xpose.msra.mxu1 %v11045_v34  ;;  %13013 = vst [vmem:[#allocation39_spill] sm:$0xff] %v11093_v41  ;;  %13014 = vst [vmem:[#allocation19_spill] sm:$0xff] %v11096_v23  ;;  %v11117_v15 = vld [vmem:[#allocation7 + $0xb0] sm:$0xff]   ;;  %v11126_v53 = vld [vmem:[#allocation7 + $0x38] sm:$0xff]  }
0x176b   :  { %7511 = vmatprep.subr.bf16.mxu0 %v11048_v3  ;;  %7529 = vmatprep.subr.bf16.mxu1 %v11051_v11  ;;  %13015 = vst [vmem:[#allocation16_spill] sm:$0xff] %v11099_v14  ;;  %13016 = vst [vmem:[#allocation55_spill] sm:$0xff] %v11102_v33  ;;  %v11129_v36 = vld [vmem:[#allocation7 + $0xb8] sm:$0xff]   ;;  %v11132_v1 = vld [vmem:[#allocation7 + $0x140] sm:$0xff]  }
0x176c   :  { %13017 = vst [vmem:[#allocation47_spill] sm:$0xff] %v11105_v47  ;;  %13018 = vst [vmem:[#allocation14_spill] sm:$0xff] %v11108_v8  ;;  %v11135_v28 = vld [vmem:[#allocation7 + $0x1c0] sm:$0xff]  }
0x176d   :  { %13019 = vst [vmem:[#allocation76_spill] sm:$0xff] %v11111_v46  ;;  %13020 = vst [vmem:[#allocation31_spill] sm:$0xff] %v11114_v19 }
0x176e   :  { %13021 = vst [vmem:[#allocation27_spill] sm:$0xff] %v11117_v15  ;;  %13022 = vst [vmem:[#allocation48_spill] sm:$0xff] %v11120_v4 }
0x176f   :  { %13023 = vst [vmem:[#allocation22_spill] sm:$0xff] %v11123_v63  ;;  %13024 = vst [vmem:[#allocation30_spill] sm:$0xff] %v11126_v53 }
0x1770   :  { %13025 = vst [vmem:[#allocation15_spill] sm:$0xff] %v11129_v36  ;;  %13026 = vst [vmem:[#allocation25_spill] sm:$0xff] %v11132_v1 }
0x1771   :  { %13027 = vst [vmem:[#allocation21_spill] sm:$0xff] %v11135_v28 }
0x1772   :  { %7512 = vmatpush3.bf16.xpose.msra.mxu0 %v11054_v40  ;;  %7530 = vmatpush3.bf16.xpose.msra.mxu1 %v11057_v9 }
0x1773   :  { %7513 = vmatprep.subr.bf16.mxu0 %v11060_v21  ;;  %7531 = vmatprep.subr.bf16.mxu1 %v11063_v16 }
0x177a   :  { %7514 = vmatpush3.bf16.xpose.msra.mxu0 %v11066_v32  ;;  %7532 = vmatpush3.bf16.xpose.msra.mxu1 %v11069_v58 }
0x177b   :  { %7515 = vmatprep.subr.bf16.mxu0 %v11072_v44  ;;  %7533 = vmatprep.subr.bf16.mxu1 %v11075_v45 }
0x1782   :  { %7516 = vmatpush3.bf16.xpose.msra.mxu0 %v11078_v2  ;;  %7534 = vmatpush3.bf16.xpose.msra.mxu1 %v11081_v43 }
0x1783   :  { %7517 = vmatprep.subr.bf16.mxu0 %v11084_v18  ;;  %7535 = vmatprep.subr.bf16.mxu1 %v11087_v39 }
0x178a   :  { %7518 = vmatpush3.bf16.xpose.msra.mxu0 %v11090_v17  ;;  %7536 = vmatpush3.bf16.xpose.msra.mxu1 %v11093_v41 }
0x178b   :  { %7519 = vmatprep.subr.bf16.mxu0 %v11096_v23  ;;  %7537 = vmatprep.subr.bf16.mxu1 %v11099_v14 }
0x1792   :  { %7520 = vmatpush3.bf16.xpose.msra.mxu0 %v11102_v33  ;;  %7538 = vmatpush3.bf16.xpose.msra.mxu1 %v11105_v47 }
0x1793   :  { %7521 = vmatprep.subr.bf16.mxu0 %v11108_v8  ;;  %7539 = vmatprep.subr.bf16.mxu1 %v11111_v46 }
0x179a   :  { %7522 = vmatpush3.bf16.xpose.msra.mxu0 %v11114_v19  ;;  %7540 = vmatpush3.bf16.xpose.msra.mxu1 %v11117_v15 }
0x179b   :  { %7523 = vmatprep.subr.bf16.mxu0 %v11120_v4  ;;  %7541 = vmatprep.subr.bf16.mxu1 %v11123_v63 }
0x17a2   :  { %7524 = vmatpush3.bf16.xpose.msra.mxu0 %v11126_v53  ;;  %7542 = vmatpush3.bf16.xpose.msra.mxu1 %v11129_v36 }
0x17a3   :  { %7545 = vmatprep.subr.bf16.mxu0 %v11132_v1  ;;  %7563 = vmatprep.subr.bf16.mxu1 %v11135_v28 }
0x17fc   :  { %v7437_v26 = vpop.f32.mrb[112].mxu0  ;;  %v7459_v49 = vpop.f32.mrb[112].mxu1 }
0x17fd   :  { %v7438_v31 = vpop.f32.mrb[113].mxu0  ;;  %v7460_v55 = vpop.f32.mrb[113].mxu1 }
0x17fe   :  { %v7439_v62 = vadd.f32 %v7438_v31, %v7437_v26  ;;  %v7461_v7 = vadd.f32 %v7460_v55, %v7459_v49  ;;  %v7440_v30 = vpop.f32.mrb[114].mxu0  ;;  %v7462_v59 = vpop.f32.mrb[114].mxu1 }
0x17ff   :  { %v7441_v25 = vpop.f32.mrb[115].mxu0  ;;  %v7463_v51 = vpop.f32.mrb[115].mxu1 }
0x1800   :  { %v4460_v50 = vadd.f32 %v10808_v57, %v7439_v62  ;;  %v7442_v35 = vadd.f32 %v7441_v25, %v7440_v30  ;;  %v7464_v37 = vadd.f32 %v7463_v51, %v7462_v59 }
0x1802   :  { %v4501_v5 = vadd.f32 %v7461_v7, %v4460_v50  ;;  %v4463_v52 = vadd.f32 %v10808_v57, %v7442_v35 }
0x1804   :  { %v4504_v56 = vadd.f32 %v7464_v37, %v4463_v52  ;;  %v11151_v37 = vld [vmem:[#allocation7 + $0x180] sm:$0xff]  }
0x183c   :  { %v7481_v29 = vpop.f32.mrb[116].mxu0  ;;  %v7503_v10 = vpop.f32.mrb[116].mxu1 }
0x183d   :  { %v7482_v13 = vpop.f32.mrb[117].mxu0  ;;  %v7504_v12 = vpop.f32.mrb[117].mxu1 }
0x183e   :  { %v7483_v27 = vadd.f32 %v7482_v13, %v7481_v29  ;;  %v7505_v6 = vadd.f32 %v7504_v12, %v7503_v10  ;;  %v7484_v31 = vpop.f32.mrb[118].mxu0  ;;  %v7506_v55 = vpop.f32.mrb[118].mxu1 }
0x183f   :  { %v7485_v49 = vpop.f32.mrb[119].mxu0  ;;  %v7507_v26 = vpop.f32.mrb[119].mxu1 }
0x1840   :  { %v4542_v0 = vadd.f32 %v7483_v27, %v4501_v5  ;;  %v7486_v48 = vadd.f32 %v7485_v49, %v7484_v31  ;;  %v7508_v24 = vadd.f32 %v7507_v26, %v7506_v55  ;;  %v11148_v5 = vld [vmem:[#allocation7 + $0x100] sm:$0xff]   ;;  %v11156_v31 = vld [vmem:[#allocation7 + $0x148] sm:$0xff]  }
0x1841   :  { %v11159_v55 = vld [vmem:[#allocation7 + $0x1c8] sm:$0xff]  }
0x1842   :  { %v4545_v62 = vadd.f32 %v7486_v48, %v4504_v56  ;;  %v4583_v25 = vadd.f32 %v7505_v6, %v4542_v0  ;;  %v11162_v49 = vld [vmem:[#allocation7 + $0x108] sm:$0xff]  }
0x1843   :  { %v11165_v26 = vld [vmem:[#allocation7 + $0x188] sm:$0xff]  }
0x1844   :  { %4589 = vmax.xlane.f32.xlu0 %v4583_v25  ;;  %v4586_v51 = vadd.f32 %v7508_v24, %v4545_v62  ;;  %v11168_v62 = vld [vmem:[#allocation7 + $0x150] sm:$0xff]  }
0x1846   :  { %4591 = vmax.xlane.f32.xlu1 %v4586_v51 }
0x18d1   :  { %v4590_v57 = vpop.xlane.xlu0 %4589 }
0x18d2   :  { %v4593_v52 = vsub.f32 %v4583_v25, %v4590_v57  ;;  %v11171_v25 = vld [vmem:[#allocation7 + $0x1d0] sm:$0xff]  }
0x18d3   :  { %v4592_v7 = vpop.xlane.xlu1 %4591  ;;  %v11177_v57 = vld [vmem:[#allocation7 + $0x190] sm:$0xff]  }
0x18d4   :  { %v4595_v59 = vmul.f32 1.442695, %v4593_v52  ;;  %v4594_v30 = vsub.f32 %v4586_v51, %v4592_v7  ;;  %v11174_v51 = vld [vmem:[#allocation7 + $0x110] sm:$0xff]   ;;  %v11180_v52 = vld [vmem:[#allocation7 + $0x158] sm:$0xff]  }
0x18d5   :  { %v11183_v7 = vld [vmem:[#allocation7 + $0x1d8] sm:$0xff]  }
0x18d6   :  { %8032 = vpow2.f32 %v4595_v59  ;;  %v4597_v13 = vmul.f32 1.442695, %v4594_v30  ;;  %v11186_v59 = vld [vmem:[#allocation7 + $0x118] sm:$0xff]  }
0x18d7   :  { %v11189_v30 = vld [vmem:[#allocation7 + $0x198] sm:$0xff]  }
0x18d8   :  { %8034 = vpow2.f32 %v4597_v13  ;;  %v11192_v13 = vld [vmem:[#allocation7 + $0x160] sm:$0xff]  }
0x18e0   :  { %v8033_v12 = vpop.eup %8032 }
0x18e1   :  { %4599 = vadd.xlane.f32.xlu0 %v8033_v12 }
0x18e2   :  { %v8035_v10 = vpop.eup %8034 }
0x18e3   :  { %4601 = vadd.xlane.f32.xlu1 %v8035_v10 }
0x196e   :  { %v4600_v27 = vpop.xlane.xlu0 %4599 }
0x196f   :  { %8036 = vrcp.f32 %v4600_v27  ;;  %v11201_v27 = vld [vmem:[#allocation7 + $0x1a0] sm:$0xff]  }
0x1970   :  { %v4602_v29 = vpop.xlane.xlu1 %4601 }
0x1971   :  { %8038 = vrcp.f32 %v4602_v29  ;;  %v11204_v29 = vld [vmem:[#allocation7 + $0x168] sm:$0xff]  }
0x1979   :  { %v8037_v6 = vpop.eup %8036 }
0x197a   :  { %v4604_v0 = vmul.f32 %v8037_v6, %v8033_v12  ;;  %v11195_v12 = vld [vmem:[#allocation7 + $0x1e0] sm:$0xff]   ;;  %v11207_v6 = vld [vmem:[#allocation7 + $0x1e8] sm:$0xff]  }
0x197b   :  { %v8039_v56 = vpop.eup %8038 }
0x197c   :  { %v4606_v24 = vmul.f32 %v8039_v56, %v8035_v10  ;;  %v4607_v48 = vsub.f32 %v4604_v0, %v12927_v61  ;;  %v11198_v10 = vld [vmem:[#allocation7 + $0x120] sm:$0xff]   ;;  %v11210_v0 = vld [vmem:[#allocation7 + $0x128] sm:$0xff]   ;;  %v11228_v61 = vld [vmem:[#allocation7 + $0x178] sm:$0xff]  }
0x197d   :  { %v11213_v56 = vld [vmem:[#allocation7 + $0x1a8] sm:$0xff]  }
0x197e   :  { %v4608_v35 = vsub.f32 %v4606_v24, %v12928_v60  ;;  %13028 = vst [vmem:[#allocation52_spill] sm:$0xff] %v11213_v56  ;;  %v11216_v24 = vld [vmem:[#allocation7 + $0x170] sm:$0xff]  }
0x197f   :  { %13029 = vst [vmem:[#allocation24_spill] sm:$0xff] %v11216_v24  ;;  %v11225_v60 = vld [vmem:[#allocation7 + $0x1b0] sm:$0xff]  }
0x1980   :  { %v11142_v50 = vpack.c.bf16 %v4608_v35, %v4607_v48  ;;  %v11219_v48 = vld [vmem:[#allocation7 + $0x1f0] sm:$0xff]  }
0x1981   :  { %13030 = vst [vmem:[#allocation50_spill] sm:$0xff] %v11219_v48  ;;  %v11222_v35 = vld [vmem:[#allocation7 + $0x130] sm:$0xff]  }
0x1982   :  { %7525 = vmatprep.mubr.bf16.mxu0 %v11142_v50  ;;  %7543 = vmatprep.mubr.bf16.mxu1 %v11142_v50 }
0x1983   :  { %7526 = vmatmul.mubr.bf16.vlgmr.msra.gmra.mrb[120].mxu0 %v11142_v50  ;;  %7544 = vmatmul.mubr.bf16.vlgmr.msra.gmra.mrb[120].mxu1 %v11142_v50 }
0x1984   :  { %7546 = vmatpush3.bf16.xpose.msra.mxu0 %v11148_v5  ;;  %7564 = vmatpush3.bf16.xpose.msra.mxu1 %v11151_v37 }
0x1985   :  { %7561 = vmatprep.mubr.bf16.mxu0 %v11142_v50  ;;  %7579 = vmatprep.mubr.bf16.mxu1 %v11142_v50 }
0x1986   :  { %7547 = vmatprep.subr.bf16.mxu0 %v11156_v31  ;;  %7565 = vmatprep.subr.bf16.mxu1 %v11159_v55 }
0x198c   :  { %7548 = vmatpush3.bf16.xpose.msra.mxu0 %v11162_v49  ;;  %7566 = vmatpush3.bf16.xpose.msra.mxu1 %v11165_v26 }
0x198d   :  { %7549 = vmatprep.subr.bf16.mxu0 %v11168_v62  ;;  %7567 = vmatprep.subr.bf16.mxu1 %v11171_v25 }
0x1994   :  { %7550 = vmatpush3.bf16.xpose.msra.mxu0 %v11174_v51  ;;  %7568 = vmatpush3.bf16.xpose.msra.mxu1 %v11177_v57 }
0x1995   :  { %7551 = vmatprep.subr.bf16.mxu0 %v11180_v52  ;;  %7569 = vmatprep.subr.bf16.mxu1 %v11183_v7 }
0x199c   :  { %7552 = vmatpush3.bf16.xpose.msra.mxu0 %v11186_v59  ;;  %7570 = vmatpush3.bf16.xpose.msra.mxu1 %v11189_v30 }
0x199d   :  { %7553 = vmatprep.subr.bf16.mxu0 %v11192_v13  ;;  %7571 = vmatprep.subr.bf16.mxu1 %v11195_v12 }
0x19a4   :  { %7554 = vmatpush3.bf16.xpose.msra.mxu0 %v11198_v10  ;;  %7572 = vmatpush3.bf16.xpose.msra.mxu1 %v11201_v27 }
0x19a5   :  { %7555 = vmatprep.subr.bf16.mxu0 %v11204_v29  ;;  %7573 = vmatprep.subr.bf16.mxu1 %v11207_v6 }
0x19ac   :  { %7556 = vmatpush3.bf16.xpose.msra.mxu0 %v11210_v0  ;;  %7574 = vmatpush3.bf16.xpose.msra.mxu1 %v11213_v56  ;;  %v11231_v56 = vld [vmem:[#allocation7 + $0x1f8] sm:$0xff]  }
0x19ad   :  { %7557 = vmatprep.subr.bf16.mxu0 %v11216_v24  ;;  %7575 = vmatprep.subr.bf16.mxu1 %v11219_v48  ;;  %v11234_v24 = vld [vmem:[#allocation7 + $0x138] sm:$0xff]  }
0x19ae   :  { %v11237_v48 = vld [vmem:[#allocation7 + $0x1b8] sm:$0xff]  }
0x19af   :  { %13031 = vst [vmem:[#allocation45_spill] sm:$0xff] %v11237_v48 }
0x19b4   :  { %7558 = vmatpush3.bf16.xpose.msra.mxu0 %v11222_v35  ;;  %7576 = vmatpush3.bf16.xpose.msra.mxu1 %v11225_v60 }
0x19b5   :  { %7559 = vmatprep.subr.bf16.mxu0 %v11228_v61  ;;  %7577 = vmatprep.subr.bf16.mxu1 %v11231_v56 }
0x19bc   :  { %7560 = vmatpush3.bf16.xpose.msra.mxu0 %v11234_v24  ;;  %7578 = vmatpush3.bf16.xpose.msra.mxu1 %v11237_v48 }
0x19bd   :  { %7581 = vmatprep.subr.bf16.mxu0 %v10844_v20  ;;  %7603 = vmatprep.subr.bf16.mxu1 %v10847_v42 }
0x19c3   :  { %7562 = vmatmul.mubr.bf16.vlgmr.msra.gmra.mrb[124].mxu0 %v11142_v50  ;;  %7580 = vmatmul.mubr.bf16.vlgmr.msra.gmra.mrb[124].mxu1 %v11142_v50 }
0x19c4   :  { %7582 = vmatpush3.bf16.msra.mxu0 %v11042_v54  ;;  %7604 = vmatpush3.bf16.msra.mxu1 %v11045_v34 }
0x19c5   :  { %7583 = vmatprep.subr.bf16.mxu0 %v11048_v3  ;;  %7605 = vmatprep.subr.bf16.mxu1 %v11051_v11  ;;  %v13045_v11 = vld [vmem:[#allocation61_spill] sm:$0xff] }
0x19c8   :  { %7584 = vmatpush3.bf16.msra.mxu0 %v11054_v40  ;;  %7606 = vmatpush3.bf16.msra.mxu1 %v11057_v9  ;;  %v13042_v9 = vld [vmem:[#allocation57_spill] sm:$0xff]  ;;  %v13043_v40 = vld [vmem:[#allocation63_spill] sm:$0xff] }
0x19c9   :  { %7585 = vmatprep.subr.bf16.mxu0 %v11060_v21  ;;  %7607 = vmatprep.subr.bf16.mxu1 %v11063_v16  ;;  %v13038_v21 = vld [vmem:[#allocation67_spill] sm:$0xff] }
0x19cc   :  { %7586 = vmatpush3.bf16.msra.mxu0 %v11066_v32  ;;  %7608 = vmatpush3.bf16.msra.mxu1 %v11069_v58  ;;  %v13037_v32 = vld [vmem:[#allocation51_spill] sm:$0xff] }
0x19cd   :  { %7587 = vmatprep.subr.bf16.mxu0 %v11072_v44  ;;  %7609 = vmatprep.subr.bf16.mxu1 %v11075_v45 }
0x19d0   :  { %7588 = vmatpush3.bf16.msra.mxu0 %v11078_v2  ;;  %7610 = vmatpush3.bf16.msra.mxu1 %v11081_v43  ;;  %v13032_v2 = vld [vmem:[#allocation56_spill] sm:$0xff] }
0x19d1   :  { %7589 = vmatprep.subr.bf16.mxu0 %v11084_v18  ;;  %7611 = vmatprep.subr.bf16.mxu1 %v11087_v39 }
0x19d4   :  { %7590 = vmatpush3.bf16.msra.mxu0 %v11090_v17  ;;  %7612 = vmatpush3.bf16.msra.mxu1 %v11093_v41 }
0x19d5   :  { %7591 = vmatprep.subr.bf16.mxu0 %v11096_v23  ;;  %7613 = vmatprep.subr.bf16.mxu1 %v11099_v14 }
0x19d8   :  { %7592 = vmatpush3.bf16.msra.mxu0 %v11102_v33  ;;  %7614 = vmatpush3.bf16.msra.mxu1 %v11105_v47 }
0x19d9   :  { %7593 = vmatprep.subr.bf16.mxu0 %v11108_v8  ;;  %7615 = vmatprep.subr.bf16.mxu1 %v11111_v46 }
0x19dc   :  { %7594 = vmatpush3.bf16.msra.mxu0 %v11114_v19  ;;  %7616 = vmatpush3.bf16.msra.mxu1 %v11117_v15 }
0x19dd   :  { %7595 = vmatprep.subr.bf16.mxu0 %v11120_v4  ;;  %7617 = vmatprep.subr.bf16.mxu1 %v11123_v63 }
0x19e0   :  { %7596 = vmatpush3.bf16.msra.mxu0 %v11126_v53  ;;  %7618 = vmatpush3.bf16.msra.mxu1 %v11129_v36 }
0x19e1   :  { %7625 = vmatprep.subr.bf16.mxu0 %v11132_v1  ;;  %7647 = vmatprep.subr.bf16.mxu1 %v11135_v28 }
0x1a56   :  { %v4644_v50 = vpop.f32.mrb[120].mxu0  ;;  %v4687_v8 = vpop.f32.mrb[120].mxu1 }
0x1a57   :  { %v4798_v47 = vand.u32 2147483648, %v4644_v50  ;;  %v4800_v46 = vand.u32 2147483648, %v4687_v8  ;;  %v4646_v33 = vpop.f32.mrb[121].mxu0  ;;  %v4689_v19 = vpop.f32.mrb[121].mxu1 }
0x1a58   :  { %v4799_v14 = vand.u32 2147483648, %v4646_v33  ;;  %v4801_v15 = vand.u32 2147483648, %v4689_v19  ;;  %v4648_v23 = vpop.f32.mrb[122].mxu0  ;;  %v4691_v4 = vpop.f32.mrb[122].mxu1  ;;  %v13033_v33 = vld [vmem:[#allocation58_spill] sm:$0xff] }
0x1a59   :  { %v4814_v41 = vor.u32 1006665857, %v4798_v47  ;;  %v4816_v63 = vor.u32 1006665857, %v4800_v46  ;;  %v4806_v17 = vand.u32 2147483648, %v4648_v23  ;;  %v4808_v53 = vand.u32 2147483648, %v4691_v4 }
0x1a5a   :  { %v4815_v39 = vor.u32 1006665857, %v4799_v14  ;;  %v4817_v36 = vor.u32 1006665857, %v4801_v15  ;;  %v4650_v18 = vpop.f32.mrb[123].mxu0  ;;  %v4693_v1 = vpop.f32.mrb[123].mxu1 }
0x1a5b   :  { %v4846_v28 = vadd.f32 %v4814_v41, %v10934_v38  ;;  %v4848_v43 = vadd.f32 %v4816_v63, %v10936_v22  ;;  %v4822_v50 = vor.u32 1006665857, %v4806_v17  ;;  %v4824_v8 = vor.u32 1006665857, %v4808_v53  ;;  %v13034_v47 = vld [vmem:[#allocation28_spill] sm:$0xff]  ;;  %v13035_v23 = vld [vmem:[#allocation66_spill] sm:$0xff] }
0x1a5c   :  { %v4847_v45 = vadd.f32 %v4815_v39, %v13032_v2  ;;  %v4849_v19 = vadd.f32 %v4817_v36, %v13033_v33  ;;  %v4807_v44 = vand.u32 2147483648, %v4650_v18  ;;  %v4809_v58 = vand.u32 2147483648, %v4693_v1  ;;  %v13036_v14 = vld [vmem:[#allocation41_spill] sm:$0xff]  ;;  %v13039_v41 = vld [vmem:[#allocation62_spill] sm:$0xff]  ;;  %v13040_v39 = vld [vmem:[#allocation64_spill] sm:$0xff] }
0x1a5d   :  { %v4862_v46 = vsub.f32 %v4846_v28, %v13034_v47  ;;  %v4864_v4 = vsub.f32 %v4848_v43, %v13035_v23  ;;  %v4854_v15 = vadd.f32 %v4822_v50, %v13036_v14  ;;  %v4856_v16 = vadd.f32 %v4824_v8, %v13037_v32  ;;  %v13041_v18 = vld [vmem:[#allocation46_spill] sm:$0xff]  ;;  %v13044_v8 = vld [vmem:[#allocation49_spill] sm:$0xff] }
0x1a5e   :  { %v4863_v38 = vsub.f32 %v4847_v45, %v13038_v21  ;;  %v4865_v22 = vsub.f32 %v4849_v19, %v13039_v41  ;;  %v4823_v17 = vor.u32 1006665857, %v4807_v44  ;;  %v4825_v63 = vor.u32 1006665857, %v4809_v58 }
0x1a5f   :  { %v6253_v53 = vclamps-f32 %v4862_v46, 0.03137255  ;;  %v6255_v2 = vclamps-f32 %v4864_v4, 0.03137255  ;;  %v4870_v36 = vsub.f32 %v4854_v15, %v13040_v39  ;;  %v4872_v1 = vsub.f32 %v4856_v16, %v13041_v18 }
0x1a60   :  { %v6254_v33 = vclamps-f32 %v4863_v38, 0.03137255  ;;  %v6256_v28 = vclamps-f32 %v4865_v22, 0.03137255  ;;  %v4855_v43 = vadd.f32 %v4823_v17, %v13042_v9  ;;  %v4857_v50 = vadd.f32 %v4825_v63, %v13043_v40 }
0x1a61   :  { %v6261_v14 = vclamps-f32 %v4870_v36, 0.03137255  ;;  %v6263_v32 = vclamps-f32 %v4872_v1, 0.03137255  ;;  %v4910_v46 = vadd.f32 %v13034_v47, %v6253_v53  ;;  %v4912_v16 = vadd.f32 %v13035_v23, %v6255_v2 }
0x1a62   :  { %v4871_v45 = vsub.f32 %v4855_v43, %v13044_v8  ;;  %v4873_v19 = vsub.f32 %v4857_v50, %v13045_v11  ;;  %v4911_v58 = vadd.f32 %v13038_v21, %v6254_v33  ;;  %v4913_v44 = vadd.f32 %v13039_v41, %v6256_v28 }
0x1a63   :  { %v4918_v4 = vadd.f32 %v13040_v39, %v6261_v14  ;;  %v4920_v9 = vadd.f32 %v13041_v18, %v6263_v32  ;;  %v4926_v1 = vmax.f32 %v4910_v46, 0.0  ;;  %v4928_v41 = vmax.f32 %v4912_v16, 0.0 }
0x1a64   :  { %v6262_v15 = vclamps-f32 %v4871_v45, 0.03137255  ;;  %v6264_v40 = vclamps-f32 %v4873_v19, 0.03137255  ;;  %v4927_v63 = vmax.f32 %v4911_v58, 0.0  ;;  %v4929_v21 = vmax.f32 %v4913_v44, 0.0 }
0x1a65   :  { %v4934_v38 = vmax.f32 %v4918_v4, 0.0  ;;  %v4936_v22 = vmax.f32 %v4920_v9, 0.0  ;;  %v11312_v43 = vmin.f32 %v4926_v1, 1.0  ;;  %v13054_v45 = vld [vmem:[#allocation52_spill] sm:$0xff]  ;;  %v13056_v58 = vld [vmem:[#allocation50_spill] sm:$0xff] }
0x1a66   :  { %v4919_v17 = vadd.f32 %v13044_v8, %v6262_v15  ;;  %v4921_v36 = vadd.f32 %v13045_v11, %v6264_v40  ;;  %v11304_v2 = vmin.f32 %v4927_v63, 1.0  ;;  %v11308_v18 = vmin.f32 %v4929_v21, 1.0  ;;  %v13055_v19 = vld [vmem:[#allocation24_spill] sm:$0xff] }
0x1a67   :  { %v11300_v53 = vmin.f32 %v4934_v38, 1.0  ;;  %v11302_v23 = vmin.f32 %v4936_v22, 1.0  ;;  %13052 = vst [vmem:[#allocation67_spill] sm:$0xff] %v11312_v43  ;;  %v11314_v11 = vmin.f32 %v4928_v41, 1.0 }
0x1a68   :  { %v4935_v33 = vmax.f32 %v4919_v17, 0.0  ;;  %v4937_v47 = vmax.f32 %v4921_v36, 0.0  ;;  %13048 = vst [vmem:[#allocation28_spill] sm:$0xff] %v11304_v2  ;;  %13050 = vst [vmem:[#allocation41_spill] sm:$0xff] %v11308_v18 }
0x1a69   :  { %13046 = vst [vmem:[#allocation56_spill] sm:$0xff] %v11300_v53  ;;  %13047 = vst [vmem:[#allocation58_spill] sm:$0xff] %v11302_v23  ;;  %v4958_v32 = vpack.c.bf16 %v11300_v53, %v11312_v43  ;;  %v4960_v8 = vpack.c.bf16 %v11302_v23, %v11314_v11  ;;  %v13064_v53 = vld [vmem:[#allocation23_spill] sm:$0xff]  ;;  %v13070_v43 = vld [vmem:[#allocation44_spill] sm:$0xff] }
0x1a6a   :  { %v11306_v39 = vmin.f32 %v4935_v33, 1.0  ;;  %v11310_v28 = vmin.f32 %v4937_v47, 1.0  ;;  %13053 = vst [vmem:[#allocation62_spill] sm:$0xff] %v11314_v11  ;;  %v13069_v11 = vld [vmem:[#allocation34_spill] sm:$0xff] }
0x1a6c   :  { %13049 = vst [vmem:[#allocation66_spill] sm:$0xff] %v11306_v39  ;;  %13051 = vst [vmem:[#allocation51_spill] sm:$0xff] %v11310_v28  ;;  %v4959_v50 = vpack.c.bf16 %v11306_v39, %v11304_v2  ;;  %v4961_v14 = vpack.c.bf16 %v11310_v28, %v11308_v18  ;;  %v13065_v2 = vld [vmem:[#allocation60_spill] sm:$0xff] }
0x1a6e   :  { %4998 = vmatprep.mubr.bf16.mxu0 %v4959_v50  ;;  %5039 = vmatprep.mubr.bf16.mxu1 %v4961_v14  ;;  %v13057_v50 = vld [vmem:[#allocation13_spill] sm:$0xff]  ;;  %v13058_v14 = vld [vmem:[#allocation35_spill] sm:$0xff] }
0x1a6f   :  { %4999 = vmatmul.mubr.bf16.vlgmr.msra.gmra.mrb[128].mxu0 %v4958_v32  ;;  %5040 = vmatmul.mubr.bf16.vlgmr.msra.gmra.mrb[128].mxu1 %v4960_v8 }
0x1a70   :  { %7626 = vmatpush3.bf16.msra.mxu0 %v11148_v5  ;;  %7648 = vmatpush3.bf16.msra.mxu1 %v11151_v37 }
0x1a71   :  { %7627 = vmatprep.subr.bf16.mxu0 %v11156_v31  ;;  %7649 = vmatprep.subr.bf16.mxu1 %v11159_v55 }
0x1a74   :  { %7628 = vmatpush3.bf16.msra.mxu0 %v11162_v49  ;;  %7650 = vmatpush3.bf16.msra.mxu1 %v11165_v26 }
0x1a75   :  { %7629 = vmatprep.subr.bf16.mxu0 %v11168_v62  ;;  %7651 = vmatprep.subr.bf16.mxu1 %v11171_v25 }
0x1a78   :  { %7630 = vmatpush3.bf16.msra.mxu0 %v11174_v51  ;;  %7652 = vmatpush3.bf16.msra.mxu1 %v11177_v57 }
0x1a79   :  { %7631 = vmatprep.subr.bf16.mxu0 %v11180_v52  ;;  %7653 = vmatprep.subr.bf16.mxu1 %v11183_v7 }
0x1a7c   :  { %7632 = vmatpush3.bf16.msra.mxu0 %v11186_v59  ;;  %7654 = vmatpush3.bf16.msra.mxu1 %v11189_v30 }
0x1a7d   :  { %7633 = vmatprep.subr.bf16.mxu0 %v11192_v13  ;;  %7655 = vmatprep.subr.bf16.mxu1 %v11195_v12 }
0x1a80   :  { %7634 = vmatpush3.bf16.msra.mxu0 %v11198_v10  ;;  %7656 = vmatpush3.bf16.msra.mxu1 %v11201_v27 }
0x1a81   :  { %7635 = vmatprep.subr.bf16.mxu0 %v11204_v29  ;;  %7657 = vmatprep.subr.bf16.mxu1 %v11207_v6 }
0x1a84   :  { %7636 = vmatpush3.bf16.msra.mxu0 %v11210_v0  ;;  %7658 = vmatpush3.bf16.msra.mxu1 %v13054_v45 }
0x1a85   :  { %7637 = vmatprep.subr.bf16.mxu0 %v13055_v19  ;;  %7659 = vmatprep.subr.bf16.mxu1 %v13056_v58 }
0x1a88   :  { %7638 = vmatpush3.bf16.msra.mxu0 %v11222_v35  ;;  %7660 = vmatpush3.bf16.msra.mxu1 %v11225_v60 }
0x1a89   :  { %7639 = vmatprep.subr.bf16.mxu0 %v11228_v61  ;;  %7661 = vmatprep.subr.bf16.mxu1 %v11231_v56 }
0x1a8c   :  { %7640 = vmatpush3.bf16.msra.mxu0 %v11234_v24  ;;  %7662 = vmatpush3.bf16.msra.mxu1 %v11237_v48  ;;  %v13072_v48 = vld [vmem:[#allocation72_spill] sm:$0xff] }
0x1a8d   :  { %7669 = vmatprep.subr.bf16.mxu0 %v10844_v20  ;;  %7687 = vmatprep.subr.bf16.mxu1 %v10847_v42 }
0x1a96   :  { %v4730_v44 = vpop.f32.mrb[124].mxu0  ;;  %v4773_v46 = vpop.f32.mrb[124].mxu1 }
0x1a97   :  { %v4802_v16 = vand.u32 2147483648, %v4730_v44  ;;  %v4804_v4 = vand.u32 2147483648, %v4773_v46  ;;  %v4732_v9 = vpop.f32.mrb[125].mxu0  ;;  %v4775_v15 = vpop.f32.mrb[125].mxu1  ;;  %v13059_v46 = vld [vmem:[#allocation37_spill] sm:$0xff] }
0x1a98   :  { %v4803_v40 = vand.u32 2147483648, %v4732_v9  ;;  %v4805_v38 = vand.u32 2147483648, %v4775_v15  ;;  %v4734_v22 = vpop.f32.mrb[126].mxu0  ;;  %v4777_v17 = vpop.f32.mrb[126].mxu1  ;;  %v13060_v9 = vld [vmem:[#allocation42_spill] sm:$0xff] }
0x1a99   :  { %v4818_v63 = vor.u32 1006665857, %v4802_v16  ;;  %v4820_v36 = vor.u32 1006665857, %v4804_v4  ;;  %v4810_v21 = vand.u32 2147483648, %v4734_v22  ;;  %v4812_v1 = vand.u32 2147483648, %v4777_v17 }
0x1a9a   :  { %v4819_v41 = vor.u32 1006665857, %v4803_v40  ;;  %v4821_v33 = vor.u32 1006665857, %v4805_v38  ;;  %v4736_v47 = vpop.f32.mrb[127].mxu0  ;;  %v4779_v20 = vpop.f32.mrb[127].mxu1 }
0x1a9b   :  { %v4850_v42 = vadd.f32 %v4818_v63, %v13057_v50  ;;  %v4852_v32 = vadd.f32 %v4820_v36, %v13058_v14  ;;  %v4826_v8 = vor.u32 1006665857, %v4810_v21  ;;  %v4828_v44 = vor.u32 1006665857, %v4812_v1  ;;  %v13061_v16 = vld [vmem:[#allocation65_spill] sm:$0xff]  ;;  %v13062_v22 = vld [vmem:[#allocation59_spill] sm:$0xff] }
0x1a9c   :  { %v4851_v28 = vadd.f32 %v4819_v41, %v13059_v46  ;;  %v4853_v15 = vadd.f32 %v4821_v33, %v13060_v9  ;;  %v4811_v39 = vand.u32 2147483648, %v4736_v47  ;;  %v4813_v23 = vand.u32 2147483648, %v4779_v20  ;;  %v13063_v40 = vld [vmem:[#allocation36_spill] sm:$0xff]  ;;  %v13067_v46 = vld [vmem:[#allocation69_spill] sm:$0xff]  ;;  %v13068_v47 = vld [vmem:[#allocation70_spill] sm:$0xff] }
0x1a9d   :  { %v4866_v4 = vsub.f32 %v4850_v42, %v13061_v16  ;;  %v4868_v17 = vsub.f32 %v4852_v32, %v13062_v22  ;;  %v4858_v38 = vadd.f32 %v4826_v8, %v13063_v40  ;;  %v4860_v18 = vadd.f32 %v4828_v44, %v13064_v53  ;;  %v13066_v50 = vld [vmem:[#allocation68_spill] sm:$0xff]  ;;  %v13071_v44 = vld [vmem:[#allocation71_spill] sm:$0xff] }
0x1a9e   :  { %v4867_v63 = vsub.f32 %v4851_v28, %v13065_v2  ;;  %v4869_v36 = vsub.f32 %v4853_v15, %v13066_v50  ;;  %v4827_v21 = vor.u32 1006665857, %v4811_v39  ;;  %v4829_v1 = vor.u32 1006665857, %v4813_v23 }
0x1a9f   :  { %v6257_v14 = vclamps-f32 %v4866_v4, 0.03137255  ;;  %v6259_v41 = vclamps-f32 %v4868_v17, 0.03137255  ;;  %v4874_v33 = vsub.f32 %v4858_v38, %v13067_v46  ;;  %v4876_v20 = vsub.f32 %v4860_v18, %v13068_v47 }
0x1aa0   :  { %v6258_v9 = vclamps-f32 %v4867_v63, 0.03137255  ;;  %v6260_v42 = vclamps-f32 %v4869_v36, 0.03137255  ;;  %v4859_v32 = vadd.f32 %v4827_v21, %v13069_v11  ;;  %v4861_v8 = vadd.f32 %v4829_v1, %v13070_v43 }
0x1aa1   :  { %v6265_v40 = vclamps-f32 %v4874_v33, 0.03137255  ;;  %v6267_v53 = vclamps-f32 %v4876_v20, 0.03137255  ;;  %v4914_v4 = vadd.f32 %v13061_v16, %v6257_v14  ;;  %v4916_v18 = vadd.f32 %v13062_v22, %v6259_v41 }
0x1aa2   :  { %v4875_v28 = vsub.f32 %v4859_v32, %v13071_v44  ;;  %v4877_v15 = vsub.f32 %v4861_v8, %v13072_v48  ;;  %v4915_v23 = vadd.f32 %v13065_v2, %v6258_v9  ;;  %v4917_v39 = vadd.f32 %v13066_v50, %v6260_v42 }
0x1aa3   :  { %v4922_v17 = vadd.f32 %v13067_v46, %v6265_v40  ;;  %v4924_v11 = vadd.f32 %v13068_v47, %v6267_v53  ;;  %v4930_v20 = vmax.f32 %v4914_v4, 0.0  ;;  %v4932_v50 = vmax.f32 %v4916_v18, 0.0  ;;  %v13085_v4 = vld [vmem:[#allocation40_spill] sm:$0xff]  ;;  %v13086_v18 = vld [vmem:[#allocation29_spill] sm:$0xff] }
0x1aa4   :  { %v6266_v38 = vclamps-f32 %v4875_v28, 0.03137255  ;;  %v6268_v43 = vclamps-f32 %v4877_v15, 0.03137255  ;;  %v4931_v1 = vmax.f32 %v4915_v23, 0.0  ;;  %v4933_v2 = vmax.f32 %v4917_v39, 0.0 }
0x1aa5   :  { %v4938_v63 = vmax.f32 %v4922_v17, 0.0  ;;  %v4940_v36 = vmax.f32 %v4924_v11, 0.0  ;;  %v11392_v32 = vmin.f32 %v4930_v20, 1.0  ;;  %v13081_v28 = vld [vmem:[#allocation43_spill] sm:$0xff]  ;;  %v13082_v15 = vld [vmem:[#allocation73_spill] sm:$0xff]  ;;  %v13083_v23 = vld [vmem:[#allocation74_spill] sm:$0xff] }
0x1aa6   :  { %v4923_v21 = vadd.f32 %v13071_v44, %v6266_v38  ;;  %v4925_v33 = vadd.f32 %v13072_v48, %v6268_v43  ;;  %v11384_v41 = vmin.f32 %v4931_v1, 1.0  ;;  %v11388_v47 = vmin.f32 %v4933_v2, 1.0  ;;  %v13084_v39 = vld [vmem:[#allocation12_spill] sm:$0xff]  ;;  %v13087_v17 = vld [vmem:[#allocation33_spill] sm:$0xff]  ;;  %v13088_v11 = vld [vmem:[#allocation75_spill] sm:$0xff] }
0x1aa7   :  { %v11380_v14 = vmin.f32 %v4938_v63, 1.0  ;;  %v11382_v22 = vmin.f32 %v4940_v36, 1.0  ;;  %13079 = vst [vmem:[#allocation52_spill] sm:$0xff] %v11392_v32  ;;  %v11394_v48 = vmin.f32 %v4932_v50, 1.0  ;;  %v13089_v38 = vld [vmem:[#allocation32_spill] sm:$0xff]  ;;  %v13090_v43 = vld [vmem:[#allocation18_spill] sm:$0xff] }
0x1aa8   :  { %v4939_v9 = vmax.f32 %v4923_v21, 0.0  ;;  %v4941_v16 = vmax.f32 %v4925_v33, 0.0  ;;  %13075 = vst [vmem:[#allocation57_spill] sm:$0xff] %v11384_v41  ;;  %13077 = vst [vmem:[#allocation49_spill] sm:$0xff] %v11388_v47  ;;  %v13091_v63 = vld [vmem:[#allocation20_spill] sm:$0xff]  ;;  %v13092_v36 = vld [vmem:[#allocation26_spill] sm:$0xff] }
0x1aa9   :  { %13073 = vst [vmem:[#allocation64_spill] sm:$0xff] %v11380_v14  ;;  %13074 = vst [vmem:[#allocation46_spill] sm:$0xff] %v11382_v22  ;;  %v4962_v53 = vpack.c.bf16 %v11380_v14, %v11392_v32  ;;  %v4964_v44 = vpack.c.bf16 %v11382_v22, %v11394_v48  ;;  %v13093_v21 = vld [vmem:[#allocation17_spill] sm:$0xff]  ;;  %v13094_v1 = vld [vmem:[#allocation38_spill] sm:$0xff] }
0x1aaa   :  { %v11386_v46 = vmin.f32 %v4939_v9, 1.0  ;;  %v11390_v42 = vmin.f32 %v4941_v16, 1.0  ;;  %13080 = vst [vmem:[#allocation24_spill] sm:$0xff] %v11394_v48  ;;  %v13095_v33 = vld [vmem:[#allocation39_spill] sm:$0xff]  ;;  %v13097_v20 = vld [vmem:[#allocation16_spill] sm:$0xff]  ;;  %v13100_v16 = vld [vmem:[#allocation14_spill] sm:$0xff] }
0x1aab   :  { %v13096_v2 = vld [vmem:[#allocation19_spill] sm:$0xff]  ;;  %v13108_v14 = vld [vmem:[#allocation25_spill] sm:$0xff] }
0x1aac   :  { %13076 = vst [vmem:[#allocation63_spill] sm:$0xff] %v11386_v46  ;;  %13078 = vst [vmem:[#allocation61_spill] sm:$0xff] %v11390_v42  ;;  %v4963_v8 = vpack.c.bf16 %v11386_v46, %v11384_v41  ;;  %v4965_v40 = vpack.c.bf16 %v11390_v42, %v11388_v47  ;;  %v13098_v50 = vld [vmem:[#allocation55_spill] sm:$0xff]  ;;  %v13105_v42 = vld [vmem:[#allocation22_spill] sm:$0xff] }
0x1aad   :  { %v13099_v9 = vld [vmem:[#allocation47_spill] sm:$0xff]  ;;  %v13106_v46 = vld [vmem:[#allocation30_spill] sm:$0xff]  ;;  %v13109_v47 = vld [vmem:[#allocation21_spill] sm:$0xff] }
0x1aae   :  { %5080 = vmatprep.mubr.bf16.mxu0 %v4963_v8  ;;  %5121 = vmatprep.mubr.bf16.mxu1 %v4965_v40  ;;  %v13101_v8 = vld [vmem:[#allocation76_spill] sm:$0xff]  ;;  %v13102_v40 = vld [vmem:[#allocation31_spill] sm:$0xff] }
0x1aaf   :  { %5081 = vmatmul.mubr.bf16.vlgmr.msra.gmra.mrb[132].mxu0 %v4962_v53  ;;  %5122 = vmatmul.mubr.bf16.vlgmr.msra.gmra.mrb[132].mxu1 %v4964_v44  ;;  %v13103_v53 = vld [vmem:[#allocation27_spill] sm:$0xff]  ;;  %v13104_v44 = vld [vmem:[#allocation48_spill] sm:$0xff] }
0x1ab0   :  { %7670 = vmatpush3.bf16.xpose.msra.mxu0 %v11042_v54  ;;  %7688 = vmatpush3.bf16.xpose.msra.mxu1 %v11045_v34  ;;  %v13107_v22 = vld [vmem:[#allocation15_spill] sm:$0xff] }
0x1ab1   :  { %7671 = vmatprep.subr.bf16.mxu0 %v11048_v3  ;;  %7689 = vmatprep.subr.bf16.mxu1 %v13081_v28 }
0x1ab8   :  { %7672 = vmatpush3.bf16.xpose.msra.mxu0 %v13082_v15  ;;  %7690 = vmatpush3.bf16.xpose.msra.mxu1 %v13083_v23 }
0x1ab9   :  { %7673 = vmatprep.subr.bf16.mxu0 %v13084_v39  ;;  %7691 = vmatprep.subr.bf16.mxu1 %v13085_v4 }
0x1ac0   :  { %7674 = vmatpush3.bf16.xpose.msra.mxu0 %v13086_v18  ;;  %7692 = vmatpush3.bf16.xpose.msra.mxu1 %v13087_v17 }
0x1ac1   :  { %7675 = vmatprep.subr.bf16.mxu0 %v13088_v11  ;;  %7693 = vmatprep.subr.bf16.mxu1 %v13089_v38 }
0x1ac8   :  { %7676 = vmatpush3.bf16.xpose.msra.mxu0 %v13090_v43  ;;  %7694 = vmatpush3.bf16.xpose.msra.mxu1 %v13091_v63 }
0x1ac9   :  { %7677 = vmatprep.subr.bf16.mxu0 %v13092_v36  ;;  %7695 = vmatprep.subr.bf16.mxu1 %v13093_v21 }
0x1ad0   :  { %7678 = vmatpush3.bf16.xpose.msra.mxu0 %v13094_v1  ;;  %7696 = vmatpush3.bf16.xpose.msra.mxu1 %v13095_v33 }
0x1ad1   :  { %7679 = vmatprep.subr.bf16.mxu0 %v13096_v2  ;;  %7697 = vmatprep.subr.bf16.mxu1 %v13097_v20 }
0x1ad8   :  { %7680 = vmatpush3.bf16.xpose.msra.mxu0 %v13098_v50  ;;  %7698 = vmatpush3.bf16.xpose.msra.mxu1 %v13099_v9 }
0x1ad9   :  { %7681 = vmatprep.subr.bf16.mxu0 %v13100_v16  ;;  %7699 = vmatprep.subr.bf16.mxu1 %v13101_v8 }
0x1ae0   :  { %7682 = vmatpush3.bf16.xpose.msra.mxu0 %v13102_v40  ;;  %7700 = vmatpush3.bf16.xpose.msra.mxu1 %v13103_v53 }
0x1ae1   :  { %7683 = vmatprep.subr.bf16.mxu0 %v13104_v44  ;;  %7701 = vmatprep.subr.bf16.mxu1 %v13105_v42 }
0x1ae8   :  { %7684 = vmatpush3.bf16.xpose.msra.mxu0 %v13106_v46  ;;  %7702 = vmatpush3.bf16.xpose.msra.mxu1 %v13107_v22  ;;  %v11439_v46 = vld [vmem:[%s11753_s3] ss:$0 sm:$0xff]  ;;  %s8546_s3 = smov [#allocation8]  }
0x1ae9   :  { %7705 = vmatprep.subr.bf16.mxu0 %v13108_v14  ;;  %7723 = vmatprep.subr.bf16.mxu1 %v13109_v47  ;;  %s6061_s18 = sshll.u32 %s8546_s3, 4  ;;  %s6062_s18 = int_to_ptr.vmem [resolvable:$true] %s6061_s18 }
0x1aea   :  { %s8510_s19 = scalar_lea.vmem %s6062_s18, 2048  ;;  %p8515_p11 = scmp.lt.s32.totalorder %s6062_s18, %s6062_s18 }
0x1aeb   :  { %p8511_p10 = scmp.ne.s32.totalorder %s6062_s18, %s8510_s19  ;;  %p8516_p12 = scmp.lt.s32.totalorder %s8510_s19, %s8510_s19 }
0x1aed   :  { %p8517_p13 = por %p8516_p12, %p8515_p11 }
0x1aef   :  { %p8518_p0 = pnand %p8517_p13, %p8511_p10 }
0x1b42   :  { %v7597_v41 = vpop.f32.mrb[128].mxu0  ;;  %v7619_v48 = vpop.f32.mrb[128].mxu1 }
0x1b43   :  { %v7598_v32 = vpop.f32.mrb[129].mxu0  ;;  %v7620_v8 = vpop.f32.mrb[129].mxu1 }
0x1b44   :  { %v7599_v16 = vadd.f32 %v7598_v32, %v7597_v41  ;;  %v7621_v40 = vadd.f32 %v7620_v8, %v7619_v48  ;;  %v7600_v9 = vpop.f32.mrb[130].mxu0  ;;  %v7622_v53 = vpop.f32.mrb[130].mxu1 }
0x1b45   :  { %v7601_v50 = vpop.f32.mrb[131].mxu0  ;;  %v7623_v44 = vpop.f32.mrb[131].mxu1 }
0x1b46   :  { %v5001_v22 = vadd.f32 %v11439_v46, %v7599_v16  ;;  %v7602_v14 = vadd.f32 %v7601_v50, %v7600_v9  ;;  %v7624_v42 = vadd.f32 %v7623_v44, %v7622_v53 }
0x1b48   :  { %v5042_v47 = vadd.f32 %v7621_v40, %v5001_v22  ;;  %v5004_v20 = vadd.f32 %v11439_v46, %v7602_v14 }
0x1b4a   :  { %v5045_v2 = vadd.f32 %v7624_v42, %v5004_v20 }
0x1b82   :  { %v7641_v33 = vpop.f32.mrb[132].mxu0  ;;  %v7663_v41 = vpop.f32.mrb[132].mxu1 }
0x1b83   :  { %v7642_v32 = vpop.f32.mrb[133].mxu0  ;;  %v7664_v48 = vpop.f32.mrb[133].mxu1 }
0x1b84   :  { %v7643_v8 = vadd.f32 %v7642_v32, %v7641_v33  ;;  %v7665_v1 = vadd.f32 %v7664_v48, %v7663_v41  ;;  %v7644_v21 = vpop.f32.mrb[134].mxu0  ;;  %v7666_v36 = vpop.f32.mrb[134].mxu1  ;;  %v13112_v32 = vld [vmem:[#allocation45_spill] sm:$0xff]  ;;  %v11475_v48 = vld [vmem:[#allocation7 + $0x40] sm:$0xff]  }
0x1b85   :  { %v7645_v63 = vpop.f32.mrb[135].mxu0  ;;  %v7667_v43 = vpop.f32.mrb[135].mxu1 }
0x1b86   :  { %v5083_v38 = vadd.f32 %v7643_v8, %v5042_v47  ;;  %v7646_v11 = vadd.f32 %v7645_v63, %v7644_v21  ;;  %v7668_v17 = vadd.f32 %v7667_v43, %v7666_v36  ;;  %v13110_v36 = vld [vmem:[#allocation53_spill] sm:$0xff]  ;;  %v11478_v8 = vld [vmem:[#allocation7 + $0xc0] sm:$0xff]  }
0x1b88   :  { %v5086_v16 = vadd.f32 %v7646_v11, %v5045_v2  ;;  %v5124_v50 = vadd.f32 %v7665_v1, %v5083_v38  ;;  %v13111_v1 = vld [vmem:[#allocation54_spill] sm:$0xff] }
0x1b8a   :  { %5130 = vmax.xlane.f32.xlu0 %v5124_v50  ;;  %v5127_v22 = vadd.f32 %v7668_v17, %v5086_v16  ;;  %v13113_v16 = vld [vmem:[#allocation33_spill] sm:$0xff] }
0x1b8c   :  { %5132 = vmax.xlane.f32.xlu1 %v5127_v22 }
0x1c17   :  { %v5131_v14 = vpop.xlane.xlu0 %5130 }
0x1c18   :  { %v5134_v42 = vsub.f32 %v5124_v50, %v5131_v14  ;;  %v13114_v50 = vld [vmem:[#allocation75_spill] sm:$0xff] }
0x1c19   :  { %v5133_v20 = vpop.xlane.xlu1 %5132  ;;  %v13125_v14 = vld [vmem:[#allocation47_spill] sm:$0xff] }
0x1c1a   :  { %v5136_v9 = vmul.f32 1.442695, %v5134_v42  ;;  %v5135_v40 = vsub.f32 %v5127_v22, %v5133_v20  ;;  %v13124_v22 = vld [vmem:[#allocation55_spill] sm:$0xff]  ;;  %v13126_v42 = vld [vmem:[#allocation14_spill] sm:$0xff]  ;;  %v13127_v20 = vld [vmem:[#allocation76_spill] sm:$0xff] }
0x1c1c   :  { %8040 = vpow2.f32 %v5136_v9  ;;  %v5138_v33 = vmul.f32 1.442695, %v5135_v40  ;;  %v13128_v9 = vld [vmem:[#allocation31_spill] sm:$0xff] }
0x1c1d   :  { %v13129_v40 = vld [vmem:[#allocation27_spill] sm:$0xff] }
0x1c1e   :  { %8042 = vpow2.f32 %v5138_v33  ;;  %v13130_v33 = vld [vmem:[#allocation48_spill] sm:$0xff] }
0x1c26   :  { %v8041_v53 = vpop.eup %8040 }
0x1c27   :  { %5140 = vadd.xlane.f32.xlu0 %v8041_v53 }
0x1c28   :  { %v8043_v44 = vpop.eup %8042 }
0x1c29   :  { %5142 = vadd.xlane.f32.xlu1 %v8043_v44 }
0x1cb4   :  { %v5141_v47 = vpop.xlane.xlu0 %5140 }
0x1cb5   :  { %8044 = vrcp.f32 %v5141_v47  ;;  %v13133_v47 = vld [vmem:[#allocation15_spill] sm:$0xff] }
0x1cb6   :  { %v5143_v43 = vpop.xlane.xlu1 %5142 }
0x1cb7   :  { %8046 = vrcp.f32 %v5143_v43  ;;  %v13134_v43 = vld [vmem:[#allocation25_spill] sm:$0xff] }
0x1cbf   :  { %v8045_v11 = vpop.eup %8044 }
0x1cc0   :  { %v5145_v38 = vmul.f32 %v8045_v11, %v8041_v53  ;;  %v13131_v53 = vld [vmem:[#allocation22_spill] sm:$0xff]  ;;  %v13135_v11 = vld [vmem:[#allocation21_spill] sm:$0xff] }
0x1cc1   :  { %v8047_v17 = vpop.eup %8046 }
0x1cc2   :  { %v5147_v63 = vmul.f32 %v8047_v17, %v8043_v44  ;;  %v5148_v21 = vsub.f32 %v5145_v38, %v13110_v36  ;;  %v13132_v44 = vld [vmem:[#allocation30_spill] sm:$0xff] }
0x1cc4   :  { %v5149_v2 = vsub.f32 %v5147_v63, %v13111_v1 }
0x1cc6   :  { %v5150_v41 = vpack.c.bf16 %v5149_v2, %v5148_v21 }
0x1cc8   :  { %7685 = vmatprep.mubr.bf16.mxu0 %v5150_v41  ;;  %7703 = vmatprep.mubr.bf16.mxu1 %v5150_v41 }
0x1cc9   :  { %7686 = vmatmul.mubr.bf16.vlgmr.msra.gmra.mrb[136].mxu0 %v5150_v41  ;;  %7704 = vmatmul.mubr.bf16.vlgmr.msra.gmra.mrb[136].mxu1 %v5150_v41 }
0x1cca   :  { %7706 = vmatpush3.bf16.xpose.msra.mxu0 %v11148_v5  ;;  %7724 = vmatpush3.bf16.xpose.msra.mxu1 %v11151_v37 }
0x1ccb   :  { %7721 = vmatprep.mubr.bf16.mxu0 %v5150_v41  ;;  %7739 = vmatprep.mubr.bf16.mxu1 %v5150_v41 }
0x1ccc   :  { %7707 = vmatprep.subr.bf16.mxu0 %v11156_v31  ;;  %7725 = vmatprep.subr.bf16.mxu1 %v11159_v55 }
0x1cd2   :  { %7708 = vmatpush3.bf16.xpose.msra.mxu0 %v11162_v49  ;;  %7726 = vmatpush3.bf16.xpose.msra.mxu1 %v11165_v26 }
0x1cd3   :  { %7709 = vmatprep.subr.bf16.mxu0 %v11168_v62  ;;  %7727 = vmatprep.subr.bf16.mxu1 %v11171_v25 }
0x1cda   :  { %7710 = vmatpush3.bf16.xpose.msra.mxu0 %v11174_v51  ;;  %7728 = vmatpush3.bf16.xpose.msra.mxu1 %v11177_v57 }
0x1cdb   :  { %7711 = vmatprep.subr.bf16.mxu0 %v11180_v52  ;;  %7729 = vmatprep.subr.bf16.mxu1 %v11183_v7 }
0x1ce2   :  { %7712 = vmatpush3.bf16.xpose.msra.mxu0 %v11186_v59  ;;  %7730 = vmatpush3.bf16.xpose.msra.mxu1 %v11189_v30 }
0x1ce3   :  { %7713 = vmatprep.subr.bf16.mxu0 %v11192_v13  ;;  %7731 = vmatprep.subr.bf16.mxu1 %v11195_v12 }
0x1cea   :  { %7714 = vmatpush3.bf16.xpose.msra.mxu0 %v11198_v10  ;;  %7732 = vmatpush3.bf16.xpose.msra.mxu1 %v11201_v27 }
0x1ceb   :  { %7715 = vmatprep.subr.bf16.mxu0 %v11204_v29  ;;  %7733 = vmatprep.subr.bf16.mxu1 %v11207_v6 }
0x1cf2   :  { %7716 = vmatpush3.bf16.xpose.msra.mxu0 %v11210_v0  ;;  %7734 = vmatpush3.bf16.xpose.msra.mxu1 %v13054_v45 }
0x1cf3   :  { %7717 = vmatprep.subr.bf16.mxu0 %v13055_v19  ;;  %7735 = vmatprep.subr.bf16.mxu1 %v13056_v58 }
0x1cfa   :  { %7718 = vmatpush3.bf16.xpose.msra.mxu0 %v11222_v35  ;;  %7736 = vmatpush3.bf16.xpose.msra.mxu1 %v11225_v60 }
0x1cfb   :  { %7719 = vmatprep.subr.bf16.mxu0 %v11228_v61  ;;  %7737 = vmatprep.subr.bf16.mxu1 %v11231_v56 }
0x1d02   :  { %7720 = vmatpush3.bf16.xpose.msra.mxu0 %v11234_v24  ;;  %7738 = vmatpush3.bf16.xpose.msra.mxu1 %v13112_v32 }
0x1d03   :  { %7741 = vmatprep.subr.bf16.mxu0 %v11475_v48  ;;  %7763 = vmatprep.subr.bf16.mxu1 %v11478_v8 }
0x1d09   :  { %7722 = vmatmul.mubr.bf16.vlgmr.msra.gmra.mrb[140].mxu0 %v5150_v41  ;;  %7740 = vmatmul.mubr.bf16.vlgmr.msra.gmra.mrb[140].mxu1 %v5150_v41 }
0x1d0a   :  { %7742 = vmatpush3.bf16.msra.mxu0 %v11042_v54  ;;  %7764 = vmatpush3.bf16.msra.mxu1 %v11045_v34  ;;  %v13115_v54 = vld [vmem:[#allocation32_spill] sm:$0xff]  ;;  %v13116_v34 = vld [vmem:[#allocation18_spill] sm:$0xff] }
0x1d0b   :  { %7743 = vmatprep.subr.bf16.mxu0 %v11048_v3  ;;  %7765 = vmatprep.subr.bf16.mxu1 %v13081_v28  ;;  %v13117_v3 = vld [vmem:[#allocation20_spill] sm:$0xff]  ;;  %v13118_v28 = vld [vmem:[#allocation26_spill] sm:$0xff] }
0x1d0e   :  { %7744 = vmatpush3.bf16.msra.mxu0 %v13082_v15  ;;  %7766 = vmatpush3.bf16.msra.mxu1 %v13083_v23  ;;  %v13119_v15 = vld [vmem:[#allocation17_spill] sm:$0xff]  ;;  %v13120_v23 = vld [vmem:[#allocation38_spill] sm:$0xff] }
0x1d0f   :  { %7745 = vmatprep.subr.bf16.mxu0 %v13084_v39  ;;  %7767 = vmatprep.subr.bf16.mxu1 %v13085_v4  ;;  %v13121_v39 = vld [vmem:[#allocation39_spill] sm:$0xff] }
0x1d10   :  { %v13122_v4 = vld [vmem:[#allocation19_spill] sm:$0xff] }
0x1d12   :  { %7746 = vmatpush3.bf16.msra.mxu0 %v13086_v18  ;;  %7768 = vmatpush3.bf16.msra.mxu1 %v13113_v16  ;;  %v13123_v18 = vld [vmem:[#allocation16_spill] sm:$0xff] }
0x1d13   :  { %7747 = vmatprep.subr.bf16.mxu0 %v13114_v50  ;;  %7769 = vmatprep.subr.bf16.mxu1 %v13115_v54 }
0x1d16   :  { %7748 = vmatpush3.bf16.msra.mxu0 %v13116_v34  ;;  %7770 = vmatpush3.bf16.msra.mxu1 %v13117_v3 }
0x1d17   :  { %7749 = vmatprep.subr.bf16.mxu0 %v13118_v28  ;;  %7771 = vmatprep.subr.bf16.mxu1 %v13119_v15 }
0x1d1a   :  { %7750 = vmatpush3.bf16.msra.mxu0 %v13120_v23  ;;  %7772 = vmatpush3.bf16.msra.mxu1 %v13121_v39 }
0x1d1b   :  { %7751 = vmatprep.subr.bf16.mxu0 %v13122_v4  ;;  %7773 = vmatprep.subr.bf16.mxu1 %v13123_v18 }
0x1d1e   :  { %7752 = vmatpush3.bf16.msra.mxu0 %v13124_v22  ;;  %7774 = vmatpush3.bf16.msra.mxu1 %v13125_v14  ;;  %v13136_v14 = vld [vmem:[#allocation67_spill] sm:$0xff] }
0x1d1f   :  { %7753 = vmatprep.subr.bf16.mxu0 %v13126_v42  ;;  %7775 = vmatprep.subr.bf16.mxu1 %v13127_v20  ;;  %v13137_v20 = vld [vmem:[#allocation62_spill] sm:$0xff] }
0x1d22   :  { %7754 = vmatpush3.bf16.msra.mxu0 %v13128_v9  ;;  %7776 = vmatpush3.bf16.msra.mxu1 %v13129_v40 }
0x1d23   :  { %7755 = vmatprep.subr.bf16.mxu0 %v13130_v33  ;;  %7777 = vmatprep.subr.bf16.mxu1 %v13131_v53  ;;  %v13138_v53 = vld [vmem:[#allocation28_spill] sm:$0xff] }
0x1d26   :  { %7756 = vmatpush3.bf16.msra.mxu0 %v13132_v44  ;;  %7778 = vmatpush3.bf16.msra.mxu1 %v13133_v47  ;;  %v13139_v47 = vld [vmem:[#allocation41_spill] sm:$0xff] }
0x1d27   :  { %7785 = vmatprep.subr.bf16.mxu0 %v13134_v43  ;;  %7807 = vmatprep.subr.bf16.mxu1 %v13135_v11 }
0x1d9c   :  { %v5185_v38 = vpop.f32.mrb[136].mxu0  ;;  %v5228_v17 = vpop.f32.mrb[136].mxu1 }
0x1d9d   :  { %v5339_v63 = vand.u32 2147483648, %v5185_v38  ;;  %v5341_v21 = vand.u32 2147483648, %v5228_v17  ;;  %v5187_v2 = vpop.f32.mrb[137].mxu0  ;;  %v5230_v41 = vpop.f32.mrb[137].mxu1  ;;  %v11517_v17 = vld [vmem:[#allocation2] sm:$0xff] }
0x1d9e   :  { %v5340_v16 = vand.u32 2147483648, %v5187_v2  ;;  %v5342_v50 = vand.u32 2147483648, %v5230_v41  ;;  %v5189_v54 = vpop.f32.mrb[138].mxu0  ;;  %v5232_v34 = vpop.f32.mrb[138].mxu1  ;;  %13140 = vst [vmem:[#allocation50_spill] sm:$0xff] %v11517_v17  ;;  %v13141_v41 = vld [vmem:[#allocation56_spill] sm:$0xff] }
0x1d9f   :  { %v5355_v3 = vor.u32 1006665857, %v5339_v63  ;;  %v5357_v28 = vor.u32 1006665857, %v5341_v21  ;;  %v5347_v15 = vand.u32 2147483648, %v5189_v54  ;;  %v5349_v23 = vand.u32 2147483648, %v5232_v34 }
0x1da0   :  { %v5356_v39 = vor.u32 1006665857, %v5340_v16  ;;  %v5358_v4 = vor.u32 1006665857, %v5342_v50  ;;  %v5191_v18 = vpop.f32.mrb[139].mxu0  ;;  %v5234_v22 = vpop.f32.mrb[139].mxu1 }
0x1da1   :  { %v5387_v42 = vadd.f32 %v5355_v3, %v13136_v14  ;;  %v5389_v9 = vadd.f32 %v5357_v28, %v13137_v20  ;;  %v5363_v40 = vor.u32 1006665857, %v5347_v15  ;;  %v5365_v33 = vor.u32 1006665857, %v5349_v23  ;;  %v11520_v21 = vld [vmem:[#allocation2 + $0x10] sm:$0xff]  ;;  %v11525_v34 = vld [vmem:[#allocation2 + $0x8] sm:$0xff] }
0x1da2   :  { %v5388_v44 = vadd.f32 %v5356_v39, %v13138_v53  ;;  %v5390_v43 = vadd.f32 %v5358_v4, %v13139_v47  ;;  %v5348_v11 = vand.u32 2147483648, %v5191_v18  ;;  %v5350_v38 = vand.u32 2147483648, %v5234_v22  ;;  %v13142_v50 = vld [vmem:[#allocation58_spill] sm:$0xff]  ;;  %13143 = vst [vmem:[#allocation13_spill] sm:$0xff] %v11525_v34  ;;  %v11528_v28 = vld [vmem:[#allocation2 + $0x18] sm:$0xff]  ;;  %v11531_v22 = vld [vmem:[#allocation2 + $0x40] sm:$0xff] }
0x1da3   :  { %v5403_v63 = vsub.f32 %v5387_v42, %v11517_v17  ;;  %v5405_v2 = vsub.f32 %v5389_v9, %v11520_v21  ;;  %v5395_v16 = vadd.f32 %v5363_v40, %v13141_v41  ;;  %v5397_v54 = vadd.f32 %v5365_v33, %v13142_v50  ;;  %13144 = vst [vmem:[#allocation35_spill] sm:$0xff] %v11528_v28  ;;  %v11534_v42 = vld [vmem:[#allocation2 + $0x50] sm:$0xff] }
0x1da4   :  { %v5404_v3 = vsub.f32 %v5388_v44, %v11525_v34  ;;  %v5406_v15 = vsub.f32 %v5390_v43, %v11528_v28  ;;  %v5364_v23 = vor.u32 1006665857, %v5348_v11  ;;  %v5366_v39 = vor.u32 1006665857, %v5350_v38  ;;  %v13145_v33 = vld [vmem:[#allocation66_spill] sm:$0xff]  ;;  %v13146_v44 = vld [vmem:[#allocation51_spill] sm:$0xff] }
0x1da5   :  { %v6269_v4 = vclamps-f32 %v5403_v63, 0.03137255  ;;  %v6271_v18 = vclamps-f32 %v5405_v2, 0.03137255  ;;  %v5411_v14 = vsub.f32 %v5395_v16, %v11531_v22  ;;  %v5413_v20 = vsub.f32 %v5397_v54, %v11534_v42  ;;  %v11539_v11 = vld [vmem:[#allocation2 + $0x48] sm:$0xff]  ;;  %v11542_v63 = vld [vmem:[#allocation2 + $0x58] sm:$0xff] }
0x1da6   :  { %v6270_v9 = vclamps-f32 %v5404_v3, 0.03137255  ;;  %v6272_v40 = vclamps-f32 %v5406_v15, 0.03137255  ;;  %v5396_v53 = vadd.f32 %v5364_v23, %v13145_v33  ;;  %v5398_v47 = vadd.f32 %v5366_v39, %v13146_v44 }
0x1da7   :  { %v6277_v41 = vclamps-f32 %v5411_v14, 0.03137255  ;;  %v6279_v43 = vclamps-f32 %v5413_v20, 0.03137255  ;;  %v5451_v54 = vadd.f32 %v11517_v17, %v6269_v4  ;;  %v5453_v3 = vadd.f32 %v11520_v21, %v6271_v18 }
0x1da8   :  { %v5412_v38 = vsub.f32 %v5396_v53, %v11539_v11  ;;  %v5414_v2 = vsub.f32 %v5398_v47, %v11542_v63  ;;  %v5452_v16 = vadd.f32 %v11525_v34, %v6270_v9  ;;  %v5454_v50 = vadd.f32 %v11528_v28, %v6272_v40 }
0x1da9   :  { %v5459_v15 = vadd.f32 %v11531_v22, %v6277_v41  ;;  %v5461_v23 = vadd.f32 %v11534_v42, %v6279_v43  ;;  %v5467_v34 = vmax.f32 %v5451_v54, 0.0  ;;  %v5469_v40 = vmax.f32 %v5453_v3, 0.0 }
0x1daa   :  { %v6278_v39 = vclamps-f32 %v5412_v38, 0.03137255  ;;  %v6280_v14 = vclamps-f32 %v5414_v2, 0.03137255  ;;  %v5468_v44 = vmax.f32 %v5452_v16, 0.0  ;;  %v5470_v9 = vmax.f32 %v5454_v50, 0.0 }
0x1dab   :  { %v5475_v20 = vmax.f32 %v5459_v15, 0.0  ;;  %v5477_v33 = vmax.f32 %v5461_v23, 0.0  ;;  %v11565_v16 = vmin.f32 %v5467_v34, 1.0  ;;  %v11567_v15 = vmin.f32 %v5469_v40, 1.0  ;;  %v11616_v34 = vld [vmem:[#allocation2 + $0x30] sm:$0xff] }
0x1dac   :  { %v5460_v53 = vadd.f32 %v11539_v11, %v6278_v39  ;;  %v5462_v47 = vadd.f32 %v11542_v63, %v6280_v14  ;;  %v11557_v41 = vmin.f32 %v5468_v44, 1.0  ;;  %v11561_v38 = vmin.f32 %v5470_v9, 1.0  ;;  %v13151_v39 = vld [vmem:[#allocation64_spill] sm:$0xff] }
0x1dad   :  { %v11553_v17 = vmin.f32 %v5475_v20, 1.0  ;;  %v11555_v18 = vmin.f32 %v5477_v33, 1.0  ;;  %v13152_v20 = vld [vmem:[#allocation46_spill] sm:$0xff] }
0x1dae   :  { %v5476_v28 = vmax.f32 %v5460_v53, 0.0  ;;  %v5478_v4 = vmax.f32 %v5462_v47, 0.0  ;;  %v11621_v53 = vld [vmem:[#allocation2 + $0x28] sm:$0xff]  ;;  %v11624_v47 = vld [vmem:[#allocation2 + $0x38] sm:$0xff] }
0x1daf   :  { %v5499_v3 = vpack.c.bf16 %v11553_v17, %v11565_v16 }
0x1db0   :  { %v11559_v43 = vmin.f32 %v5476_v28, 1.0  ;;  %v11563_v2 = vmin.f32 %v5478_v4, 1.0  ;;  %v5501_v28 = vpack.c.bf16 %v11555_v18, %v11567_v15 }
0x1db2   :  { %v5500_v50 = vpack.c.bf16 %v11559_v43, %v11557_v41  ;;  %v5502_v54 = vpack.c.bf16 %v11563_v2, %v11561_v38 }
0x1db4   :  { %5539 = vmatprep.mubr.bf16.mxu0 %v5500_v50  ;;  %5580 = vmatprep.mubr.bf16.mxu1 %v5502_v54 }
0x1db5   :  { %5540 = vmatmul.mubr.bf16.vlgmr.msra.gmra.mrb[144].mxu0 %v5499_v3  ;;  %5581 = vmatmul.mubr.bf16.vlgmr.msra.gmra.mrb[144].mxu1 %v5501_v28  ;;  %v11627_v3 = vld [vmem:[#allocation2 + $0x60] sm:$0xff] }
0x1db6   :  { %7786 = vmatpush3.bf16.msra.mxu0 %v11148_v5  ;;  %7808 = vmatpush3.bf16.msra.mxu1 %v11151_v37 }
0x1db7   :  { %7787 = vmatprep.subr.bf16.mxu0 %v11156_v31  ;;  %7809 = vmatprep.subr.bf16.mxu1 %v11159_v55 }
0x1dba   :  { %7788 = vmatpush3.bf16.msra.mxu0 %v11162_v49  ;;  %7810 = vmatpush3.bf16.msra.mxu1 %v11165_v26 }
0x1dbb   :  { %7789 = vmatprep.subr.bf16.mxu0 %v11168_v62  ;;  %7811 = vmatprep.subr.bf16.mxu1 %v11171_v25 }
0x1dbe   :  { %7790 = vmatpush3.bf16.msra.mxu0 %v11174_v51  ;;  %7812 = vmatpush3.bf16.msra.mxu1 %v11177_v57 }
0x1dbf   :  { %7791 = vmatprep.subr.bf16.mxu0 %v11180_v52  ;;  %7813 = vmatprep.subr.bf16.mxu1 %v11183_v7 }
0x1dc2   :  { %7792 = vmatpush3.bf16.msra.mxu0 %v11186_v59  ;;  %7814 = vmatpush3.bf16.msra.mxu1 %v11189_v30 }
0x1dc3   :  { %7793 = vmatprep.subr.bf16.mxu0 %v11192_v13  ;;  %7815 = vmatprep.subr.bf16.mxu1 %v11195_v12 }
0x1dc6   :  { %7794 = vmatpush3.bf16.msra.mxu0 %v11198_v10  ;;  %7816 = vmatpush3.bf16.msra.mxu1 %v11201_v27  ;;  %v13147_v10 = vld [vmem:[#allocation52_spill] sm:$0xff] }
0x1dc7   :  { %7795 = vmatprep.subr.bf16.mxu0 %v11204_v29  ;;  %7817 = vmatprep.subr.bf16.mxu1 %v11207_v6  ;;  %v13148_v29 = vld [vmem:[#allocation24_spill] sm:$0xff] }
0x1dca   :  { %7796 = vmatpush3.bf16.msra.mxu0 %v11210_v0  ;;  %7818 = vmatpush3.bf16.msra.mxu1 %v13054_v45  ;;  %v13150_v45 = vld [vmem:[#allocation49_spill] sm:$0xff] }
0x1dcb   :  { %7797 = vmatprep.subr.bf16.mxu0 %v13055_v19  ;;  %7819 = vmatprep.subr.bf16.mxu1 %v13056_v58 }
0x1dce   :  { %7798 = vmatpush3.bf16.msra.mxu0 %v11222_v35  ;;  %7820 = vmatpush3.bf16.msra.mxu1 %v11225_v60 }
0x1dcf   :  { %7799 = vmatprep.subr.bf16.mxu0 %v11228_v61  ;;  %7821 = vmatprep.subr.bf16.mxu1 %v11231_v56 }
0x1dd2   :  { %7800 = vmatpush3.bf16.msra.mxu0 %v11234_v24  ;;  %7822 = vmatpush3.bf16.msra.mxu1 %v13112_v32  ;;  %v13149_v24 = vld [vmem:[#allocation57_spill] sm:$0xff] }
0x1dd3   :  { %7829 = vmatprep.subr.bf16.mxu0 %v11475_v48  ;;  %7847 = vmatprep.subr.bf16.mxu1 %v11478_v8  ;;  %v11613_v48 = vld [vmem:[#allocation2 + $0x20] sm:$0xff] }
0x1ddc   :  { %v5271_v5 = vpop.f32.mrb[140].mxu0  ;;  %v5314_v37 = vpop.f32.mrb[140].mxu1 }
0x1ddd   :  { %v5343_v31 = vand.u32 2147483648, %v5271_v5  ;;  %v5345_v55 = vand.u32 2147483648, %v5314_v37  ;;  %v5273_v49 = vpop.f32.mrb[141].mxu0  ;;  %v5316_v26 = vpop.f32.mrb[141].mxu1  ;;  %v11630_v5 = vld [vmem:[#allocation2 + $0x70] sm:$0xff] }
0x1dde   :  { %v5344_v62 = vand.u32 2147483648, %v5273_v49  ;;  %v5346_v60 = vand.u32 2147483648, %v5316_v26  ;;  %v5275_v25 = vpop.f32.mrb[142].mxu0  ;;  %v5318_v61 = vpop.f32.mrb[142].mxu1  ;;  %v13153_v49 = vld [vmem:[#allocation63_spill] sm:$0xff] }
0x1ddf   :  { %v5359_v51 = vor.u32 1006665857, %v5343_v31  ;;  %v5361_v57 = vor.u32 1006665857, %v5345_v55  ;;  %v5351_v52 = vand.u32 2147483648, %v5275_v25  ;;  %v5353_v7 = vand.u32 2147483648, %v5318_v61 }
0x1de0   :  { %v5360_v59 = vor.u32 1006665857, %v5344_v62  ;;  %v5362_v30 = vor.u32 1006665857, %v5346_v60  ;;  %v5277_v13 = vpop.f32.mrb[143].mxu0  ;;  %v5320_v12 = vpop.f32.mrb[143].mxu1 }
0x1de1   :  { %v5391_v27 = vadd.f32 %v5359_v51, %v13147_v10  ;;  %v5393_v6 = vadd.f32 %v5361_v57, %v13148_v29  ;;  %v5367_v0 = vor.u32 1006665857, %v5351_v52  ;;  %v5369_v56 = vor.u32 1006665857, %v5353_v7  ;;  %v13154_v62 = vld [vmem:[#allocation61_spill] sm:$0xff]  ;;  %v11638_v52 = vld [vmem:[#allocation2 + $0x78] sm:$0xff] }
0x1de2   :  { %v5392_v35 = vadd.f32 %v5360_v59, %v13149_v24  ;;  %v5394_v19 = vadd.f32 %v5362_v30, %v13150_v45  ;;  %v5352_v58 = vand.u32 2147483648, %v5277_v13  ;;  %v5354_v32 = vand.u32 2147483648, %v5320_v12  ;;  %v11635_v51 = vld [vmem:[#allocation2 + $0x68] sm:$0xff] }
0x1de3   :  { %v5407_v8 = vsub.f32 %v5391_v27, %v11613_v48  ;;  %v5409_v23 = vsub.f32 %v5393_v6, %v11616_v34  ;;  %v5399_v14 = vadd.f32 %v5367_v0, %v13151_v39  ;;  %v5401_v33 = vadd.f32 %v5369_v56, %v13152_v20 }
0x1de4   :  { %v5408_v44 = vsub.f32 %v5392_v35, %v11621_v53  ;;  %v5410_v9 = vsub.f32 %v5394_v19, %v11624_v47  ;;  %v5368_v40 = vor.u32 1006665857, %v5352_v58  ;;  %v5370_v4 = vor.u32 1006665857, %v5354_v32 }
0x1de5   :  { %v6273_v50 = vclamps-f32 %v5407_v8, 0.03137255  ;;  %v6275_v54 = vclamps-f32 %v5409_v23, 0.03137255  ;;  %v5415_v28 = vsub.f32 %v5399_v14, %v11627_v3  ;;  %v5417_v37 = vsub.f32 %v5401_v33, %v11630_v5 }
0x1de6   :  { %v6274_v31 = vclamps-f32 %v5408_v44, 0.03137255  ;;  %v6276_v55 = vclamps-f32 %v5410_v9, 0.03137255  ;;  %v5400_v26 = vadd.f32 %v5368_v40, %v13153_v49  ;;  %v5402_v60 = vadd.f32 %v5370_v4, %v13154_v62  ;;  %v8384_v49 = vld [vmem:[#allocation7 + $0x48] sm:$0xff]  }
0x1de7   :  { %v6281_v25 = vclamps-f32 %v5415_v28, 0.03137255  ;;  %v6283_v61 = vclamps-f32 %v5417_v37, 0.03137255  ;;  %v5455_v13 = vadd.f32 %v11613_v48, %v6273_v50  ;;  %v5457_v12 = vadd.f32 %v11616_v34, %v6275_v54  ;;  %v8386_v62 = vld [vmem:[#allocation7 + $0x8] sm:$0xff]  }
0x1de8   :  { %v5416_v57 = vsub.f32 %v5400_v26, %v11635_v51  ;;  %v5418_v7 = vsub.f32 %v5402_v60, %v11638_v52  ;;  %v5456_v59 = vadd.f32 %v11621_v53, %v6274_v31  ;;  %v5458_v30 = vadd.f32 %v11624_v47, %v6276_v55  ;;  %v8382_v31 = vld [vmem:[#allocation7] sm:$0xff]   ;;  %v8385_v26 = vld [vmem:[#allocation7 + $0xc8] sm:$0xff]  }
0x1de9   :  { %v5463_v10 = vadd.f32 %v11627_v3, %v6281_v25  ;;  %v5465_v27 = vadd.f32 %v11630_v5, %v6283_v61  ;;  %v5471_v58 = vmax.f32 %v5455_v13, 0.0  ;;  %v5473_v32 = vmax.f32 %v5457_v12, 0.0  ;;  %v8383_v55 = vld [vmem:[#allocation7 + $0x80] sm:$0xff]   ;;  %v8387_v60 = vld [vmem:[#allocation7 + $0x88] sm:$0xff]   ;;  %v8388_v25 = vld [vmem:[#allocation7 + $0x50] sm:$0xff]  }
0x1dea   :  { %v6282_v29 = vclamps-f32 %v5416_v57, 0.03137255  ;;  %v6284_v6 = vclamps-f32 %v5418_v7, 0.03137255  ;;  %v5472_v35 = vmax.f32 %v5456_v59, 0.0  ;;  %v5474_v19 = vmax.f32 %v5458_v30, 0.0 }
0x1deb   :  { %v5479_v0 = vmax.f32 %v5463_v10, 0.0  ;;  %v5481_v56 = vmax.f32 %v5465_v27, 0.0  ;;  %v11661_v40 = vmin.f32 %v5471_v58, 1.0  ;;  %v11663_v4 = vmin.f32 %v5473_v32, 1.0  ;;  %v8389_v61 = vld [vmem:[#allocation7 + $0xd0] sm:$0xff]   ;;  %v8392_v59 = vld [vmem:[#allocation7 + $0x58] sm:$0xff]  }
0x1dec   :  { %v5464_v24 = vadd.f32 %v11635_v51, %v6282_v29  ;;  %v5466_v45 = vadd.f32 %v11638_v52, %v6284_v6  ;;  %v11653_v20 = vmin.f32 %v5472_v35, 1.0  ;;  %v11657_v44 = vmin.f32 %v5474_v19, 1.0  ;;  %v8390_v57 = vld [vmem:[#allocation7 + $0x10] sm:$0xff]   ;;  %v8393_v30 = vld [vmem:[#allocation7 + $0xd8] sm:$0xff]   ;;  %v8396_v10 = vld [vmem:[#allocation7 + $0x60] sm:$0xff]  }
0x1ded   :  { %v11649_v39 = vmin.f32 %v5479_v0, 1.0  ;;  %v11651_v14 = vmin.f32 %v5481_v56, 1.0  ;;  %v8391_v7 = vld [vmem:[#allocation7 + $0x90] sm:$0xff]   ;;  %v8394_v13 = vld [vmem:[#allocation7 + $0x18] sm:$0xff]   ;;  %v8397_v27 = vld [vmem:[#allocation7 + $0xe0] sm:$0xff]  }
0x1dee   :  { %v5480_v8 = vmax.f32 %v5464_v24, 0.0  ;;  %v5482_v23 = vmax.f32 %v5466_v45, 0.0  ;;  %v8395_v12 = vld [vmem:[#allocation7 + $0x98] sm:$0xff]   ;;  %v8398_v29 = vld [vmem:[#allocation7 + $0x20] sm:$0xff]   ;;  %v8400_v0 = vld [vmem:[#allocation7 + $0x68] sm:$0xff]  }
0x1def   :  { %v5503_v28 = vpack.c.bf16 %v11649_v39, %v11661_v40  ;;  %v5505_v37 = vpack.c.bf16 %v11651_v14, %v11663_v4  ;;  %v8399_v6 = vld [vmem:[#allocation7 + $0xa0] sm:$0xff]   ;;  %v8401_v56 = vld [vmem:[#allocation7 + $0xe8] sm:$0xff]   ;;  %v8404_v45 = vld [vmem:[#allocation7 + $0x70] sm:$0xff]  }
0x1df0   :  { %v11655_v33 = vmin.f32 %v5480_v8, 1.0  ;;  %v11659_v9 = vmin.f32 %v5482_v23, 1.0  ;;  %v8402_v24 = vld [vmem:[#allocation7 + $0x28] sm:$0xff]   ;;  %v8405_v19 = vld [vmem:[#allocation7 + $0xf0] sm:$0xff]   ;;  %v8408_v8 = vld [vmem:[#allocation7 + $0x78] sm:$0xff]  }
0x1df1   :  { %v8403_v35 = vld [vmem:[#allocation7 + $0xa8] sm:$0xff]   ;;  %v8406_v58 = vld [vmem:[#allocation7 + $0x30] sm:$0xff]   ;;  %v8409_v23 = vld [vmem:[#allocation7 + $0xf8] sm:$0xff]  }
0x1df2   :  { %v5504_v50 = vpack.c.bf16 %v11655_v33, %v11653_v20  ;;  %v5506_v54 = vpack.c.bf16 %v11659_v9, %v11657_v44  ;;  %v8407_v32 = vld [vmem:[#allocation7 + $0xb0] sm:$0xff]  }
0x1df4   :  { %5621 = vmatprep.mubr.bf16.mxu0 %v5504_v50  ;;  %5662 = vmatprep.mubr.bf16.mxu1 %v5506_v54  ;;  %v8410_v50 = vld [vmem:[#allocation7 + $0x38] sm:$0xff]  }
0x1df5   :  { %5622 = vmatmul.mubr.bf16.vlgmr.msra.gmra.mrb[148].mxu0 %v5503_v28  ;;  %5663 = vmatmul.mubr.bf16.vlgmr.msra.gmra.mrb[148].mxu1 %v5505_v37  ;;  %v8411_v54 = vld [vmem:[#allocation7 + $0xb8] sm:$0xff]   ;;  %v8412_v28 = vld [vmem:[#allocation7 + $0x140] sm:$0xff]  }
0x1df6   :  { %7830 = vmatpush3.bf16.xpose.msra.mxu0 %v8382_v31  ;;  %7848 = vmatpush3.bf16.xpose.msra.mxu1 %v8383_v55  ;;  %v8413_v37 = vld [vmem:[#allocation7 + $0x1c0] sm:$0xff]  }
0x1df7   :  { %7831 = vmatprep.subr.bf16.mxu0 %v8384_v49  ;;  %7849 = vmatprep.subr.bf16.mxu1 %v8385_v26 }
0x1dfe   :  { %7832 = vmatpush3.bf16.xpose.msra.mxu0 %v8386_v62  ;;  %7850 = vmatpush3.bf16.xpose.msra.mxu1 %v8387_v60 }
0x1dff   :  { %7833 = vmatprep.subr.bf16.mxu0 %v8388_v25  ;;  %7851 = vmatprep.subr.bf16.mxu1 %v8389_v61 }
0x1e06   :  { %7834 = vmatpush3.bf16.xpose.msra.mxu0 %v8390_v57  ;;  %7852 = vmatpush3.bf16.xpose.msra.mxu1 %v8391_v7 }
0x1e07   :  { %7835 = vmatprep.subr.bf16.mxu0 %v8392_v59  ;;  %7853 = vmatprep.subr.bf16.mxu1 %v8393_v30 }
0x1e0e   :  { %7836 = vmatpush3.bf16.xpose.msra.mxu0 %v8394_v13  ;;  %7854 = vmatpush3.bf16.xpose.msra.mxu1 %v8395_v12 }
0x1e0f   :  { %7837 = vmatprep.subr.bf16.mxu0 %v8396_v10  ;;  %7855 = vmatprep.subr.bf16.mxu1 %v8397_v27 }
0x1e16   :  { %7838 = vmatpush3.bf16.xpose.msra.mxu0 %v8398_v29  ;;  %7856 = vmatpush3.bf16.xpose.msra.mxu1 %v8399_v6 }
0x1e17   :  { %7839 = vmatprep.subr.bf16.mxu0 %v8400_v0  ;;  %7857 = vmatprep.subr.bf16.mxu1 %v8401_v56 }
0x1e1e   :  { %7840 = vmatpush3.bf16.xpose.msra.mxu0 %v8402_v24  ;;  %7858 = vmatpush3.bf16.xpose.msra.mxu1 %v8403_v35 }
0x1e1f   :  { %7841 = vmatprep.subr.bf16.mxu0 %v8404_v45  ;;  %7859 = vmatprep.subr.bf16.mxu1 %v8405_v19 }
0x1e26   :  { %7842 = vmatpush3.bf16.xpose.msra.mxu0 %v8406_v58  ;;  %7860 = vmatpush3.bf16.xpose.msra.mxu1 %v8407_v32 }
0x1e27   :  { %7843 = vmatprep.subr.bf16.mxu0 %v8408_v8  ;;  %7861 = vmatprep.subr.bf16.mxu1 %v8409_v23 }
0x1e2e   :  { %7844 = vmatpush3.bf16.xpose.msra.mxu0 %v8410_v50  ;;  %7862 = vmatpush3.bf16.xpose.msra.mxu1 %v8411_v54 }
0x1e2f   :  { %7865 = vmatprep.subr.bf16.mxu0 %v8412_v28  ;;  %7883 = vmatprep.subr.bf16.mxu1 %v8413_v37 }
0x1e88   :  { %v7757_v31 = vpop.f32.mrb[144].mxu0  ;;  %v7779_v55 = vpop.f32.mrb[144].mxu1 }
0x1e89   :  { %v7758_v49 = vpop.f32.mrb[145].mxu0  ;;  %v7780_v26 = vpop.f32.mrb[145].mxu1 }
0x1e8a   :  { %v7759_v62 = vadd.f32 %v7758_v49, %v7757_v31  ;;  %v7781_v60 = vadd.f32 %v7780_v26, %v7779_v55  ;;  %v7760_v25 = vpop.f32.mrb[146].mxu0  ;;  %v7782_v61 = vpop.f32.mrb[146].mxu1 }
0x1e8b   :  { %v7761_v57 = vpop.f32.mrb[147].mxu0  ;;  %v7783_v7 = vpop.f32.mrb[147].mxu1 }
0x1e8c   :  { %v5542_v59 = vadd.f32 %v11439_v46, %v7759_v62  ;;  %v7762_v30 = vadd.f32 %v7761_v57, %v7760_v25  ;;  %v7784_v13 = vadd.f32 %v7783_v7, %v7782_v61 }
0x1e8e   :  { %v5583_v12 = vadd.f32 %v7781_v60, %v5542_v59  ;;  %v5545_v10 = vadd.f32 %v11439_v46, %v7762_v30 }
0x1e90   :  { %v5586_v27 = vadd.f32 %v7784_v13, %v5545_v10 }
0x1ec8   :  { %v7801_v29 = vpop.f32.mrb[148].mxu0  ;;  %v7823_v6 = vpop.f32.mrb[148].mxu1 }
0x1ec9   :  { %v7802_v0 = vpop.f32.mrb[149].mxu0  ;;  %v7824_v56 = vpop.f32.mrb[149].mxu1 }
0x1eca   :  { %v7803_v24 = vadd.f32 %v7802_v0, %v7801_v29  ;;  %v7825_v35 = vadd.f32 %v7824_v56, %v7823_v6  ;;  %v7804_v45 = vpop.f32.mrb[150].mxu0  ;;  %v7826_v19 = vpop.f32.mrb[150].mxu1  ;;  %v8414_v29 = vld [vmem:[#allocation7 + $0x100] sm:$0xff]   ;;  %v8418_v0 = vld [vmem:[#allocation7 + $0x108] sm:$0xff]  }
0x1ecb   :  { %v7805_v58 = vpop.f32.mrb[151].mxu0  ;;  %v7827_v32 = vpop.f32.mrb[151].mxu1  ;;  %v8415_v6 = vld [vmem:[#allocation7 + $0x180] sm:$0xff]   ;;  %v8419_v56 = vld [vmem:[#allocation7 + $0x188] sm:$0xff]  }
0x1ecc   :  { %v5624_v8 = vadd.f32 %v7803_v24, %v5583_v12  ;;  %v7806_v23 = vadd.f32 %v7805_v58, %v7804_v45  ;;  %v7828_v50 = vadd.f32 %v7827_v32, %v7826_v19  ;;  %v8420_v24 = vld [vmem:[#allocation7 + $0x150] sm:$0xff]   ;;  %v8424_v58 = vld [vmem:[#allocation7 + $0x158] sm:$0xff]  }
0x1ecd   :  { %v8422_v45 = vld [vmem:[#allocation7 + $0x110] sm:$0xff]   ;;  %v8425_v32 = vld [vmem:[#allocation7 + $0x1d8] sm:$0xff]  }
0x1ece   :  { %v5627_v54 = vadd.f32 %v7806_v23, %v5586_v27  ;;  %v5665_v28 = vadd.f32 %v7825_v35, %v5624_v8  ;;  %v8421_v35 = vld [vmem:[#allocation7 + $0x1d0] sm:$0xff]   ;;  %v8426_v8 = vld [vmem:[#allocation7 + $0x118] sm:$0xff]  }
0x1ecf   :  { %v8423_v19 = vld [vmem:[#allocation7 + $0x190] sm:$0xff]   ;;  %v8427_v23 = vld [vmem:[#allocation7 + $0x198] sm:$0xff]  }
0x1ed0   :  { %5671 = vmax.xlane.f32.xlu0 %v5665_v28  ;;  %v5668_v37 = vadd.f32 %v7828_v50, %v5627_v54  ;;  %v8428_v50 = vld [vmem:[#allocation7 + $0x160] sm:$0xff]  }
0x1ed1   :  { %v8429_v54 = vld [vmem:[#allocation7 + $0x1e0] sm:$0xff]  }
0x1ed2   :  { %5673 = vmax.xlane.f32.xlu1 %v5668_v37 }
0x1f5d   :  { %v5672_v46 = vpop.xlane.xlu0 %5671 }
0x1f5e   :  { %v5675_v31 = vsub.f32 %v5665_v28, %v5672_v46  ;;  %v8430_v28 = vld [vmem:[#allocation7 + $0x120] sm:$0xff]   ;;  %v8432_v46 = vld [vmem:[#allocation7 + $0x168] sm:$0xff]  }
0x1f5f   :  { %v5674_v55 = vpop.xlane.xlu1 %5673 }
0x1f60   :  { %v5677_v49 = vmul.f32 1.442695, %v5675_v31  ;;  %v5676_v26 = vsub.f32 %v5668_v37, %v5674_v55  ;;  %v8431_v37 = vld [vmem:[#allocation7 + $0x1a0] sm:$0xff]   ;;  %v8433_v31 = vld [vmem:[#allocation7 + $0x1e8] sm:$0xff]  }
0x1f61   :  { %v8434_v55 = vld [vmem:[#allocation7 + $0x128] sm:$0xff]  }
0x1f62   :  { %8048 = vpow2.f32 %v5677_v49  ;;  %v5679_v62 = vmul.f32 1.442695, %v5676_v26  ;;  %v8435_v49 = vld [vmem:[#allocation7 + $0x1a8] sm:$0xff]   ;;  %v8436_v26 = vld [vmem:[#allocation7 + $0x170] sm:$0xff]  }
0x1f64   :  { %8050 = vpow2.f32 %v5679_v62  ;;  %v8437_v62 = vld [vmem:[#allocation7 + $0x1f0] sm:$0xff]  }
0x1f6c   :  { %v8049_v60 = vpop.eup %8048 }
0x1f6d   :  { %5681 = vadd.xlane.f32.xlu0 %v8049_v60 }
0x1f6e   :  { %v8051_v25 = vpop.eup %8050 }
0x1f6f   :  { %5683 = vadd.xlane.f32.xlu1 %v8051_v25 }
0x1ffa   :  { %v5682_v61 = vpop.xlane.xlu0 %5681 }
0x1ffb   :  { %8052 = vrcp.f32 %v5682_v61  ;;  %v8440_v61 = vld [vmem:[#allocation7 + $0x178] sm:$0xff]  }
0x1ffc   :  { %v5684_v57 = vpop.xlane.xlu1 %5683 }
0x1ffd   :  { %8054 = vrcp.f32 %v5684_v57  ;;  %v8441_v57 = vld [vmem:[#allocation7 + $0x1f8] sm:$0xff]  }
0x2005   :  { %v8053_v7 = vpop.eup %8052 }
0x2006   :  { %v5686_v59 = vmul.f32 %v8053_v7, %v8049_v60  ;;  %v8438_v60 = vld [vmem:[#allocation7 + $0x130] sm:$0xff]   ;;  %v8442_v7 = vld [vmem:[#allocation7 + $0x138] sm:$0xff]  }
0x2007   :  { %v8055_v30 = vpop.eup %8054 }
0x2008   :  { %v5688_v13 = vmul.f32 %v8055_v30, %v8051_v25  ;;  %v5689_v12 = vsub.f32 %v5686_v59, %v13110_v36  ;;  %v8416_v36 = vld [vmem:[#allocation7 + $0x148] sm:$0xff]   ;;  %v8439_v25 = vld [vmem:[#allocation7 + $0x1b0] sm:$0xff]   ;;  %v8443_v59 = vld [vmem:[#allocation7 + $0x1b8] sm:$0xff]  }
0x200a   :  { %v5690_v10 = vsub.f32 %v5688_v13, %v13111_v1  ;;  %v8417_v1 = vld [vmem:[#allocation7 + $0x1c8] sm:$0xff]  }
0x200c   :  { %v11677_v27 = vpack.c.bf16 %v5690_v10, %v5689_v12 }
0x200e   :  { %7845 = vmatprep.mubr.bf16.mxu0 %v11677_v27  ;;  %7863 = vmatprep.mubr.bf16.mxu1 %v11677_v27 }
0x200f   :  { %7846 = vmatmul.mubr.bf16.vlgmr.msra.gmra.mrb[152].mxu0 %v11677_v27  ;;  %7864 = vmatmul.mubr.bf16.vlgmr.msra.gmra.mrb[152].mxu1 %v11677_v27 }
0x2010   :  { %7866 = vmatpush3.bf16.xpose.msra.mxu0 %v8414_v29  ;;  %7884 = vmatpush3.bf16.xpose.msra.mxu1 %v8415_v6 }
0x2011   :  { %7881 = vmatprep.mubr.bf16.mxu0 %v11677_v27  ;;  %7899 = vmatprep.mubr.bf16.mxu1 %v11677_v27 }
0x2012   :  { %7867 = vmatprep.subr.bf16.mxu0 %v8416_v36  ;;  %7885 = vmatprep.subr.bf16.mxu1 %v8417_v1 }
0x2018   :  { %7868 = vmatpush3.bf16.xpose.msra.mxu0 %v8418_v0  ;;  %7886 = vmatpush3.bf16.xpose.msra.mxu1 %v8419_v56 }
0x2019   :  { %7869 = vmatprep.subr.bf16.mxu0 %v8420_v24  ;;  %7887 = vmatprep.subr.bf16.mxu1 %v8421_v35 }
0x2020   :  { %7870 = vmatpush3.bf16.xpose.msra.mxu0 %v8422_v45  ;;  %7888 = vmatpush3.bf16.xpose.msra.mxu1 %v8423_v19 }
0x2021   :  { %7871 = vmatprep.subr.bf16.mxu0 %v8424_v58  ;;  %7889 = vmatprep.subr.bf16.mxu1 %v8425_v32 }
0x2028   :  { %7872 = vmatpush3.bf16.xpose.msra.mxu0 %v8426_v8  ;;  %7890 = vmatpush3.bf16.xpose.msra.mxu1 %v8427_v23 }
0x2029   :  { %7873 = vmatprep.subr.bf16.mxu0 %v8428_v50  ;;  %7891 = vmatprep.subr.bf16.mxu1 %v8429_v54 }
0x2030   :  { %7874 = vmatpush3.bf16.xpose.msra.mxu0 %v8430_v28  ;;  %7892 = vmatpush3.bf16.xpose.msra.mxu1 %v8431_v37 }
0x2031   :  { %7875 = vmatprep.subr.bf16.mxu0 %v8432_v46  ;;  %7893 = vmatprep.subr.bf16.mxu1 %v8433_v31 }
0x2038   :  { %7876 = vmatpush3.bf16.xpose.msra.mxu0 %v8434_v55  ;;  %7894 = vmatpush3.bf16.xpose.msra.mxu1 %v8435_v49  ;;  %v13155_v49 = vld [vmem:[#allocation50_spill] sm:$0xff] }
0x2039   :  { %7877 = vmatprep.subr.bf16.mxu0 %v8436_v26  ;;  %7895 = vmatprep.subr.bf16.mxu1 %v8437_v62 }
0x2040   :  { %7878 = vmatpush3.bf16.xpose.msra.mxu0 %v8438_v60  ;;  %7896 = vmatpush3.bf16.xpose.msra.mxu1 %v8439_v25 }
0x2041   :  { %7879 = vmatprep.subr.bf16.mxu0 %v8440_v61  ;;  %7897 = vmatprep.subr.bf16.mxu1 %v8441_v57  ;;  %v13156_v61 = vld [vmem:[#allocation13_spill] sm:$0xff]  ;;  %v13157_v57 = vld [vmem:[#allocation35_spill] sm:$0xff] }
0x2048   :  { %7880 = vmatpush3.bf16.xpose.msra.mxu0 %v8442_v7  ;;  %7898 = vmatpush3.bf16.xpose.msra.mxu1 %v8443_v59 }
0x204f   :  { %7882 = vmatmul.mubr.bf16.vlgmr.msra.gmra.mrb[156].mxu0 %v11677_v27  ;;  %7900 = vmatmul.mubr.bf16.vlgmr.msra.gmra.mrb[156].mxu1 %v11677_v27 }
0x20e2   :  { %v5726_v30 = vpop.f32.mrb[152].mxu0  ;;  %v5769_v13 = vpop.f32.mrb[152].mxu1 }
0x20e3   :  { %v5880_v12 = vand.u32 2147483648, %v5726_v30  ;;  %v5882_v10 = vand.u32 2147483648, %v5769_v13  ;;  %v5728_v29 = vpop.f32.mrb[153].mxu0  ;;  %v5771_v6 = vpop.f32.mrb[153].mxu1 }
0x20e4   :  { %v5881_v36 = vand.u32 2147483648, %v5728_v29  ;;  %v5883_v1 = vand.u32 2147483648, %v5771_v6  ;;  %v5730_v0 = vpop.f32.mrb[154].mxu0  ;;  %v5773_v56 = vpop.f32.mrb[154].mxu1 }
0x20e5   :  { %v5896_v24 = vor.u32 1006665857, %v5880_v12  ;;  %v5898_v35 = vor.u32 1006665857, %v5882_v10  ;;  %v5888_v45 = vand.u32 2147483648, %v5730_v0  ;;  %v5890_v19 = vand.u32 2147483648, %v5773_v56 }
0x20e6   :  { %v5897_v58 = vor.u32 1006665857, %v5881_v36  ;;  %v5899_v32 = vor.u32 1006665857, %v5883_v1  ;;  %v5732_v8 = vpop.f32.mrb[155].mxu0  ;;  %v5775_v23 = vpop.f32.mrb[155].mxu1 }
0x20e7   :  { %v5928_v27 = vadd.f32 %v5896_v24, %v11565_v16  ;;  %v5930_v50 = vadd.f32 %v5898_v35, %v11567_v15  ;;  %v5904_v54 = vor.u32 1006665857, %v5888_v45  ;;  %v5906_v28 = vor.u32 1006665857, %v5890_v19 }
0x20e8   :  { %v5929_v37 = vadd.f32 %v5897_v58, %v11557_v41  ;;  %v5931_v46 = vadd.f32 %v5899_v32, %v11561_v38  ;;  %v5889_v31 = vand.u32 2147483648, %v5732_v8  ;;  %v5891_v55 = vand.u32 2147483648, %v5775_v23 }
0x20e9   :  { %v5944_v26 = vsub.f32 %v5928_v27, %v13155_v49  ;;  %v5946_v62 = vsub.f32 %v5930_v50, %v11520_v21  ;;  %v5936_v60 = vadd.f32 %v5904_v54, %v11553_v17  ;;  %v5938_v25 = vadd.f32 %v5906_v28, %v11555_v18 }
0x20ea   :  { %v5945_v16 = vsub.f32 %v5929_v37, %v13156_v61  ;;  %v5947_v15 = vsub.f32 %v5931_v46, %v13157_v57  ;;  %v5905_v7 = vor.u32 1006665857, %v5889_v31  ;;  %v5907_v59 = vor.u32 1006665857, %v5891_v55 }
0x20eb   :  { %v6285_v30 = vclamps-f32 %v5944_v26, 0.03137255  ;;  %v6287_v41 = vclamps-f32 %v5946_v62, 0.03137255  ;;  %v5952_v38 = vsub.f32 %v5936_v60, %v11531_v22  ;;  %v5954_v13 = vsub.f32 %v5938_v25, %v11534_v42 }
0x20ec   :  { %v6286_v12 = vclamps-f32 %v5945_v16, 0.03137255  ;;  %v6288_v10 = vclamps-f32 %v5947_v15, 0.03137255  ;;  %v5937_v29 = vadd.f32 %v5905_v7, %v11559_v43  ;;  %v5939_v17 = vadd.f32 %v5907_v59, %v11563_v2 }
0x20ed   :  { %v5992_v18 = vadd.f32 %v13155_v49, %v6285_v30  ;;  %v5994_v6 = vadd.f32 %v11520_v21, %v6287_v41  ;;  %v6293_v36 = vclamps-f32 %v5952_v38, 0.03137255  ;;  %v6295_v1 = vclamps-f32 %v5954_v13, 0.03137255 }
0x20ee   :  { %v5993_v0 = vadd.f32 %v13156_v61, %v6286_v12  ;;  %v5995_v56 = vadd.f32 %v13157_v57, %v6288_v10  ;;  %v5953_v24 = vsub.f32 %v5937_v29, %v11539_v11  ;;  %v5955_v35 = vsub.f32 %v5939_v17, %v11542_v63 }
0x20ef   :  { %v6008_v45 = vmax.f32 %v5992_v18, 0.0  ;;  %v6010_v19 = vmax.f32 %v5994_v6, 0.0  ;;  %v6000_v43 = vadd.f32 %v11531_v22, %v6293_v36  ;;  %v6002_v2 = vadd.f32 %v11534_v42, %v6295_v1 }
0x20f0   :  { %v6009_v58 = vmax.f32 %v5993_v0, 0.0  ;;  %v6011_v32 = vmax.f32 %v5995_v56, 0.0  ;;  %v6294_v8 = vclamps-f32 %v5953_v24, 0.03137255  ;;  %v6296_v21 = vclamps-f32 %v5955_v35, 0.03137255 }
0x20f1   :  { %v6024_v23 = vmin.f32 %v6008_v45, 1.0  ;;  %v6026_v27 = vmin.f32 %v6010_v19, 1.0  ;;  %v6016_v50 = vmax.f32 %v6000_v43, 0.0  ;;  %v6018_v54 = vmax.f32 %v6002_v2, 0.0 }
0x20f2   :  { %v6025_v28 = vmin.f32 %v6009_v58, 1.0  ;;  %v6027_v37 = vmin.f32 %v6011_v32, 1.0  ;;  %v6001_v46 = vadd.f32 %v11539_v11, %v6294_v8  ;;  %v6003_v31 = vadd.f32 %v11542_v63, %v6296_v21 }
0x20f3   :  { %6040 = vst [vmem:[#allocation8] sm:$0xff] %v6024_v23  ;;  %6042 = vst [vmem:[#allocation8 + $0x10] sm:$0xff] %v6026_v27  ;;  %v6032_v55 = vmin.f32 %v6016_v50, 1.0  ;;  %v6034_v22 = vmin.f32 %v6018_v54, 1.0 }
0x20f4   :  { %6041 = vst [vmem:[#allocation8 + $0x8] sm:$0xff] %v6025_v28  ;;  %6043 = vst [vmem:[#allocation8 + $0x18] sm:$0xff] %v6027_v37  ;;  %v6017_v42 = vmax.f32 %v6001_v46, 0.0  ;;  %v6019_v49 = vmax.f32 %v6003_v31, 0.0 }
0x20f5   :  { %6048 = vst [vmem:[#allocation8 + $0x40] sm:$0xff] %v6032_v55  ;;  %6050 = vst [vmem:[#allocation8 + $0x50] sm:$0xff] %v6034_v22 }
0x20f6   :  { %v6033_v26 = vmin.f32 %v6017_v42, 1.0  ;;  %v6035_v62 = vmin.f32 %v6019_v49, 1.0 }
0x20f8   :  { %6049 = vst [vmem:[#allocation8 + $0x48] sm:$0xff] %v6033_v26  ;;  %6051 = vst [vmem:[#allocation8 + $0x58] sm:$0xff] %v6035_v62 }
0x2122   :  { %v5812_v60 = vpop.f32.mrb[156].mxu0  ;;  %v5855_v25 = vpop.f32.mrb[156].mxu1 }
0x2123   :  { %v5884_v61 = vand.u32 2147483648, %v5812_v60  ;;  %v5886_v11 = vand.u32 2147483648, %v5855_v25  ;;  %v5814_v16 = vpop.f32.mrb[157].mxu0  ;;  %v5857_v63 = vpop.f32.mrb[157].mxu1 }
0x2124   :  { %v5885_v57 = vand.u32 2147483648, %v5814_v16  ;;  %v5887_v15 = vand.u32 2147483648, %v5857_v63  ;;  %v5816_v7 = vpop.f32.mrb[158].mxu0  ;;  %v5859_v59 = vpop.f32.mrb[158].mxu1 }
0x2125   :  { %v5900_v30 = vor.u32 1006665857, %v5884_v61  ;;  %v5902_v41 = vor.u32 1006665857, %v5886_v11  ;;  %v5892_v38 = vand.u32 2147483648, %v5816_v7  ;;  %v5894_v13 = vand.u32 2147483648, %v5859_v59 }
0x2126   :  { %v5901_v12 = vor.u32 1006665857, %v5885_v57  ;;  %v5903_v10 = vor.u32 1006665857, %v5887_v15  ;;  %v5818_v29 = vpop.f32.mrb[159].mxu0  ;;  %v5861_v17 = vpop.f32.mrb[159].mxu1 }
0x2127   :  { %v5932_v18 = vadd.f32 %v5900_v30, %v11661_v40  ;;  %v5934_v6 = vadd.f32 %v5902_v41, %v11663_v4  ;;  %v5908_v36 = vor.u32 1006665857, %v5892_v38  ;;  %v5910_v1 = vor.u32 1006665857, %v5894_v13 }
0x2128   :  { %v5933_v0 = vadd.f32 %v5901_v12, %v11653_v20  ;;  %v5935_v56 = vadd.f32 %v5903_v10, %v11657_v44  ;;  %v5893_v24 = vand.u32 2147483648, %v5818_v29  ;;  %v5895_v35 = vand.u32 2147483648, %v5861_v17 }
0x2129   :  { %v5948_v45 = vsub.f32 %v5932_v18, %v11613_v48  ;;  %v5950_v19 = vsub.f32 %v5934_v6, %v11616_v34  ;;  %v5940_v43 = vadd.f32 %v5908_v36, %v11649_v39  ;;  %v5942_v2 = vadd.f32 %v5910_v1, %v11651_v14 }
0x212a   :  { %v5949_v40 = vsub.f32 %v5933_v0, %v11621_v53  ;;  %v5951_v4 = vsub.f32 %v5935_v56, %v11624_v47  ;;  %v5909_v58 = vor.u32 1006665857, %v5893_v24  ;;  %v5911_v32 = vor.u32 1006665857, %v5895_v35 }
0x212b   :  { %v6289_v8 = vclamps-f32 %v5948_v45, 0.03137255  ;;  %v6291_v20 = vclamps-f32 %v5950_v19, 0.03137255  ;;  %v5956_v44 = vsub.f32 %v5940_v43, %v11627_v3  ;;  %v5958_v21 = vsub.f32 %v5942_v2, %v11630_v5 }
0x212c   :  { %v6290_v23 = vclamps-f32 %v5949_v40, 0.03137255  ;;  %v6292_v27 = vclamps-f32 %v5951_v4, 0.03137255  ;;  %v5941_v50 = vadd.f32 %v5909_v58, %v11655_v33  ;;  %v5943_v39 = vadd.f32 %v5911_v32, %v11659_v9 }
0x212d   :  { %v5996_v14 = vadd.f32 %v11613_v48, %v6289_v8  ;;  %v5998_v54 = vadd.f32 %v11616_v34, %v6291_v20  ;;  %v6297_v28 = vclamps-f32 %v5956_v44, 0.03137255  ;;  %v6299_v37 = vclamps-f32 %v5958_v21, 0.03137255 }
0x212e   :  { %v5997_v46 = vadd.f32 %v11621_v53, %v6290_v23  ;;  %v5999_v31 = vadd.f32 %v11624_v47, %v6292_v27  ;;  %v5957_v55 = vsub.f32 %v5941_v50, %v11635_v51  ;;  %v5959_v22 = vsub.f32 %v5943_v39, %v11638_v52 }
0x212f   :  { %v6012_v42 = vmax.f32 %v5996_v14, 0.0  ;;  %v6014_v49 = vmax.f32 %v5998_v54, 0.0  ;;  %v6004_v33 = vadd.f32 %v11627_v3, %v6297_v28  ;;  %v6006_v9 = vadd.f32 %v11630_v5, %v6299_v37 }
0x2130   :  { %v6013_v26 = vmax.f32 %v5997_v46, 0.0  ;;  %v6015_v48 = vmax.f32 %v5999_v31, 0.0  ;;  %v6298_v62 = vclamps-f32 %v5957_v55, 0.03137255  ;;  %v6300_v34 = vclamps-f32 %v5959_v22, 0.03137255 }
0x2131   :  { %v6028_v60 = vmin.f32 %v6012_v42, 1.0  ;;  %v6030_v25 = vmin.f32 %v6014_v49, 1.0  ;;  %v6020_v61 = vmax.f32 %v6004_v33, 0.0  ;;  %v6022_v53 = vmax.f32 %v6006_v9, 0.0 }
0x2132   :  { %v6029_v11 = vmin.f32 %v6013_v26, 1.0  ;;  %v6031_v47 = vmin.f32 %v6015_v48, 1.0  ;;  %v6005_v16 = vadd.f32 %v11635_v51, %v6298_v62  ;;  %v6007_v63 = vadd.f32 %v11638_v52, %v6300_v34 }
0x2133   :  { %6044 = vst [vmem:[#allocation8 + $0x20] sm:$0xff] %v6028_v60  ;;  %6046 = vst [vmem:[#allocation8 + $0x30] sm:$0xff] %v6030_v25  ;;  %v6036_v57 = vmin.f32 %v6020_v61, 1.0  ;;  %v6038_v3 = vmin.f32 %v6022_v53, 1.0 }
0x2134   :  { %6045 = vst [vmem:[#allocation8 + $0x28] sm:$0xff] %v6029_v11  ;;  %6047 = vst [vmem:[#allocation8 + $0x38] sm:$0xff] %v6031_v47  ;;  %v6021_v5 = vmax.f32 %v6005_v16, 0.0  ;;  %v6023_v15 = vmax.f32 %v6007_v63, 0.0 }
0x2135   :  { %6052 = vst [vmem:[#allocation8 + $0x60] sm:$0xff] %v6036_v57  ;;  %6054 = vst [vmem:[#allocation8 + $0x70] sm:$0xff] %v6038_v3 }
0x2136   :  { %v6037_v7 = vmin.f32 %v6021_v5, 1.0  ;;  %v6039_v59 = vmin.f32 %v6023_v15, 1.0 }
0x2138   :  { %6053 = vst [vmem:[#allocation8 + $0x68] sm:$0xff] %v6037_v7  ;;  %6055 = vst [vmem:[#allocation8 + $0x78] sm:$0xff] %v6039_v59 }
0x2139   :  { %8521 = shalt.err (!%p8518_p0)
}
0x213a   :  { %s8522_s23 = scalar_lea.hbm %s11755_s5, 2048 }
0x213b   :  { %p8523_p1 = scmp.ne.s32.totalorder %s11755_s5, %s8522_s23  ;;  %p8526_p2 = scmp.lt.u32.totalorder %s8522_s23, %s11755_s5 }
0x213d   :  { %p8528_p3 = pnand %p8526_p2, %p8523_p1 }
0x213f   :  { %8531 = shalt.err (!%p8528_p3)
}
0x2140   :  { %6067 = dma.vmem_to_hbm [thread:$0]  %s6062_s18, 2048, %s11755_s5, [#allocation4], %s8540_s30, %s8540_s30, %s8541_s6  }
0x2141   :  { %8536 = dma.done.wait [#allocation4], 2048  }
0x2142   :  { %8537 = vsyncadd [#allocation4], 4294965248 }
0x2143   :  { %6071 = vsyncpa [#allocation3], 1 }
0x2144   :  { %6072 = vsyncpa [#allocation6], 1 }
0x2145   :  { %6073 = vsyncpa [#allocation4], 1 }

</bundles_post_ra>
